<compile_context>
chip_gen: v7x
topology: tpu7x:2x2x1
jax: 0.10.0
libtpu: 0.0.40
codegen_flags: <defaults>
</compile_context>

<pallas_src>
import functools
import math

import jax
import jax.numpy as jnp
from jax.experimental import pallas as pl
from jax.experimental.pallas import tpu as pltpu

PARAMS = {
    'p': {'num_blocks': [3, 4, 6, 3], 'channels': [32, 64, 128, 256]},
    'n': {'num_blocks': [3, 4, 6, 3], 'channels': [64, 128, 256, 512]},
    'm': {'num_blocks': [3, 4, 6, 3], 'channels': [96, 192, 384, 768]},
    't': {'num_blocks': [3, 4, 6, 3], 'channels': [128, 256, 512, 1024]},
    's': {'num_blocks': [3, 4, 13, 3], 'channels': [128, 256, 512, 1024]},
    'l': {'num_blocks': [3, 4, 23, 3], 'channels': [128, 256, 512, 1024]},
    'h': {'num_blocks': [3, 8, 23, 3], 'channels': [128, 256, 512, 1024]},
    'g': {'num_blocks': [3, 8, 36, 3], 'channels': [128, 256, 512, 1024]},
}

_GROUPS = 32  # ResNeXt cardinality (C=32 in BottleNeck)


def _round_up(v, m):
    return ((v + m - 1) // m) * m


# ----------------------------------------------------------------------------
# In-kernel GELU (exact erf via Abramowitz-Stegun 7.1.26; the exp goes to the
# EUP, the divide is routed through the hardware reciprocal).
# ----------------------------------------------------------------------------
def _gelu(x):
    y = x * 0.7071067811865476
    ay = jnp.abs(y)
    t = pl.reciprocal(1.0 + 0.3275911 * ay, approx=True)
    poly = t * (0.254829592 + t * (-0.284496736 + t * (1.421413741
                + t * (-1.453152027 + t * 1.061405429))))
    e = 1.0 - poly * jnp.exp(-ay * ay)
    erf = jnp.where(y < 0, -e, e)
    return 0.5 * x * (1.0 + erf)


# ----------------------------------------------------------------------------
# Fused (batched matmul + bias + GELU [+ residual + GELU]) Pallas kernel.
#   x: (B, M, K) bf16, w: (B, K, N) bf16 (BN scale pre-folded),
#   bias: (B, 1, N) f32, residual/out: (M, B*N).
# ----------------------------------------------------------------------------
def _fused_mm_kernel(*refs, nk, apply_act, has_res):
    if has_res:
        x_ref, w_ref, b_ref, r_ref, o_ref, acc_ref = refs
    else:
        x_ref, w_ref, b_ref, o_ref, acc_ref = refs
        r_ref = None

    k = pl.program_id(3)

    @pl.when(k == 0)
    def _():
        acc_ref[...] = jnp.zeros_like(acc_ref)

    acc_ref[...] += jnp.dot(x_ref[0], w_ref[0],
                            preferred_element_type=jnp.float32)

    @pl.when(k == nk - 1)
    def _():
        z = acc_ref[...] + b_ref[0]
        if apply_act:
            z = _gelu(z)
        if has_res:
            z = _gelu(z + r_ref[...].astype(jnp.float32))
        o_ref[...] = z.astype(o_ref.dtype)


def fused_matmul(x, w, bias, residual=None, apply_act=True):
    """Returns epilogue(x @ w + bias) as (M, B*N) bf16."""
    B, M, K = x.shape
    Bw, Kw, Np = w.shape
    assert Bw == B and Np % 128 == 0

    # K tiling: one full-depth step for moderate K (all layers of this net),
    # 512-wide tiles for very deep reductions.
    if max(K, Kw) <= 2048:
        Kp = _round_up(max(K, Kw), 128)
        TK, nk = Kp, 1
    else:
        Kp = _round_up(max(K, Kw), 512)
        TK, nk = 512, Kp // 512

    TM = min(256, _round_up(M, 16))
    Mp = _round_up(M, TM)
    TN = 256 if Np % 256 == 0 else 128
    nbn = Np // TN

    xb = x.astype(jnp.bfloat16)
    if (Mp, Kp) != (M, K):
        xb = jnp.pad(xb, ((0, 0), (0, Mp - M), (0, Kp - K)))
    if Kp != Kw:
        w = jnp.pad(w, ((0, 0), (0, Kp - Kw), (0, 0)))

    in_specs = [
        pl.BlockSpec((1, TM, TK), lambda b, i, j, k: (b, i, k)),
        pl.BlockSpec((1, TK, TN), lambda b, i, j, k: (b, k, j)),
        pl.BlockSpec((1, 1, TN), lambda b, i, j, k: (b, 0, j)),
    ]
    args = [xb, w, bias]

    has_res = residual is not None
    if has_res:
        assert residual.shape == (M, B * Np)
        r = residual.astype(jnp.bfloat16)
        if Mp != M:
            r = jnp.pad(r, ((0, Mp - M), (0, 0)))
        in_specs.append(
            pl.BlockSpec((TM, TN), lambda b, i, j, k: (i, b * nbn + j)))
        args.append(r)

    kernel = functools.partial(_fused_mm_kernel, nk=nk,
                               apply_act=apply_act, has_res=has_res)

    out = pl.pallas_call(
        kernel,
        out_shape=jax.ShapeDtypeStruct((Mp, B * Np), jnp.bfloat16),
        grid_spec=pltpu.PrefetchScalarGridSpec(
            num_scalar_prefetch=0,
            grid=(B, Mp // TM, nbn, nk),
            in_specs=in_specs,
            out_specs=pl.BlockSpec((TM, TN), lambda b, i, j, k: (i, b * nbn + j)),
            scratch_shapes=[pltpu.VMEM((TM, TN), jnp.float32)],
        ),
        compiler_params=pltpu.CompilerParams(
            dimension_semantics=("parallel", "parallel", "parallel", "arbitrary")),
    )(*args)
    return out[:M] if Mp != M else out


# ----------------------------------------------------------------------------
# MaxPool2d(kernel=3, stride=2, padding=0, ceil_mode=True): Pallas max-reduction
# over the 9 stacked windows, tiled over M with a real (parallel) grid.
# ----------------------------------------------------------------------------
def _maxpool_kernel(x_ref, o_ref):
    o_ref[...] = jnp.max(x_ref[...], axis=0)


def maxpool_ceil(x, k=3, stride=2):
    n, h, w, c = x.shape
    ho = -(-(h - k) // stride) + 1
    wo = -(-(w - k) // stride) + 1
    if (ho - 1) * stride >= h:  # PyTorch ceil_mode rule
        ho -= 1
    if (wo - 1) * stride >= w:
        wo -= 1
    hp = (ho - 1) * stride + k
    wp = (wo - 1) * stride + k
    neg = float('-inf')
    xp = jnp.pad(x, ((0, 0), (0, hp - h), (0, wp - w), (0, 0)),
                 constant_values=neg)
    wins = [xp[:, i:i + stride * ho:stride, j:j + stride * wo:stride, :]
            for i in range(k) for j in range(k)]
    m = n * ho * wo
    stacked = jnp.stack(wins, axis=0).reshape(k * k, m, c)

    tm = min(512, _round_up(m, 16))
    mp = _round_up(m, tm)
    if mp != m:
        stacked = jnp.pad(stacked, ((0, 0), (0, mp - m), (0, 0)),
                          constant_values=neg)

    out = pl.pallas_call(
        _maxpool_kernel,
        out_shape=jax.ShapeDtypeStruct((mp, c), x.dtype),
        grid_spec=pltpu.PrefetchScalarGridSpec(
            num_scalar_prefetch=0,
            grid=(mp // tm,),
            in_specs=[pl.BlockSpec((k * k, tm, c), lambda i: (0, i, 0))],
            out_specs=pl.BlockSpec((tm, c), lambda i: (i, 0)),
        ),
        compiler_params=pltpu.CompilerParams(dimension_semantics=("parallel",)),
    )(stacked)
    return out[:m].reshape(n, ho, wo, c)


# ----------------------------------------------------------------------------
# Conv wrappers (all heavy math inside fused_matmul).
# ----------------------------------------------------------------------------
def _im2col(x, kh, kw, stride, pad):
    n, h, w, c = x.shape
    ho = (h + 2 * pad - kh) // stride + 1
    wo = (w + 2 * pad - kw) // stride + 1
    xp = jnp.pad(x, ((0, 0), (pad, pad), (pad, pad), (0, 0)))
    cols = [xp[:, i:i + stride * ho:stride, j:j + stride * wo:stride, :]
            for i in range(kh) for j in range(kw)]
    patches = jnp.stack(cols, axis=3)           # (N, Ho, Wo, kh*kw, C)
    return patches.reshape(n * ho * wo, kh * kw * c), (n, ho, wo)


def conv_im2col(x, layer, k, stride, pad, apply_act=True):
    cols, (n, ho, wo) = _im2col(x, k, k, stride, pad)
    out = fused_matmul(cols[None], layer['w'], layer['b'], apply_act=apply_act)
    return out.reshape(n, ho, wo, -1)


def conv1x1(x, layer, stride=1, apply_act=True, residual=None):
    if stride > 1:
        x = x[:, ::stride, ::stride, :]
    n, h, w, c = x.shape
    cols = x.reshape(1, n * h * w, c)
    out = fused_matmul(cols, layer['w'], layer['b'],
                       residual=residual, apply_act=apply_act)
    return out.reshape(n, h, w, -1)


def grouped_conv3x3(x, layer):
    """groups=32, 3x3, stride 1, pad 1 — batched over independent 128-ch slices."""
    n, h, w, ch = x.shape
    sg = ch // 128
    xp = jnp.pad(x, ((0, 0), (1, 1), (1, 1), (0, 0)))
    cols = [xp[:, i:i + h, j:j + w, :] for i in range(3) for j in range(3)]
    patches = jnp.stack(cols, axis=3)                         # (n, h, w, 9, ch)
    m = n * h * w
    xb = jnp.transpose(patches.reshape(m, 9, sg, 128),
                       (2, 0, 1, 3)).reshape(sg, m, 9 * 128)  # (sg, M, 1152)
    out = fused_matmul(xb, layer['w'], layer['b'], apply_act=True)   # (M, ch)
    return out.reshape(n, h, w, ch)


# ----------------------------------------------------------------------------
# Parameter initialization (deterministic, synthetic).  BN scale is folded into
# the weights; weights are bf16 and pre-shaped for the kernels.
# ----------------------------------------------------------------------------
def init_params(variant='s', focus_ch=3, seed=0):
    assert focus_ch == 3, "focus path (Conv) undefined in reference; use Identity"
    cfg = PARAMS[variant]
    key = jax.random.PRNGKey(seed)

    def next_key():
        nonlocal key
        key, sub = jax.random.split(key)
        return sub

    def bn_affine(c):
        eps = 1e-5
        gamma = 1.0 + 0.1 * jax.random.normal(next_key(), (c,), jnp.float32)
        beta = 0.1 * jax.random.normal(next_key(), (c,), jnp.float32)
        mean = 0.1 * jax.random.normal(next_key(), (c,), jnp.float32)
        var = 1.0 + 0.1 * jax.random.uniform(next_key(), (c,), jnp.float32)
        scale = gamma / jnp.sqrt(var + eps)
        shift = beta - mean * scale
        return scale, shift

    def dense_layer(kh, kw, cin, cout, with_bn=True):
        std = math.sqrt(2.0 / (kh * kw * cin))
        wf = jax.random.normal(next_key(), (kh, kw, cin, cout), jnp.float32) * std
        if with_bn:
            scale, shift = bn_affine(cout)
        else:  # reference downsample is a bare Conv2d (no BN)
            scale = jnp.ones((cout,), jnp.float32)
            shift = jnp.zeros((cout,), jnp.float32)
        np_out = _round_up(cout, 128)
        wmat = (wf * scale).reshape(kh * kw * cin, cout)       # fold BN scale
        wmat = jnp.pad(wmat, ((0, 0), (0, np_out - cout))).astype(jnp.bfloat16)
        bias = jnp.pad(shift, (0, np_out - cout)).reshape(1, 1, np_out)
        return {'w': wmat[None], 'b': bias}

    def grouped_layer(ch, groups=_GROUPS):
        ci = ch // groups
        std = math.sqrt(2.0 / (9 * ci))
        wg = jax.random.normal(next_key(), (groups, 3, 3, ci, ci),
                               jnp.float32) * std
        scale, shift = bn_affine(ch)
        sg = ch // 128            # independent 128-in/128-out channel slices
        gps = groups // sg        # groups packed per slice (block-diagonal)
        wr = wg.reshape(sg, gps, 3, 3, ci, ci)
        eye = jnp.eye(gps, dtype=jnp.float32)
        dense = jnp.einsum('sgijab,gh->sijgahb', wr, eye)
        dense = dense.reshape(sg, 3, 3, 128, 128) * scale.reshape(sg, 1, 1, 1, 128)
        wmat = dense.reshape(sg, 9 * 128, 128).astype(jnp.bfloat16)
        bias = shift.reshape(sg, 1, 128)
        return {'w': wmat, 'b': bias}

    params = {'stem': dense_layer(7, 7, focus_ch, 64)}
    in_ch = 64
    stages = []
    for si, (ch, nb) in enumerate(zip(cfg['channels'], cfg['num_blocks'])):
        blocks = []
        for bi in range(nb):
            stride = (1 if si == 0 else 2) if bi == 0 else 1
            need_ds = (bi == 0) and (stride != 1 or in_ch != ch)
            blocks.append({
                'conv1': dense_layer(1, 1, in_ch, ch),
                'conv2': grouped_layer(ch),
                'conv3': dense_layer(1, 1, ch, ch),
                'ds': dense_layer(1, 1, in_ch, ch, with_bn=False) if need_ds else None,
            })
            in_ch = ch
        stages.append(blocks)
    params['stages'] = stages
    return params


# ----------------------------------------------------------------------------
# Forward pass (returns the three FPN feature maps, NCHW f32 like PyTorch).
# ----------------------------------------------------------------------------
def forward(params, x_nchw):
    x = jnp.transpose(x_nchw, (0, 2, 3, 1)).astype(jnp.bfloat16)  # -> NHWC bf16

    # focus: nn.Identity (focus_ch == 3)

    # stem: Conv7x7 s2 p3 -> BN -> GELU -> MaxPool(3, 2, ceil).
    # Stem output carries 128 channels (64 real + 64 exact zeros); downstream
    # weights have matching zero rows, so results are identical to cout=64.
    x = conv_im2col(x, params['stem'], k=7, stride=2, pad=3, apply_act=True)
    x = maxpool_ceil(x, k=3, stride=2)

    fpn = []
    for si, blocks in enumerate(params['stages']):
        for bi, blk in enumerate(blocks):
            stride = 2 if (si > 0 and bi == 0) else 1
            residual = x
            if blk['ds'] is not None:
                residual = conv1x1(x, blk['ds'], stride=stride, apply_act=False)
            out = conv1x1(x, blk['conv1'], stride=stride, apply_act=True)
            out = grouped_conv3x3(out, blk['conv2'])
            n, h, w, _ = out.shape
            # GELU(bn3(conv3(out))) then +residual then GELU — fused in-kernel.
            out = conv1x1(out, blk['conv3'], apply_act=True,
                          residual=residual.reshape(n * h * w, -1))
            x = out
        if si in (0, 1, 2):
            fpn.append(x)

    return [jnp.transpose(f, (0, 3, 1, 2)).astype(jnp.float32) for f in fpn]


if __name__ == "__main__":
    params = init_params(variant='s', focus_ch=3, seed=0)

    key = jax.random.PRNGKey(0)
    x = jax.random.normal(key, (2, 3, 16, 16), jnp.float32)  # NCHW input

    run = jax.jit(forward)
    feats = run(params, x)
    for f in feats:
        jax.block_until_ready(f)

    expected = [(2, 128, 4, 4), (2, 256, 2, 2), (2, 512, 1, 1)]
    assert [tuple(f.shape) for f in feats] == expected, [f.shape for f in feats]
    assert all(bool(jnp.all(jnp.isfinite(f))) for f in feats)
    print("KERNEL_OK")
</pallas_src>

<mosaic_0001>
module attributes {stable_mosaic.version = 11 : i64} {
  func.func @_fused_mm_kernel(%arg0: i32, %arg1: i32, %arg2: i32, %arg3: i32, %arg4: memref<1x128x256xbf16, #tpu.memory_space<vmem>>, %arg5: memref<1x256x128xbf16, #tpu.memory_space<vmem>>, %arg6: memref<1x1x128xf32, #tpu.memory_space<vmem>>, %arg7: memref<128x128xbf16, #tpu.memory_space<vmem>>, %arg8: memref<128x128xf32, #tpu.memory_space<vmem>>) attributes {dimension_semantics = [#tpu.dimension_semantics<parallel>, #tpu.dimension_semantics<parallel>, #tpu.dimension_semantics<parallel>, #tpu.dimension_semantics<arbitrary>], iteration_bounds = array<i64: 1, 1, 1, 1>, scalar_prefetch = 0 : i64, scratch_operands = 1 : i64, tpu.core_type = #tpu.core_type<tc>, window_params = [{transform_indices = @transform_0, window_bounds = array<i64: 1, 128, 256>}, {transform_indices = @transform_1, window_bounds = array<i64: 1, 256, 128>}, {transform_indices = @transform_2, window_bounds = array<i64: 1, 1, 128>}, {transform_indices = @transform_3, window_bounds = array<i64: 128, 128>}]} {
    %c0_i32 = arith.constant 0 : i32
    %0 = arith.cmpi eq, %arg3, %c0_i32 : i32
    %1 = arith.extui %0 : i1 to i32
    %c0_i32_0 = arith.constant 0 : i32
    %2 = arith.cmpi ne, %1, %c0_i32_0 : i32
    scf.if %2 {
      %cst_12 = arith.constant 0.000000e+00 : f32
      %14 = vector.broadcast %cst_12 : f32 to vector<128x128xf32>
      %c0_13 = arith.constant 0 : index
      %c0_14 = arith.constant 0 : index
      %15 = vector.load %arg8[%c0_13, %c0_14] : memref<128x128xf32, #tpu.memory_space<vmem>>, vector<128x128xf32>
      tpu.vector_store %arg8[%c0_13, %c0_14], %14 {strides = array<i32>} : memref<128x128xf32, #tpu.memory_space<vmem>>, vector<128x128xf32>,
    } else {
    }
    %c0 = arith.constant 0 : index
    %c0_1 = arith.constant 0 : index
    %3 = vector.load %arg8[%c0, %c0_1] : memref<128x128xf32, #tpu.memory_space<vmem>>, vector<128x128xf32>
    %c0_2 = arith.constant 0 : index
    %c0_3 = arith.constant 0 : index
    %c0_4 = arith.constant 0 : index
    %4 = vector.load %arg4[%c0_2, %c0_3, %c0_4] : memref<1x128x256xbf16, #tpu.memory_space<vmem>>, vector<1x128x256xbf16>
    %5 = vector.shape_cast %4 : vector<1x128x256xbf16> to vector<128x256xbf16>
    %c0_5 = arith.constant 0 : index
    %c0_6 = arith.constant 0 : index
    %c0_7 = arith.constant 0 : index
    %6 = vector.load %arg5[%c0_5, %c0_6, %c0_7] : memref<1x256x128xbf16, #tpu.memory_space<vmem>>, vector<1x256x128xbf16>
    %7 = vector.shape_cast %6 : vector<1x256x128xbf16> to vector<256x128xbf16>
    %cst = arith.constant dense<0.000000e+00> : vector<128x128xf32>
    %8 = tpu.matmul %5, %7, %cst {dimension_numbers = #tpu.dot_dimension_numbers<[1], [0], [0], [1], [0, 0, 1, 1], [], []>} : vector<128x256xbf16>, vector<256x128xbf16>, vector<128x128xf32> -> vector<128x128xf32>
    %9 = arith.addf %3, %8 : vector<128x128xf32>
    %c0_8 = arith.constant 0 : index
    %c0_9 = arith.constant 0 : index
    %10 = vector.load %arg8[%c0_8, %c0_9] : memref<128x128xf32, #tpu.memory_space<vmem>>, vector<128x128xf32>
    tpu.vector_store %arg8[%c0_8, %c0_9], %9 {strides = array<i32>} : memref<128x128xf32, #tpu.memory_space<vmem>>, vector<128x128xf32>,
    %c0_i32_10 = arith.constant 0 : i32
    %11 = arith.cmpi eq, %arg3, %c0_i32_10 : i32
    %12 = arith.extui %11 : i1 to i32
    %c0_i32_11 = arith.constant 0 : i32
    %13 = arith.cmpi ne, %12, %c0_i32_11 : i32
    scf.if %13 {
      %c0_12 = arith.constant 0 : index
      %c0_13 = arith.constant 0 : index
      %14 = vector.load %arg8[%c0_12, %c0_13] : memref<128x128xf32, #tpu.memory_space<vmem>>, vector<128x128xf32>
      %c0_14 = arith.constant 0 : index
      %c0_15 = arith.constant 0 : index
      %c0_16 = arith.constant 0 : index
      %15 = vector.load %arg6[%c0_14, %c0_15, %c0_16] : memref<1x1x128xf32, #tpu.memory_space<vmem>>, vector<1x1x128xf32>
      %16 = vector.shape_cast %15 : vector<1x1x128xf32> to vector<1x128xf32>
      %17 = vector.broadcast %16 : vector<1x128xf32> to vector<128x128xf32>
      %18 = arith.addf %14, %17 : vector<128x128xf32>
      %cst_17 = arith.constant 0.707106769 : f32
      %19 = vector.broadcast %cst_17 : f32 to vector<128x128xf32>
      %20 = arith.mulf %18, %19 : vector<128x128xf32>
      %21 = math.absf %20 : vector<128x128xf32>
      %cst_18 = arith.constant 0.327591091 : f32
      %22 = vector.broadcast %cst_18 : f32 to vector<128x128xf32>
      %23 = arith.mulf %22, %21 : vector<128x128xf32>
      %cst_19 = arith.constant 1.000000e+00 : f32
      %24 = vector.broadcast %cst_19 : f32 to vector<128x128xf32>
      %25 = arith.addf %24, %23 : vector<128x128xf32>
      %26 = tpu.reciprocal %25 {approx = true} : vector<128x128xf32> -> vector<128x128xf32>
      %cst_20 = arith.constant 1.06140542 : f32
      %27 = vector.broadcast %cst_20 : f32 to vector<128x128xf32>
      %28 = arith.mulf %26, %27 : vector<128x128xf32>
      %cst_21 = arith.constant -1.45315206 : f32
      %29 = vector.broadcast %cst_21 : f32 to vector<128x128xf32>
      %30 = arith.addf %29, %28 : vector<128x128xf32>
      %31 = arith.mulf %26, %30 : vector<128x128xf32>
      %cst_22 = arith.constant 1.42141378 : f32
      %32 = vector.broadcast %cst_22 : f32 to vector<128x128xf32>
      %33 = arith.addf %32, %31 : vector<128x128xf32>
      %34 = arith.mulf %26, %33 : vector<128x128xf32>
      %cst_23 = arith.constant -0.284496725 : f32
      %35 = vector.broadcast %cst_23 : f32 to vector<128x128xf32>
      %36 = arith.addf %35, %34 : vector<128x128xf32>
      %37 = arith.mulf %26, %36 : vector<128x128xf32>
      %cst_24 = arith.constant 0.254829586 : f32
      %38 = vector.broadcast %cst_24 : f32 to vector<128x128xf32>
      %39 = arith.addf %38, %37 : vector<128x128xf32>
      %40 = arith.mulf %26, %39 : vector<128x128xf32>
      %cst_25 = arith.constant 0.000000e+00 : f32
      %41 = vector.broadcast %cst_25 : f32 to vector<128x128xf32>
      %42 = arith.subf %41, %21 : vector<128x128xf32>
      %43 = arith.mulf %42, %21 : vector<128x128xf32>
      %44 = math.exp %43 : vector<128x128xf32>
      %45 = arith.mulf %40, %44 : vector<128x128xf32>
      %cst_26 = arith.constant 1.000000e+00 : f32
      %46 = vector.broadcast %cst_26 : f32 to vector<128x128xf32>
      %47 = arith.subf %46, %45 : vector<128x128xf32>
      %cst_27 = arith.constant 0.000000e+00 : f32
      %48 = vector.broadcast %cst_27 : f32 to vector<128x128xf32>
      %49 = arith.cmpf olt, %20, %48 : vector<128x128xf32>
      %cst_28 = arith.constant 0.000000e+00 : f32
      %50 = vector.broadcast %cst_28 : f32 to vector<128x128xf32>
      %51 = arith.subf %50, %47 : vector<128x128xf32>
      %52 = arith.select %49, %51, %47 : vector<128x128xi1>, vector<128x128xf32>
      %cst_29 = arith.constant 5.000000e-01 : f32
      %53 = vector.broadcast %cst_29 : f32 to vector<128x128xf32>
      %54 = arith.mulf %53, %18 : vector<128x128xf32>
      %cst_30 = arith.constant 1.000000e+00 : f32
      %55 = vector.broadcast %cst_30 : f32 to vector<128x128xf32>
      %56 = arith.addf %55, %52 : vector<128x128xf32>
      %57 = arith.mulf %54, %56 : vector<128x128xf32>
      %58 = arith.truncf %57 : vector<128x128xf32> to vector<128x128xbf16>
      %c0_31 = arith.constant 0 : index
      %c0_32 = arith.constant 0 : index
      %59 = vector.load %arg7[%c0_31, %c0_32] : memref<128x128xbf16, #tpu.memory_space<vmem>>, vector<128x128xbf16>
      tpu.vector_store %arg7[%c0_31, %c0_32], %58 {strides = array<i32>} : memref<128x128xbf16, #tpu.memory_space<vmem>>, vector<128x128xbf16>,
    } else {
    }
    return
  }
  func.func @transform_0(%arg0: i32, %arg1: i32, %arg2: i32, %arg3: i32) -> (i32, i32, i32) {
    %c0_i32 = arith.constant 0 : i32
    return %arg0, %arg1, %arg3 : i32, i32, i32
  }
  func.func @transform_1(%arg0: i32, %arg1: i32, %arg2: i32, %arg3: i32) -> (i32, i32, i32) {
    %c0_i32 = arith.constant 0 : i32
    return %arg0, %arg3, %arg2 : i32, i32, i32
  }
  func.func @transform_2(%arg0: i32, %arg1: i32, %arg2: i32, %arg3: i32) -> (i32, i32, i32) {
    %c0_i32 = arith.constant 0 : i32
    %c0_i32_0 = arith.constant 0 : i32
    return %arg0, %c0_i32, %arg2 : i32, i32, i32
  }
  func.func @transform_3(%arg0: i32, %arg1: i32, %arg2: i32, %arg3: i32) -> (i32, i32) {
    %c1_i32 = arith.constant 1 : i32
    %0 = arith.muli %arg0, %c1_i32 : i32
    %1 = arith.addi %0, %arg2 : i32
    %c0_i32 = arith.constant 0 : i32
    return %arg1, %1 : i32, i32
  }
}

module attributes {stable_mosaic.version = 11 : i64} {
  func.func @_maxpool_kernel(%arg0: i32, %arg1: memref<9x32x128xbf16, #tpu.memory_space<vmem>>, %arg2: memref<32x128xbf16, #tpu.memory_space<vmem>>) attributes {dimension_semantics = [#tpu.dimension_semantics<parallel>], iteration_bounds = array<i64: 1>, scalar_prefetch = 0 : i64, scratch_operands = 0 : i64, tpu.core_type = #tpu.core_type<tc>, window_params = [{transform_indices = @transform_0, window_bounds = array<i64: 9, 32, 128>}, {transform_indices = @transform_1, window_bounds = array<i64: 32, 128>}]} {
    %c0 = arith.constant 0 : index
    %c0_0 = arith.constant 0 : index
    %c0_1 = arith.constant 0 : index
    %0 = vector.load %arg1[%c0, %c0_0, %c0_1] : memref<9x32x128xbf16, #tpu.memory_space<vmem>>, vector<9x32x128xbf16>
    %cst = arith.constant dense<0xFF80> : vector<32x128xbf16>
    %1 = vector.multi_reduction <maximumf>, %0, %cst [0] : vector<9x32x128xbf16> to vector<32x128xbf16>
    %c0_2 = arith.constant 0 : index
    %c0_3 = arith.constant 0 : index
    %2 = vector.load %arg2[%c0_2, %c0_3] : memref<32x128xbf16, #tpu.memory_space<vmem>>, vector<32x128xbf16>
    tpu.vector_store %arg2[%c0_2, %c0_3], %1 {strides = array<i32>} : memref<32x128xbf16, #tpu.memory_space<vmem>>, vector<32x128xbf16>,
    return
  }
  func.func @transform_0(%arg0: i32) -> (i32, i32, i32) {
    %c0_i32 = arith.constant 0 : i32
    %c0_i32_0 = arith.constant 0 : i32
    %c0_i32_1 = arith.constant 0 : i32
    return %c0_i32, %arg0, %c0_i32_0 : i32, i32, i32
  }
  func.func @transform_1(%arg0: i32) -> (i32, i32) {
    %c0_i32 = arith.constant 0 : i32
    %c0_i32_0 = arith.constant 0 : i32
    return %arg0, %c0_i32 : i32, i32
  }
}

module attributes {stable_mosaic.version = 11 : i64} {
  func.func @_fused_mm_kernel(%arg0: i32, %arg1: i32, %arg2: i32, %arg3: i32, %arg4: memref<1x32x128xbf16, #tpu.memory_space<vmem>>, %arg5: memref<1x128x128xbf16, #tpu.memory_space<vmem>>, %arg6: memref<1x1x128xf32, #tpu.memory_space<vmem>>, %arg7: memref<32x128xbf16, #tpu.memory_space<vmem>>, %arg8: memref<32x128xf32, #tpu.memory_space<vmem>>) attributes {dimension_semantics = [#tpu.dimension_semantics<parallel>, #tpu.dimension_semantics<parallel>, #tpu.dimension_semantics<parallel>, #tpu.dimension_semantics<arbitrary>], iteration_bounds = array<i64: 1, 1, 1, 1>, scalar_prefetch = 0 : i64, scratch_operands = 1 : i64, tpu.core_type = #tpu.core_type<tc>, window_params = [{transform_indices = @transform_0, window_bounds = array<i64: 1, 32, 128>}, {transform_indices = @transform_1, window_bounds = array<i64: 1, 128, 128>}, {transform_indices = @transform_2, window_bounds = array<i64: 1, 1, 128>}, {transform_indices = @transform_3, window_bounds = array<i64: 32, 128>}]} {
    %c0_i32 = arith.constant 0 : i32
    %0 = arith.cmpi eq, %arg3, %c0_i32 : i32
    %1 = arith.extui %0 : i1 to i32
    %c0_i32_0 = arith.constant 0 : i32
    %2 = arith.cmpi ne, %1, %c0_i32_0 : i32
    scf.if %2 {
      %cst_12 = arith.constant 0.000000e+00 : f32
      %14 = vector.broadcast %cst_12 : f32 to vector<32x128xf32>
      %c0_13 = arith.constant 0 : index
      %c0_14 = arith.constant 0 : index
      %15 = vector.load %arg8[%c0_13, %c0_14] : memref<32x128xf32, #tpu.memory_space<vmem>>, vector<32x128xf32>
      tpu.vector_store %arg8[%c0_13, %c0_14], %14 {strides = array<i32>} : memref<32x128xf32, #tpu.memory_space<vmem>>, vector<32x128xf32>,
    } else {
    }
    %c0 = arith.constant 0 : index
    %c0_1 = arith.constant 0 : index
    %3 = vector.load %arg8[%c0, %c0_1] : memref<32x128xf32, #tpu.memory_space<vmem>>, vector<32x128xf32>
    %c0_2 = arith.constant 0 : index
    %c0_3 = arith.constant 0 : index
    %c0_4 = arith.constant 0 : index
    %4 = vector.load %arg4[%c0_2, %c0_3, %c0_4] : memref<1x32x128xbf16, #tpu.memory_space<vmem>>, vector<1x32x128xbf16>
    %5 = vector.shape_cast %4 : vector<1x32x128xbf16> to vector<32x128xbf16>
    %c0_5 = arith.constant 0 : index
    %c0_6 = arith.constant 0 : index
    %c0_7 = arith.constant 0 : index
    %6 = vector.load %arg5[%c0_5, %c0_6, %c0_7] : memref<1x128x128xbf16, #tpu.memory_space<vmem>>, vector<1x128x128xbf16>
    %7 = vector.shape_cast %6 : vector<1x128x128xbf16> to vector<128x128xbf16>
    %cst = arith.constant dense<0.000000e+00> : vector<32x128xf32>
    %8 = tpu.matmul %5, %7, %cst {dimension_numbers = #tpu.dot_dimension_numbers<[1], [0], [0], [1], [0, 0, 1, 1], [], []>} : vector<32x128xbf16>, vector<128x128xbf16>, vector<32x128xf32> -> vector<32x128xf32>
    %9 = arith.addf %3, %8 : vector<32x128xf32>
    %c0_8 = arith.constant 0 : index
    %c0_9 = arith.constant 0 : index
    %10 = vector.load %arg8[%c0_8, %c0_9] : memref<32x128xf32, #tpu.memory_space<vmem>>, vector<32x128xf32>
    tpu.vector_store %arg8[%c0_8, %c0_9], %9 {strides = array<i32>} : memref<32x128xf32, #tpu.memory_space<vmem>>, vector<32x128xf32>,
    %c0_i32_10 = arith.constant 0 : i32
    %11 = arith.cmpi eq, %arg3, %c0_i32_10 : i32
    %12 = arith.extui %11 : i1 to i32
    %c0_i32_11 = arith.constant 0 : i32
    %13 = arith.cmpi ne, %12, %c0_i32_11 : i32
    scf.if %13 {
      %c0_12 = arith.constant 0 : index
      %c0_13 = arith.constant 0 : index
      %14 = vector.load %arg8[%c0_12, %c0_13] : memref<32x128xf32, #tpu.memory_space<vmem>>, vector<32x128xf32>
      %c0_14 = arith.constant 0 : index
      %c0_15 = arith.constant 0 : index
      %c0_16 = arith.constant 0 : index
      %15 = vector.load %arg6[%c0_14, %c0_15, %c0_16] : memref<1x1x128xf32, #tpu.memory_space<vmem>>, vector<1x1x128xf32>
      %16 = vector.shape_cast %15 : vector<1x1x128xf32> to vector<1x128xf32>
      %17 = vector.broadcast %16 : vector<1x128xf32> to vector<32x128xf32>
      %18 = arith.addf %14, %17 : vector<32x128xf32>
      %cst_17 = arith.constant 0.707106769 : f32
      %19 = vector.broadcast %cst_17 : f32 to vector<32x128xf32>
      %20 = arith.mulf %18, %19 : vector<32x128xf32>
      %21 = math.absf %20 : vector<32x128xf32>
      %cst_18 = arith.constant 0.327591091 : f32
      %22 = vector.broadcast %cst_18 : f32 to vector<32x128xf32>
      %23 = arith.mulf %22, %21 : vector<32x128xf32>
      %cst_19 = arith.constant 1.000000e+00 : f32
      %24 = vector.broadcast %cst_19 : f32 to vector<32x128xf32>
      %25 = arith.addf %24, %23 : vector<32x128xf32>
      %26 = tpu.reciprocal %25 {approx = true} : vector<32x128xf32> -> vector<32x128xf32>
      %cst_20 = arith.constant 1.06140542 : f32
      %27 = vector.broadcast %cst_20 : f32 to vector<32x128xf32>
      %28 = arith.mulf %26, %27 : vector<32x128xf32>
      %cst_21 = arith.constant -1.45315206 : f32
      %29 = vector.broadcast %cst_21 : f32 to vector<32x128xf32>
      %30 = arith.addf %29, %28 : vector<32x128xf32>
      %31 = arith.mulf %26, %30 : vector<32x128xf32>
      %cst_22 = arith.constant 1.42141378 : f32
      %32 = vector.broadcast %cst_22 : f32 to vector<32x128xf32>
      %33 = arith.addf %32, %31 : vector<32x128xf32>
      %34 = arith.mulf %26, %33 : vector<32x128xf32>
      %cst_23 = arith.constant -0.284496725 : f32
      %35 = vector.broadcast %cst_23 : f32 to vector<32x128xf32>
      %36 = arith.addf %35, %34 : vector<32x128xf32>
      %37 = arith.mulf %26, %36 : vector<32x128xf32>
      %cst_24 = arith.constant 0.254829586 : f32
      %38 = vector.broadcast %cst_24 : f32 to vector<32x128xf32>
      %39 = arith.addf %38, %37 : vector<32x128xf32>
      %40 = arith.mulf %26, %39 : vector<32x128xf32>
      %cst_25 = arith.constant 0.000000e+00 : f32
      %41 = vector.broadcast %cst_25 : f32 to vector<32x128xf32>
      %42 = arith.subf %41, %21 : vector<32x128xf32>
      %43 = arith.mulf %42, %21 : vector<32x128xf32>
      %44 = math.exp %43 : vector<32x128xf32>
      %45 = arith.mulf %40, %44 : vector<32x128xf32>
      %cst_26 = arith.constant 1.000000e+00 : f32
      %46 = vector.broadcast %cst_26 : f32 to vector<32x128xf32>
      %47 = arith.subf %46, %45 : vector<32x128xf32>
      %cst_27 = arith.constant 0.000000e+00 : f32
      %48 = vector.broadcast %cst_27 : f32 to vector<32x128xf32>
      %49 = arith.cmpf olt, %20, %48 : vector<32x128xf32>
      %cst_28 = arith.constant 0.000000e+00 : f32
      %50 = vector.broadcast %cst_28 : f32 to vector<32x128xf32>
      %51 = arith.subf %50, %47 : vector<32x128xf32>
      %52 = arith.select %49, %51, %47 : vector<32x128xi1>, vector<32x128xf32>
      %cst_29 = arith.constant 5.000000e-01 : f32
      %53 = vector.broadcast %cst_29 : f32 to vector<32x128xf32>
      %54 = arith.mulf %53, %18 : vector<32x128xf32>
      %cst_30 = arith.constant 1.000000e+00 : f32
      %55 = vector.broadcast %cst_30 : f32 to vector<32x128xf32>
      %56 = arith.addf %55, %52 : vector<32x128xf32>
      %57 = arith.mulf %54, %56 : vector<32x128xf32>
      %58 = arith.truncf %57 : vector<32x128xf32> to vector<32x128xbf16>
      %c0_31 = arith.constant 0 : index
      %c0_32 = arith.constant 0 : index
      %59 = vector.load %arg7[%c0_31, %c0_32] : memref<32x128xbf16, #tpu.memory_space<vmem>>, vector<32x128xbf16>
      tpu.vector_store %arg7[%c0_31, %c0_32], %58 {strides = array<i32>} : memref<32x128xbf16, #tpu.memory_space<vmem>>, vector<32x128xbf16>,
    } else {
    }
    return
  }
  func.func @transform_0(%arg0: i32, %arg1: i32, %arg2: i32, %arg3: i32) -> (i32, i32, i32) {
    %c0_i32 = arith.constant 0 : i32
    return %arg0, %arg1, %arg3 : i32, i32, i32
  }
  func.func @transform_1(%arg0: i32, %arg1: i32, %arg2: i32, %arg3: i32) -> (i32, i32, i32) {
    %c0_i32 = arith.constant 0 : i32
    return %arg0, %arg3, %arg2 : i32, i32, i32
  }
  func.func @transform_2(%arg0: i32, %arg1: i32, %arg2: i32, %arg3: i32) -> (i32, i32, i32) {
    %c0_i32 = arith.constant 0 : i32
    %c0_i32_0 = arith.constant 0 : i32
    return %arg0, %c0_i32, %arg2 : i32, i32, i32
  }
  func.func @transform_3(%arg0: i32, %arg1: i32, %arg2: i32, %arg3: i32) -> (i32, i32) {
    %c1_i32 = arith.constant 1 : i32
    %0 = arith.muli %arg0, %c1_i32 : i32
    %1 = arith.addi %0, %arg2 : i32
    %c0_i32 = arith.constant 0 : i32
    return %arg1, %1 : i32, i32
  }
}

module attributes {stable_mosaic.version = 11 : i64} {
  func.func @_fused_mm_kernel(%arg0: i32, %arg1: i32, %arg2: i32, %arg3: i32, %arg4: memref<1x32x1152xbf16, #tpu.memory_space<vmem>>, %arg5: memref<1x1152x128xbf16, #tpu.memory_space<vmem>>, %arg6: memref<1x1x128xf32, #tpu.memory_space<vmem>>, %arg7: memref<32x128xbf16, #tpu.memory_space<vmem>>, %arg8: memref<32x128xf32, #tpu.memory_space<vmem>>) attributes {dimension_semantics = [#tpu.dimension_semantics<parallel>, #tpu.dimension_semantics<parallel>, #tpu.dimension_semantics<parallel>, #tpu.dimension_semantics<arbitrary>], iteration_bounds = array<i64: 1, 1, 1, 1>, scalar_prefetch = 0 : i64, scratch_operands = 1 : i64, tpu.core_type = #tpu.core_type<tc>, window_params = [{transform_indices = @transform_0, window_bounds = array<i64: 1, 32, 1152>}, {transform_indices = @transform_1, window_bounds = array<i64: 1, 1152, 128>}, {transform_indices = @transform_2, window_bounds = array<i64: 1, 1, 128>}, {transform_indices = @transform_3, window_bounds = array<i64: 32, 128>}]} {
    %c0_i32 = arith.constant 0 : i32
    %0 = arith.cmpi eq, %arg3, %c0_i32 : i32
    %1 = arith.extui %0 : i1 to i32
    %c0_i32_0 = arith.constant 0 : i32
    %2 = arith.cmpi ne, %1, %c0_i32_0 : i32
    scf.if %2 {
      %cst_12 = arith.constant 0.000000e+00 : f32
      %14 = vector.broadcast %cst_12 : f32 to vector<32x128xf32>
      %c0_13 = arith.constant 0 : index
      %c0_14 = arith.constant 0 : index
      %15 = vector.load %arg8[%c0_13, %c0_14] : memref<32x128xf32, #tpu.memory_space<vmem>>, vector<32x128xf32>
      tpu.vector_store %arg8[%c0_13, %c0_14], %14 {strides = array<i32>} : memref<32x128xf32, #tpu.memory_space<vmem>>, vector<32x128xf32>,
    } else {
    }
    %c0 = arith.constant 0 : index
    %c0_1 = arith.constant 0 : index
    %3 = vector.load %arg8[%c0, %c0_1] : memref<32x128xf32, #tpu.memory_space<vmem>>, vector<32x128xf32>
    %c0_2 = arith.constant 0 : index
    %c0_3 = arith.constant 0 : index
    %c0_4 = arith.constant 0 : index
    %4 = vector.load %arg4[%c0_2, %c0_3, %c0_4] : memref<1x32x1152xbf16, #tpu.memory_space<vmem>>, vector<1x32x1152xbf16>
    %5 = vector.shape_cast %4 : vector<1x32x1152xbf16> to vector<32x1152xbf16>
    %c0_5 = arith.constant 0 : index
    %c0_6 = arith.constant 0 : index
    %c0_7 = arith.constant 0 : index
    %6 = vector.load %arg5[%c0_5, %c0_6, %c0_7] : memref<1x1152x128xbf16, #tpu.memory_space<vmem>>, vector<1x1152x128xbf16>
    %7 = vector.shape_cast %6 : vector<1x1152x128xbf16> to vector<1152x128xbf16>
    %cst = arith.constant dense<0.000000e+00> : vector<32x128xf32>
    %8 = tpu.matmul %5, %7, %cst {dimension_numbers = #tpu.dot_dimension_numbers<[1], [0], [0], [1], [0, 0, 1, 1], [], []>} : vector<32x1152xbf16>, vector<1152x128xbf16>, vector<32x128xf32> -> vector<32x128xf32>
    %9 = arith.addf %3, %8 : vector<32x128xf32>
    %c0_8 = arith.constant 0 : index
    %c0_9 = arith.constant 0 : index
    %10 = vector.load %arg8[%c0_8, %c0_9] : memref<32x128xf32, #tpu.memory_space<vmem>>, vector<32x128xf32>
    tpu.vector_store %arg8[%c0_8, %c0_9], %9 {strides = array<i32>} : memref<32x128xf32, #tpu.memory_space<vmem>>, vector<32x128xf32>,
    %c0_i32_10 = arith.constant 0 : i32
    %11 = arith.cmpi eq, %arg3, %c0_i32_10 : i32
    %12 = arith.extui %11 : i1 to i32
    %c0_i32_11 = arith.constant 0 : i32
    %13 = arith.cmpi ne, %12, %c0_i32_11 : i32
    scf.if %13 {
      %c0_12 = arith.constant 0 : index
      %c0_13 = arith.constant 0 : index
      %14 = vector.load %arg8[%c0_12, %c0_13] : memref<32x128xf32, #tpu.memory_space<vmem>>, vector<32x128xf32>
      %c0_14 = arith.constant 0 : index
      %c0_15 = arith.constant 0 : index
      %c0_16 = arith.constant 0 : index
      %15 = vector.load %arg6[%c0_14, %c0_15, %c0_16] : memref<1x1x128xf32, #tpu.memory_space<vmem>>, vector<1x1x128xf32>
      %16 = vector.shape_cast %15 : vector<1x1x128xf32> to vector<1x128xf32>
      %17 = vector.broadcast %16 : vector<1x128xf32> to vector<32x128xf32>
      %18 = arith.addf %14, %17 : vector<32x128xf32>
      %cst_17 = arith.constant 0.707106769 : f32
      %19 = vector.broadcast %cst_17 : f32 to vector<32x128xf32>
      %20 = arith.mulf %18, %19 : vector<32x128xf32>
      %21 = math.absf %20 : vector<32x128xf32>
      %cst_18 = arith.constant 0.327591091 : f32
      %22 = vector.broadcast %cst_18 : f32 to vector<32x128xf32>
      %23 = arith.mulf %22, %21 : vector<32x128xf32>
      %cst_19 = arith.constant 1.000000e+00 : f32
      %24 = vector.broadcast %cst_19 : f32 to vector<32x128xf32>
      %25 = arith.addf %24, %23 : vector<32x128xf32>
      %26 = tpu.reciprocal %25 {approx = true} : vector<32x128xf32> -> vector<32x128xf32>
      %cst_20 = arith.constant 1.06140542 : f32
      %27 = vector.broadcast %cst_20 : f32 to vector<32x128xf32>
      %28 = arith.mulf %26, %27 : vector<32x128xf32>
      %cst_21 = arith.constant -1.45315206 : f32
      %29 = vector.broadcast %cst_21 : f32 to vector<32x128xf32>
      %30 = arith.addf %29, %28 : vector<32x128xf32>
      %31 = arith.mulf %26, %30 : vector<32x128xf32>
      %cst_22 = arith.constant 1.42141378 : f32
      %32 = vector.broadcast %cst_22 : f32 to vector<32x128xf32>
      %33 = arith.addf %32, %31 : vector<32x128xf32>
      %34 = arith.mulf %26, %33 : vector<32x128xf32>
      %cst_23 = arith.constant -0.284496725 : f32
      %35 = vector.broadcast %cst_23 : f32 to vector<32x128xf32>
      %36 = arith.addf %35, %34 : vector<32x128xf32>
      %37 = arith.mulf %26, %36 : vector<32x128xf32>
      %cst_24 = arith.constant 0.254829586 : f32
      %38 = vector.broadcast %cst_24 : f32 to vector<32x128xf32>
      %39 = arith.addf %38, %37 : vector<32x128xf32>
      %40 = arith.mulf %26, %39 : vector<32x128xf32>
      %cst_25 = arith.constant 0.000000e+00 : f32
      %41 = vector.broadcast %cst_25 : f32 to vector<32x128xf32>
      %42 = arith.subf %41, %21 : vector<32x128xf32>
      %43 = arith.mulf %42, %21 : vector<32x128xf32>
      %44 = math.exp %43 : vector<32x128xf32>
      %45 = arith.mulf %40, %44 : vector<32x128xf32>
      %cst_26 = arith.constant 1.000000e+00 : f32
      %46 = vector.broadcast %cst_26 : f32 to vector<32x128xf32>
      %47 = arith.subf %46, %45 : vector<32x128xf32>
      %cst_27 = arith.constant 0.000000e+00 : f32
      %48 = vector.broadcast %cst_27 : f32 to vector<32x128xf32>
      %49 = arith.cmpf olt, %20, %48 : vector<32x128xf32>
      %cst_28 = arith.constant 0.000000e+00 : f32
      %50 = vector.broadcast %cst_28 : f32 to vector<32x128xf32>
      %51 = arith.subf %50, %47 : vector<32x128xf32>
      %52 = arith.select %49, %51, %47 : vector<32x128xi1>, vector<32x128xf32>
      %cst_29 = arith.constant 5.000000e-01 : f32
      %53 = vector.broadcast %cst_29 : f32 to vector<32x128xf32>
      %54 = arith.mulf %53, %18 : vector<32x128xf32>
      %cst_30 = arith.constant 1.000000e+00 : f32
      %55 = vector.broadcast %cst_30 : f32 to vector<32x128xf32>
      %56 = arith.addf %55, %52 : vector<32x128xf32>
      %57 = arith.mulf %54, %56 : vector<32x128xf32>
      %58 = arith.truncf %57 : vector<32x128xf32> to vector<32x128xbf16>
      %c0_31 = arith.constant 0 : index
      %c0_32 = arith.constant 0 : index
      %59 = vector.load %arg7[%c0_31, %c0_32] : memref<32x128xbf16, #tpu.memory_space<vmem>>, vector<32x128xbf16>
      tpu.vector_store %arg7[%c0_31, %c0_32], %58 {strides = array<i32>} : memref<32x128xbf16, #tpu.memory_space<vmem>>, vector<32x128xbf16>,
    } else {
    }
    return
  }
  func.func @transform_0(%arg0: i32, %arg1: i32, %arg2: i32, %arg3: i32) -> (i32, i32, i32) {
    %c0_i32 = arith.constant 0 : i32
    return %arg0, %arg1, %arg3 : i32, i32, i32
  }
  func.func @transform_1(%arg0: i32, %arg1: i32, %arg2: i32, %arg3: i32) -> (i32, i32, i32) {
    %c0_i32 = arith.constant 0 : i32
    return %arg0, %arg3, %arg2 : i32, i32, i32
  }
  func.func @transform_2(%arg0: i32, %arg1: i32, %arg2: i32, %arg3: i32) -> (i32, i32, i32) {
    %c0_i32 = arith.constant 0 : i32
    %c0_i32_0 = arith.constant 0 : i32
    return %arg0, %c0_i32, %arg2 : i32, i32, i32
  }
  func.func @transform_3(%arg0: i32, %arg1: i32, %arg2: i32, %arg3: i32) -> (i32, i32) {
    %c1_i32 = arith.constant 1 : i32
    %0 = arith.muli %arg0, %c1_i32 : i32
    %1 = arith.addi %0, %arg2 : i32
    %c0_i32 = arith.constant 0 : i32
    return %arg1, %1 : i32, i32
  }
}

module attributes {stable_mosaic.version = 11 : i64} {
  func.func @_fused_mm_kernel(%arg0: i32, %arg1: i32, %arg2: i32, %arg3: i32, %arg4: memref<1x32x128xbf16, #tpu.memory_space<vmem>>, %arg5: memref<1x128x128xbf16, #tpu.memory_space<vmem>>, %arg6: memref<1x1x128xf32, #tpu.memory_space<vmem>>, %arg7: memref<32x128xbf16, #tpu.memory_space<vmem>>, %arg8: memref<32x128xbf16, #tpu.memory_space<vmem>>, %arg9: memref<32x128xf32, #tpu.memory_space<vmem>>) attributes {dimension_semantics = [#tpu.dimension_semantics<parallel>, #tpu.dimension_semantics<parallel>, #tpu.dimension_semantics<parallel>, #tpu.dimension_semantics<arbitrary>], iteration_bounds = array<i64: 1, 1, 1, 1>, scalar_prefetch = 0 : i64, scratch_operands = 1 : i64, tpu.core_type = #tpu.core_type<tc>, window_params = [{transform_indices = @transform_0, window_bounds = array<i64: 1, 32, 128>}, {transform_indices = @transform_1, window_bounds = array<i64: 1, 128, 128>}, {transform_indices = @transform_2, window_bounds = array<i64: 1, 1, 128>}, {transform_indices = @transform_3, window_bounds = array<i64: 32, 128>}, {transform_indices = @transform_4, window_bounds = array<i64: 32, 128>}]} {
    %c0_i32 = arith.constant 0 : i32
    %0 = arith.cmpi eq, %arg3, %c0_i32 : i32
    %1 = arith.extui %0 : i1 to i32
    %c0_i32_0 = arith.constant 0 : i32
    %2 = arith.cmpi ne, %1, %c0_i32_0 : i32
    scf.if %2 {
      %cst_12 = arith.constant 0.000000e+00 : f32
      %14 = vector.broadcast %cst_12 : f32 to vector<32x128xf32>
      %c0_13 = arith.constant 0 : index
      %c0_14 = arith.constant 0 : index
      %15 = vector.load %arg9[%c0_13, %c0_14] : memref<32x128xf32, #tpu.memory_space<vmem>>, vector<32x128xf32>
      tpu.vector_store %arg9[%c0_13, %c0_14], %14 {strides = array<i32>} : memref<32x128xf32, #tpu.memory_space<vmem>>, vector<32x128xf32>,
    } else {
    }
    %c0 = arith.constant 0 : index
    %c0_1 = arith.constant 0 : index
    %3 = vector.load %arg9[%c0, %c0_1] : memref<32x128xf32, #tpu.memory_space<vmem>>, vector<32x128xf32>
    %c0_2 = arith.constant 0 : index
    %c0_3 = arith.constant 0 : index
    %c0_4 = arith.constant 0 : index
    %4 = vector.load %arg4[%c0_2, %c0_3, %c0_4] : memref<1x32x128xbf16, #tpu.memory_space<vmem>>, vector<1x32x128xbf16>
    %5 = vector.shape_cast %4 : vector<1x32x128xbf16> to vector<32x128xbf16>
    %c0_5 = arith.constant 0 : index
    %c0_6 = arith.constant 0 : index
    %c0_7 = arith.constant 0 : index
    %6 = vector.load %arg5[%c0_5, %c0_6, %c0_7] : memref<1x128x128xbf16, #tpu.memory_space<vmem>>, vector<1x128x128xbf16>
    %7 = vector.shape_cast %6 : vector<1x128x128xbf16> to vector<128x128xbf16>
    %cst = arith.constant dense<0.000000e+00> : vector<32x128xf32>
    %8 = tpu.matmul %5, %7, %cst {dimension_numbers = #tpu.dot_dimension_numbers<[1], [0], [0], [1], [0, 0, 1, 1], [], []>} : vector<32x128xbf16>, vector<128x128xbf16>, vector<32x128xf32> -> vector<32x128xf32>
    %9 = arith.addf %3, %8 : vector<32x128xf32>
    %c0_8 = arith.constant 0 : index
    %c0_9 = arith.constant 0 : index
    %10 = vector.load %arg9[%c0_8, %c0_9] : memref<32x128xf32, #tpu.memory_space<vmem>>, vector<32x128xf32>
    tpu.vector_store %arg9[%c0_8, %c0_9], %9 {strides = array<i32>} : memref<32x128xf32, #tpu.memory_space<vmem>>, vector<32x128xf32>,
    %c0_i32_10 = arith.constant 0 : i32
    %11 = arith.cmpi eq, %arg3, %c0_i32_10 : i32
    %12 = arith.extui %11 : i1 to i32
    %c0_i32_11 = arith.constant 0 : i32
    %13 = arith.cmpi ne, %12, %c0_i32_11 : i32
    scf.if %13 {
      %c0_12 = arith.constant 0 : index
      %c0_13 = arith.constant 0 : index
      %14 = vector.load %arg9[%c0_12, %c0_13] : memref<32x128xf32, #tpu.memory_space<vmem>>, vector<32x128xf32>
      %c0_14 = arith.constant 0 : index
      %c0_15 = arith.constant 0 : index
      %c0_16 = arith.constant 0 : index
      %15 = vector.load %arg6[%c0_14, %c0_15, %c0_16] : memref<1x1x128xf32, #tpu.memory_space<vmem>>, vector<1x1x128xf32>
      %16 = vector.shape_cast %15 : vector<1x1x128xf32> to vector<1x128xf32>
      %17 = vector.broadcast %16 : vector<1x128xf32> to vector<32x128xf32>
      %18 = arith.addf %14, %17 : vector<32x128xf32>
      %cst_17 = arith.constant 0.707106769 : f32
      %19 = vector.broadcast %cst_17 : f32 to vector<32x128xf32>
      %20 = arith.mulf %18, %19 : vector<32x128xf32>
      %21 = math.absf %20 : vector<32x128xf32>
      %cst_18 = arith.constant 0.327591091 : f32
      %22 = vector.broadcast %cst_18 : f32 to vector<32x128xf32>
      %23 = arith.mulf %22, %21 : vector<32x128xf32>
      %cst_19 = arith.constant 1.000000e+00 : f32
      %24 = vector.broadcast %cst_19 : f32 to vector<32x128xf32>
      %25 = arith.addf %24, %23 : vector<32x128xf32>
      %26 = tpu.reciprocal %25 {approx = true} : vector<32x128xf32> -> vector<32x128xf32>
      %cst_20 = arith.constant 1.06140542 : f32
      %27 = vector.broadcast %cst_20 : f32 to vector<32x128xf32>
      %28 = arith.mulf %26, %27 : vector<32x128xf32>
      %cst_21 = arith.constant -1.45315206 : f32
      %29 = vector.broadcast %cst_21 : f32 to vector<32x128xf32>
      %30 = arith.addf %29, %28 : vector<32x128xf32>
      %31 = arith.mulf %26, %30 : vector<32x128xf32>
      %cst_22 = arith.constant 1.42141378 : f32
      %32 = vector.broadcast %cst_22 : f32 to vector<32x128xf32>
      %33 = arith.addf %32, %31 : vector<32x128xf32>
      %34 = arith.mulf %26, %33 : vector<32x128xf32>
      %cst_23 = arith.constant -0.284496725 : f32
      %35 = vector.broadcast %cst_23 : f32 to vector<32x128xf32>
      %36 = arith.addf %35, %34 : vector<32x128xf32>
      %37 = arith.mulf %26, %36 : vector<32x128xf32>
      %cst_24 = arith.constant 0.254829586 : f32
      %38 = vector.broadcast %cst_24 : f32 to vector<32x128xf32>
      %39 = arith.addf %38, %37 : vector<32x128xf32>
      %40 = arith.mulf %26, %39 : vector<32x128xf32>
      %cst_25 = arith.constant 0.000000e+00 : f32
      %41 = vector.broadcast %cst_25 : f32 to vector<32x128xf32>
      %42 = arith.subf %41, %21 : vector<32x128xf32>
      %43 = arith.mulf %42, %21 : vector<32x128xf32>
      %44 = math.exp %43 : vector<32x128xf32>
      %45 = arith.mulf %40, %44 : vector<32x128xf32>
      %cst_26 = arith.constant 1.000000e+00 : f32
      %46 = vector.broadcast %cst_26 : f32 to vector<32x128xf32>
      %47 = arith.subf %46, %45 : vector<32x128xf32>
      %cst_27 = arith.constant 0.000000e+00 : f32
      %48 = vector.broadcast %cst_27 : f32 to vector<32x128xf32>
      %49 = arith.cmpf olt, %20, %48 : vector<32x128xf32>
      %cst_28 = arith.constant 0.000000e+00 : f32
      %50 = vector.broadcast %cst_28 : f32 to vector<32x128xf32>
      %51 = arith.subf %50, %47 : vector<32x128xf32>
      %52 = arith.select %49, %51, %47 : vector<32x128xi1>, vector<32x128xf32>
      %cst_29 = arith.constant 5.000000e-01 : f32
      %53 = vector.broadcast %cst_29 : f32 to vector<32x128xf32>
      %54 = arith.mulf %53, %18 : vector<32x128xf32>
      %cst_30 = arith.constant 1.000000e+00 : f32
      %55 = vector.broadcast %cst_30 : f32 to vector<32x128xf32>
      %56 = arith.addf %55, %52 : vector<32x128xf32>
      %57 = arith.mulf %54, %56 : vector<32x128xf32>
      %c0_31 = arith.constant 0 : index
      %c0_32 = arith.constant 0 : index
      %58 = vector.load %arg7[%c0_31, %c0_32] : memref<32x128xbf16, #tpu.memory_space<vmem>>, vector<32x128xbf16>
      %59 = arith.extf %58 : vector<32x128xbf16> to vector<32x128xf32>
      %60 = arith.addf %57, %59 : vector<32x128xf32>
      %cst_33 = arith.constant 0.707106769 : f32
      %61 = vector.broadcast %cst_33 : f32 to vector<32x128xf32>
      %62 = arith.mulf %60, %61 : vector<32x128xf32>
      %63 = math.absf %62 : vector<32x128xf32>
      %cst_34 = arith.constant 0.327591091 : f32
      %64 = vector.broadcast %cst_34 : f32 to vector<32x128xf32>
      %65 = arith.mulf %64, %63 : vector<32x128xf32>
      %cst_35 = arith.constant 1.000000e+00 : f32
      %66 = vector.broadcast %cst_35 : f32 to vector<32x128xf32>
      %67 = arith.addf %66, %65 : vector<32x128xf32>
      %68 = tpu.reciprocal %67 {approx = true} : vector<32x128xf32> -> vector<32x128xf32>
      %cst_36 = arith.constant 1.06140542 : f32
      %69 = vector.broadcast %cst_36 : f32 to vector<32x128xf32>
      %70 = arith.mulf %68, %69 : vector<32x128xf32>
      %cst_37 = arith.constant -1.45315206 : f32
      %71 = vector.broadcast %cst_37 : f32 to vector<32x128xf32>
      %72 = arith.addf %71, %70 : vector<32x128xf32>
      %73 = arith.mulf %68, %72 : vector<32x128xf32>
      %cst_38 = arith.constant 1.42141378 : f32
      %74 = vector.broadcast %cst_38 : f32 to vector<32x128xf32>
      %75 = arith.addf %74, %73 : vector<32x128xf32>
      %76 = arith.mulf %68, %75 : vector<32x128xf32>
      %cst_39 = arith.constant -0.284496725 : f32
      %77 = vector.broadcast %cst_39 : f32 to vector<32x128xf32>
      %78 = arith.addf %77, %76 : vector<32x128xf32>
      %79 = arith.mulf %68, %78 : vector<32x128xf32>
      %cst_40 = arith.constant 0.254829586 : f32
      %80 = vector.broadcast %cst_40 : f32 to vector<32x128xf32>
      %81 = arith.addf %80, %79 : vector<32x128xf32>
      %82 = arith.mulf %68, %81 : vector<32x128xf32>
      %cst_41 = arith.constant 0.000000e+00 : f32
      %83 = vector.broadcast %cst_41 : f32 to vector<32x128xf32>
      %84 = arith.subf %83, %63 : vector<32x128xf32>
      %85 = arith.mulf %84, %63 : vector<32x128xf32>
      %86 = math.exp %85 : vector<32x128xf32>
      %87 = arith.mulf %82, %86 : vector<32x128xf32>
      %cst_42 = arith.constant 1.000000e+00 : f32
      %88 = vector.broadcast %cst_42 : f32 to vector<32x128xf32>
      %89 = arith.subf %88, %87 : vector<32x128xf32>
      %cst_43 = arith.constant 0.000000e+00 : f32
      %90 = vector.broadcast %cst_43 : f32 to vector<32x128xf32>
      %91 = arith.cmpf olt, %62, %90 : vector<32x128xf32>
      %cst_44 = arith.constant 0.000000e+00 : f32
      %92 = vector.broadcast %cst_44 : f32 to vector<32x128xf32>
      %93 = arith.subf %92, %89 : vector<32x128xf32>
      %94 = arith.select %91, %93, %89 : vector<32x128xi1>, vector<32x128xf32>
      %cst_45 = arith.constant 5.000000e-01 : f32
      %95 = vector.broadcast %cst_45 : f32 to vector<32x128xf32>
      %96 = arith.mulf %95, %60 : vector<32x128xf32>
      %cst_46 = arith.constant 1.000000e+00 : f32
      %97 = vector.broadcast %cst_46 : f32 to vector<32x128xf32>
      %98 = arith.addf %97, %94 : vector<32x128xf32>
      %99 = arith.mulf %96, %98 : vector<32x128xf32>
      %100 = arith.truncf %99 : vector<32x128xf32> to vector<32x128xbf16>
      %c0_47 = arith.constant 0 : index
      %c0_48 = arith.constant 0 : index
      %101 = vector.load %arg8[%c0_47, %c0_48] : memref<32x128xbf16, #tpu.memory_space<vmem>>, vector<32x128xbf16>
      tpu.vector_store %arg8[%c0_47, %c0_48], %100 {strides = array<i32>} : memref<32x128xbf16, #tpu.memory_space<vmem>>, vector<32x128xbf16>,
    } else {
    }
    return
  }
  func.func @transform_0(%arg0: i32, %arg1: i32, %arg2: i32, %arg3: i32) -> (i32, i32, i32) {
    %c0_i32 = arith.constant 0 : i32
    return %arg0, %arg1, %arg3 : i32, i32, i32
  }
  func.func @transform_1(%arg0: i32, %arg1: i32, %arg2: i32, %arg3: i32) -> (i32, i32, i32) {
    %c0_i32 = arith.constant 0 : i32
    return %arg0, %arg3, %arg2 : i32, i32, i32
  }
  func.func @transform_2(%arg0: i32, %arg1: i32, %arg2: i32, %arg3: i32) -> (i32, i32, i32) {
    %c0_i32 = arith.constant 0 : i32
    %c0_i32_0 = arith.constant 0 : i32
    return %arg0, %c0_i32, %arg2 : i32, i32, i32
  }
  func.func @transform_3(%arg0: i32, %arg1: i32, %arg2: i32, %arg3: i32) -> (i32, i32) {
    %c1_i32 = arith.constant 1 : i32
    %0 = arith.muli %arg0, %c1_i32 : i32
    %1 = arith.addi %0, %arg2 : i32
    %c0_i32 = arith.constant 0 : i32
    return %arg1, %1 : i32, i32
  }
  func.func @transform_4(%arg0: i32, %arg1: i32, %arg2: i32, %arg3: i32) -> (i32, i32) {
    %c1_i32 = arith.constant 1 : i32
    %0 = arith.muli %arg0, %c1_i32 : i32
    %1 = arith.addi %0, %arg2 : i32
    %c0_i32 = arith.constant 0 : i32
    return %arg1, %1 : i32, i32
  }
}

module attributes {stable_mosaic.version = 11 : i64} {
  func.func @_fused_mm_kernel(%arg0: i32, %arg1: i32, %arg2: i32, %arg3: i32, %arg4: memref<1x32x128xbf16, #tpu.memory_space<vmem>>, %arg5: memref<1x128x128xbf16, #tpu.memory_space<vmem>>, %arg6: memref<1x1x128xf32, #tpu.memory_space<vmem>>, %arg7: memref<32x128xbf16, #tpu.memory_space<vmem>>, %arg8: memref<32x128xf32, #tpu.memory_space<vmem>>) attributes {dimension_semantics = [#tpu.dimension_semantics<parallel>, #tpu.dimension_semantics<parallel>, #tpu.dimension_semantics<parallel>, #tpu.dimension_semantics<arbitrary>], iteration_bounds = array<i64: 1, 1, 1, 1>, scalar_prefetch = 0 : i64, scratch_operands = 1 : i64, tpu.core_type = #tpu.core_type<tc>, window_params = [{transform_indices = @transform_0, window_bounds = array<i64: 1, 32, 128>}, {transform_indices = @transform_1, window_bounds = array<i64: 1, 128, 128>}, {transform_indices = @transform_2, window_bounds = array<i64: 1, 1, 128>}, {transform_indices = @transform_3, window_bounds = array<i64: 32, 128>}]} {
    %c0_i32 = arith.constant 0 : i32
    %0 = arith.cmpi eq, %arg3, %c0_i32 : i32
    %1 = arith.extui %0 : i1 to i32
    %c0_i32_0 = arith.constant 0 : i32
    %2 = arith.cmpi ne, %1, %c0_i32_0 : i32
    scf.if %2 {
      %cst_12 = arith.constant 0.000000e+00 : f32
      %14 = vector.broadcast %cst_12 : f32 to vector<32x128xf32>
      %c0_13 = arith.constant 0 : index
      %c0_14 = arith.constant 0 : index
      %15 = vector.load %arg8[%c0_13, %c0_14] : memref<32x128xf32, #tpu.memory_space<vmem>>, vector<32x128xf32>
      tpu.vector_store %arg8[%c0_13, %c0_14], %14 {strides = array<i32>} : memref<32x128xf32, #tpu.memory_space<vmem>>, vector<32x128xf32>,
    } else {
    }
    %c0 = arith.constant 0 : index
    %c0_1 = arith.constant 0 : index
    %3 = vector.load %arg8[%c0, %c0_1] : memref<32x128xf32, #tpu.memory_space<vmem>>, vector<32x128xf32>
    %c0_2 = arith.constant 0 : index
    %c0_3 = arith.constant 0 : index
    %c0_4 = arith.constant 0 : index
    %4 = vector.load %arg4[%c0_2, %c0_3, %c0_4] : memref<1x32x128xbf16, #tpu.memory_space<vmem>>, vector<1x32x128xbf16>
    %5 = vector.shape_cast %4 : vector<1x32x128xbf16> to vector<32x128xbf16>
    %c0_5 = arith.constant 0 : index
    %c0_6 = arith.constant 0 : index
    %c0_7 = arith.constant 0 : index
    %6 = vector.load %arg5[%c0_5, %c0_6, %c0_7] : memref<1x128x128xbf16, #tpu.memory_space<vmem>>, vector<1x128x128xbf16>
    %7 = vector.shape_cast %6 : vector<1x128x128xbf16> to vector<128x128xbf16>
    %cst = arith.constant dense<0.000000e+00> : vector<32x128xf32>
    %8 = tpu.matmul %5, %7, %cst {dimension_numbers = #tpu.dot_dimension_numbers<[1], [0], [0], [1], [0, 0, 1, 1], [], []>} : vector<32x128xbf16>, vector<128x128xbf16>, vector<32x128xf32> -> vector<32x128xf32>
    %9 = arith.addf %3, %8 : vector<32x128xf32>
    %c0_8 = arith.constant 0 : index
    %c0_9 = arith.constant 0 : index
    %10 = vector.load %arg8[%c0_8, %c0_9] : memref<32x128xf32, #tpu.memory_space<vmem>>, vector<32x128xf32>
    tpu.vector_store %arg8[%c0_8, %c0_9], %9 {strides = array<i32>} : memref<32x128xf32, #tpu.memory_space<vmem>>, vector<32x128xf32>,
    %c0_i32_10 = arith.constant 0 : i32
    %11 = arith.cmpi eq, %arg3, %c0_i32_10 : i32
    %12 = arith.extui %11 : i1 to i32
    %c0_i32_11 = arith.constant 0 : i32
    %13 = arith.cmpi ne, %12, %c0_i32_11 : i32
    scf.if %13 {
      %c0_12 = arith.constant 0 : index
      %c0_13 = arith.constant 0 : index
      %14 = vector.load %arg8[%c0_12, %c0_13] : memref<32x128xf32, #tpu.memory_space<vmem>>, vector<32x128xf32>
      %c0_14 = arith.constant 0 : index
      %c0_15 = arith.constant 0 : index
      %c0_16 = arith.constant 0 : index
      %15 = vector.load %arg6[%c0_14, %c0_15, %c0_16] : memref<1x1x128xf32, #tpu.memory_space<vmem>>, vector<1x1x128xf32>
      %16 = vector.shape_cast %15 : vector<1x1x128xf32> to vector<1x128xf32>
      %17 = vector.broadcast %16 : vector<1x128xf32> to vector<32x128xf32>
      %18 = arith.addf %14, %17 : vector<32x128xf32>
      %19 = arith.truncf %18 : vector<32x128xf32> to vector<32x128xbf16>
      %c0_17 = arith.constant 0 : index
      %c0_18 = arith.constant 0 : index
      %20 = vector.load %arg7[%c0_17, %c0_18] : memref<32x128xbf16, #tpu.memory_space<vmem>>, vector<32x128xbf16>
      tpu.vector_store %arg7[%c0_17, %c0_18], %19 {strides = array<i32>} : memref<32x128xbf16, #tpu.memory_space<vmem>>, vector<32x128xbf16>,
    } else {
    }
    return
  }
  func.func @transform_0(%arg0: i32, %arg1: i32, %arg2: i32, %arg3: i32) -> (i32, i32, i32) {
    %c0_i32 = arith.constant 0 : i32
    return %arg0, %arg1, %arg3 : i32, i32, i32
  }
  func.func @transform_1(%arg0: i32, %arg1: i32, %arg2: i32, %arg3: i32) -> (i32, i32, i32) {
    %c0_i32 = arith.constant 0 : i32
    return %arg0, %arg3, %arg2 : i32, i32, i32
  }
  func.func @transform_2(%arg0: i32, %arg1: i32, %arg2: i32, %arg3: i32) -> (i32, i32, i32) {
    %c0_i32 = arith.constant 0 : i32
    %c0_i32_0 = arith.constant 0 : i32
    return %arg0, %c0_i32, %arg2 : i32, i32, i32
  }
  func.func @transform_3(%arg0: i32, %arg1: i32, %arg2: i32, %arg3: i32) -> (i32, i32) {
    %c1_i32 = arith.constant 1 : i32
    %0 = arith.muli %arg0, %c1_i32 : i32
    %1 = arith.addi %0, %arg2 : i32
    %c0_i32 = arith.constant 0 : i32
    return %arg1, %1 : i32, i32
  }
}

module attributes {stable_mosaic.version = 11 : i64} {
  func.func @_fused_mm_kernel(%arg0: i32, %arg1: i32, %arg2: i32, %arg3: i32, %arg4: memref<1x16x128xbf16, #tpu.memory_space<vmem>>, %arg5: memref<1x128x256xbf16, #tpu.memory_space<vmem>>, %arg6: memref<1x1x256xf32, #tpu.memory_space<vmem>>, %arg7: memref<16x256xbf16, #tpu.memory_space<vmem>>, %arg8: memref<16x256xf32, #tpu.memory_space<vmem>>) attributes {dimension_semantics = [#tpu.dimension_semantics<parallel>, #tpu.dimension_semantics<parallel>, #tpu.dimension_semantics<parallel>, #tpu.dimension_semantics<arbitrary>], iteration_bounds = array<i64: 1, 1, 1, 1>, scalar_prefetch = 0 : i64, scratch_operands = 1 : i64, tpu.core_type = #tpu.core_type<tc>, window_params = [{transform_indices = @transform_0, window_bounds = array<i64: 1, 16, 128>}, {transform_indices = @transform_1, window_bounds = array<i64: 1, 128, 256>}, {transform_indices = @transform_2, window_bounds = array<i64: 1, 1, 256>}, {transform_indices = @transform_3, window_bounds = array<i64: 16, 256>}]} {
    %c0_i32 = arith.constant 0 : i32
    %0 = arith.cmpi eq, %arg3, %c0_i32 : i32
    %1 = arith.extui %0 : i1 to i32
    %c0_i32_0 = arith.constant 0 : i32
    %2 = arith.cmpi ne, %1, %c0_i32_0 : i32
    scf.if %2 {
      %cst_12 = arith.constant 0.000000e+00 : f32
      %14 = vector.broadcast %cst_12 : f32 to vector<16x256xf32>
      %c0_13 = arith.constant 0 : index
      %c0_14 = arith.constant 0 : index
      %15 = vector.load %arg8[%c0_13, %c0_14] : memref<16x256xf32, #tpu.memory_space<vmem>>, vector<16x256xf32>
      tpu.vector_store %arg8[%c0_13, %c0_14], %14 {strides = array<i32>} : memref<16x256xf32, #tpu.memory_space<vmem>>, vector<16x256xf32>,
    } else {
    }
    %c0 = arith.constant 0 : index
    %c0_1 = arith.constant 0 : index
    %3 = vector.load %arg8[%c0, %c0_1] : memref<16x256xf32, #tpu.memory_space<vmem>>, vector<16x256xf32>
    %c0_2 = arith.constant 0 : index
    %c0_3 = arith.constant 0 : index
    %c0_4 = arith.constant 0 : index
    %4 = vector.load %arg4[%c0_2, %c0_3, %c0_4] : memref<1x16x128xbf16, #tpu.memory_space<vmem>>, vector<1x16x128xbf16>
    %5 = vector.shape_cast %4 : vector<1x16x128xbf16> to vector<16x128xbf16>
    %c0_5 = arith.constant 0 : index
    %c0_6 = arith.constant 0 : index
    %c0_7 = arith.constant 0 : index
    %6 = vector.load %arg5[%c0_5, %c0_6, %c0_7] : memref<1x128x256xbf16, #tpu.memory_space<vmem>>, vector<1x128x256xbf16>
    %7 = vector.shape_cast %6 : vector<1x128x256xbf16> to vector<128x256xbf16>
    %cst = arith.constant dense<0.000000e+00> : vector<16x256xf32>
    %8 = tpu.matmul %5, %7, %cst {dimension_numbers = #tpu.dot_dimension_numbers<[1], [0], [0], [1], [0, 0, 1, 1], [], []>} : vector<16x128xbf16>, vector<128x256xbf16>, vector<16x256xf32> -> vector<16x256xf32>
    %9 = arith.addf %3, %8 : vector<16x256xf32>
    %c0_8 = arith.constant 0 : index
    %c0_9 = arith.constant 0 : index
    %10 = vector.load %arg8[%c0_8, %c0_9] : memref<16x256xf32, #tpu.memory_space<vmem>>, vector<16x256xf32>
    tpu.vector_store %arg8[%c0_8, %c0_9], %9 {strides = array<i32>} : memref<16x256xf32, #tpu.memory_space<vmem>>, vector<16x256xf32>,
    %c0_i32_10 = arith.constant 0 : i32
    %11 = arith.cmpi eq, %arg3, %c0_i32_10 : i32
    %12 = arith.extui %11 : i1 to i32
    %c0_i32_11 = arith.constant 0 : i32
    %13 = arith.cmpi ne, %12, %c0_i32_11 : i32
    scf.if %13 {
      %c0_12 = arith.constant 0 : index
      %c0_13 = arith.constant 0 : index
      %14 = vector.load %arg8[%c0_12, %c0_13] : memref<16x256xf32, #tpu.memory_space<vmem>>, vector<16x256xf32>
      %c0_14 = arith.constant 0 : index
      %c0_15 = arith.constant 0 : index
      %c0_16 = arith.constant 0 : index
      %15 = vector.load %arg6[%c0_14, %c0_15, %c0_16] : memref<1x1x256xf32, #tpu.memory_space<vmem>>, vector<1x1x256xf32>
      %16 = vector.shape_cast %15 : vector<1x1x256xf32> to vector<1x256xf32>
      %17 = vector.broadcast %16 : vector<1x256xf32> to vector<16x256xf32>
      %18 = arith.addf %14, %17 : vector<16x256xf32>
      %cst_17 = arith.constant 0.707106769 : f32
      %19 = vector.broadcast %cst_17 : f32 to vector<16x256xf32>
      %20 = arith.mulf %18, %19 : vector<16x256xf32>
      %21 = math.absf %20 : vector<16x256xf32>
      %cst_18 = arith.constant 0.327591091 : f32
      %22 = vector.broadcast %cst_18 : f32 to vector<16x256xf32>
      %23 = arith.mulf %22, %21 : vector<16x256xf32>
      %cst_19 = arith.constant 1.000000e+00 : f32
      %24 = vector.broadcast %cst_19 : f32 to vector<16x256xf32>
      %25 = arith.addf %24, %23 : vector<16x256xf32>
      %26 = tpu.reciprocal %25 {approx = true} : vector<16x256xf32> -> vector<16x256xf32>
      %cst_20 = arith.constant 1.06140542 : f32
      %27 = vector.broadcast %cst_20 : f32 to vector<16x256xf32>
      %28 = arith.mulf %26, %27 : vector<16x256xf32>
      %cst_21 = arith.constant -1.45315206 : f32
      %29 = vector.broadcast %cst_21 : f32 to vector<16x256xf32>
      %30 = arith.addf %29, %28 : vector<16x256xf32>
      %31 = arith.mulf %26, %30 : vector<16x256xf32>
      %cst_22 = arith.constant 1.42141378 : f32
      %32 = vector.broadcast %cst_22 : f32 to vector<16x256xf32>
      %33 = arith.addf %32, %31 : vector<16x256xf32>
      %34 = arith.mulf %26, %33 : vector<16x256xf32>
      %cst_23 = arith.constant -0.284496725 : f32
      %35 = vector.broadcast %cst_23 : f32 to vector<16x256xf32>
      %36 = arith.addf %35, %34 : vector<16x256xf32>
      %37 = arith.mulf %26, %36 : vector<16x256xf32>
      %cst_24 = arith.constant 0.254829586 : f32
      %38 = vector.broadcast %cst_24 : f32 to vector<16x256xf32>
      %39 = arith.addf %38, %37 : vector<16x256xf32>
      %40 = arith.mulf %26, %39 : vector<16x256xf32>
      %cst_25 = arith.constant 0.000000e+00 : f32
      %41 = vector.broadcast %cst_25 : f32 to vector<16x256xf32>
      %42 = arith.subf %41, %21 : vector<16x256xf32>
      %43 = arith.mulf %42, %21 : vector<16x256xf32>
      %44 = math.exp %43 : vector<16x256xf32>
      %45 = arith.mulf %40, %44 : vector<16x256xf32>
      %cst_26 = arith.constant 1.000000e+00 : f32
      %46 = vector.broadcast %cst_26 : f32 to vector<16x256xf32>
      %47 = arith.subf %46, %45 : vector<16x256xf32>
      %cst_27 = arith.constant 0.000000e+00 : f32
      %48 = vector.broadcast %cst_27 : f32 to vector<16x256xf32>
      %49 = arith.cmpf olt, %20, %48 : vector<16x256xf32>
      %cst_28 = arith.constant 0.000000e+00 : f32
      %50 = vector.broadcast %cst_28 : f32 to vector<16x256xf32>
      %51 = arith.subf %50, %47 : vector<16x256xf32>
      %52 = arith.select %49, %51, %47 : vector<16x256xi1>, vector<16x256xf32>
      %cst_29 = arith.constant 5.000000e-01 : f32
      %53 = vector.broadcast %cst_29 : f32 to vector<16x256xf32>
      %54 = arith.mulf %53, %18 : vector<16x256xf32>
      %cst_30 = arith.constant 1.000000e+00 : f32
      %55 = vector.broadcast %cst_30 : f32 to vector<16x256xf32>
      %56 = arith.addf %55, %52 : vector<16x256xf32>
      %57 = arith.mulf %54, %56 : vector<16x256xf32>
      %58 = arith.truncf %57 : vector<16x256xf32> to vector<16x256xbf16>
      %c0_31 = arith.constant 0 : index
      %c0_32 = arith.constant 0 : index
      %59 = vector.load %arg7[%c0_31, %c0_32] : memref<16x256xbf16, #tpu.memory_space<vmem>>, vector<16x256xbf16>
      tpu.vector_store %arg7[%c0_31, %c0_32], %58 {strides = array<i32>} : memref<16x256xbf16, #tpu.memory_space<vmem>>, vector<16x256xbf16>,
    } else {
    }
    return
  }
  func.func @transform_0(%arg0: i32, %arg1: i32, %arg2: i32, %arg3: i32) -> (i32, i32, i32) {
    %c0_i32 = arith.constant 0 : i32
    return %arg0, %arg1, %arg3 : i32, i32, i32
  }
  func.func @transform_1(%arg0: i32, %arg1: i32, %arg2: i32, %arg3: i32) -> (i32, i32, i32) {
    %c0_i32 = arith.constant 0 : i32
    return %arg0, %arg3, %arg2 : i32, i32, i32
  }
  func.func @transform_2(%arg0: i32, %arg1: i32, %arg2: i32, %arg3: i32) -> (i32, i32, i32) {
    %c0_i32 = arith.constant 0 : i32
    %c0_i32_0 = arith.constant 0 : i32
    return %arg0, %c0_i32, %arg2 : i32, i32, i32
  }
  func.func @transform_3(%arg0: i32, %arg1: i32, %arg2: i32, %arg3: i32) -> (i32, i32) {
    %c1_i32 = arith.constant 1 : i32
    %0 = arith.muli %arg0, %c1_i32 : i32
    %1 = arith.addi %0, %arg2 : i32
    %c0_i32 = arith.constant 0 : i32
    return %arg1, %1 : i32, i32
  }
}

module attributes {stable_mosaic.version = 11 : i64} {
  func.func @_fused_mm_kernel(%arg0: i32, %arg1: i32, %arg2: i32, %arg3: i32, %arg4: memref<1x16x128xbf16, #tpu.memory_space<vmem>>, %arg5: memref<1x128x256xbf16, #tpu.memory_space<vmem>>, %arg6: memref<1x1x256xf32, #tpu.memory_space<vmem>>, %arg7: memref<16x256xbf16, #tpu.memory_space<vmem>>, %arg8: memref<16x256xf32, #tpu.memory_space<vmem>>) attributes {dimension_semantics = [#tpu.dimension_semantics<parallel>, #tpu.dimension_semantics<parallel>, #tpu.dimension_semantics<parallel>, #tpu.dimension_semantics<arbitrary>], iteration_bounds = array<i64: 1, 1, 1, 1>, scalar_prefetch = 0 : i64, scratch_operands = 1 : i64, tpu.core_type = #tpu.core_type<tc>, window_params = [{transform_indices = @transform_0, window_bounds = array<i64: 1, 16, 128>}, {transform_indices = @transform_1, window_bounds = array<i64: 1, 128, 256>}, {transform_indices = @transform_2, window_bounds = array<i64: 1, 1, 256>}, {transform_indices = @transform_3, window_bounds = array<i64: 16, 256>}]} {
    %c0_i32 = arith.constant 0 : i32
    %0 = arith.cmpi eq, %arg3, %c0_i32 : i32
    %1 = arith.extui %0 : i1 to i32
    %c0_i32_0 = arith.constant 0 : i32
    %2 = arith.cmpi ne, %1, %c0_i32_0 : i32
    scf.if %2 {
      %cst_12 = arith.constant 0.000000e+00 : f32
      %14 = vector.broadcast %cst_12 : f32 to vector<16x256xf32>
      %c0_13 = arith.constant 0 : index
      %c0_14 = arith.constant 0 : index
      %15 = vector.load %arg8[%c0_13, %c0_14] : memref<16x256xf32, #tpu.memory_space<vmem>>, vector<16x256xf32>
      tpu.vector_store %arg8[%c0_13, %c0_14], %14 {strides = array<i32>} : memref<16x256xf32, #tpu.memory_space<vmem>>, vector<16x256xf32>,
    } else {
    }
    %c0 = arith.constant 0 : index
    %c0_1 = arith.constant 0 : index
    %3 = vector.load %arg8[%c0, %c0_1] : memref<16x256xf32, #tpu.memory_space<vmem>>, vector<16x256xf32>
    %c0_2 = arith.constant 0 : index
    %c0_3 = arith.constant 0 : index
    %c0_4 = arith.constant 0 : index
    %4 = vector.load %arg4[%c0_2, %c0_3, %c0_4] : memref<1x16x128xbf16, #tpu.memory_space<vmem>>, vector<1x16x128xbf16>
    %5 = vector.shape_cast %4 : vector<1x16x128xbf16> to vector<16x128xbf16>
    %c0_5 = arith.constant 0 : index
    %c0_6 = arith.constant 0 : index
    %c0_7 = arith.constant 0 : index
    %6 = vector.load %arg5[%c0_5, %c0_6, %c0_7] : memref<1x128x256xbf16, #tpu.memory_space<vmem>>, vector<1x128x256xbf16>
    %7 = vector.shape_cast %6 : vector<1x128x256xbf16> to vector<128x256xbf16>
    %cst = arith.constant dense<0.000000e+00> : vector<16x256xf32>
    %8 = tpu.matmul %5, %7, %cst {dimension_numbers = #tpu.dot_dimension_numbers<[1], [0], [0], [1], [0, 0, 1, 1], [], []>} : vector<16x128xbf16>, vector<128x256xbf16>, vector<16x256xf32> -> vector<16x256xf32>
    %9 = arith.addf %3, %8 : vector<16x256xf32>
    %c0_8 = arith.constant 0 : index
    %c0_9 = arith.constant 0 : index
    %10 = vector.load %arg8[%c0_8, %c0_9] : memref<16x256xf32, #tpu.memory_space<vmem>>, vector<16x256xf32>
    tpu.vector_store %arg8[%c0_8, %c0_9], %9 {strides = array<i32>} : memref<16x256xf32, #tpu.memory_space<vmem>>, vector<16x256xf32>,
    %c0_i32_10 = arith.constant 0 : i32
    %11 = arith.cmpi eq, %arg3, %c0_i32_10 : i32
    %12 = arith.extui %11 : i1 to i32
    %c0_i32_11 = arith.constant 0 : i32
    %13 = arith.cmpi ne, %12, %c0_i32_11 : i32
    scf.if %13 {
      %c0_12 = arith.constant 0 : index
      %c0_13 = arith.constant 0 : index
      %14 = vector.load %arg8[%c0_12, %c0_13] : memref<16x256xf32, #tpu.memory_space<vmem>>, vector<16x256xf32>
      %c0_14 = arith.constant 0 : index
      %c0_15 = arith.constant 0 : index
      %c0_16 = arith.constant 0 : index
      %15 = vector.load %arg6[%c0_14, %c0_15, %c0_16] : memref<1x1x256xf32, #tpu.memory_space<vmem>>, vector<1x1x256xf32>
      %16 = vector.shape_cast %15 : vector<1x1x256xf32> to vector<1x256xf32>
      %17 = vector.broadcast %16 : vector<1x256xf32> to vector<16x256xf32>
      %18 = arith.addf %14, %17 : vector<16x256xf32>
      %19 = arith.truncf %18 : vector<16x256xf32> to vector<16x256xbf16>
      %c0_17 = arith.constant 0 : index
      %c0_18 = arith.constant 0 : index
      %20 = vector.load %arg7[%c0_17, %c0_18] : memref<16x256xbf16, #tpu.memory_space<vmem>>, vector<16x256xbf16>
      tpu.vector_store %arg7[%c0_17, %c0_18], %19 {strides = array<i32>} : memref<16x256xbf16, #tpu.memory_space<vmem>>, vector<16x256xbf16>,
    } else {
    }
    return
  }
  func.func @transform_0(%arg0: i32, %arg1: i32, %arg2: i32, %arg3: i32) -> (i32, i32, i32) {
    %c0_i32 = arith.constant 0 : i32
    return %arg0, %arg1, %arg3 : i32, i32, i32
  }
  func.func @transform_1(%arg0: i32, %arg1: i32, %arg2: i32, %arg3: i32) -> (i32, i32, i32) {
    %c0_i32 = arith.constant 0 : i32
    return %arg0, %arg3, %arg2 : i32, i32, i32
  }
  func.func @transform_2(%arg0: i32, %arg1: i32, %arg2: i32, %arg3: i32) -> (i32, i32, i32) {
    %c0_i32 = arith.constant 0 : i32
    %c0_i32_0 = arith.constant 0 : i32
    return %arg0, %c0_i32, %arg2 : i32, i32, i32
  }
  func.func @transform_3(%arg0: i32, %arg1: i32, %arg2: i32, %arg3: i32) -> (i32, i32) {
    %c1_i32 = arith.constant 1 : i32
    %0 = arith.muli %arg0, %c1_i32 : i32
    %1 = arith.addi %0, %arg2 : i32
    %c0_i32 = arith.constant 0 : i32
    return %arg1, %1 : i32, i32
  }
}

module attributes {stable_mosaic.version = 11 : i64} {
  func.func @_fused_mm_kernel(%arg0: i32, %arg1: i32, %arg2: i32, %arg3: i32, %arg4: memref<1x16x1152xbf16, #tpu.memory_space<vmem>>, %arg5: memref<1x1152x128xbf16, #tpu.memory_space<vmem>>, %arg6: memref<1x1x128xf32, #tpu.memory_space<vmem>>, %arg7: memref<16x128xbf16, #tpu.memory_space<vmem>>, %arg8: memref<16x128xf32, #tpu.memory_space<vmem>>) attributes {dimension_semantics = [#tpu.dimension_semantics<parallel>, #tpu.dimension_semantics<parallel>, #tpu.dimension_semantics<parallel>, #tpu.dimension_semantics<arbitrary>], iteration_bounds = array<i64: 2, 1, 1, 1>, scalar_prefetch = 0 : i64, scratch_operands = 1 : i64, tpu.core_type = #tpu.core_type<tc>, window_params = [{transform_indices = @transform_0, window_bounds = array<i64: 1, 16, 1152>}, {transform_indices = @transform_1, window_bounds = array<i64: 1, 1152, 128>}, {transform_indices = @transform_2, window_bounds = array<i64: 1, 1, 128>}, {transform_indices = @transform_3, window_bounds = array<i64: 16, 128>}]} {
    %c0_i32 = arith.constant 0 : i32
    %0 = arith.cmpi eq, %arg3, %c0_i32 : i32
    %1 = arith.extui %0 : i1 to i32
    %c0_i32_0 = arith.constant 0 : i32
    %2 = arith.cmpi ne, %1, %c0_i32_0 : i32
    scf.if %2 {
      %cst_12 = arith.constant 0.000000e+00 : f32
      %14 = vector.broadcast %cst_12 : f32 to vector<16x128xf32>
      %c0_13 = arith.constant 0 : index
      %c0_14 = arith.constant 0 : index
      %15 = vector.load %arg8[%c0_13, %c0_14] : memref<16x128xf32, #tpu.memory_space<vmem>>, vector<16x128xf32>
      tpu.vector_store %arg8[%c0_13, %c0_14], %14 {strides = array<i32>} : memref<16x128xf32, #tpu.memory_space<vmem>>, vector<16x128xf32>,
    } else {
    }
    %c0 = arith.constant 0 : index
    %c0_1 = arith.constant 0 : index
    %3 = vector.load %arg8[%c0, %c0_1] : memref<16x128xf32, #tpu.memory_space<vmem>>, vector<16x128xf32>
    %c0_2 = arith.constant 0 : index
    %c0_3 = arith.constant 0 : index
    %c0_4 = arith.constant 0 : index
    %4 = vector.load %arg4[%c0_2, %c0_3, %c0_4] : memref<1x16x1152xbf16, #tpu.memory_space<vmem>>, vector<1x16x1152xbf16>
    %5 = vector.shape_cast %4 : vector<1x16x1152xbf16> to vector<16x1152xbf16>
    %c0_5 = arith.constant 0 : index
    %c0_6 = arith.constant 0 : index
    %c0_7 = arith.constant 0 : index
    %6 = vector.load %arg5[%c0_5, %c0_6, %c0_7] : memref<1x1152x128xbf16, #tpu.memory_space<vmem>>, vector<1x1152x128xbf16>
    %7 = vector.shape_cast %6 : vector<1x1152x128xbf16> to vector<1152x128xbf16>
    %cst = arith.constant dense<0.000000e+00> : vector<16x128xf32>
    %8 = tpu.matmul %5, %7, %cst {dimension_numbers = #tpu.dot_dimension_numbers<[1], [0], [0], [1], [0, 0, 1, 1], [], []>} : vector<16x1152xbf16>, vector<1152x128xbf16>, vector<16x128xf32> -> vector<16x128xf32>
    %9 = arith.addf %3, %8 : vector<16x128xf32>
    %c0_8 = arith.constant 0 : index
    %c0_9 = arith.constant 0 : index
    %10 = vector.load %arg8[%c0_8, %c0_9] : memref<16x128xf32, #tpu.memory_space<vmem>>, vector<16x128xf32>
    tpu.vector_store %arg8[%c0_8, %c0_9], %9 {strides = array<i32>} : memref<16x128xf32, #tpu.memory_space<vmem>>, vector<16x128xf32>,
    %c0_i32_10 = arith.constant 0 : i32
    %11 = arith.cmpi eq, %arg3, %c0_i32_10 : i32
    %12 = arith.extui %11 : i1 to i32
    %c0_i32_11 = arith.constant 0 : i32
    %13 = arith.cmpi ne, %12, %c0_i32_11 : i32
    scf.if %13 {
      %c0_12 = arith.constant 0 : index
      %c0_13 = arith.constant 0 : index
      %14 = vector.load %arg8[%c0_12, %c0_13] : memref<16x128xf32, #tpu.memory_space<vmem>>, vector<16x128xf32>
      %c0_14 = arith.constant 0 : index
      %c0_15 = arith.constant 0 : index
      %c0_16 = arith.constant 0 : index
      %15 = vector.load %arg6[%c0_14, %c0_15, %c0_16] : memref<1x1x128xf32, #tpu.memory_space<vmem>>, vector<1x1x128xf32>
      %16 = vector.shape_cast %15 : vector<1x1x128xf32> to vector<1x128xf32>
      %17 = vector.broadcast %16 : vector<1x128xf32> to vector<16x128xf32>
      %18 = arith.addf %14, %17 : vector<16x128xf32>
      %cst_17 = arith.constant 0.707106769 : f32
      %19 = vector.broadcast %cst_17 : f32 to vector<16x128xf32>
      %20 = arith.mulf %18, %19 : vector<16x128xf32>
      %21 = math.absf %20 : vector<16x128xf32>
      %cst_18 = arith.constant 0.327591091 : f32
      %22 = vector.broadcast %cst_18 : f32 to vector<16x128xf32>
      %23 = arith.mulf %22, %21 : vector<16x128xf32>
      %cst_19 = arith.constant 1.000000e+00 : f32
      %24 = vector.broadcast %cst_19 : f32 to vector<16x128xf32>
      %25 = arith.addf %24, %23 : vector<16x128xf32>
      %26 = tpu.reciprocal %25 {approx = true} : vector<16x128xf32> -> vector<16x128xf32>
      %cst_20 = arith.constant 1.06140542 : f32
      %27 = vector.broadcast %cst_20 : f32 to vector<16x128xf32>
      %28 = arith.mulf %26, %27 : vector<16x128xf32>
      %cst_21 = arith.constant -1.45315206 : f32
      %29 = vector.broadcast %cst_21 : f32 to vector<16x128xf32>
      %30 = arith.addf %29, %28 : vector<16x128xf32>
      %31 = arith.mulf %26, %30 : vector<16x128xf32>
      %cst_22 = arith.constant 1.42141378 : f32
      %32 = vector.broadcast %cst_22 : f32 to vector<16x128xf32>
      %33 = arith.addf %32, %31 : vector<16x128xf32>
      %34 = arith.mulf %26, %33 : vector<16x128xf32>
      %cst_23 = arith.constant -0.284496725 : f32
      %35 = vector.broadcast %cst_23 : f32 to vector<16x128xf32>
      %36 = arith.addf %35, %34 : vector<16x128xf32>
      %37 = arith.mulf %26, %36 : vector<16x128xf32>
      %cst_24 = arith.constant 0.254829586 : f32
      %38 = vector.broadcast %cst_24 : f32 to vector<16x128xf32>
      %39 = arith.addf %38, %37 : vector<16x128xf32>
      %40 = arith.mulf %26, %39 : vector<16x128xf32>
      %cst_25 = arith.constant 0.000000e+00 : f32
      %41 = vector.broadcast %cst_25 : f32 to vector<16x128xf32>
      %42 = arith.subf %41, %21 : vector<16x128xf32>
      %43 = arith.mulf %42, %21 : vector<16x128xf32>
      %44 = math.exp %43 : vector<16x128xf32>
      %45 = arith.mulf %40, %44 : vector<16x128xf32>
      %cst_26 = arith.constant 1.000000e+00 : f32
      %46 = vector.broadcast %cst_26 : f32 to vector<16x128xf32>
      %47 = arith.subf %46, %45 : vector<16x128xf32>
      %cst_27 = arith.constant 0.000000e+00 : f32
      %48 = vector.broadcast %cst_27 : f32 to vector<16x128xf32>
      %49 = arith.cmpf olt, %20, %48 : vector<16x128xf32>
      %cst_28 = arith.constant 0.000000e+00 : f32
      %50 = vector.broadcast %cst_28 : f32 to vector<16x128xf32>
      %51 = arith.subf %50, %47 : vector<16x128xf32>
      %52 = arith.select %49, %51, %47 : vector<16x128xi1>, vector<16x128xf32>
      %cst_29 = arith.constant 5.000000e-01 : f32
      %53 = vector.broadcast %cst_29 : f32 to vector<16x128xf32>
      %54 = arith.mulf %53, %18 : vector<16x128xf32>
      %cst_30 = arith.constant 1.000000e+00 : f32
      %55 = vector.broadcast %cst_30 : f32 to vector<16x128xf32>
      %56 = arith.addf %55, %52 : vector<16x128xf32>
      %57 = arith.mulf %54, %56 : vector<16x128xf32>
      %58 = arith.truncf %57 : vector<16x128xf32> to vector<16x128xbf16>
      %c0_31 = arith.constant 0 : index
      %c0_32 = arith.constant 0 : index
      %59 = vector.load %arg7[%c0_31, %c0_32] : memref<16x128xbf16, #tpu.memory_space<vmem>>, vector<16x128xbf16>
      tpu.vector_store %arg7[%c0_31, %c0_32], %58 {strides = array<i32>} : memref<16x128xbf16, #tpu.memory_space<vmem>>, vector<16x128xbf16>,
    } else {
    }
    return
  }
  func.func @transform_0(%arg0: i32, %arg1: i32, %arg2: i32, %arg3: i32) -> (i32, i32, i32) {
    %c0_i32 = arith.constant 0 : i32
    return %arg0, %arg1, %arg3 : i32, i32, i32
  }
  func.func @transform_1(%arg0: i32, %arg1: i32, %arg2: i32, %arg3: i32) -> (i32, i32, i32) {
    %c0_i32 = arith.constant 0 : i32
    return %arg0, %arg3, %arg2 : i32, i32, i32
  }
  func.func @transform_2(%arg0: i32, %arg1: i32, %arg2: i32, %arg3: i32) -> (i32, i32, i32) {
    %c0_i32 = arith.constant 0 : i32
    %c0_i32_0 = arith.constant 0 : i32
    return %arg0, %c0_i32, %arg2 : i32, i32, i32
  }
  func.func @transform_3(%arg0: i32, %arg1: i32, %arg2: i32, %arg3: i32) -> (i32, i32) {
    %c1_i32 = arith.constant 1 : i32
    %0 = arith.muli %arg0, %c1_i32 : i32
    %1 = arith.addi %0, %arg2 : i32
    %c0_i32 = arith.constant 0 : i32
    return %arg1, %1 : i32, i32
  }
}

module attributes {stable_mosaic.version = 11 : i64} {
  func.func @_fused_mm_kernel(%arg0: i32, %arg1: i32, %arg2: i32, %arg3: i32, %arg4: memref<1x16x256xbf16, #tpu.memory_space<vmem>>, %arg5: memref<1x256x256xbf16, #tpu.memory_space<vmem>>, %arg6: memref<1x1x256xf32, #tpu.memory_space<vmem>>, %arg7: memref<16x256xbf16, #tpu.memory_space<vmem>>, %arg8: memref<16x256xbf16, #tpu.memory_space<vmem>>, %arg9: memref<16x256xf32, #tpu.memory_space<vmem>>) attributes {dimension_semantics = [#tpu.dimension_semantics<parallel>, #tpu.dimension_semantics<parallel>, #tpu.dimension_semantics<parallel>, #tpu.dimension_semantics<arbitrary>], iteration_bounds = array<i64: 1, 1, 1, 1>, scalar_prefetch = 0 : i64, scratch_operands = 1 : i64, tpu.core_type = #tpu.core_type<tc>, window_params = [{transform_indices = @transform_0, window_bounds = array<i64: 1, 16, 256>}, {transform_indices = @transform_1, window_bounds = array<i64: 1, 256, 256>}, {transform_indices = @transform_2, window_bounds = array<i64: 1, 1, 256>}, {transform_indices = @transform_3, window_bounds = array<i64: 16, 256>}, {transform_indices = @transform_4, window_bounds = array<i64: 16, 256>}]} {
    %c0_i32 = arith.constant 0 : i32
    %0 = arith.cmpi eq, %arg3, %c0_i32 : i32
    %1 = arith.extui %0 : i1 to i32
    %c0_i32_0 = arith.constant 0 : i32
    %2 = arith.cmpi ne, %1, %c0_i32_0 : i32
    scf.if %2 {
      %cst_12 = arith.constant 0.000000e+00 : f32
      %14 = vector.broadcast %cst_12 : f32 to vector<16x256xf32>
      %c0_13 = arith.constant 0 : index
      %c0_14 = arith.constant 0 : index
      %15 = vector.load %arg9[%c0_13, %c0_14] : memref<16x256xf32, #tpu.memory_space<vmem>>, vector<16x256xf32>
      tpu.vector_store %arg9[%c0_13, %c0_14], %14 {strides = array<i32>} : memref<16x256xf32, #tpu.memory_space<vmem>>, vector<16x256xf32>,
    } else {
    }
    %c0 = arith.constant 0 : index
    %c0_1 = arith.constant 0 : index
    %3 = vector.load %arg9[%c0, %c0_1] : memref<16x256xf32, #tpu.memory_space<vmem>>, vector<16x256xf32>
    %c0_2 = arith.constant 0 : index
    %c0_3 = arith.constant 0 : index
    %c0_4 = arith.constant 0 : index
    %4 = vector.load %arg4[%c0_2, %c0_3, %c0_4] : memref<1x16x256xbf16, #tpu.memory_space<vmem>>, vector<1x16x256xbf16>
    %5 = vector.shape_cast %4 : vector<1x16x256xbf16> to vector<16x256xbf16>
    %c0_5 = arith.constant 0 : index
    %c0_6 = arith.constant 0 : index
    %c0_7 = arith.constant 0 : index
    %6 = vector.load %arg5[%c0_5, %c0_6, %c0_7] : memref<1x256x256xbf16, #tpu.memory_space<vmem>>, vector<1x256x256xbf16>
    %7 = vector.shape_cast %6 : vector<1x256x256xbf16> to vector<256x256xbf16>
    %cst = arith.constant dense<0.000000e+00> : vector<16x256xf32>
    %8 = tpu.matmul %5, %7, %cst {dimension_numbers = #tpu.dot_dimension_numbers<[1], [0], [0], [1], [0, 0, 1, 1], [], []>} : vector<16x256xbf16>, vector<256x256xbf16>, vector<16x256xf32> -> vector<16x256xf32>
    %9 = arith.addf %3, %8 : vector<16x256xf32>
    %c0_8 = arith.constant 0 : index
    %c0_9 = arith.constant 0 : index
    %10 = vector.load %arg9[%c0_8, %c0_9] : memref<16x256xf32, #tpu.memory_space<vmem>>, vector<16x256xf32>
    tpu.vector_store %arg9[%c0_8, %c0_9], %9 {strides = array<i32>} : memref<16x256xf32, #tpu.memory_space<vmem>>, vector<16x256xf32>,
    %c0_i32_10 = arith.constant 0 : i32
    %11 = arith.cmpi eq, %arg3, %c0_i32_10 : i32
    %12 = arith.extui %11 : i1 to i32
    %c0_i32_11 = arith.constant 0 : i32
    %13 = arith.cmpi ne, %12, %c0_i32_11 : i32
    scf.if %13 {
      %c0_12 = arith.constant 0 : index
      %c0_13 = arith.constant 0 : index
      %14 = vector.load %arg9[%c0_12, %c0_13] : memref<16x256xf32, #tpu.memory_space<vmem>>, vector<16x256xf32>
      %c0_14 = arith.constant 0 : index
      %c0_15 = arith.constant 0 : index
      %c0_16 = arith.constant 0 : index
      %15 = vector.load %arg6[%c0_14, %c0_15, %c0_16] : memref<1x1x256xf32, #tpu.memory_space<vmem>>, vector<1x1x256xf32>
      %16 = vector.shape_cast %15 : vector<1x1x256xf32> to vector<1x256xf32>
      %17 = vector.broadcast %16 : vector<1x256xf32> to vector<16x256xf32>
      %18 = arith.addf %14, %17 : vector<16x256xf32>
      %cst_17 = arith.constant 0.707106769 : f32
      %19 = vector.broadcast %cst_17 : f32 to vector<16x256xf32>
      %20 = arith.mulf %18, %19 : vector<16x256xf32>
      %21 = math.absf %20 : vector<16x256xf32>
      %cst_18 = arith.constant 0.327591091 : f32
      %22 = vector.broadcast %cst_18 : f32 to vector<16x256xf32>
      %23 = arith.mulf %22, %21 : vector<16x256xf32>
      %cst_19 = arith.constant 1.000000e+00 : f32
      %24 = vector.broadcast %cst_19 : f32 to vector<16x256xf32>
      %25 = arith.addf %24, %23 : vector<16x256xf32>
      %26 = tpu.reciprocal %25 {approx = true} : vector<16x256xf32> -> vector<16x256xf32>
      %cst_20 = arith.constant 1.06140542 : f32
      %27 = vector.broadcast %cst_20 : f32 to vector<16x256xf32>
      %28 = arith.mulf %26, %27 : vector<16x256xf32>
      %cst_21 = arith.constant -1.45315206 : f32
      %29 = vector.broadcast %cst_21 : f32 to vector<16x256xf32>
      %30 = arith.addf %29, %28 : vector<16x256xf32>
      %31 = arith.mulf %26, %30 : vector<16x256xf32>
      %cst_22 = arith.constant 1.42141378 : f32
      %32 = vector.broadcast %cst_22 : f32 to vector<16x256xf32>
      %33 = arith.addf %32, %31 : vector<16x256xf32>
      %34 = arith.mulf %26, %33 : vector<16x256xf32>
      %cst_23 = arith.constant -0.284496725 : f32
      %35 = vector.broadcast %cst_23 : f32 to vector<16x256xf32>
      %36 = arith.addf %35, %34 : vector<16x256xf32>
      %37 = arith.mulf %26, %36 : vector<16x256xf32>
      %cst_24 = arith.constant 0.254829586 : f32
      %38 = vector.broadcast %cst_24 : f32 to vector<16x256xf32>
      %39 = arith.addf %38, %37 : vector<16x256xf32>
      %40 = arith.mulf %26, %39 : vector<16x256xf32>
      %cst_25 = arith.constant 0.000000e+00 : f32
      %41 = vector.broadcast %cst_25 : f32 to vector<16x256xf32>
      %42 = arith.subf %41, %21 : vector<16x256xf32>
      %43 = arith.mulf %42, %21 : vector<16x256xf32>
      %44 = math.exp %43 : vector<16x256xf32>
      %45 = arith.mulf %40, %44 : vector<16x256xf32>
      %cst_26 = arith.constant 1.000000e+00 : f32
      %46 = vector.broadcast %cst_26 : f32 to vector<16x256xf32>
      %47 = arith.subf %46, %45 : vector<16x256xf32>
      %cst_27 = arith.constant 0.000000e+00 : f32
      %48 = vector.broadcast %cst_27 : f32 to vector<16x256xf32>
      %49 = arith.cmpf olt, %20, %48 : vector<16x256xf32>
      %cst_28 = arith.constant 0.000000e+00 : f32
      %50 = vector.broadcast %cst_28 : f32 to vector<16x256xf32>
      %51 = arith.subf %50, %47 : vector<16x256xf32>
      %52 = arith.select %49, %51, %47 : vector<16x256xi1>, vector<16x256xf32>
      %cst_29 = arith.constant 5.000000e-01 : f32
      %53 = vector.broadcast %cst_29 : f32 to vector<16x256xf32>
      %54 = arith.mulf %53, %18 : vector<16x256xf32>
      %cst_30 = arith.constant 1.000000e+00 : f32
      %55 = vector.broadcast %cst_30 : f32 to vector<16x256xf32>
      %56 = arith.addf %55, %52 : vector<16x256xf32>
      %57 = arith.mulf %54, %56 : vector<16x256xf32>
      %c0_31 = arith.constant 0 : index
      %c0_32 = arith.constant 0 : index
      %58 = vector.load %arg7[%c0_31, %c0_32] : memref<16x256xbf16, #tpu.memory_space<vmem>>, vector<16x256xbf16>
      %59 = arith.extf %58 : vector<16x256xbf16> to vector<16x256xf32>
      %60 = arith.addf %57, %59 : vector<16x256xf32>
      %cst_33 = arith.constant 0.707106769 : f32
      %61 = vector.broadcast %cst_33 : f32 to vector<16x256xf32>
      %62 = arith.mulf %60, %61 : vector<16x256xf32>
      %63 = math.absf %62 : vector<16x256xf32>
      %cst_34 = arith.constant 0.327591091 : f32
      %64 = vector.broadcast %cst_34 : f32 to vector<16x256xf32>
      %65 = arith.mulf %64, %63 : vector<16x256xf32>
      %cst_35 = arith.constant 1.000000e+00 : f32
      %66 = vector.broadcast %cst_35 : f32 to vector<16x256xf32>
      %67 = arith.addf %66, %65 : vector<16x256xf32>
      %68 = tpu.reciprocal %67 {approx = true} : vector<16x256xf32> -> vector<16x256xf32>
      %cst_36 = arith.constant 1.06140542 : f32
      %69 = vector.broadcast %cst_36 : f32 to vector<16x256xf32>
      %70 = arith.mulf %68, %69 : vector<16x256xf32>
      %cst_37 = arith.constant -1.45315206 : f32
      %71 = vector.broadcast %cst_37 : f32 to vector<16x256xf32>
      %72 = arith.addf %71, %70 : vector<16x256xf32>
      %73 = arith.mulf %68, %72 : vector<16x256xf32>
      %cst_38 = arith.constant 1.42141378 : f32
      %74 = vector.broadcast %cst_38 : f32 to vector<16x256xf32>
      %75 = arith.addf %74, %73 : vector<16x256xf32>
      %76 = arith.mulf %68, %75 : vector<16x256xf32>
      %cst_39 = arith.constant -0.284496725 : f32
      %77 = vector.broadcast %cst_39 : f32 to vector<16x256xf32>
      %78 = arith.addf %77, %76 : vector<16x256xf32>
      %79 = arith.mulf %68, %78 : vector<16x256xf32>
      %cst_40 = arith.constant 0.254829586 : f32
      %80 = vector.broadcast %cst_40 : f32 to vector<16x256xf32>
      %81 = arith.addf %80, %79 : vector<16x256xf32>
      %82 = arith.mulf %68, %81 : vector<16x256xf32>
      %cst_41 = arith.constant 0.000000e+00 : f32
      %83 = vector.broadcast %cst_41 : f32 to vector<16x256xf32>
      %84 = arith.subf %83, %63 : vector<16x256xf32>
      %85 = arith.mulf %84, %63 : vector<16x256xf32>
      %86 = math.exp %85 : vector<16x256xf32>
      %87 = arith.mulf %82, %86 : vector<16x256xf32>
      %cst_42 = arith.constant 1.000000e+00 : f32
      %88 = vector.broadcast %cst_42 : f32 to vector<16x256xf32>
      %89 = arith.subf %88, %87 : vector<16x256xf32>
      %cst_43 = arith.constant 0.000000e+00 : f32
      %90 = vector.broadcast %cst_43 : f32 to vector<16x256xf32>
      %91 = arith.cmpf olt, %62, %90 : vector<16x256xf32>
      %cst_44 = arith.constant 0.000000e+00 : f32
      %92 = vector.broadcast %cst_44 : f32 to vector<16x256xf32>
      %93 = arith.subf %92, %89 : vector<16x256xf32>
      %94 = arith.select %91, %93, %89 : vector<16x256xi1>, vector<16x256xf32>
      %cst_45 = arith.constant 5.000000e-01 : f32
      %95 = vector.broadcast %cst_45 : f32 to vector<16x256xf32>
      %96 = arith.mulf %95, %60 : vector<16x256xf32>
      %cst_46 = arith.constant 1.000000e+00 : f32
      %97 = vector.broadcast %cst_46 : f32 to vector<16x256xf32>
      %98 = arith.addf %97, %94 : vector<16x256xf32>
      %99 = arith.mulf %96, %98 : vector<16x256xf32>
      %100 = arith.truncf %99 : vector<16x256xf32> to vector<16x256xbf16>
      %c0_47 = arith.constant 0 : index
      %c0_48 = arith.constant 0 : index
      %101 = vector.load %arg8[%c0_47, %c0_48] : memref<16x256xbf16, #tpu.memory_space<vmem>>, vector<16x256xbf16>
      tpu.vector_store %arg8[%c0_47, %c0_48], %100 {strides = array<i32>} : memref<16x256xbf16, #tpu.memory_space<vmem>>, vector<16x256xbf16>,
    } else {
    }
    return
  }
  func.func @transform_0(%arg0: i32, %arg1: i32, %arg2: i32, %arg3: i32) -> (i32, i32, i32) {
    %c0_i32 = arith.constant 0 : i32
    return %arg0, %arg1, %arg3 : i32, i32, i32
  }
  func.func @transform_1(%arg0: i32, %arg1: i32, %arg2: i32, %arg3: i32) -> (i32, i32, i32) {
    %c0_i32 = arith.constant 0 : i32
    return %arg0, %arg3, %arg2 : i32, i32, i32
  }
  func.func @transform_2(%arg0: i32, %arg1: i32, %arg2: i32, %arg3: i32) -> (i32, i32, i32) {
    %c0_i32 = arith.constant 0 : i32
    %c0_i32_0 = arith.constant 0 : i32
    return %arg0, %c0_i32, %arg2 : i32, i32, i32
  }
  func.func @transform_3(%arg0: i32, %arg1: i32, %arg2: i32, %arg3: i32) -> (i32, i32) {
    %c1_i32 = arith.constant 1 : i32
    %0 = arith.muli %arg0, %c1_i32 : i32
    %1 = arith.addi %0, %arg2 : i32
    %c0_i32 = arith.constant 0 : i32
    return %arg1, %1 : i32, i32
  }
  func.func @transform_4(%arg0: i32, %arg1: i32, %arg2: i32, %arg3: i32) -> (i32, i32) {
    %c1_i32 = arith.constant 1 : i32
    %0 = arith.muli %arg0, %c1_i32 : i32
    %1 = arith.addi %0, %arg2 : i32
    %c0_i32 = arith.constant 0 : i32
    return %arg1, %1 : i32, i32
  }
}

module attributes {stable_mosaic.version = 11 : i64} {
  func.func @_fused_mm_kernel(%arg0: i32, %arg1: i32, %arg2: i32, %arg3: i32, %arg4: memref<1x16x256xbf16, #tpu.memory_space<vmem>>, %arg5: memref<1x256x256xbf16, #tpu.memory_space<vmem>>, %arg6: memref<1x1x256xf32, #tpu.memory_space<vmem>>, %arg7: memref<16x256xbf16, #tpu.memory_space<vmem>>, %arg8: memref<16x256xf32, #tpu.memory_space<vmem>>) attributes {dimension_semantics = [#tpu.dimension_semantics<parallel>, #tpu.dimension_semantics<parallel>, #tpu.dimension_semantics<parallel>, #tpu.dimension_semantics<arbitrary>], iteration_bounds = array<i64: 1, 1, 1, 1>, scalar_prefetch = 0 : i64, scratch_operands = 1 : i64, tpu.core_type = #tpu.core_type<tc>, window_params = [{transform_indices = @transform_0, window_bounds = array<i64: 1, 16, 256>}, {transform_indices = @transform_1, window_bounds = array<i64: 1, 256, 256>}, {transform_indices = @transform_2, window_bounds = array<i64: 1, 1, 256>}, {transform_indices = @transform_3, window_bounds = array<i64: 16, 256>}]} {
    %c0_i32 = arith.constant 0 : i32
    %0 = arith.cmpi eq, %arg3, %c0_i32 : i32
    %1 = arith.extui %0 : i1 to i32
    %c0_i32_0 = arith.constant 0 : i32
    %2 = arith.cmpi ne, %1, %c0_i32_0 : i32
    scf.if %2 {
      %cst_12 = arith.constant 0.000000e+00 : f32
      %14 = vector.broadcast %cst_12 : f32 to vector<16x256xf32>
      %c0_13 = arith.constant 0 : index
      %c0_14 = arith.constant 0 : index
      %15 = vector.load %arg8[%c0_13, %c0_14] : memref<16x256xf32, #tpu.memory_space<vmem>>, vector<16x256xf32>
      tpu.vector_store %arg8[%c0_13, %c0_14], %14 {strides = array<i32>} : memref<16x256xf32, #tpu.memory_space<vmem>>, vector<16x256xf32>,
    } else {
    }
    %c0 = arith.constant 0 : index
    %c0_1 = arith.constant 0 : index
    %3 = vector.load %arg8[%c0, %c0_1] : memref<16x256xf32, #tpu.memory_space<vmem>>, vector<16x256xf32>
    %c0_2 = arith.constant 0 : index
    %c0_3 = arith.constant 0 : index
    %c0_4 = arith.constant 0 : index
    %4 = vector.load %arg4[%c0_2, %c0_3, %c0_4] : memref<1x16x256xbf16, #tpu.memory_space<vmem>>, vector<1x16x256xbf16>
    %5 = vector.shape_cast %4 : vector<1x16x256xbf16> to vector<16x256xbf16>
    %c0_5 = arith.constant 0 : index
    %c0_6 = arith.constant 0 : index
    %c0_7 = arith.constant 0 : index
    %6 = vector.load %arg5[%c0_5, %c0_6, %c0_7] : memref<1x256x256xbf16, #tpu.memory_space<vmem>>, vector<1x256x256xbf16>
    %7 = vector.shape_cast %6 : vector<1x256x256xbf16> to vector<256x256xbf16>
    %cst = arith.constant dense<0.000000e+00> : vector<16x256xf32>
    %8 = tpu.matmul %5, %7, %cst {dimension_numbers = #tpu.dot_dimension_numbers<[1], [0], [0], [1], [0, 0, 1, 1], [], []>} : vector<16x256xbf16>, vector<256x256xbf16>, vector<16x256xf32> -> vector<16x256xf32>
    %9 = arith.addf %3, %8 : vector<16x256xf32>
    %c0_8 = arith.constant 0 : index
    %c0_9 = arith.constant 0 : index
    %10 = vector.load %arg8[%c0_8, %c0_9] : memref<16x256xf32, #tpu.memory_space<vmem>>, vector<16x256xf32>
    tpu.vector_store %arg8[%c0_8, %c0_9], %9 {strides = array<i32>} : memref<16x256xf32, #tpu.memory_space<vmem>>, vector<16x256xf32>,
    %c0_i32_10 = arith.constant 0 : i32
    %11 = arith.cmpi eq, %arg3, %c0_i32_10 : i32
    %12 = arith.extui %11 : i1 to i32
    %c0_i32_11 = arith.constant 0 : i32
    %13 = arith.cmpi ne, %12, %c0_i32_11 : i32
    scf.if %13 {
      %c0_12 = arith.constant 0 : index
      %c0_13 = arith.constant 0 : index
      %14 = vector.load %arg8[%c0_12, %c0_13] : memref<16x256xf32, #tpu.memory_space<vmem>>, vector<16x256xf32>
      %c0_14 = arith.constant 0 : index
      %c0_15 = arith.constant 0 : index
      %c0_16 = arith.constant 0 : index
      %15 = vector.load %arg6[%c0_14, %c0_15, %c0_16] : memref<1x1x256xf32, #tpu.memory_space<vmem>>, vector<1x1x256xf32>
      %16 = vector.shape_cast %15 : vector<1x1x256xf32> to vector<1x256xf32>
      %17 = vector.broadcast %16 : vector<1x256xf32> to vector<16x256xf32>
      %18 = arith.addf %14, %17 : vector<16x256xf32>
      %cst_17 = arith.constant 0.707106769 : f32
      %19 = vector.broadcast %cst_17 : f32 to vector<16x256xf32>
      %20 = arith.mulf %18, %19 : vector<16x256xf32>
      %21 = math.absf %20 : vector<16x256xf32>
      %cst_18 = arith.constant 0.327591091 : f32
      %22 = vector.broadcast %cst_18 : f32 to vector<16x256xf32>
      %23 = arith.mulf %22, %21 : vector<16x256xf32>
      %cst_19 = arith.constant 1.000000e+00 : f32
      %24 = vector.broadcast %cst_19 : f32 to vector<16x256xf32>
      %25 = arith.addf %24, %23 : vector<16x256xf32>
      %26 = tpu.reciprocal %25 {approx = true} : vector<16x256xf32> -> vector<16x256xf32>
      %cst_20 = arith.constant 1.06140542 : f32
      %27 = vector.broadcast %cst_20 : f32 to vector<16x256xf32>
      %28 = arith.mulf %26, %27 : vector<16x256xf32>
      %cst_21 = arith.constant -1.45315206 : f32
      %29 = vector.broadcast %cst_21 : f32 to vector<16x256xf32>
      %30 = arith.addf %29, %28 : vector<16x256xf32>
      %31 = arith.mulf %26, %30 : vector<16x256xf32>
      %cst_22 = arith.constant 1.42141378 : f32
      %32 = vector.broadcast %cst_22 : f32 to vector<16x256xf32>
      %33 = arith.addf %32, %31 : vector<16x256xf32>
      %34 = arith.mulf %26, %33 : vector<16x256xf32>
      %cst_23 = arith.constant -0.284496725 : f32
      %35 = vector.broadcast %cst_23 : f32 to vector<16x256xf32>
      %36 = arith.addf %35, %34 : vector<16x256xf32>
      %37 = arith.mulf %26, %36 : vector<16x256xf32>
      %cst_24 = arith.constant 0.254829586 : f32
      %38 = vector.broadcast %cst_24 : f32 to vector<16x256xf32>
      %39 = arith.addf %38, %37 : vector<16x256xf32>
      %40 = arith.mulf %26, %39 : vector<16x256xf32>
      %cst_25 = arith.constant 0.000000e+00 : f32
      %41 = vector.broadcast %cst_25 : f32 to vector<16x256xf32>
      %42 = arith.subf %41, %21 : vector<16x256xf32>
      %43 = arith.mulf %42, %21 : vector<16x256xf32>
      %44 = math.exp %43 : vector<16x256xf32>
      %45 = arith.mulf %40, %44 : vector<16x256xf32>
      %cst_26 = arith.constant 1.000000e+00 : f32
      %46 = vector.broadcast %cst_26 : f32 to vector<16x256xf32>
      %47 = arith.subf %46, %45 : vector<16x256xf32>
      %cst_27 = arith.constant 0.000000e+00 : f32
      %48 = vector.broadcast %cst_27 : f32 to vector<16x256xf32>
      %49 = arith.cmpf olt, %20, %48 : vector<16x256xf32>
      %cst_28 = arith.constant 0.000000e+00 : f32
      %50 = vector.broadcast %cst_28 : f32 to vector<16x256xf32>
      %51 = arith.subf %50, %47 : vector<16x256xf32>
      %52 = arith.select %49, %51, %47 : vector<16x256xi1>, vector<16x256xf32>
      %cst_29 = arith.constant 5.000000e-01 : f32
      %53 = vector.broadcast %cst_29 : f32 to vector<16x256xf32>
      %54 = arith.mulf %53, %18 : vector<16x256xf32>
      %cst_30 = arith.constant 1.000000e+00 : f32
      %55 = vector.broadcast %cst_30 : f32 to vector<16x256xf32>
      %56 = arith.addf %55, %52 : vector<16x256xf32>
      %57 = arith.mulf %54, %56 : vector<16x256xf32>
      %58 = arith.truncf %57 : vector<16x256xf32> to vector<16x256xbf16>
      %c0_31 = arith.constant 0 : index
      %c0_32 = arith.constant 0 : index
      %59 = vector.load %arg7[%c0_31, %c0_32] : memref<16x256xbf16, #tpu.memory_space<vmem>>, vector<16x256xbf16>
      tpu.vector_store %arg7[%c0_31, %c0_32], %58 {strides = array<i32>} : memref<16x256xbf16, #tpu.memory_space<vmem>>, vector<16x256xbf16>,
    } else {
    }
    return
  }
  func.func @transform_0(%arg0: i32, %arg1: i32, %arg2: i32, %arg3: i32) -> (i32, i32, i32) {
    %c0_i32 = arith.constant 0 : i32
    return %arg0, %arg1, %arg3 : i32, i32, i32
  }
  func.func @transform_1(%arg0: i32, %arg1: i32, %arg2: i32, %arg3: i32) -> (i32, i32, i32) {
    %c0_i32 = arith.constant 0 : i32
    return %arg0, %arg3, %arg2 : i32, i32, i32
  }
  func.func @transform_2(%arg0: i32, %arg1: i32, %arg2: i32, %arg3: i32) -> (i32, i32, i32) {
    %c0_i32 = arith.constant 0 : i32
    %c0_i32_0 = arith.constant 0 : i32
    return %arg0, %c0_i32, %arg2 : i32, i32, i32
  }
  func.func @transform_3(%arg0: i32, %arg1: i32, %arg2: i32, %arg3: i32) -> (i32, i32) {
    %c1_i32 = arith.constant 1 : i32
    %0 = arith.muli %arg0, %c1_i32 : i32
    %1 = arith.addi %0, %arg2 : i32
    %c0_i32 = arith.constant 0 : i32
    return %arg1, %1 : i32, i32
  }
}

module attributes {stable_mosaic.version = 11 : i64} {
  func.func @_fused_mm_kernel(%arg0: i32, %arg1: i32, %arg2: i32, %arg3: i32, %arg4: memref<1x16x256xbf16, #tpu.memory_space<vmem>>, %arg5: memref<1x256x256xbf16, #tpu.memory_space<vmem>>, %arg6: memref<1x1x256xf32, #tpu.memory_space<vmem>>, %arg7: memref<16x256xbf16, #tpu.memory_space<vmem>>, %arg8: memref<16x256xf32, #tpu.memory_space<vmem>>) attributes {dimension_semantics = [#tpu.dimension_semantics<parallel>, #tpu.dimension_semantics<parallel>, #tpu.dimension_semantics<parallel>, #tpu.dimension_semantics<arbitrary>], iteration_bounds = array<i64: 1, 1, 2, 1>, scalar_prefetch = 0 : i64, scratch_operands = 1 : i64, tpu.core_type = #tpu.core_type<tc>, window_params = [{transform_indices = @transform_0, window_bounds = array<i64: 1, 16, 256>}, {transform_indices = @transform_1, window_bounds = array<i64: 1, 256, 256>}, {transform_indices = @transform_2, window_bounds = array<i64: 1, 1, 256>}, {transform_indices = @transform_3, window_bounds = array<i64: 16, 256>}]} {
    %c0_i32 = arith.constant 0 : i32
    %0 = arith.cmpi eq, %arg3, %c0_i32 : i32
    %1 = arith.extui %0 : i1 to i32
    %c0_i32_0 = arith.constant 0 : i32
    %2 = arith.cmpi ne, %1, %c0_i32_0 : i32
    scf.if %2 {
      %cst_12 = arith.constant 0.000000e+00 : f32
      %14 = vector.broadcast %cst_12 : f32 to vector<16x256xf32>
      %c0_13 = arith.constant 0 : index
      %c0_14 = arith.constant 0 : index
      %15 = vector.load %arg8[%c0_13, %c0_14] : memref<16x256xf32, #tpu.memory_space<vmem>>, vector<16x256xf32>
      tpu.vector_store %arg8[%c0_13, %c0_14], %14 {strides = array<i32>} : memref<16x256xf32, #tpu.memory_space<vmem>>, vector<16x256xf32>,
    } else {
    }
    %c0 = arith.constant 0 : index
    %c0_1 = arith.constant 0 : index
    %3 = vector.load %arg8[%c0, %c0_1] : memref<16x256xf32, #tpu.memory_space<vmem>>, vector<16x256xf32>
    %c0_2 = arith.constant 0 : index
    %c0_3 = arith.constant 0 : index
    %c0_4 = arith.constant 0 : index
    %4 = vector.load %arg4[%c0_2, %c0_3, %c0_4] : memref<1x16x256xbf16, #tpu.memory_space<vmem>>, vector<1x16x256xbf16>
    %5 = vector.shape_cast %4 : vector<1x16x256xbf16> to vector<16x256xbf16>
    %c0_5 = arith.constant 0 : index
    %c0_6 = arith.constant 0 : index
    %c0_7 = arith.constant 0 : index
    %6 = vector.load %arg5[%c0_5, %c0_6, %c0_7] : memref<1x256x256xbf16, #tpu.memory_space<vmem>>, vector<1x256x256xbf16>
    %7 = vector.shape_cast %6 : vector<1x256x256xbf16> to vector<256x256xbf16>
    %cst = arith.constant dense<0.000000e+00> : vector<16x256xf32>
    %8 = tpu.matmul %5, %7, %cst {dimension_numbers = #tpu.dot_dimension_numbers<[1], [0], [0], [1], [0, 0, 1, 1], [], []>} : vector<16x256xbf16>, vector<256x256xbf16>, vector<16x256xf32> -> vector<16x256xf32>
    %9 = arith.addf %3, %8 : vector<16x256xf32>
    %c0_8 = arith.constant 0 : index
    %c0_9 = arith.constant 0 : index
    %10 = vector.load %arg8[%c0_8, %c0_9] : memref<16x256xf32, #tpu.memory_space<vmem>>, vector<16x256xf32>
    tpu.vector_store %arg8[%c0_8, %c0_9], %9 {strides = array<i32>} : memref<16x256xf32, #tpu.memory_space<vmem>>, vector<16x256xf32>,
    %c0_i32_10 = arith.constant 0 : i32
    %11 = arith.cmpi eq, %arg3, %c0_i32_10 : i32
    %12 = arith.extui %11 : i1 to i32
    %c0_i32_11 = arith.constant 0 : i32
    %13 = arith.cmpi ne, %12, %c0_i32_11 : i32
    scf.if %13 {
      %c0_12 = arith.constant 0 : index
      %c0_13 = arith.constant 0 : index
      %14 = vector.load %arg8[%c0_12, %c0_13] : memref<16x256xf32, #tpu.memory_space<vmem>>, vector<16x256xf32>
      %c0_14 = arith.constant 0 : index
      %c0_15 = arith.constant 0 : index
      %c0_16 = arith.constant 0 : index
      %15 = vector.load %arg6[%c0_14, %c0_15, %c0_16] : memref<1x1x256xf32, #tpu.memory_space<vmem>>, vector<1x1x256xf32>
      %16 = vector.shape_cast %15 : vector<1x1x256xf32> to vector<1x256xf32>
      %17 = vector.broadcast %16 : vector<1x256xf32> to vector<16x256xf32>
      %18 = arith.addf %14, %17 : vector<16x256xf32>
      %cst_17 = arith.constant 0.707106769 : f32
      %19 = vector.broadcast %cst_17 : f32 to vector<16x256xf32>
      %20 = arith.mulf %18, %19 : vector<16x256xf32>
      %21 = math.absf %20 : vector<16x256xf32>
      %cst_18 = arith.constant 0.327591091 : f32
      %22 = vector.broadcast %cst_18 : f32 to vector<16x256xf32>
      %23 = arith.mulf %22, %21 : vector<16x256xf32>
      %cst_19 = arith.constant 1.000000e+00 : f32
      %24 = vector.broadcast %cst_19 : f32 to vector<16x256xf32>
      %25 = arith.addf %24, %23 : vector<16x256xf32>
      %26 = tpu.reciprocal %25 {approx = true} : vector<16x256xf32> -> vector<16x256xf32>
      %cst_20 = arith.constant 1.06140542 : f32
      %27 = vector.broadcast %cst_20 : f32 to vector<16x256xf32>
      %28 = arith.mulf %26, %27 : vector<16x256xf32>
      %cst_21 = arith.constant -1.45315206 : f32
      %29 = vector.broadcast %cst_21 : f32 to vector<16x256xf32>
      %30 = arith.addf %29, %28 : vector<16x256xf32>
      %31 = arith.mulf %26, %30 : vector<16x256xf32>
      %cst_22 = arith.constant 1.42141378 : f32
      %32 = vector.broadcast %cst_22 : f32 to vector<16x256xf32>
      %33 = arith.addf %32, %31 : vector<16x256xf32>
      %34 = arith.mulf %26, %33 : vector<16x256xf32>
      %cst_23 = arith.constant -0.284496725 : f32
      %35 = vector.broadcast %cst_23 : f32 to vector<16x256xf32>
      %36 = arith.addf %35, %34 : vector<16x256xf32>
      %37 = arith.mulf %26, %36 : vector<16x256xf32>
      %cst_24 = arith.constant 0.254829586 : f32
      %38 = vector.broadcast %cst_24 : f32 to vector<16x256xf32>
      %39 = arith.addf %38, %37 : vector<16x256xf32>
      %40 = arith.mulf %26, %39 : vector<16x256xf32>
      %cst_25 = arith.constant 0.000000e+00 : f32
      %41 = vector.broadcast %cst_25 : f32 to vector<16x256xf32>
      %42 = arith.subf %41, %21 : vector<16x256xf32>
      %43 = arith.mulf %42, %21 : vector<16x256xf32>
      %44 = math.exp %43 : vector<16x256xf32>
      %45 = arith.mulf %40, %44 : vector<16x256xf32>
      %cst_26 = arith.constant 1.000000e+00 : f32
      %46 = vector.broadcast %cst_26 : f32 to vector<16x256xf32>
      %47 = arith.subf %46, %45 : vector<16x256xf32>
      %cst_27 = arith.constant 0.000000e+00 : f32
      %48 = vector.broadcast %cst_27 : f32 to vector<16x256xf32>
      %49 = arith.cmpf olt, %20, %48 : vector<16x256xf32>
      %cst_28 = arith.constant 0.000000e+00 : f32
      %50 = vector.broadcast %cst_28 : f32 to vector<16x256xf32>
      %51 = arith.subf %50, %47 : vector<16x256xf32>
      %52 = arith.select %49, %51, %47 : vector<16x256xi1>, vector<16x256xf32>
      %cst_29 = arith.constant 5.000000e-01 : f32
      %53 = vector.broadcast %cst_29 : f32 to vector<16x256xf32>
      %54 = arith.mulf %53, %18 : vector<16x256xf32>
      %cst_30 = arith.constant 1.000000e+00 : f32
      %55 = vector.broadcast %cst_30 : f32 to vector<16x256xf32>
      %56 = arith.addf %55, %52 : vector<16x256xf32>
      %57 = arith.mulf %54, %56 : vector<16x256xf32>
      %58 = arith.truncf %57 : vector<16x256xf32> to vector<16x256xbf16>
      %c0_31 = arith.constant 0 : index
      %c0_32 = arith.constant 0 : index
      %59 = vector.load %arg7[%c0_31, %c0_32] : memref<16x256xbf16, #tpu.memory_space<vmem>>, vector<16x256xbf16>
      tpu.vector_store %arg7[%c0_31, %c0_32], %58 {strides = array<i32>} : memref<16x256xbf16, #tpu.memory_space<vmem>>, vector<16x256xbf16>,
    } else {
    }
    return
  }
  func.func @transform_0(%arg0: i32, %arg1: i32, %arg2: i32, %arg3: i32) -> (i32, i32, i32) {
    %c0_i32 = arith.constant 0 : i32
    return %arg0, %arg1, %arg3 : i32, i32, i32
  }
  func.func @transform_1(%arg0: i32, %arg1: i32, %arg2: i32, %arg3: i32) -> (i32, i32, i32) {
    %c0_i32 = arith.constant 0 : i32
    return %arg0, %arg3, %arg2 : i32, i32, i32
  }
  func.func @transform_2(%arg0: i32, %arg1: i32, %arg2: i32, %arg3: i32) -> (i32, i32, i32) {
    %c0_i32 = arith.constant 0 : i32
    %c0_i32_0 = arith.constant 0 : i32
    return %arg0, %c0_i32, %arg2 : i32, i32, i32
  }
  func.func @transform_3(%arg0: i32, %arg1: i32, %arg2: i32, %arg3: i32) -> (i32, i32) {
    %c2_i32 = arith.constant 2 : i32
    %0 = arith.muli %arg0, %c2_i32 : i32
    %1 = arith.addi %0, %arg2 : i32
    %c0_i32 = arith.constant 0 : i32
    return %arg1, %1 : i32, i32
  }
}

module attributes {stable_mosaic.version = 11 : i64} {
  func.func @_fused_mm_kernel(%arg0: i32, %arg1: i32, %arg2: i32, %arg3: i32, %arg4: memref<1x16x1152xbf16, #tpu.memory_space<vmem>>, %arg5: memref<1x1152x128xbf16, #tpu.memory_space<vmem>>, %arg6: memref<1x1x128xf32, #tpu.memory_space<vmem>>, %arg7: memref<16x128xbf16, #tpu.memory_space<vmem>>, %arg8: memref<16x128xf32, #tpu.memory_space<vmem>>) attributes {dimension_semantics = [#tpu.dimension_semantics<parallel>, #tpu.dimension_semantics<parallel>, #tpu.dimension_semantics<parallel>, #tpu.dimension_semantics<arbitrary>], iteration_bounds = array<i64: 4, 1, 1, 1>, scalar_prefetch = 0 : i64, scratch_operands = 1 : i64, tpu.core_type = #tpu.core_type<tc>, window_params = [{transform_indices = @transform_0, window_bounds = array<i64: 1, 16, 1152>}, {transform_indices = @transform_1, window_bounds = array<i64: 1, 1152, 128>}, {transform_indices = @transform_2, window_bounds = array<i64: 1, 1, 128>}, {transform_indices = @transform_3, window_bounds = array<i64: 16, 128>}]} {
    %c0_i32 = arith.constant 0 : i32
    %0 = arith.cmpi eq, %arg3, %c0_i32 : i32
    %1 = arith.extui %0 : i1 to i32
    %c0_i32_0 = arith.constant 0 : i32
    %2 = arith.cmpi ne, %1, %c0_i32_0 : i32
    scf.if %2 {
      %cst_12 = arith.constant 0.000000e+00 : f32
      %14 = vector.broadcast %cst_12 : f32 to vector<16x128xf32>
      %c0_13 = arith.constant 0 : index
      %c0_14 = arith.constant 0 : index
      %15 = vector.load %arg8[%c0_13, %c0_14] : memref<16x128xf32, #tpu.memory_space<vmem>>, vector<16x128xf32>
      tpu.vector_store %arg8[%c0_13, %c0_14], %14 {strides = array<i32>} : memref<16x128xf32, #tpu.memory_space<vmem>>, vector<16x128xf32>,
    } else {
    }
    %c0 = arith.constant 0 : index
    %c0_1 = arith.constant 0 : index
    %3 = vector.load %arg8[%c0, %c0_1] : memref<16x128xf32, #tpu.memory_space<vmem>>, vector<16x128xf32>
    %c0_2 = arith.constant 0 : index
    %c0_3 = arith.constant 0 : index
    %c0_4 = arith.constant 0 : index
    %4 = vector.load %arg4[%c0_2, %c0_3, %c0_4] : memref<1x16x1152xbf16, #tpu.memory_space<vmem>>, vector<1x16x1152xbf16>
    %5 = vector.shape_cast %4 : vector<1x16x1152xbf16> to vector<16x1152xbf16>
    %c0_5 = arith.constant 0 : index
    %c0_6 = arith.constant 0 : index
    %c0_7 = arith.constant 0 : index
    %6 = vector.load %arg5[%c0_5, %c0_6, %c0_7] : memref<1x1152x128xbf16, #tpu.memory_space<vmem>>, vector<1x1152x128xbf16>
    %7 = vector.shape_cast %6 : vector<1x1152x128xbf16> to vector<1152x128xbf16>
    %cst = arith.constant dense<0.000000e+00> : vector<16x128xf32>
    %8 = tpu.matmul %5, %7, %cst {dimension_numbers = #tpu.dot_dimension_numbers<[1], [0], [0], [1], [0, 0, 1, 1], [], []>} : vector<16x1152xbf16>, vector<1152x128xbf16>, vector<16x128xf32> -> vector<16x128xf32>
    %9 = arith.addf %3, %8 : vector<16x128xf32>
    %c0_8 = arith.constant 0 : index
    %c0_9 = arith.constant 0 : index
    %10 = vector.load %arg8[%c0_8, %c0_9] : memref<16x128xf32, #tpu.memory_space<vmem>>, vector<16x128xf32>
    tpu.vector_store %arg8[%c0_8, %c0_9], %9 {strides = array<i32>} : memref<16x128xf32, #tpu.memory_space<vmem>>, vector<16x128xf32>,
    %c0_i32_10 = arith.constant 0 : i32
    %11 = arith.cmpi eq, %arg3, %c0_i32_10 : i32
    %12 = arith.extui %11 : i1 to i32
    %c0_i32_11 = arith.constant 0 : i32
    %13 = arith.cmpi ne, %12, %c0_i32_11 : i32
    scf.if %13 {
      %c0_12 = arith.constant 0 : index
      %c0_13 = arith.constant 0 : index
      %14 = vector.load %arg8[%c0_12, %c0_13] : memref<16x128xf32, #tpu.memory_space<vmem>>, vector<16x128xf32>
      %c0_14 = arith.constant 0 : index
      %c0_15 = arith.constant 0 : index
      %c0_16 = arith.constant 0 : index
      %15 = vector.load %arg6[%c0_14, %c0_15, %c0_16] : memref<1x1x128xf32, #tpu.memory_space<vmem>>, vector<1x1x128xf32>
      %16 = vector.shape_cast %15 : vector<1x1x128xf32> to vector<1x128xf32>
      %17 = vector.broadcast %16 : vector<1x128xf32> to vector<16x128xf32>
      %18 = arith.addf %14, %17 : vector<16x128xf32>
      %cst_17 = arith.constant 0.707106769 : f32
      %19 = vector.broadcast %cst_17 : f32 to vector<16x128xf32>
      %20 = arith.mulf %18, %19 : vector<16x128xf32>
      %21 = math.absf %20 : vector<16x128xf32>
      %cst_18 = arith.constant 0.327591091 : f32
      %22 = vector.broadcast %cst_18 : f32 to vector<16x128xf32>
      %23 = arith.mulf %22, %21 : vector<16x128xf32>
      %cst_19 = arith.constant 1.000000e+00 : f32
      %24 = vector.broadcast %cst_19 : f32 to vector<16x128xf32>
      %25 = arith.addf %24, %23 : vector<16x128xf32>
      %26 = tpu.reciprocal %25 {approx = true} : vector<16x128xf32> -> vector<16x128xf32>
      %cst_20 = arith.constant 1.06140542 : f32
      %27 = vector.broadcast %cst_20 : f32 to vector<16x128xf32>
      %28 = arith.mulf %26, %27 : vector<16x128xf32>
      %cst_21 = arith.constant -1.45315206 : f32
      %29 = vector.broadcast %cst_21 : f32 to vector<16x128xf32>
      %30 = arith.addf %29, %28 : vector<16x128xf32>
      %31 = arith.mulf %26, %30 : vector<16x128xf32>
      %cst_22 = arith.constant 1.42141378 : f32
      %32 = vector.broadcast %cst_22 : f32 to vector<16x128xf32>
      %33 = arith.addf %32, %31 : vector<16x128xf32>
      %34 = arith.mulf %26, %33 : vector<16x128xf32>
      %cst_23 = arith.constant -0.284496725 : f32
      %35 = vector.broadcast %cst_23 : f32 to vector<16x128xf32>
      %36 = arith.addf %35, %34 : vector<16x128xf32>
      %37 = arith.mulf %26, %36 : vector<16x128xf32>
      %cst_24 = arith.constant 0.254829586 : f32
      %38 = vector.broadcast %cst_24 : f32 to vector<16x128xf32>
      %39 = arith.addf %38, %37 : vector<16x128xf32>
      %40 = arith.mulf %26, %39 : vector<16x128xf32>
      %cst_25 = arith.constant 0.000000e+00 : f32
      %41 = vector.broadcast %cst_25 : f32 to vector<16x128xf32>
      %42 = arith.subf %41, %21 : vector<16x128xf32>
      %43 = arith.mulf %42, %21 : vector<16x128xf32>
      %44 = math.exp %43 : vector<16x128xf32>
      %45 = arith.mulf %40, %44 : vector<16x128xf32>
      %cst_26 = arith.constant 1.000000e+00 : f32
      %46 = vector.broadcast %cst_26 : f32 to vector<16x128xf32>
      %47 = arith.subf %46, %45 : vector<16x128xf32>
      %cst_27 = arith.constant 0.000000e+00 : f32
      %48 = vector.broadcast %cst_27 : f32 to vector<16x128xf32>
      %49 = arith.cmpf olt, %20, %48 : vector<16x128xf32>
      %cst_28 = arith.constant 0.000000e+00 : f32
      %50 = vector.broadcast %cst_28 : f32 to vector<16x128xf32>
      %51 = arith.subf %50, %47 : vector<16x128xf32>
      %52 = arith.select %49, %51, %47 : vector<16x128xi1>, vector<16x128xf32>
      %cst_29 = arith.constant 5.000000e-01 : f32
      %53 = vector.broadcast %cst_29 : f32 to vector<16x128xf32>
      %54 = arith.mulf %53, %18 : vector<16x128xf32>
      %cst_30 = arith.constant 1.000000e+00 : f32
      %55 = vector.broadcast %cst_30 : f32 to vector<16x128xf32>
      %56 = arith.addf %55, %52 : vector<16x128xf32>
      %57 = arith.mulf %54, %56 : vector<16x128xf32>
      %58 = arith.truncf %57 : vector<16x128xf32> to vector<16x128xbf16>
      %c0_31 = arith.constant 0 : index
      %c0_32 = arith.constant 0 : index
      %59 = vector.load %arg7[%c0_31, %c0_32] : memref<16x128xbf16, #tpu.memory_space<vmem>>, vector<16x128xbf16>
      tpu.vector_store %arg7[%c0_31, %c0_32], %58 {strides = array<i32>} : memref<16x128xbf16, #tpu.memory_space<vmem>>, vector<16x128xbf16>,
    } else {
    }
    return
  }
  func.func @transform_0(%arg0: i32, %arg1: i32, %arg2: i32, %arg3: i32) -> (i32, i32, i32) {
    %c0_i32 = arith.constant 0 : i32
    return %arg0, %arg1, %arg3 : i32, i32, i32
  }
  func.func @transform_1(%arg0: i32, %arg1: i32, %arg2: i32, %arg3: i32) -> (i32, i32, i32) {
    %c0_i32 = arith.constant 0 : i32
    return %arg0, %arg3, %arg2 : i32, i32, i32
  }
  func.func @transform_2(%arg0: i32, %arg1: i32, %arg2: i32, %arg3: i32) -> (i32, i32, i32) {
    %c0_i32 = arith.constant 0 : i32
    %c0_i32_0 = arith.constant 0 : i32
    return %arg0, %c0_i32, %arg2 : i32, i32, i32
  }
  func.func @transform_3(%arg0: i32, %arg1: i32, %arg2: i32, %arg3: i32) -> (i32, i32) {
    %c1_i32 = arith.constant 1 : i32
    %0 = arith.muli %arg0, %c1_i32 : i32
    %1 = arith.addi %0, %arg2 : i32
    %c0_i32 = arith.constant 0 : i32
    return %arg1, %1 : i32, i32
  }
}

module attributes {stable_mosaic.version = 11 : i64} {
  func.func @_fused_mm_kernel(%arg0: i32, %arg1: i32, %arg2: i32, %arg3: i32, %arg4: memref<1x16x256xbf16, #tpu.memory_space<vmem>>, %arg5: memref<1x256x256xbf16, #tpu.memory_space<vmem>>, %arg6: memref<1x1x256xf32, #tpu.memory_space<vmem>>, %arg7: memref<16x256xbf16, #tpu.memory_space<vmem>>, %arg8: memref<16x256xf32, #tpu.memory_space<vmem>>) attributes {dimension_semantics = [#tpu.dimension_semantics<parallel>, #tpu.dimension_semantics<parallel>, #tpu.dimension_semantics<parallel>, #tpu.dimension_semantics<arbitrary>], iteration_bounds = array<i64: 1, 1, 2, 1>, scalar_prefetch = 0 : i64, scratch_operands = 1 : i64, tpu.core_type = #tpu.core_type<tc>, window_params = [{transform_indices = @transform_0, window_bounds = array<i64: 1, 16, 256>}, {transform_indices = @transform_1, window_bounds = array<i64: 1, 256, 256>}, {transform_indices = @transform_2, window_bounds = array<i64: 1, 1, 256>}, {transform_indices = @transform_3, window_bounds = array<i64: 16, 256>}]} {
    %c0_i32 = arith.constant 0 : i32
    %0 = arith.cmpi eq, %arg3, %c0_i32 : i32
    %1 = arith.extui %0 : i1 to i32
    %c0_i32_0 = arith.constant 0 : i32
    %2 = arith.cmpi ne, %1, %c0_i32_0 : i32
    scf.if %2 {
      %cst_12 = arith.constant 0.000000e+00 : f32
      %14 = vector.broadcast %cst_12 : f32 to vector<16x256xf32>
      %c0_13 = arith.constant 0 : index
      %c0_14 = arith.constant 0 : index
      %15 = vector.load %arg8[%c0_13, %c0_14] : memref<16x256xf32, #tpu.memory_space<vmem>>, vector<16x256xf32>
      tpu.vector_store %arg8[%c0_13, %c0_14], %14 {strides = array<i32>} : memref<16x256xf32, #tpu.memory_space<vmem>>, vector<16x256xf32>,
    } else {
    }
    %c0 = arith.constant 0 : index
    %c0_1 = arith.constant 0 : index
    %3 = vector.load %arg8[%c0, %c0_1] : memref<16x256xf32, #tpu.memory_space<vmem>>, vector<16x256xf32>
    %c0_2 = arith.constant 0 : index
    %c0_3 = arith.constant 0 : index
    %c0_4 = arith.constant 0 : index
    %4 = vector.load %arg4[%c0_2, %c0_3, %c0_4] : memref<1x16x256xbf16, #tpu.memory_space<vmem>>, vector<1x16x256xbf16>
    %5 = vector.shape_cast %4 : vector<1x16x256xbf16> to vector<16x256xbf16>
    %c0_5 = arith.constant 0 : index
    %c0_6 = arith.constant 0 : index
    %c0_7 = arith.constant 0 : index
    %6 = vector.load %arg5[%c0_5, %c0_6, %c0_7] : memref<1x256x256xbf16, #tpu.memory_space<vmem>>, vector<1x256x256xbf16>
    %7 = vector.shape_cast %6 : vector<1x256x256xbf16> to vector<256x256xbf16>
    %cst = arith.constant dense<0.000000e+00> : vector<16x256xf32>
    %8 = tpu.matmul %5, %7, %cst {dimension_numbers = #tpu.dot_dimension_numbers<[1], [0], [0], [1], [0, 0, 1, 1], [], []>} : vector<16x256xbf16>, vector<256x256xbf16>, vector<16x256xf32> -> vector<16x256xf32>
    %9 = arith.addf %3, %8 : vector<16x256xf32>
    %c0_8 = arith.constant 0 : index
    %c0_9 = arith.constant 0 : index
    %10 = vector.load %arg8[%c0_8, %c0_9] : memref<16x256xf32, #tpu.memory_space<vmem>>, vector<16x256xf32>
    tpu.vector_store %arg8[%c0_8, %c0_9], %9 {strides = array<i32>} : memref<16x256xf32, #tpu.memory_space<vmem>>, vector<16x256xf32>,
    %c0_i32_10 = arith.constant 0 : i32
    %11 = arith.cmpi eq, %arg3, %c0_i32_10 : i32
    %12 = arith.extui %11 : i1 to i32
    %c0_i32_11 = arith.constant 0 : i32
    %13 = arith.cmpi ne, %12, %c0_i32_11 : i32
    scf.if %13 {
      %c0_12 = arith.constant 0 : index
      %c0_13 = arith.constant 0 : index
      %14 = vector.load %arg8[%c0_12, %c0_13] : memref<16x256xf32, #tpu.memory_space<vmem>>, vector<16x256xf32>
      %c0_14 = arith.constant 0 : index
      %c0_15 = arith.constant 0 : index
      %c0_16 = arith.constant 0 : index
      %15 = vector.load %arg6[%c0_14, %c0_15, %c0_16] : memref<1x1x256xf32, #tpu.memory_space<vmem>>, vector<1x1x256xf32>
      %16 = vector.shape_cast %15 : vector<1x1x256xf32> to vector<1x256xf32>
      %17 = vector.broadcast %16 : vector<1x256xf32> to vector<16x256xf32>
      %18 = arith.addf %14, %17 : vector<16x256xf32>
      %19 = arith.truncf %18 : vector<16x256xf32> to vector<16x256xbf16>
      %c0_17 = arith.constant 0 : index
      %c0_18 = arith.constant 0 : index
      %20 = vector.load %arg7[%c0_17, %c0_18] : memref<16x256xbf16, #tpu.memory_space<vmem>>, vector<16x256xbf16>
      tpu.vector_store %arg7[%c0_17, %c0_18], %19 {strides = array<i32>} : memref<16x256xbf16, #tpu.memory_space<vmem>>, vector<16x256xbf16>,
    } else {
    }
    return
  }
  func.func @transform_0(%arg0: i32, %arg1: i32, %arg2: i32, %arg3: i32) -> (i32, i32, i32) {
    %c0_i32 = arith.constant 0 : i32
    return %arg0, %arg1, %arg3 : i32, i32, i32
  }
  func.func @transform_1(%arg0: i32, %arg1: i32, %arg2: i32, %arg3: i32) -> (i32, i32, i32) {
    %c0_i32 = arith.constant 0 : i32
    return %arg0, %arg3, %arg2 : i32, i32, i32
  }
  func.func @transform_2(%arg0: i32, %arg1: i32, %arg2: i32, %arg3: i32) -> (i32, i32, i32) {
    %c0_i32 = arith.constant 0 : i32
    %c0_i32_0 = arith.constant 0 : i32
    return %arg0, %c0_i32, %arg2 : i32, i32, i32
  }
  func.func @transform_3(%arg0: i32, %arg1: i32, %arg2: i32, %arg3: i32) -> (i32, i32) {
    %c2_i32 = arith.constant 2 : i32
    %0 = arith.muli %arg0, %c2_i32 : i32
    %1 = arith.addi %0, %arg2 : i32
    %c0_i32 = arith.constant 0 : i32
    return %arg1, %1 : i32, i32
  }
}

module attributes {stable_mosaic.version = 11 : i64} {
  func.func @_fused_mm_kernel(%arg0: i32, %arg1: i32, %arg2: i32, %arg3: i32, %arg4: memref<1x16x512xbf16, #tpu.memory_space<vmem>>, %arg5: memref<1x512x256xbf16, #tpu.memory_space<vmem>>, %arg6: memref<1x1x256xf32, #tpu.memory_space<vmem>>, %arg7: memref<16x256xbf16, #tpu.memory_space<vmem>>, %arg8: memref<16x256xbf16, #tpu.memory_space<vmem>>, %arg9: memref<16x256xf32, #tpu.memory_space<vmem>>) attributes {dimension_semantics = [#tpu.dimension_semantics<parallel>, #tpu.dimension_semantics<parallel>, #tpu.dimension_semantics<parallel>, #tpu.dimension_semantics<arbitrary>], iteration_bounds = array<i64: 1, 1, 2, 1>, scalar_prefetch = 0 : i64, scratch_operands = 1 : i64, tpu.core_type = #tpu.core_type<tc>, window_params = [{transform_indices = @transform_0, window_bounds = array<i64: 1, 16, 512>}, {transform_indices = @transform_1, window_bounds = array<i64: 1, 512, 256>}, {transform_indices = @transform_2, window_bounds = array<i64: 1, 1, 256>}, {transform_indices = @transform_3, window_bounds = array<i64: 16, 256>}, {transform_indices = @transform_4, window_bounds = array<i64: 16, 256>}]} {
    %c0_i32 = arith.constant 0 : i32
    %0 = arith.cmpi eq, %arg3, %c0_i32 : i32
    %1 = arith.extui %0 : i1 to i32
    %c0_i32_0 = arith.constant 0 : i32
    %2 = arith.cmpi ne, %1, %c0_i32_0 : i32
    scf.if %2 {
      %cst_12 = arith.constant 0.000000e+00 : f32
      %14 = vector.broadcast %cst_12 : f32 to vector<16x256xf32>
      %c0_13 = arith.constant 0 : index
      %c0_14 = arith.constant 0 : index
      %15 = vector.load %arg9[%c0_13, %c0_14] : memref<16x256xf32, #tpu.memory_space<vmem>>, vector<16x256xf32>
      tpu.vector_store %arg9[%c0_13, %c0_14], %14 {strides = array<i32>} : memref<16x256xf32, #tpu.memory_space<vmem>>, vector<16x256xf32>,
    } else {
    }
    %c0 = arith.constant 0 : index
    %c0_1 = arith.constant 0 : index
    %3 = vector.load %arg9[%c0, %c0_1] : memref<16x256xf32, #tpu.memory_space<vmem>>, vector<16x256xf32>
    %c0_2 = arith.constant 0 : index
    %c0_3 = arith.constant 0 : index
    %c0_4 = arith.constant 0 : index
    %4 = vector.load %arg4[%c0_2, %c0_3, %c0_4] : memref<1x16x512xbf16, #tpu.memory_space<vmem>>, vector<1x16x512xbf16>
    %5 = vector.shape_cast %4 : vector<1x16x512xbf16> to vector<16x512xbf16>
    %c0_5 = arith.constant 0 : index
    %c0_6 = arith.constant 0 : index
    %c0_7 = arith.constant 0 : index
    %6 = vector.load %arg5[%c0_5, %c0_6, %c0_7] : memref<1x512x256xbf16, #tpu.memory_space<vmem>>, vector<1x512x256xbf16>
    %7 = vector.shape_cast %6 : vector<1x512x256xbf16> to vector<512x256xbf16>
    %cst = arith.constant dense<0.000000e+00> : vector<16x256xf32>
    %8 = tpu.matmul %5, %7, %cst {dimension_numbers = #tpu.dot_dimension_numbers<[1], [0], [0], [1], [0, 0, 1, 1], [], []>} : vector<16x512xbf16>, vector<512x256xbf16>, vector<16x256xf32> -> vector<16x256xf32>
    %9 = arith.addf %3, %8 : vector<16x256xf32>
    %c0_8 = arith.constant 0 : index
    %c0_9 = arith.constant 0 : index
    %10 = vector.load %arg9[%c0_8, %c0_9] : memref<16x256xf32, #tpu.memory_space<vmem>>, vector<16x256xf32>
    tpu.vector_store %arg9[%c0_8, %c0_9], %9 {strides = array<i32>} : memref<16x256xf32, #tpu.memory_space<vmem>>, vector<16x256xf32>,
    %c0_i32_10 = arith.constant 0 : i32
    %11 = arith.cmpi eq, %arg3, %c0_i32_10 : i32
    %12 = arith.extui %11 : i1 to i32
    %c0_i32_11 = arith.constant 0 : i32
    %13 = arith.cmpi ne, %12, %c0_i32_11 : i32
    scf.if %13 {
      %c0_12 = arith.constant 0 : index
      %c0_13 = arith.constant 0 : index
      %14 = vector.load %arg9[%c0_12, %c0_13] : memref<16x256xf32, #tpu.memory_space<vmem>>, vector<16x256xf32>
      %c0_14 = arith.constant 0 : index
      %c0_15 = arith.constant 0 : index
      %c0_16 = arith.constant 0 : index
      %15 = vector.load %arg6[%c0_14, %c0_15, %c0_16] : memref<1x1x256xf32, #tpu.memory_space<vmem>>, vector<1x1x256xf32>
      %16 = vector.shape_cast %15 : vector<1x1x256xf32> to vector<1x256xf32>
      %17 = vector.broadcast %16 : vector<1x256xf32> to vector<16x256xf32>
      %18 = arith.addf %14, %17 : vector<16x256xf32>
      %cst_17 = arith.constant 0.707106769 : f32
      %19 = vector.broadcast %cst_17 : f32 to vector<16x256xf32>
      %20 = arith.mulf %18, %19 : vector<16x256xf32>
      %21 = math.absf %20 : vector<16x256xf32>
      %cst_18 = arith.constant 0.327591091 : f32
      %22 = vector.broadcast %cst_18 : f32 to vector<16x256xf32>
      %23 = arith.mulf %22, %21 : vector<16x256xf32>
      %cst_19 = arith.constant 1.000000e+00 : f32
      %24 = vector.broadcast %cst_19 : f32 to vector<16x256xf32>
      %25 = arith.addf %24, %23 : vector<16x256xf32>
      %26 = tpu.reciprocal %25 {approx = true} : vector<16x256xf32> -> vector<16x256xf32>
      %cst_20 = arith.constant 1.06140542 : f32
      %27 = vector.broadcast %cst_20 : f32 to vector<16x256xf32>
      %28 = arith.mulf %26, %27 : vector<16x256xf32>
      %cst_21 = arith.constant -1.45315206 : f32
      %29 = vector.broadcast %cst_21 : f32 to vector<16x256xf32>
      %30 = arith.addf %29, %28 : vector<16x256xf32>
      %31 = arith.mulf %26, %30 : vector<16x256xf32>
      %cst_22 = arith.constant 1.42141378 : f32
      %32 = vector.broadcast %cst_22 : f32 to vector<16x256xf32>
      %33 = arith.addf %32, %31 : vector<16x256xf32>
      %34 = arith.mulf %26, %33 : vector<16x256xf32>
      %cst_23 = arith.constant -0.284496725 : f32
      %35 = vector.broadcast %cst_23 : f32 to vector<16x256xf32>
      %36 = arith.addf %35, %34 : vector<16x256xf32>
      %37 = arith.mulf %26, %36 : vector<16x256xf32>
      %cst_24 = arith.constant 0.254829586 : f32
      %38 = vector.broadcast %cst_24 : f32 to vector<16x256xf32>
      %39 = arith.addf %38, %37 : vector<16x256xf32>
      %40 = arith.mulf %26, %39 : vector<16x256xf32>
      %cst_25 = arith.constant 0.000000e+00 : f32
      %41 = vector.broadcast %cst_25 : f32 to vector<16x256xf32>
      %42 = arith.subf %41, %21 : vector<16x256xf32>
      %43 = arith.mulf %42, %21 : vector<16x256xf32>
      %44 = math.exp %43 : vector<16x256xf32>
      %45 = arith.mulf %40, %44 : vector<16x256xf32>
      %cst_26 = arith.constant 1.000000e+00 : f32
      %46 = vector.broadcast %cst_26 : f32 to vector<16x256xf32>
      %47 = arith.subf %46, %45 : vector<16x256xf32>
      %cst_27 = arith.constant 0.000000e+00 : f32
      %48 = vector.broadcast %cst_27 : f32 to vector<16x256xf32>
      %49 = arith.cmpf olt, %20, %48 : vector<16x256xf32>
      %cst_28 = arith.constant 0.000000e+00 : f32
      %50 = vector.broadcast %cst_28 : f32 to vector<16x256xf32>
      %51 = arith.subf %50, %47 : vector<16x256xf32>
      %52 = arith.select %49, %51, %47 : vector<16x256xi1>, vector<16x256xf32>
      %cst_29 = arith.constant 5.000000e-01 : f32
      %53 = vector.broadcast %cst_29 : f32 to vector<16x256xf32>
      %54 = arith.mulf %53, %18 : vector<16x256xf32>
      %cst_30 = arith.constant 1.000000e+00 : f32
      %55 = vector.broadcast %cst_30 : f32 to vector<16x256xf32>
      %56 = arith.addf %55, %52 : vector<16x256xf32>
      %57 = arith.mulf %54, %56 : vector<16x256xf32>
      %c0_31 = arith.constant 0 : index
      %c0_32 = arith.constant 0 : index
      %58 = vector.load %arg7[%c0_31, %c0_32] : memref<16x256xbf16, #tpu.memory_space<vmem>>, vector<16x256xbf16>
      %59 = arith.extf %58 : vector<16x256xbf16> to vector<16x256xf32>
      %60 = arith.addf %57, %59 : vector<16x256xf32>
      %cst_33 = arith.constant 0.707106769 : f32
      %61 = vector.broadcast %cst_33 : f32 to vector<16x256xf32>
      %62 = arith.mulf %60, %61 : vector<16x256xf32>
      %63 = math.absf %62 : vector<16x256xf32>
      %cst_34 = arith.constant 0.327591091 : f32
      %64 = vector.broadcast %cst_34 : f32 to vector<16x256xf32>
      %65 = arith.mulf %64, %63 : vector<16x256xf32>
      %cst_35 = arith.constant 1.000000e+00 : f32
      %66 = vector.broadcast %cst_35 : f32 to vector<16x256xf32>
      %67 = arith.addf %66, %65 : vector<16x256xf32>
      %68 = tpu.reciprocal %67 {approx = true} : vector<16x256xf32> -> vector<16x256xf32>
      %cst_36 = arith.constant 1.06140542 : f32
      %69 = vector.broadcast %cst_36 : f32 to vector<16x256xf32>
      %70 = arith.mulf %68, %69 : vector<16x256xf32>
      %cst_37 = arith.constant -1.45315206 : f32
      %71 = vector.broadcast %cst_37 : f32 to vector<16x256xf32>
      %72 = arith.addf %71, %70 : vector<16x256xf32>
      %73 = arith.mulf %68, %72 : vector<16x256xf32>
      %cst_38 = arith.constant 1.42141378 : f32
      %74 = vector.broadcast %cst_38 : f32 to vector<16x256xf32>
      %75 = arith.addf %74, %73 : vector<16x256xf32>
      %76 = arith.mulf %68, %75 : vector<16x256xf32>
      %cst_39 = arith.constant -0.284496725 : f32
      %77 = vector.broadcast %cst_39 : f32 to vector<16x256xf32>
      %78 = arith.addf %77, %76 : vector<16x256xf32>
      %79 = arith.mulf %68, %78 : vector<16x256xf32>
      %cst_40 = arith.constant 0.254829586 : f32
      %80 = vector.broadcast %cst_40 : f32 to vector<16x256xf32>
      %81 = arith.addf %80, %79 : vector<16x256xf32>
      %82 = arith.mulf %68, %81 : vector<16x256xf32>
      %cst_41 = arith.constant 0.000000e+00 : f32
      %83 = vector.broadcast %cst_41 : f32 to vector<16x256xf32>
      %84 = arith.subf %83, %63 : vector<16x256xf32>
      %85 = arith.mulf %84, %63 : vector<16x256xf32>
      %86 = math.exp %85 : vector<16x256xf32>
      %87 = arith.mulf %82, %86 : vector<16x256xf32>
      %cst_42 = arith.constant 1.000000e+00 : f32
      %88 = vector.broadcast %cst_42 : f32 to vector<16x256xf32>
      %89 = arith.subf %88, %87 : vector<16x256xf32>
      %cst_43 = arith.constant 0.000000e+00 : f32
      %90 = vector.broadcast %cst_43 : f32 to vector<16x256xf32>
      %91 = arith.cmpf olt, %62, %90 : vector<16x256xf32>
      %cst_44 = arith.constant 0.000000e+00 : f32
      %92 = vector.broadcast %cst_44 : f32 to vector<16x256xf32>
      %93 = arith.subf %92, %89 : vector<16x256xf32>
      %94 = arith.select %91, %93, %89 : vector<16x256xi1>, vector<16x256xf32>
      %cst_45 = arith.constant 5.000000e-01 : f32
      %95 = vector.broadcast %cst_45 : f32 to vector<16x256xf32>
      %96 = arith.mulf %95, %60 : vector<16x256xf32>
      %cst_46 = arith.constant 1.000000e+00 : f32
      %97 = vector.broadcast %cst_46 : f32 to vector<16x256xf32>
      %98 = arith.addf %97, %94 : vector<16x256xf32>
      %99 = arith.mulf %96, %98 : vector<16x256xf32>
      %100 = arith.truncf %99 : vector<16x256xf32> to vector<16x256xbf16>
      %c0_47 = arith.constant 0 : index
      %c0_48 = arith.constant 0 : index
      %101 = vector.load %arg8[%c0_47, %c0_48] : memref<16x256xbf16, #tpu.memory_space<vmem>>, vector<16x256xbf16>
      tpu.vector_store %arg8[%c0_47, %c0_48], %100 {strides = array<i32>} : memref<16x256xbf16, #tpu.memory_space<vmem>>, vector<16x256xbf16>,
    } else {
    }
    return
  }
  func.func @transform_0(%arg0: i32, %arg1: i32, %arg2: i32, %arg3: i32) -> (i32, i32, i32) {
    %c0_i32 = arith.constant 0 : i32
    return %arg0, %arg1, %arg3 : i32, i32, i32
  }
  func.func @transform_1(%arg0: i32, %arg1: i32, %arg2: i32, %arg3: i32) -> (i32, i32, i32) {
    %c0_i32 = arith.constant 0 : i32
    return %arg0, %arg3, %arg2 : i32, i32, i32
  }
  func.func @transform_2(%arg0: i32, %arg1: i32, %arg2: i32, %arg3: i32) -> (i32, i32, i32) {
    %c0_i32 = arith.constant 0 : i32
    %c0_i32_0 = arith.constant 0 : i32
    return %arg0, %c0_i32, %arg2 : i32, i32, i32
  }
  func.func @transform_3(%arg0: i32, %arg1: i32, %arg2: i32, %arg3: i32) -> (i32, i32) {
    %c2_i32 = arith.constant 2 : i32
    %0 = arith.muli %arg0, %c2_i32 : i32
    %1 = arith.addi %0, %arg2 : i32
    %c0_i32 = arith.constant 0 : i32
    return %arg1, %1 : i32, i32
  }
  func.func @transform_4(%arg0: i32, %arg1: i32, %arg2: i32, %arg3: i32) -> (i32, i32) {
    %c2_i32 = arith.constant 2 : i32
    %0 = arith.muli %arg0, %c2_i32 : i32
    %1 = arith.addi %0, %arg2 : i32
    %c0_i32 = arith.constant 0 : i32
    return %arg1, %1 : i32, i32
  }
}

module attributes {stable_mosaic.version = 11 : i64} {
  func.func @_fused_mm_kernel(%arg0: i32, %arg1: i32, %arg2: i32, %arg3: i32, %arg4: memref<1x16x512xbf16, #tpu.memory_space<vmem>>, %arg5: memref<1x512x256xbf16, #tpu.memory_space<vmem>>, %arg6: memref<1x1x256xf32, #tpu.memory_space<vmem>>, %arg7: memref<16x256xbf16, #tpu.memory_space<vmem>>, %arg8: memref<16x256xf32, #tpu.memory_space<vmem>>) attributes {dimension_semantics = [#tpu.dimension_semantics<parallel>, #tpu.dimension_semantics<parallel>, #tpu.dimension_semantics<parallel>, #tpu.dimension_semantics<arbitrary>], iteration_bounds = array<i64: 1, 1, 2, 1>, scalar_prefetch = 0 : i64, scratch_operands = 1 : i64, tpu.core_type = #tpu.core_type<tc>, window_params = [{transform_indices = @transform_0, window_bounds = array<i64: 1, 16, 512>}, {transform_indices = @transform_1, window_bounds = array<i64: 1, 512, 256>}, {transform_indices = @transform_2, window_bounds = array<i64: 1, 1, 256>}, {transform_indices = @transform_3, window_bounds = array<i64: 16, 256>}]} {
    %c0_i32 = arith.constant 0 : i32
    %0 = arith.cmpi eq, %arg3, %c0_i32 : i32
    %1 = arith.extui %0 : i1 to i32
    %c0_i32_0 = arith.constant 0 : i32
    %2 = arith.cmpi ne, %1, %c0_i32_0 : i32
    scf.if %2 {
      %cst_12 = arith.constant 0.000000e+00 : f32
      %14 = vector.broadcast %cst_12 : f32 to vector<16x256xf32>
      %c0_13 = arith.constant 0 : index
      %c0_14 = arith.constant 0 : index
      %15 = vector.load %arg8[%c0_13, %c0_14] : memref<16x256xf32, #tpu.memory_space<vmem>>, vector<16x256xf32>
      tpu.vector_store %arg8[%c0_13, %c0_14], %14 {strides = array<i32>} : memref<16x256xf32, #tpu.memory_space<vmem>>, vector<16x256xf32>,
    } else {
    }
    %c0 = arith.constant 0 : index
    %c0_1 = arith.constant 0 : index
    %3 = vector.load %arg8[%c0, %c0_1] : memref<16x256xf32, #tpu.memory_space<vmem>>, vector<16x256xf32>
    %c0_2 = arith.constant 0 : index
    %c0_3 = arith.constant 0 : index
    %c0_4 = arith.constant 0 : index
    %4 = vector.load %arg4[%c0_2, %c0_3, %c0_4] : memref<1x16x512xbf16, #tpu.memory_space<vmem>>, vector<1x16x512xbf16>
    %5 = vector.shape_cast %4 : vector<1x16x512xbf16> to vector<16x512xbf16>
    %c0_5 = arith.constant 0 : index
    %c0_6 = arith.constant 0 : index
    %c0_7 = arith.constant 0 : index
    %6 = vector.load %arg5[%c0_5, %c0_6, %c0_7] : memref<1x512x256xbf16, #tpu.memory_space<vmem>>, vector<1x512x256xbf16>
    %7 = vector.shape_cast %6 : vector<1x512x256xbf16> to vector<512x256xbf16>
    %cst = arith.constant dense<0.000000e+00> : vector<16x256xf32>
    %8 = tpu.matmul %5, %7, %cst {dimension_numbers = #tpu.dot_dimension_numbers<[1], [0], [0], [1], [0, 0, 1, 1], [], []>} : vector<16x512xbf16>, vector<512x256xbf16>, vector<16x256xf32> -> vector<16x256xf32>
    %9 = arith.addf %3, %8 : vector<16x256xf32>
    %c0_8 = arith.constant 0 : index
    %c0_9 = arith.constant 0 : index
    %10 = vector.load %arg8[%c0_8, %c0_9] : memref<16x256xf32, #tpu.memory_space<vmem>>, vector<16x256xf32>
    tpu.vector_store %arg8[%c0_8, %c0_9], %9 {strides = array<i32>} : memref<16x256xf32, #tpu.memory_space<vmem>>, vector<16x256xf32>,
    %c0_i32_10 = arith.constant 0 : i32
    %11 = arith.cmpi eq, %arg3, %c0_i32_10 : i32
    %12 = arith.extui %11 : i1 to i32
    %c0_i32_11 = arith.constant 0 : i32
    %13 = arith.cmpi ne, %12, %c0_i32_11 : i32
    scf.if %13 {
      %c0_12 = arith.constant 0 : index
      %c0_13 = arith.constant 0 : index
      %14 = vector.load %arg8[%c0_12, %c0_13] : memref<16x256xf32, #tpu.memory_space<vmem>>, vector<16x256xf32>
      %c0_14 = arith.constant 0 : index
      %c0_15 = arith.constant 0 : index
      %c0_16 = arith.constant 0 : index
      %15 = vector.load %arg6[%c0_14, %c0_15, %c0_16] : memref<1x1x256xf32, #tpu.memory_space<vmem>>, vector<1x1x256xf32>
      %16 = vector.shape_cast %15 : vector<1x1x256xf32> to vector<1x256xf32>
      %17 = vector.broadcast %16 : vector<1x256xf32> to vector<16x256xf32>
      %18 = arith.addf %14, %17 : vector<16x256xf32>
      %cst_17 = arith.constant 0.707106769 : f32
      %19 = vector.broadcast %cst_17 : f32 to vector<16x256xf32>
      %20 = arith.mulf %18, %19 : vector<16x256xf32>
      %21 = math.absf %20 : vector<16x256xf32>
      %cst_18 = arith.constant 0.327591091 : f32
      %22 = vector.broadcast %cst_18 : f32 to vector<16x256xf32>
      %23 = arith.mulf %22, %21 : vector<16x256xf32>
      %cst_19 = arith.constant 1.000000e+00 : f32
      %24 = vector.broadcast %cst_19 : f32 to vector<16x256xf32>
      %25 = arith.addf %24, %23 : vector<16x256xf32>
      %26 = tpu.reciprocal %25 {approx = true} : vector<16x256xf32> -> vector<16x256xf32>
      %cst_20 = arith.constant 1.06140542 : f32
      %27 = vector.broadcast %cst_20 : f32 to vector<16x256xf32>
      %28 = arith.mulf %26, %27 : vector<16x256xf32>
      %cst_21 = arith.constant -1.45315206 : f32
      %29 = vector.broadcast %cst_21 : f32 to vector<16x256xf32>
      %30 = arith.addf %29, %28 : vector<16x256xf32>
      %31 = arith.mulf %26, %30 : vector<16x256xf32>
      %cst_22 = arith.constant 1.42141378 : f32
      %32 = vector.broadcast %cst_22 : f32 to vector<16x256xf32>
      %33 = arith.addf %32, %31 : vector<16x256xf32>
      %34 = arith.mulf %26, %33 : vector<16x256xf32>
      %cst_23 = arith.constant -0.284496725 : f32
      %35 = vector.broadcast %cst_23 : f32 to vector<16x256xf32>
      %36 = arith.addf %35, %34 : vector<16x256xf32>
      %37 = arith.mulf %26, %36 : vector<16x256xf32>
      %cst_24 = arith.constant 0.254829586 : f32
      %38 = vector.broadcast %cst_24 : f32 to vector<16x256xf32>
      %39 = arith.addf %38, %37 : vector<16x256xf32>
      %40 = arith.mulf %26, %39 : vector<16x256xf32>
      %cst_25 = arith.constant 0.000000e+00 : f32
      %41 = vector.broadcast %cst_25 : f32 to vector<16x256xf32>
      %42 = arith.subf %41, %21 : vector<16x256xf32>
      %43 = arith.mulf %42, %21 : vector<16x256xf32>
      %44 = math.exp %43 : vector<16x256xf32>
      %45 = arith.mulf %40, %44 : vector<16x256xf32>
      %cst_26 = arith.constant 1.000000e+00 : f32
      %46 = vector.broadcast %cst_26 : f32 to vector<16x256xf32>
      %47 = arith.subf %46, %45 : vector<16x256xf32>
      %cst_27 = arith.constant 0.000000e+00 : f32
      %48 = vector.broadcast %cst_27 : f32 to vector<16x256xf32>
      %49 = arith.cmpf olt, %20, %48 : vector<16x256xf32>
      %cst_28 = arith.constant 0.000000e+00 : f32
      %50 = vector.broadcast %cst_28 : f32 to vector<16x256xf32>
      %51 = arith.subf %50, %47 : vector<16x256xf32>
      %52 = arith.select %49, %51, %47 : vector<16x256xi1>, vector<16x256xf32>
      %cst_29 = arith.constant 5.000000e-01 : f32
      %53 = vector.broadcast %cst_29 : f32 to vector<16x256xf32>
      %54 = arith.mulf %53, %18 : vector<16x256xf32>
      %cst_30 = arith.constant 1.000000e+00 : f32
      %55 = vector.broadcast %cst_30 : f32 to vector<16x256xf32>
      %56 = arith.addf %55, %52 : vector<16x256xf32>
      %57 = arith.mulf %54, %56 : vector<16x256xf32>
      %58 = arith.truncf %57 : vector<16x256xf32> to vector<16x256xbf16>
      %c0_31 = arith.constant 0 : index
      %c0_32 = arith.constant 0 : index
      %59 = vector.load %arg7[%c0_31, %c0_32] : memref<16x256xbf16, #tpu.memory_space<vmem>>, vector<16x256xbf16>
      tpu.vector_store %arg7[%c0_31, %c0_32], %58 {strides = array<i32>} : memref<16x256xbf16, #tpu.memory_space<vmem>>, vector<16x256xbf16>,
    } else {
    }
    return
  }
  func.func @transform_0(%arg0: i32, %arg1: i32, %arg2: i32, %arg3: i32) -> (i32, i32, i32) {
    %c0_i32 = arith.constant 0 : i32
    return %arg0, %arg1, %arg3 : i32, i32, i32
  }
  func.func @transform_1(%arg0: i32, %arg1: i32, %arg2: i32, %arg3: i32) -> (i32, i32, i32) {
    %c0_i32 = arith.constant 0 : i32
    return %arg0, %arg3, %arg2 : i32, i32, i32
  }
  func.func @transform_2(%arg0: i32, %arg1: i32, %arg2: i32, %arg3: i32) -> (i32, i32, i32) {
    %c0_i32 = arith.constant 0 : i32
    %c0_i32_0 = arith.constant 0 : i32
    return %arg0, %c0_i32, %arg2 : i32, i32, i32
  }
  func.func @transform_3(%arg0: i32, %arg1: i32, %arg2: i32, %arg3: i32) -> (i32, i32) {
    %c2_i32 = arith.constant 2 : i32
    %0 = arith.muli %arg0, %c2_i32 : i32
    %1 = arith.addi %0, %arg2 : i32
    %c0_i32 = arith.constant 0 : i32
    return %arg1, %1 : i32, i32
  }
}

</mosaic_0001>

<bundles_post_ra>
// kernel: forward.66
= control target key start
LH: loop header
LB: loop body
LE: loop exit
PB: predicated region body
PF: predicated region fallthrough
CT: control target
= control target key end

     0   :  { %vm45_vm0 = vcmask 1043456   ;;  %s368_s0 = inlined_call_operand.vmem [shape: bf16[9,32,128], index: 0, kind: input, shape index: {}]   ;;  %s369_s1 = inlined_call_operand.vmem [shape: bf16[32,128], index: 1, kind: output, shape index: {}]  }
   0x1   :  { %v9_v0 = vld [vmem:[%s368_s0] sm:$0xf]  ;;  %v13_v1 = vld [vmem:[%s368_s0 + $0x10] sm:$0xf]  ;;  %v10_v3 = vld [vmem:[%s368_s0 + $0x4] sm:$0xf] }
   0x2   :  { %v17_v2 = vld [vmem:[%s368_s0 + $0x20] sm:$0xf]  ;;  %v14_v4 = vld [vmem:[%s368_s0 + $0x14] sm:$0xf]  ;;  %v18_v5 = vld [vmem:[%s368_s0 + $0x24] sm:$0xf] }
   0x3   :  { %v21_v6 = vld [vmem:[%s368_s0 + $0x30] sm:$0xf]  ;;  %v48_v7 = vsel %vm45_vm0, %v9_v0, 4286644096  ;;  %v51_v8 = vsel %vm45_vm0, %v13_v1, 4286644096 }
   0x4   :  { %v55_v9 = vsel %vm45_vm0, %v17_v2, 4286644096  ;;  %v25_v10 = vld [vmem:[%s368_s0 + $0x40] sm:$0xf]  ;;  %v53_v11 = vmax.bf16 %v51_v8, %v48_v7  ;;  %v22_v12 = vld [vmem:[%s368_s0 + $0x34] sm:$0xf] }
   0x5   :  { %v29_v13 = vld [vmem:[%s368_s0 + $0x50] sm:$0xf]  ;;  %v59_v14 = vsel %vm45_vm0, %v21_v6, 4286644096  ;;  %v83_v16 = vsel %vm45_vm0, %v10_v3, 4286644096 }
   0x6   :  { %v57_v15 = vmax.bf16 %v55_v9, %v53_v11  ;;  %v86_v17 = vsel %vm45_vm0, %v14_v4, 4286644096  ;;  %v90_v18 = vsel %vm45_vm0, %v18_v5, 4286644096  ;;  %v26_v19 = vld [vmem:[%s368_s0 + $0x44] sm:$0xf] }
   0x7   :  { %v63_v20 = vsel %vm45_vm0, %v25_v10, 4286644096  ;;  %v88_v21 = vmax.bf16 %v86_v17, %v83_v16  ;;  %v30_v22 = vld [vmem:[%s368_s0 + $0x54] sm:$0xf]  ;;  %v33_v23 = vld [vmem:[%s368_s0 + $0x60] sm:$0xf] }
   0x8   :  { %v61_v24 = vmax.bf16 %v59_v14, %v57_v15  ;;  %v94_v25 = vsel %vm45_vm0, %v22_v12, 4286644096  ;;  %v34_v26 = vld [vmem:[%s368_s0 + $0x64] sm:$0xf]  ;;  %v67_v27 = vsel %vm45_vm0, %v29_v13, 4286644096 }
   0x9   :  { %v92_v28 = vmax.bf16 %v90_v18, %v88_v21  ;;  %v37_v29 = vld [vmem:[%s368_s0 + $0x70] sm:$0xf]  ;;  %v41_v30 = vld [vmem:[%s368_s0 + $0x80] sm:$0xf]  ;;  %v98_v32 = vsel %vm45_vm0, %v26_v19, 4286644096 }
   0xa   :  { %v65_v31 = vmax.bf16 %v63_v20, %v61_v24  ;;  %v38_v33 = vld [vmem:[%s368_s0 + $0x74] sm:$0xf]  ;;  %v71_v34 = vsel %vm45_vm0, %v33_v23, 4286644096  ;;  %v102_v36 = vsel %vm45_vm0, %v30_v22, 4286644096 }
   0xb   :  { %v96_v35 = vmax.bf16 %v94_v25, %v92_v28  ;;  %v42_v37 = vld [vmem:[%s368_s0 + $0x84] sm:$0xf]  ;;  %v11_v39 = vld [vmem:[%s368_s0 + $0x8] sm:$0xf]  ;;  %v15_v40 = vld [vmem:[%s368_s0 + $0x18] sm:$0xf] }
   0xc   :  { %v69_v38 = vmax.bf16 %v67_v27, %v65_v31  ;;  %v19_v41 = vld [vmem:[%s368_s0 + $0x28] sm:$0xf]  ;;  %v75_v42 = vsel %vm45_vm0, %v37_v29, 4286644096  ;;  %v79_v43 = vsel %vm45_vm0, %v41_v30, 4286644096 }
   0xd   :  { %v100_v44 = vmax.bf16 %v98_v32, %v96_v35  ;;  %v106_v45 = vsel %vm45_vm0, %v34_v26, 4286644096  ;;  %v12_v47 = vld [vmem:[%s368_s0 + $0xc] sm:$0xf]  ;;  %v23_v48 = vld [vmem:[%s368_s0 + $0x38] sm:$0xf] }
   0xe   :  { %v73_v46 = vmax.bf16 %v71_v34, %v69_v38  ;;  %v27_v49 = vld [vmem:[%s368_s0 + $0x48] sm:$0xf]  ;;  %v118_v51 = vsel %vm45_vm0, %v11_v39, 4286644096  ;;  %v121_v52 = vsel %vm45_vm0, %v15_v40, 4286644096 }
   0xf   :  { %v104_v50 = vmax.bf16 %v102_v36, %v100_v44  ;;  %v125_v53 = vsel %vm45_vm0, %v19_v41, 4286644096  ;;  %v110_v55 = vsel %vm45_vm0, %v38_v33, 4286644096  ;;  %v16_v56 = vld [vmem:[%s368_s0 + $0x1c] sm:$0xf]  ;;  %v123_v58 = vmax.bf16 %v121_v52, %v118_v51 }
  0x10   :  { %v77_v54 = vmax.bf16 %v75_v42, %v73_v46  ;;  %v20_v57 = vld [vmem:[%s368_s0 + $0x2c] sm:$0xf]  ;;  %v114_v60 = vsel %vm45_vm0, %v42_v37, 4286644096  ;;  %v24_v61 = vld [vmem:[%s368_s0 + $0x3c] sm:$0xf] }
  0x11   :  { %v108_v59 = vmax.bf16 %v106_v45, %v104_v50  ;;  %v129_v62 = vsel %vm45_vm0, %v23_v48, 4286644096  ;;  %v31_v63 = vld [vmem:[%s368_s0 + $0x58] sm:$0xf]  ;;  %v127_v0 = vmax.bf16 %v125_v53, %v123_v58  ;;  %v133_v1 = vsel %vm45_vm0, %v27_v49, 4286644096 }
  0x12   :  { %v153_v2 = vsel %vm45_vm0, %v12_v47, 4286644096  ;;  %v81_v3 = vmax.bf16 %v79_v43, %v77_v54  ;;  %v156_v5 = vsel %vm45_vm0, %v16_v56, 4286644096  ;;  %v160_v6 = vsel %vm45_vm0, %v20_v57, 4286644096 }
  0x13   :  { %v112_v4 = vmax.bf16 %v110_v55, %v108_v59  ;;  %v28_v7 = vld [vmem:[%s368_s0 + $0x4c] sm:$0xf]  ;;  %v35_v8 = vld [vmem:[%s368_s0 + $0x68] sm:$0xf]  ;;  %v131_v9 = vmax.bf16 %v129_v62, %v127_v0  ;;  %v158_v10 = vmax.bf16 %v156_v5, %v153_v2  ;;  %v137_v12 = vsel %vm45_vm0, %v31_v63, 4286644096 }
  0x14   :  { %v164_v13 = vsel %vm45_vm0, %v24_v61, 4286644096  ;;  %v32_v14 = vld [vmem:[%s368_s0 + $0x5c] sm:$0xf]  ;;  %v39_v15 = vld [vmem:[%s368_s0 + $0x78] sm:$0xf] }
  0x15   :  { %v116_v11 = vmax.bf16 %v114_v60, %v112_v4  ;;  %v135_v16 = vmax.bf16 %v133_v1, %v131_v9  ;;  %v162_v17 = vmax.bf16 %v160_v6, %v158_v10  ;;  %v141_v19 = vsel %vm45_vm0, %v35_v8, 4286644096  ;;  %v36_v21 = vld [vmem:[%s368_s0 + $0x6c] sm:$0xf]  ;;  %v40_v26 = vld [vmem:[%s368_s0 + $0x7c] sm:$0xf] }
  0x16   :  { %v168_v20 = vsel %vm45_vm0, %v28_v7, 4286644096  ;;  %v145_v24 = vsel %vm45_vm0, %v39_v15, 4286644096  ;;  %v172_v25 = vsel %vm45_vm0, %v32_v14, 4286644096 }
  0x17   :  { %v205_v18 = vcombine.low %v81_v3, %v116_v11  ;;  %v139_v22 = vmax.bf16 %v137_v12, %v135_v16  ;;  %v166_v23 = vmax.bf16 %v164_v13, %v162_v17  ;;  %v43_v27 = vld [vmem:[%s368_s0 + $0x88] sm:$0xf]  ;;  %v176_v30 = vsel %vm45_vm0, %v36_v21, 4286644096  ;;  %v44_v31 = vld [vmem:[%s368_s0 + $0x8c] sm:$0xf] }
  0x18   :  { %v149_v34 = vsel %vm45_vm0, %v43_v27, 4286644096  ;;  %v180_v35 = vsel %vm45_vm0, %v40_v26, 4286644096  ;;  %v184_v37 = vsel %vm45_vm0, %v44_v31, 4286644096 }
  0x19   :  { %199 = vst [vmem:[%s369_s1] sm:$0xff] %v205_v18   ;;  %v143_v28 = vmax.bf16 %v141_v19, %v139_v22  ;;  %v170_v29 = vmax.bf16 %v168_v20, %v166_v23 }
  0x1b   :  { %v147_v32 = vmax.bf16 %v145_v24, %v143_v28  ;;  %v174_v33 = vmax.bf16 %v172_v25, %v170_v29 }
  0x1d   :  { %v178_v36 = vmax.bf16 %v176_v30, %v174_v33  ;;  %v151_v38 = vmax.bf16 %v149_v34, %v147_v32 }
  0x1f   :  { %v182_v39 = vmax.bf16 %v180_v35, %v178_v36 }
  0x21   :  { %v186_v40 = vmax.bf16 %v184_v37, %v182_v39 }
  0x23   :  { %v206_v41 = vcombine.low %v151_v38, %v186_v40 }
  0x25   :  { %207 = vst [vmem:[%s369_s1 + $0x8] sm:$0xff] %v206_v41  }

// kernel: forward.68
= control target key start
LH: loop header
LB: loop body
LE: loop exit
PB: predicated region body
PF: predicated region fallthrough
CT: control target
= control target key end

     0   :  { %s517_s1 = inlined_call_operand.vmem [shape: bf16[1,128,128], index: 1, kind: input, shape index: {}]   ;;  %s518_s0 = inlined_call_operand.vmem [shape: bf16[1,32,128], index: 0, kind: input, shape index: {}]   ;;  %s519_s2 = inlined_call_operand.vmem [shape: f32[1,1,128], index: 2, kind: input, shape index: {}]   ;;  %s520_s3 = inlined_call_operand.vmem [shape: bf16[32,128], index: 3, kind: output, shape index: {}]  }
   0x1   :  { %v400_v0 = vld [vmem:[%s517_s1] sm:$0xff]   ;;  %v401_v1 = vld [vmem:[%s517_s1 + $0x8] sm:$0xff]   ;;  %v402_v2 = vld [vmem:[%s517_s1 + $0x10] sm:$0xff]  }
   0x2   :  { %380 = vmatprep.subr.bf16.mxu0 %v400_v0  ;;  %v403_v3 = vld [vmem:[%s517_s1 + $0x18] sm:$0xff]   ;;  %v408_v4 = vld [vmem:[%s518_s0] sm:$0xff]   ;;  %v405_v6 = vld [vmem:[%s517_s1 + $0x28] sm:$0xff]  }
   0x3   :  { %381 = vmatpush3.bf16.msra.mxu0 %v400_v0  ;;  %396 = vmatprep.mubr.bf16.mxu0 %v408_v4  ;;  %v404_v5 = vld [vmem:[%s517_s1 + $0x20] sm:$0xff]   ;;  %v406_v7 = vld [vmem:[%s517_s1 + $0x30] sm:$0xff]   ;;  %v407_v8 = vld [vmem:[%s517_s1 + $0x38] sm:$0xff]  }
   0x4   :  { %382 = vmatprep.subr.bf16.mxu0 %v401_v1  ;;  %v409_v9 = vld [vmem:[%s518_s0 + $0x8] sm:$0xff]   ;;  %v350_v10 = vld [vmem:[%s519_s2] ss:$0 sm:$0xff] }
   0x7   :  { %383 = vmatpush3.bf16.msra.mxu0 %v401_v1 }
   0x8   :  { %384 = vmatprep.subr.bf16.mxu0 %v402_v2 }
   0xb   :  { %385 = vmatpush3.bf16.msra.mxu0 %v402_v2 }
   0xc   :  { %386 = vmatprep.subr.bf16.mxu0 %v403_v3 }
   0xf   :  { %387 = vmatpush3.bf16.msra.mxu0 %v403_v3 }
  0x10   :  { %388 = vmatprep.subr.bf16.mxu0 %v404_v5 }
  0x13   :  { %389 = vmatpush3.bf16.msra.mxu0 %v404_v5 }
  0x14   :  { %390 = vmatprep.subr.bf16.mxu0 %v405_v6 }
  0x17   :  { %391 = vmatpush3.bf16.msra.mxu0 %v405_v6 }
  0x18   :  { %392 = vmatprep.subr.bf16.mxu0 %v406_v7 }
  0x1b   :  { %393 = vmatpush3.bf16.msra.mxu0 %v406_v7 }
  0x1c   :  { %394 = vmatprep.subr.bf16.mxu0 %v407_v8 }
  0x1f   :  { %395 = vmatpush3.bf16.msra.mxu0 %v407_v8 }
  0x22   :  { %397 = vmatmul.mubr.bf16.vlgmr.msra.gmra.mrb[0].mxu0 %v409_v9 }
  0xf5   :  { %v398_v11 = vpop.f32.mrb[0].mxu0 }
  0xf6   :  { %v479_v12 = vadd.f32 %v398_v11, %v350_v10  ;;  %v152_v13 = vpop.f32.mrb[1].mxu0 }
  0xf7   :  { %v481_v14 = vadd.f32 %v350_v10, %v152_v13  ;;  %v399_v15 = vpop.f32.mrb[2].mxu0 }
  0xf8   :  { %v484_v16 = vmul.f32 0.70710677, %v479_v12  ;;  %v486_v17 = vadd.f32 %v399_v15, %v350_v10  ;;  %v155_v18 = vpop.f32.mrb[3].mxu0 }
  0xf9   :  { %v489_v19 = vmul.f32 0.70710677, %v481_v14  ;;  %v491_v20 = vadd.f32 %v350_v10, %v155_v18 }
  0xfa   :  { %v199_v21 = vand.u32 2147483647, %v484_v16  ;;  %v495_v22 = vmul.f32 0.70710677, %v486_v17  ;;  %vm275_vm0 = vcmp.lt.f32.partialorder %v484_v16, 0.0 }
  0xfb   :  { %v197_v23 = vand.u32 2147483647, %v489_v19  ;;  %v499_v24 = vmul.f32 0.70710677, %v491_v20  ;;  %vm273_vm1 = vcmp.lt.f32.partialorder %v489_v19, 0.0 }
  0xfc   :  { %v203_v25 = vmul.f32 0.3275911, %v199_v21  ;;  %v200_v26 = vand.u32 2147483647, %v495_v22  ;;  %v251_v35 = vsub.f32 0.0, %v199_v21  ;;  %vm276_vm2 = vcmp.lt.f32.partialorder %v495_v22, 0.0 }
  0xfd   :  { %v201_v27 = vmul.f32 0.3275911, %v197_v23  ;;  %v198_v28 = vand.u32 2147483647, %v499_v24  ;;  %v249_v36 = vsub.f32 0.0, %v197_v23  ;;  %vm274_vm3 = vcmp.lt.f32.partialorder %v499_v24, 0.0 }
  0xfe   :  { %v207_v29 = vadd.f32 1.0, %v203_v25  ;;  %v204_v30 = vmul.f32 0.3275911, %v200_v26  ;;  %v255_v38 = vmul.f32 %v251_v35, %v199_v21  ;;  %v252_v39 = vsub.f32 0.0, %v200_v26 }
  0xff   :  { %v205_v31 = vadd.f32 1.0, %v201_v27  ;;  %v202_v32 = vmul.f32 0.3275911, %v198_v28  ;;  %v253_v42 = vmul.f32 %v249_v36, %v197_v23  ;;  %v250_v44 = vsub.f32 0.0, %v198_v28 }
 0x100   :  { %410 = vrcp.f32 %v207_v29  ;;  %v208_v33 = vadd.f32 1.0, %v204_v30  ;;  %v261_v47 = vmul.f32 1.442695, %v255_v38  ;;  %v256_v49 = vmul.f32 %v252_v39, %v200_v26 }
 0x101   :  { %412 = vrcp.f32 %v205_v31  ;;  %v206_v34 = vadd.f32 1.0, %v202_v32  ;;  %v257_v51 = vmul.f32 1.442695, %v253_v42  ;;  %v254_v55 = vmul.f32 %v250_v44, %v198_v28 }
 0x102   :  { %414 = vrcp.f32 %v208_v33  ;;  %v263_v60 = vmul.f32 1.442695, %v256_v49 }
 0x103   :  { %416 = vrcp.f32 %v206_v34  ;;  %v259_v1 = vmul.f32 1.442695, %v254_v55 }
 0x104   :  { %418 = vpow2.f32 %v261_v47 }
 0x105   :  { %420 = vpow2.f32 %v257_v51 }
 0x106   :  { %422 = vpow2.f32 %v263_v60 }
 0x107   :  { %424 = vpow2.f32 %v259_v1 }
 0x10a   :  { %v411_v37 = vpop.eup %410 }
 0x10b   :  { %v413_v40 = vpop.eup %412  ;;  %v215_v41 = vmul.f32 1.0614054, %v411_v37 }
 0x10c   :  { %v213_v43 = vmul.f32 1.0614054, %v413_v40  ;;  %v415_v46 = vpop.eup %414 }
 0x10d   :  { %v219_v45 = vadd.f32 -1.4531521, %v215_v41  ;;  %v216_v52 = vmul.f32 1.0614054, %v415_v46  ;;  %v417_v53 = vpop.eup %416 }
 0x10e   :  { %v217_v48 = vadd.f32 -1.4531521, %v213_v43  ;;  %v214_v58 = vmul.f32 1.0614054, %v417_v53  ;;  %v419_v25 = vpop.eup %418 }
 0x10f   :  { %v223_v50 = vmul.f32 %v411_v37, %v219_v45  ;;  %v220_v57 = vadd.f32 -1.4531521, %v216_v52  ;;  %v421_v27 = vpop.eup %420 }
 0x110   :  { %v221_v54 = vmul.f32 %v413_v40, %v217_v48  ;;  %v218_v63 = vadd.f32 -1.4531521, %v214_v58  ;;  %v423_v35 = vpop.eup %422 }
 0x111   :  { %v227_v56 = vadd.f32 1.4214138, %v223_v50  ;;  %v224_v62 = vmul.f32 %v415_v46, %v220_v57  ;;  %v425_v42 = vpop.eup %424  ;;  %v286_v57 = vmul.f32 0.5, %v491_v20 }
 0x112   :  { %v225_v59 = vadd.f32 1.4214138, %v221_v54  ;;  %v222_v4 = vmul.f32 %v417_v53, %v218_v63  ;;  %v285_v54 = vmul.f32 0.5, %v481_v14 }
 0x113   :  { %v231_v61 = vmul.f32 %v411_v37, %v227_v56  ;;  %v228_v3 = vadd.f32 1.4214138, %v224_v62 }
 0x114   :  { %v229_v0 = vmul.f32 %v413_v40, %v225_v59  ;;  %v226_v8 = vadd.f32 1.4214138, %v222_v4 }
 0x115   :  { %v235_v2 = vadd.f32 -0.28449672, %v231_v61  ;;  %v232_v7 = vmul.f32 %v415_v46, %v228_v3 }
 0x116   :  { %v233_v5 = vadd.f32 -0.28449672, %v229_v0  ;;  %v230_v13 = vmul.f32 %v417_v53, %v226_v8 }
 0x117   :  { %v239_v6 = vmul.f32 %v411_v37, %v235_v2  ;;  %v236_v11 = vadd.f32 -0.28449672, %v232_v7 }
 0x118   :  { %v237_v9 = vmul.f32 %v413_v40, %v233_v5  ;;  %v234_v23 = vadd.f32 -0.28449672, %v230_v13 }
 0x119   :  { %v243_v10 = vadd.f32 0.2548296, %v239_v6  ;;  %v240_v21 = vmul.f32 %v415_v46, %v236_v11 }
 0x11a   :  { %v241_v15 = vadd.f32 0.2548296, %v237_v9  ;;  %v238_v30 = vmul.f32 %v417_v53, %v234_v23 }
 0x11b   :  { %v247_v18 = vmul.f32 %v411_v37, %v243_v10  ;;  %v244_v29 = vadd.f32 0.2548296, %v240_v21 }
 0x11c   :  { %v245_v26 = vmul.f32 %v413_v40, %v241_v15  ;;  %v242_v34 = vadd.f32 0.2548296, %v238_v30 }
 0x11d   :  { %v267_v28 = vmul.f32 %v419_v25, %v247_v18  ;;  %v248_v33 = vmul.f32 %v415_v46, %v244_v29  ;;  %v287_v46 = vmul.f32 0.5, %v479_v12 }
 0x11e   :  { %v265_v31 = vmul.f32 %v421_v27, %v245_v26  ;;  %v246_v41 = vmul.f32 %v417_v53, %v242_v34  ;;  %v288_v53 = vmul.f32 0.5, %v486_v17 }
 0x11f   :  { %v271_v32 = vsub.f32 1.0, %v267_v28  ;;  %v268_v39 = vmul.f32 %v423_v35, %v248_v33 }
 0x120   :  { %v269_v36 = vsub.f32 1.0, %v265_v31  ;;  %v266_v40 = vmul.f32 %v425_v42, %v246_v41 }
 0x121   :  { %v279_v38 = vsub.f32 0.0, %v271_v32  ;;  %v272_v44 = vsub.f32 1.0, %v268_v39 }
 0x122   :  { %v277_v37 = vsub.f32 0.0, %v269_v36  ;;  %v270_v48 = vsub.f32 1.0, %v266_v40 }
 0x123   :  { %v283_v43 = vsel %vm275_vm0, %v279_v38, %v271_v32  ;;  %v280_v47 = vsub.f32 0.0, %v272_v44 }
 0x124   :  { %v281_v45 = vsel %vm273_vm1, %v277_v37, %v269_v36  ;;  %v291_v49 = vadd.f32 1.0, %v283_v43  ;;  %v278_v51 = vsub.f32 0.0, %v270_v48 }
 0x125   :  { %v284_v50 = vsel %vm276_vm2, %v280_v47, %v272_v44  ;;  %v289_v52 = vadd.f32 1.0, %v281_v45 }
 0x126   :  { %v292_v16 = vadd.f32 1.0, %v284_v50  ;;  %v282_v55 = vsel %vm274_vm3, %v278_v51, %v270_v48  ;;  %v295_v19 = vmul.f32 %v291_v49, %v287_v46 }
 0x127   :  { %v290_v58 = vadd.f32 1.0, %v282_v55  ;;  %v293_v59 = vmul.f32 %v289_v52, %v285_v54 }
 0x128   :  { %v296_v56 = vmul.f32 %v292_v16, %v288_v53 }
 0x129   :  { %v294_v60 = vmul.f32 %v290_v58, %v286_v57 }
 0x12a   :  { %v367_v22 = vpack.c.bf16 %v296_v56, %v295_v19 }
 0x12b   :  { %v362_v12 = vpack.c.bf16 %v294_v60, %v293_v59 }
 0x12c   :  { %369 = vst [vmem:[%s520_s3 + $0x8] sm:$0xff] %v367_v22  }
 0x12d   :  { %363 = vst [vmem:[%s520_s3] sm:$0xff] %v362_v12  }

// kernel: forward.65
= control target key start
LH: loop header
LB: loop body
LE: loop exit
PB: predicated region body
PF: predicated region fallthrough
CT: control target
= control target key end

     0   :  { %s1752_s1 = inlined_call_operand.vmem [shape: bf16[1,256,128], index: 1, kind: input, shape index: {}]   ;;  %s1753_s0 = inlined_call_operand.vmem [shape: bf16[1,128,256], index: 0, kind: input, shape index: {}]   ;;  %s1754_s2 = inlined_call_operand.vmem [shape: f32[1,1,128], index: 2, kind: input, shape index: {}]   ;;  %s1755_s3 = inlined_call_operand.vmem [shape: bf16[128,128], index: 3, kind: output, shape index: {}]  }
   0x1   :  { %v1168_v0 = vld [vmem:[%s1752_s1 + $0x40] sm:$0xff]   ;;  %v1170_v2 = vld [vmem:[%s1752_s1 + $0x48] sm:$0xff]   ;;  %v1172_v4 = vld [vmem:[%s1752_s1 + $0x50] sm:$0xff]  }
   0x2   :  { %v1169_v1 = vld [vmem:[%s1752_s1] sm:$0xff]   ;;  %1088 = vmatprep.subr.bf16.mxu0 %v1168_v0  ;;  %1152 = vmatprep.subr.bf16.mxu1 %v1168_v0  ;;  %v1171_v3 = vld [vmem:[%s1752_s1 + $0x8] sm:$0xff]   ;;  %v1173_v5 = vld [vmem:[%s1752_s1 + $0x10] sm:$0xff]  }
   0x3   :  { %1089 = vmatpush3.bf16.msra.mxu0 %v1169_v1  ;;  %1160 = vmatpush3.bf16.msra.mxu1 %v1169_v1  ;;  %v1174_v6 = vld [vmem:[%s1752_s1 + $0x58] sm:$0xff]   ;;  %v1176_v8 = vld [vmem:[%s1752_s1 + $0x60] sm:$0xff]   ;;  %v1178_v10 = vld [vmem:[%s1752_s1 + $0x68] sm:$0xff]  }
   0x4   :  { %1090 = vmatprep.subr.bf16.mxu0 %v1170_v2  ;;  %1153 = vmatprep.subr.bf16.mxu1 %v1170_v2  ;;  %v1175_v7 = vld [vmem:[%s1752_s1 + $0x18] sm:$0xff]   ;;  %v1177_v9 = vld [vmem:[%s1752_s1 + $0x20] sm:$0xff]   ;;  %v1179_v13 = vld [vmem:[%s1752_s1 + $0x28] sm:$0xff]  }
   0x5   :  { %v1186_v11 = vld [vmem:[%s1753_s0 + $0x4] ss:$8 sps:$4 sm:$0xff]   ;;  %v1180_v14 = vld [vmem:[%s1752_s1 + $0x70] sm:$0xff]   ;;  %v1182_v16 = vld [vmem:[%s1752_s1 + $0x78] sm:$0xff]  }
   0x6   :  { %v1189_v12 = vld [vmem:[%s1753_s0 + $0x44] ss:$8 sps:$4 sm:$0xff]   ;;  %318 = vmatprep.mubr.bf16.mxu0 %v1186_v11  ;;  %v1181_v15 = vld [vmem:[%s1752_s1 + $0x30] sm:$0xff]   ;;  %v1183_v17 = vld [vmem:[%s1752_s1 + $0x38] sm:$0xff]  }
   0x7   :  { %1091 = vmatpush3.bf16.msra.mxu0 %v1171_v3  ;;  %1161 = vmatpush3.bf16.msra.mxu1 %v1171_v3  ;;  %v1184_v18 = vld [vmem:[%s1753_s0] ss:$8 sps:$4 sm:$0xff]   ;;  %v1190_v20 = vld [vmem:[%s1753_s0 + $0x14] ss:$8 sps:$4 sm:$0xff]   ;;  %v1194_v22 = vld [vmem:[%s1753_s0 + $0x10] ss:$8 sps:$4 sm:$0xff]  }
   0x8   :  { %1092 = vmatprep.subr.bf16.mxu0 %v1172_v4  ;;  %1154 = vmatprep.subr.bf16.mxu1 %v1172_v4  ;;  %v1187_v19 = vld [vmem:[%s1753_s0 + $0x40] ss:$8 sps:$4 sm:$0xff]   ;;  %v1192_v21 = vld [vmem:[%s1753_s0 + $0x54] ss:$8 sps:$4 sm:$0xff]   ;;  %v1195_v23 = vld [vmem:[%s1753_s0 + $0x50] ss:$8 sps:$4 sm:$0xff]  }
   0x9   :  { %350 = vmatprep.mubr.bf16.mxu1 %v1189_v12  ;;  %v1196_v24 = vld [vmem:[%s1753_s0 + $0x24] ss:$8 sps:$4 sm:$0xff]   ;;  %v1200_v26 = vld [vmem:[%s1753_s0 + $0x20] ss:$8 sps:$4 sm:$0xff]   ;;  %v1202_v28 = vld [vmem:[%s1753_s0 + $0x34] ss:$8 sps:$4 sm:$0xff]  }
   0xa   :  { %v1198_v25 = vld [vmem:[%s1753_s0 + $0x64] ss:$8 sps:$4 sm:$0xff]   ;;  %v1201_v27 = vld [vmem:[%s1753_s0 + $0x60] ss:$8 sps:$4 sm:$0xff]   ;;  %v1204_v29 = vld [vmem:[%s1753_s0 + $0x74] ss:$8 sps:$4 sm:$0xff]  }
   0xb   :  { %1093 = vmatpush3.bf16.msra.mxu0 %v1173_v5  ;;  %1162 = vmatpush3.bf16.msra.mxu1 %v1173_v5  ;;  %v1206_v30 = vld [vmem:[%s1753_s0 + $0x30] ss:$8 sps:$4 sm:$0xff]   ;;  %v1391_v35 = vld [vmem:[%s1754_s2] ss:$0 sm:$0xff] }
   0xc   :  { %1094 = vmatprep.subr.bf16.mxu0 %v1174_v6  ;;  %1155 = vmatprep.subr.bf16.mxu1 %v1174_v6  ;;  %v1207_v31 = vld [vmem:[%s1753_s0 + $0x70] ss:$8 sps:$4 sm:$0xff]  }
   0xf   :  { %1095 = vmatpush3.bf16.msra.mxu0 %v1175_v7  ;;  %1163 = vmatpush3.bf16.msra.mxu1 %v1175_v7 }
  0x10   :  { %1096 = vmatprep.subr.bf16.mxu0 %v1176_v8  ;;  %1156 = vmatprep.subr.bf16.mxu1 %v1176_v8 }
  0x13   :  { %1097 = vmatpush3.bf16.msra.mxu0 %v1177_v9  ;;  %1164 = vmatpush3.bf16.msra.mxu1 %v1177_v9 }
  0x14   :  { %1098 = vmatprep.subr.bf16.mxu0 %v1178_v10  ;;  %1157 = vmatprep.subr.bf16.mxu1 %v1178_v10 }
  0x17   :  { %1099 = vmatpush3.bf16.msra.mxu0 %v1179_v13  ;;  %1165 = vmatpush3.bf16.msra.mxu1 %v1179_v13 }
  0x18   :  { %1100 = vmatprep.subr.bf16.mxu0 %v1180_v14  ;;  %1158 = vmatprep.subr.bf16.mxu1 %v1180_v14 }
  0x1b   :  { %1101 = vmatpush3.bf16.msra.mxu0 %v1181_v15  ;;  %1166 = vmatpush3.bf16.msra.mxu1 %v1181_v15 }
  0x1c   :  { %1102 = vmatprep.subr.bf16.mxu0 %v1182_v16  ;;  %1159 = vmatprep.subr.bf16.mxu1 %v1182_v16 }
  0x1f   :  { %1103 = vmatpush3.bf16.msra.mxu0 %v1183_v17  ;;  %1167 = vmatpush3.bf16.msra.mxu1 %v1183_v17 }
  0x22   :  { %319 = vmatmul.mubr.bf16.vlgmr.msra.gmra.mrb[0].mxu0 %v1184_v18  ;;  %351 = vmatmul.mubr.bf16.vlgmr.msra.gmra.mrb[0].mxu1 %v1187_v19 }
  0x23   :  { %326 = vmatprep.mubr.bf16.mxu0 %v1190_v20  ;;  %358 = vmatprep.mubr.bf16.mxu1 %v1192_v21 }
  0x2a   :  { %327 = vmatmul.mubr.bf16.gmra.mrb[4].mxu0 %v1194_v22  ;;  %359 = vmatmul.mubr.bf16.gmra.mrb[4].mxu1 %v1195_v23 }
  0x2b   :  { %334 = vmatprep.mubr.bf16.mxu0 %v1196_v24  ;;  %366 = vmatprep.mubr.bf16.mxu1 %v1198_v25 }
  0x32   :  { %335 = vmatmul.mubr.bf16.gmra.mrb[8].mxu0 %v1200_v26  ;;  %367 = vmatmul.mubr.bf16.gmra.mrb[8].mxu1 %v1201_v27 }
  0x33   :  { %342 = vmatprep.mubr.bf16.mxu0 %v1202_v28  ;;  %374 = vmatprep.mubr.bf16.mxu1 %v1204_v29 }
  0x3a   :  { %343 = vmatmul.mubr.bf16.gmra.mrb[12].mxu0 %v1206_v30  ;;  %375 = vmatmul.mubr.bf16.gmra.mrb[12].mxu1 %v1207_v31 }
  0xf5   :  { %v1104_v32 = vpop.f32.mrb[0].mxu0  ;;  %v1128_v33 = vpop.f32.mrb[0].mxu1 }
  0xf6   :  { %v1105_v34 = vpop.f32.mrb[1].mxu0  ;;  %v1129_v36 = vpop.f32.mrb[1].mxu1 }
  0xf7   :  { %v1106_v37 = vadd.f32 %v1105_v34, %v1104_v32  ;;  %v1130_v38 = vadd.f32 %v1129_v36, %v1128_v33  ;;  %v1107_v39 = vpop.f32.mrb[2].mxu0  ;;  %v1131_v40 = vpop.f32.mrb[2].mxu1 }
  0xf8   :  { %v1108_v41 = vpop.f32.mrb[3].mxu0  ;;  %v1132_v42 = vpop.f32.mrb[3].mxu1 }
  0xf9   :  { %v441_v43 = vadd.f32 %v1106_v37, %v1391_v35  ;;  %v449_v44 = vadd.f32 %v1130_v38, %v1391_v35  ;;  %v1109_v45 = vadd.f32 %v1108_v41, %v1107_v39  ;;  %v1133_v46 = vadd.f32 %v1132_v42, %v1131_v40 }
  0xfb   :  { %v1395_v47 = vmul.f32 0.70710677, %v441_v43  ;;  %v1397_v48 = vmul.f32 0.70710677, %v449_v44  ;;  %v442_v49 = vadd.f32 %v1109_v45, %v1391_v35  ;;  %v1401_v50 = vadd.f32 %v1133_v46, %v1391_v35 }
  0xfc   :  { %v1412_v10 = vmul.f32 0.5, %v441_v43  ;;  %v1414_v17 = vmul.f32 0.5, %v449_v44 }
  0xfd   :  { %v473_v51 = vand.u32 2147483647, %v1395_v47  ;;  %v481_v52 = vand.u32 2147483647, %v1397_v48  ;;  %v1405_v53 = vmul.f32 0.70710677, %v442_v49 }
  0xfe   :  { %v1408_v54 = vmul.f32 0.70710677, %v1401_v50  ;;  %v1110_v61 = vpop.f32.mrb[4].mxu0  ;;  %v1134_v62 = vpop.f32.mrb[4].mxu1  ;;  %v1446_v39 = vmul.f32 0.5, %v442_v49  ;;  %vm777_vm0 = vcmp.lt.f32.partialorder %v1395_v47, 0.0 }
  0xff   :  { %v489_v55 = vmul.f32 0.3275911, %v473_v51  ;;  %v497_v56 = vmul.f32 0.3275911, %v481_v52  ;;  %v474_v57 = vand.u32 2147483647, %v1405_v53 }
 0x100   :  { %v482_v58 = vand.u32 2147483647, %v1408_v54  ;;  %v681_v63 = vsub.f32 0.0, %v473_v51  ;;  %v689_v2 = vsub.f32 0.0, %v481_v52  ;;  %v1111_v3 = vpop.f32.mrb[5].mxu0  ;;  %v1135_v4 = vpop.f32.mrb[5].mxu1 }
 0x101   :  { %v505_v59 = vadd.f32 1.0, %v489_v55  ;;  %v513_v60 = vadd.f32 1.0, %v497_v56  ;;  %v490_v0 = vmul.f32 0.3275911, %v474_v57  ;;  %v682_v6 = vsub.f32 0.0, %v474_v57  ;;  %v1113_v8 = vpop.f32.mrb[6].mxu0 }
 0x102   :  { %v498_v1 = vmul.f32 0.3275911, %v482_v58  ;;  %v690_v7 = vsub.f32 0.0, %v482_v58  ;;  %v1137_v9 = vpop.f32.mrb[6].mxu1  ;;  %v1112_v12 = vadd.f32 %v1111_v3, %v1110_v61  ;;  %v1136_v13 = vadd.f32 %v1135_v4, %v1134_v62  ;;  %v1114_v14 = vpop.f32.mrb[7].mxu0 }
 0x103   :  { %1208 = vrcp.f32 %v505_v59  ;;  %v506_v5 = vadd.f32 1.0, %v490_v0  ;;  %v1138_v15 = vpop.f32.mrb[7].mxu1  ;;  %v697_v16 = vmul.f32 %v681_v63, %v473_v51  ;;  %v1115_v18 = vadd.f32 %v1114_v14, %v1113_v8 }
 0x104   :  { %1210 = vrcp.f32 %v513_v60  ;;  %v514_v11 = vadd.f32 1.0, %v498_v1  ;;  %v1139_v19 = vadd.f32 %v1138_v15, %v1137_v9  ;;  %v705_v22 = vmul.f32 %v689_v2, %v481_v52 }
 0x105   :  { %v1116_v20 = vpop.f32.mrb[8].mxu0  ;;  %v1416_v21 = vpop.f32.mrb[8].mxu1  ;;  %1212 = vrcp.f32 %v506_v5  ;;  %v1419_v23 = vadd.f32 %v1112_v12, %v1391_v35  ;;  %v1422_v24 = vadd.f32 %v1136_v13, %v1391_v35  ;;  %v698_v27 = vmul.f32 %v682_v6, %v474_v57 }
 0x106   :  { %v1117_v25 = vpop.f32.mrb[9].mxu0  ;;  %v1424_v26 = vpop.f32.mrb[9].mxu1  ;;  %v706_v28 = vmul.f32 %v690_v7, %v482_v58  ;;  %v1427_v29 = vadd.f32 %v1115_v18, %v1391_v35  ;;  %1214 = vrcp.f32 %v514_v11  ;;  %v1442_v36 = vadd.f32 %v1139_v19, %v1391_v35 }
 0x107   :  { %v1429_v30 = vadd.f32 %v1117_v25, %v1116_v20  ;;  %v1431_v31 = vpop.f32.mrb[10].mxu0  ;;  %v1433_v32 = vpop.f32.mrb[10].mxu1  ;;  %v1436_v33 = vmul.f32 0.70710677, %v1419_v23  ;;  %v1439_v34 = vmul.f32 0.70710677, %v1422_v24 }
 0x108   :  { %v1444_v37 = vpop.f32.mrb[11].mxu0  ;;  %v713_v38 = vmul.f32 1.442695, %v697_v16  ;;  %v1449_v40 = vmul.f32 0.70710677, %v1427_v29  ;;  %v1451_v41 = vpop.f32.mrb[11].mxu1 }
 0x109   :  { %v729_v42 = vmul.f32 1.442695, %v705_v22  ;;  %v475_v43 = vand.u32 2147483647, %v1436_v33  ;;  %v483_v44 = vand.u32 2147483647, %v1439_v34 }
 0x10a   :  { %v715_v45 = vmul.f32 1.442695, %v698_v27  ;;  %v731_v46 = vmul.f32 1.442695, %v706_v28  ;;  %v476_v51 = vand.u32 2147483647, %v1449_v40  ;;  %1216 = vpow2.f32 %v713_v38 }
 0x10b   :  { %v491_v55 = vmul.f32 0.3275911, %v475_v43  ;;  %v499_v56 = vmul.f32 0.3275911, %v483_v44  ;;  %v1459_v49 = vmul.f32 0.70710677, %v1442_v36  ;;  %1218 = vpow2.f32 %v729_v42 }
 0x10c   :  { %v683_v59 = vsub.f32 0.0, %v475_v43  ;;  %v492_v60 = vmul.f32 0.3275911, %v476_v51  ;;  %1220 = vpow2.f32 %v715_v45  ;;  %v691_v3 = vsub.f32 0.0, %v483_v44 }
 0x10d   :  { %v1456_v52 = vpop.eup %1208  ;;  %v507_v62 = vadd.f32 1.0, %v491_v55  ;;  %v515_v63 = vadd.f32 1.0, %v499_v56  ;;  %v1465_v0 = vpop.f32.mrb[12].mxu0  ;;  %v684_v4 = vsub.f32 0.0, %v476_v51  ;;  %v484_v11 = vand.u32 2147483647, %v1459_v49 }
 0x10e   :  { %v1461_v57 = vpop.eup %1210  ;;  %v537_v58 = vmul.f32 1.0614054, %v1456_v52  ;;  %v1467_v1 = vpop.f32.mrb[12].mxu1  ;;  %v508_v9 = vadd.f32 1.0, %v492_v60  ;;  %v699_v14 = vmul.f32 %v683_v59, %v475_v43  ;;  %v1486_v20 = vmul.f32 0.5, %v1401_v50 }
 0x10f   :  { %v545_v61 = vmul.f32 1.0614054, %v1461_v57  ;;  %v1469_v5 = vpop.f32.mrb[13].mxu0  ;;  %v1471_v6 = vpop.f32.mrb[13].mxu1  ;;  %1222 = vrcp.f32 %v507_v62  ;;  %v500_v22 = vmul.f32 0.3275911, %v484_v11  ;;  %v707_v43 = vmul.f32 %v691_v3, %v483_v44 }
 0x110   :  { %v553_v2 = vadd.f32 -1.4531521, %v537_v58  ;;  %v1473_v7 = vpop.eup %1212  ;;  %1224 = vrcp.f32 %v515_v63  ;;  %v1478_v15 = vpop.f32.mrb[14].mxu0  ;;  %v700_v55 = vmul.f32 %v684_v4, %v476_v51  ;;  %v717_v59 = vmul.f32 1.442695, %v699_v14 }
 0x111   :  { %v561_v8 = vadd.f32 -1.4531521, %v545_v61  ;;  %v538_v13 = vmul.f32 1.0614054, %v1473_v7  ;;  %v1480_v16 = vpop.f32.mrb[14].mxu1  ;;  %v1482_v18 = vpop.eup %1214  ;;  %1226 = vpow2.f32 %v731_v46  ;;  %v516_v56 = vadd.f32 1.0, %v500_v22 }
 0x112   :  { %v569_v12 = vmul.f32 %v1456_v52, %v553_v2  ;;  %v1488_v25 = vpop.f32.mrb[15].mxu0  ;;  %v1490_v27 = vpop.f32.mrb[15].mxu1  ;;  %v546_v42 = vmul.f32 1.0614054, %v1482_v18  ;;  %1228 = vrcp.f32 %v508_v9  ;;  %v692_v61 = vsub.f32 0.0, %v484_v11 }
 0x113   :  { %v577_v19 = vmul.f32 %v1461_v57, %v561_v8  ;;  %v554_v38 = vadd.f32 -1.4531521, %v538_v13  ;;  %1230 = vrcp.f32 %v516_v56  ;;  %v1498_v62 = vadd.f32 %v1429_v30, %v1391_v35 }
 0x114   :  { %v585_v28 = vadd.f32 1.4214138, %v569_v12  ;;  %v562_v50 = vadd.f32 -1.4531521, %v546_v42  ;;  %v1217_v63 = vpop.eup %1216  ;;  %v1503_v3 = vadd.f32 %v1424_v26, %v1416_v21  ;;  %v733_v9 = vmul.f32 1.442695, %v707_v43 }
 0x115   :  { %v593_v45 = vadd.f32 1.4214138, %v577_v19  ;;  %v570_v46 = vmul.f32 %v1473_v7, %v554_v38  ;;  %v1219_v4 = vpop.eup %1218  ;;  %v1506_v12 = vmul.f32 0.70710677, %v1498_v62  ;;  %v1510_v13 = vadd.f32 %v1444_v37, %v1431_v31 }
 0x116   :  { %v601_v58 = vmul.f32 %v1456_v52, %v585_v28  ;;  %v578_v51 = vmul.f32 %v1482_v18, %v562_v50  ;;  %v1221_v30 = vpop.eup %1220  ;;  %1232 = vpow2.f32 %v717_v59  ;;  %v719_v26 = vmul.f32 1.442695, %v700_v55 }
 0x117   :  { %v609_v60 = vmul.f32 %v1461_v57, %v593_v45  ;;  %v586_v2 = vadd.f32 1.4214138, %v570_v46  ;;  %v708_v38 = vmul.f32 %v692_v61, %v484_v11  ;;  %v1518_v42 = vand.u32 2147483647, %v1506_v12 }
 0x118   :  { %v617_v44 = vadd.f32 -0.28449672, %v601_v58  ;;  %v594_v22 = vadd.f32 1.4214138, %v578_v51  ;;  %1234 = vpow2.f32 %v733_v9  ;;  %vm785_vm1 = vcmp.lt.f32.partialorder %v1397_v48, 0.0 }
 0x119   :  { %v625_v8 = vadd.f32 -0.28449672, %v609_v60  ;;  %v602_v19 = vmul.f32 %v1473_v7, %v586_v2  ;;  %v1514_v28 = vpop.eup %1222  ;;  %v493_v11 = vmul.f32 0.3275911, %v1518_v42  ;;  %vm778_vm2 = vcmp.lt.f32.partialorder %v1405_v53, 0.0 }
 0x11a   :  { %v633_v14 = vmul.f32 %v1456_v52, %v617_v44  ;;  %v1520_v43 = vpop.eup %1224  ;;  %v610_v45 = vmul.f32 %v1482_v18, %v594_v22  ;;  %v539_v56 = vmul.f32 1.0614054, %v1514_v28  ;;  %vm786_vm3 = vcmp.lt.f32.partialorder %v1408_v54, 0.0 }
 0x11b   :  { %v641_v21 = vmul.f32 %v1461_v57, %v625_v8  ;;  %v618_v37 = vadd.f32 -0.28449672, %v602_v19  ;;  %v1227_v58 = vpop.eup %1226  ;;  %v547_v50 = vmul.f32 1.0614054, %v1520_v43  ;;  %v735_v8 = vmul.f32 1.442695, %v708_v38 }
 0x11c   :  { %v649_v31 = vadd.f32 0.2548296, %v633_v14  ;;  %v626_v60 = vadd.f32 -0.28449672, %v610_v45  ;;  %v555_v61 = vadd.f32 -1.4531521, %v539_v56  ;;  %v1530_v44 = vpop.eup %1228 }
 0x11d   :  { %v657_v46 = vadd.f32 0.2548296, %v641_v21  ;;  %v634_v59 = vmul.f32 %v1473_v7, %v618_v37  ;;  %v563_v51 = vadd.f32 -1.4531521, %v547_v50  ;;  %v509_v14 = vadd.f32 1.0, %v493_v11 }
 0x11e   :  { %v665_v55 = vmul.f32 %v1456_v52, %v649_v31  ;;  %v642_v9 = vmul.f32 %v1482_v18, %v626_v60  ;;  %v571_v21 = vmul.f32 %v1514_v28, %v555_v61  ;;  %v1535_v52 = vpop.eup %1230  ;;  %v540_v45 = vmul.f32 1.0614054, %v1530_v44 }
 0x11f   :  { %v673_v2 = vmul.f32 %v1461_v57, %v657_v46  ;;  %v650_v22 = vadd.f32 0.2548296, %v634_v59  ;;  %v579_v37 = vmul.f32 %v1520_v43, %v563_v51  ;;  %1236 = vrcp.f32 %v509_v14 }
 0x120   :  { %v745_v19 = vmul.f32 %v1217_v63, %v665_v55  ;;  %v658_v56 = vadd.f32 0.2548296, %v642_v9  ;;  %v587_v63 = vadd.f32 1.4214138, %v571_v21  ;;  %v556_v11 = vadd.f32 -1.4531521, %v540_v45  ;;  %v1233_v55 = vpop.eup %1232 }
 0x121   :  { %v753_v31 = vmul.f32 %v1219_v4, %v673_v2  ;;  %v666_v38 = vmul.f32 %v1473_v7, %v650_v22  ;;  %v595_v50 = vadd.f32 1.4214138, %v579_v37  ;;  %1238 = vpow2.f32 %v719_v26 }
 0x122   :  { %v761_v57 = vsub.f32 1.0, %v745_v19  ;;  %v674_v60 = vmul.f32 %v1482_v18, %v658_v56  ;;  %v603_v61 = vmul.f32 %v1514_v28, %v587_v63  ;;  %v572_v7 = vmul.f32 %v1530_v44, %v556_v11  ;;  %v1235_v21 = vpop.eup %1234 }
 0x123   :  { %v769_v46 = vsub.f32 1.0, %v753_v31  ;;  %v746_v59 = vmul.f32 %v1221_v30, %v666_v38  ;;  %v611_v51 = vmul.f32 %v1520_v43, %v595_v50  ;;  %v548_v14 = vmul.f32 1.0614054, %v1535_v52 }
 0x124   :  { %v793_v4 = vsub.f32 0.0, %v761_v57  ;;  %v754_v9 = vmul.f32 %v1227_v58, %v674_v60  ;;  %v619_v26 = vadd.f32 -0.28449672, %v603_v61  ;;  %v588_v31 = vadd.f32 1.4214138, %v572_v7 }
 0x125   :  { %v801_v2 = vsub.f32 0.0, %v769_v46  ;;  %v762_v22 = vsub.f32 1.0, %v746_v59  ;;  %v627_v18 = vadd.f32 -0.28449672, %v611_v51  ;;  %1240 = vpow2.f32 %v735_v8 }
 0x126   :  { %v809_v19 = vsel %vm777_vm0, %v793_v4, %v761_v57  ;;  %v770_v38 = vsub.f32 1.0, %v754_v9  ;;  %v635_v56 = vmul.f32 %v1514_v28, %v619_v26  ;;  %v604_v47 = vmul.f32 %v1530_v44, %v588_v31 }
 0x127   :  { %v817_v30 = vsel %vm785_vm1, %v801_v2, %v769_v46  ;;  %v841_v37 = vadd.f32 1.0, %v809_v19  ;;  %v794_v45 = vsub.f32 0.0, %v762_v22  ;;  %v643_v63 = vmul.f32 %v1520_v43, %v627_v18 }
 0x128   :  { %v564_v57 = vadd.f32 -1.4531521, %v548_v14  ;;  %v1556_v58 = vadd.f32 %v1503_v3, %v1391_v35  ;;  %v849_v50 = vadd.f32 1.0, %v817_v30  ;;  %v802_v46 = vsub.f32 0.0, %v770_v38 }
 0x129   :  { %v810_v48 = vsel %vm778_vm2, %v794_v45, %v762_v22  ;;  %v651_v8 = vadd.f32 0.2548296, %v635_v56  ;;  %v1560_v11 = vpop.eup %1236  ;;  %v659_v59 = vadd.f32 0.2548296, %v643_v63  ;;  %v620_v60 = vadd.f32 -0.28449672, %v604_v47 }
 0x12a   :  { %v842_v4 = vadd.f32 1.0, %v810_v48  ;;  %v580_v61 = vmul.f32 %v1535_v52, %v564_v57  ;;  %v857_v2 = vmul.f32 %v841_v37, %v1412_v10  ;;  %v818_v51 = vsel %vm786_vm3, %v802_v46, %v770_v38 }
 0x12b   :  { %v667_v3 = vmul.f32 %v1514_v28, %v651_v8  ;;  %v541_v7 = vmul.f32 1.0614054, %v1560_v11  ;;  %v1239_v53 = vpop.eup %1238  ;;  %v850_v19 = vadd.f32 1.0, %v818_v51  ;;  %v675_v22 = vmul.f32 %v1520_v43, %v659_v59 }
 0x12c   :  { %v858_v14 = vmul.f32 %v842_v4, %v1446_v39  ;;  %v636_v9 = vmul.f32 %v1530_v44, %v620_v60  ;;  %v865_v26 = vmul.f32 %v849_v50, %v1414_v17  ;;  %v596_v18 = vadd.f32 1.4214138, %v580_v61 }
 0x12d   :  { %v747_v30 = vmul.f32 %v1233_v55, %v667_v3  ;;  %v557_v10 = vadd.f32 -1.4531521, %v541_v7  ;;  %v866_v54 = vmul.f32 %v850_v19, %v1486_v20  ;;  %v755_v37 = vmul.f32 %v1235_v21, %v675_v22 }
 0x12e   :  { %v1044_v31 = vpack.c.bf16 %v858_v14, %v857_v2  ;;  %v652_v28 = vadd.f32 0.2548296, %v636_v9  ;;  %v612_v38 = vmul.f32 %v1535_v52, %v596_v18  ;;  %v1576_v56 = vmul.f32 0.70710677, %v1556_v58 }
 0x12f   :  { %v763_v45 = vsub.f32 1.0, %v747_v30  ;;  %v573_v39 = vmul.f32 %v1560_v11, %v557_v10  ;;  %v1241_v43 = vpop.eup %1240  ;;  %v1064_v17 = vpack.c.bf16 %v866_v54, %v865_v26  ;;  %v685_v20 = vsub.f32 0.0, %v1518_v42 }
 0x130   :  { %1045 = vst [vmem:[%s1755_s3] sm:$0xff] %v1044_v31   ;;  %v668_v55 = vmul.f32 %v1530_v44, %v652_v28  ;;  %v771_v63 = vsub.f32 1.0, %v755_v37  ;;  %v628_v47 = vadd.f32 -0.28449672, %v612_v38  ;;  %v1587_v48 = vand.u32 2147483647, %v1576_v56 }
 0x131   :  { %v795_v21 = vsub.f32 0.0, %v763_v45  ;;  %v589_v57 = vadd.f32 1.4214138, %v573_v39  ;;  %1084 = vst [vmem:[%s1755_s3 + $0x20] sm:$0xff] %v1064_v17   ;;  %v1591_v46 = vadd.f32 %v1510_v13, %v1391_v35  ;;  %vm779_vm4 = vcmp.lt.f32.partialorder %v1436_v33, 0.0 }
 0x132   :  { %v748_v50 = vmul.f32 %v1239_v53, %v668_v55  ;;  %v644_v44 = vmul.f32 %v1535_v52, %v628_v47  ;;  %v1145_v8 = vadd.f32 %v1451_v41, %v1433_v32  ;;  %v701_v60 = vmul.f32 %v685_v20, %v1518_v42 }
 0x133   :  { %v811_v4 = vsel %vm779_vm4, %v795_v21, %v763_v45  ;;  %v501_v61 = vmul.f32 0.3275911, %v1587_v48  ;;  %v827_v2 = vmul.f32 0.5, %v1419_v23  ;;  %v803_v51 = vsub.f32 0.0, %v771_v63 }
 0x134   :  { %v764_v59 = vsub.f32 1.0, %v748_v50  ;;  %v660_v3 = vadd.f32 0.2548296, %v644_v44  ;;  %v605_v13 = vmul.f32 %v1560_v11, %v589_v57  ;;  %v828_v33 = vmul.f32 0.5, %v1427_v29 }
 0x135   :  { %v517_v53 = vadd.f32 1.0, %v501_v61  ;;  %v1603_v14 = vmul.f32 0.70710677, %v1591_v46  ;;  %v843_v32 = vadd.f32 1.0, %v811_v4  ;;  %vm787_vm5 = vcmp.lt.f32.partialorder %v1439_v34, 0.0 }
 0x136   :  { %v796_v7 = vsub.f32 0.0, %v764_v59  ;;  %vm780_vm6 = vcmp.lt.f32.partialorder %v1449_v40, 0.0  ;;  %v676_v41 = vmul.f32 %v1535_v52, %v660_v3  ;;  %v721_v23 = vmul.f32 1.442695, %v701_v60 }
 0x137   :  { %1242 = vrcp.f32 %v517_v53  ;;  %v478_v19 = vand.u32 2147483647, %v1603_v14  ;;  %v819_v22 = vsel %vm787_vm5, %v803_v51, %v771_v63  ;;  %v621_v29 = vadd.f32 -0.28449672, %v605_v13 }
 0x138   :  { %v812_v42 = vsel %vm780_vm6, %v796_v7, %v764_v59  ;;  %v756_v26 = vmul.f32 %v1241_v43, %v676_v41  ;;  %v1610_v18 = vadd.f32 %v1145_v8, %v1391_v35  ;;  %v859_v10 = vmul.f32 %v843_v32, %v827_v2 }
 0x139   :  { %v844_v9 = vadd.f32 1.0, %v812_v42  ;;  %v494_v30 = vmul.f32 0.3275911, %v478_v19  ;;  %v851_v54 = vadd.f32 1.0, %v819_v22  ;;  %1244 = vpow2.f32 %v721_v23 }
 0x13a   :  { %v772_v34 = vsub.f32 1.0, %v756_v26  ;;  %v1613_v52 = vmul.f32 0.70710677, %v1610_v18  ;;  %v637_v45 = vmul.f32 %v1560_v11, %v621_v29  ;;  %v1124_v38 = vadd.f32 %v1469_v5, %v1465_v0 }
 0x13b   :  { %v860_v31 = vmul.f32 %v844_v9, %v828_v33  ;;  %v510_v40 = vadd.f32 1.0, %v494_v30  ;;  %v835_v39 = vmul.f32 0.5, %v1422_v24  ;;  %vm788_vm7 = vcmp.lt.f32.partialorder %v1459_v49, 0.0 }
 0x13c   :  { %v804_v28 = vsub.f32 0.0, %v772_v34  ;;  %v486_v43 = vand.u32 2147483647, %v1613_v52  ;;  %v693_v55 = vsub.f32 0.0, %v1587_v48  ;;  %v1626_v20 = vadd.f32 %v1124_v38, %v1391_v35 }
 0x13d   :  { %v1049_v37 = vpack.c.bf16 %v860_v31, %v859_v10  ;;  %1246 = vrcp.f32 %v510_v40  ;;  %v1148_v0 = vadd.f32 %v1471_v6, %v1467_v1  ;;  %v836_v24 = vmul.f32 0.5, %v1442_v36 }
 0x13e   :  { %v820_v17 = vsel %vm788_vm7, %v804_v28, %v772_v34  ;;  %v502_v49 = vmul.f32 0.3275911, %v486_v43  ;;  %v867_v21 = vmul.f32 %v851_v54, %v835_v39  ;;  %v653_v63 = vadd.f32 0.2548296, %v637_v45 }
 0x13f   :  { %1081 = vst [vmem:[%s1755_s3 + $0x8] sm:$0xff] %v1049_v37   ;;  %v852_v5 = vadd.f32 1.0, %v820_v17  ;;  %v1632_v47 = vmul.f32 0.70710677, %v1626_v20  ;;  %v1637_v8 = vadd.f32 %v1148_v0, %v1391_v35  ;;  %v1127_v4 = vadd.f32 %v1488_v25, %v1478_v15 }
 0x140   :  { %v518_v44 = vadd.f32 1.0, %v502_v49  ;;  %v709_v36 = vmul.f32 %v693_v55, %v1587_v48  ;;  %v686_v60 = vsub.f32 0.0, %v478_v19  ;;  %v669_v3 = vmul.f32 %v1560_v11, %v653_v63 }
 0x141   :  { %v1634_v57 = vpop.eup %1242  ;;  %v868_v50 = vmul.f32 %v852_v5, %v836_v24  ;;  %v479_v6 = vand.u32 2147483647, %v1632_v47  ;;  %v1649_v15 = vmul.f32 0.70710677, %v1637_v8  ;;  %v1652_v25 = vadd.f32 %v1127_v4, %v1391_v35 }
 0x142   :  { %v549_v1 = vmul.f32 1.0614054, %v1634_v57  ;;  %1248 = vrcp.f32 %v518_v44  ;;  %v737_v13 = vmul.f32 1.442695, %v709_v36  ;;  %v1151_v33 = vadd.f32 %v1490_v27, %v1480_v16 }
 0x143   :  { %v1069_v59 = vpack.c.bf16 %v868_v50, %v867_v21  ;;  %v495_v2 = vmul.f32 0.3275911, %v479_v6  ;;  %v1245_v51 = vpop.eup %1244  ;;  %v702_v32 = vmul.f32 %v686_v60, %v478_v19  ;;  %v694_v41 = vsub.f32 0.0, %v486_v43 }
 0x144   :  { %v565_v61 = vadd.f32 -1.4531521, %v549_v1  ;;  %v487_v42 = vand.u32 2147483647, %v1649_v15  ;;  %v1661_v11 = vmul.f32 0.70710677, %v1652_v25  ;;  %v749_v9 = vmul.f32 %v1245_v51, %v669_v3 }
 0x145   :  { %1085 = vst [vmem:[%s1755_s3 + $0x28] sm:$0xff] %v1069_v59   ;;  %v511_v7 = vadd.f32 1.0, %v495_v2  ;;  %v1669_v19 = vadd.f32 %v1151_v33, %v1391_v35  ;;  %v723_v30 = vmul.f32 1.442695, %v702_v32  ;;  %v710_v10 = vmul.f32 %v694_v41, %v486_v43 }
 0x146   :  { %v581_v48 = vmul.f32 %v1634_v57, %v565_v61  ;;  %v503_v26 = vmul.f32 0.3275911, %v487_v42  ;;  %v1665_v29 = vand.u32 2147483647, %v1661_v11  ;;  %v765_v45 = vsub.f32 1.0, %v749_v9 }
 0x147   :  { %v1657_v53 = vpop.eup %1246  ;;  %1250 = vrcp.f32 %v511_v7  ;;  %v1674_v37 = vmul.f32 0.70710677, %v1669_v19  ;;  %v687_v38 = vsub.f32 0.0, %v479_v6  ;;  %v739_v0 = vmul.f32 1.442695, %v710_v10 }
 0x148   :  { %v597_v23 = vadd.f32 1.4214138, %v581_v48  ;;  %v542_v22 = vmul.f32 1.0614054, %v1657_v53  ;;  %1252 = vpow2.f32 %v737_v13  ;;  %v519_v31 = vadd.f32 1.0, %v503_v26 }
 0x149   :  { %v496_v34 = vmul.f32 0.3275911, %v1665_v29  ;;  %v1681_v55 = vand.u32 2147483647, %v1674_v37  ;;  %v703_v21 = vmul.f32 %v687_v38, %v479_v6  ;;  %v797_v44 = vsub.f32 0.0, %v765_v45 }
 0x14a   :  { %v613_v16 = vmul.f32 %v1634_v57, %v597_v23  ;;  %v558_v27 = vadd.f32 -1.4531521, %v542_v22  ;;  %1254 = vrcp.f32 %v519_v31  ;;  %v695_v60 = vsub.f32 0.0, %v487_v42 }
 0x14b   :  { %v512_v39 = vadd.f32 1.0, %v496_v34  ;;  %1256 = vpow2.f32 %v723_v30  ;;  %v504_v63 = vmul.f32 0.3275911, %v1681_v55  ;;  %vm781_vm8 = vcmp.lt.f32.partialorder %v1506_v12, 0.0 }
 0x14c   :  { %v629_v54 = vadd.f32 -0.28449672, %v613_v16  ;;  %v574_v40 = vmul.f32 %v1657_v53, %v558_v27  ;;  %v1676_v28 = vpop.eup %1248  ;;  %v725_v48 = vmul.f32 1.442695, %v703_v21  ;;  %v688_v13 = vsub.f32 0.0, %v1665_v29 }
 0x14d   :  { %v550_v43 = vmul.f32 1.0614054, %v1676_v28  ;;  %1258 = vrcp.f32 %v512_v39  ;;  %v520_v61 = vadd.f32 1.0, %v504_v63  ;;  %v829_v23 = vmul.f32 0.5, %v1498_v62 }
 0x14e   :  { %v645_v35 = vmul.f32 %v1634_v57, %v629_v54  ;;  %v590_v17 = vadd.f32 1.4214138, %v574_v40  ;;  %1260 = vpow2.f32 %v739_v0  ;;  %v1698_v12 = vmul.f32 0.5, %v1556_v58 }
 0x14f   :  { %v566_v49 = vadd.f32 -1.4531521, %v550_v43  ;;  %1262 = vrcp.f32 %v520_v61  ;;  %v711_v9 = vmul.f32 %v695_v60, %v487_v42  ;;  %vm782_vm9 = vcmp.lt.f32.partialorder %v1603_v14, 0.0 }
 0x150   :  { %v661_v24 = vadd.f32 0.2548296, %v645_v35  ;;  %v606_v5 = vmul.f32 %v1657_v53, %v590_v17  ;;  %vm789_vm10 = vcmp.lt.f32.partialorder %v1576_v56, 0.0  ;;  %1264 = vpow2.f32 %v725_v48 }
 0x151   :  { %v1685_v50 = vpop.eup %1250  ;;  %v582_v36 = vmul.f32 %v1676_v28, %v566_v49  ;;  %v704_v62 = vmul.f32 %v688_v13, %v1665_v29  ;;  %v696_v39 = vsub.f32 0.0, %v1681_v55  ;;  %v830_v17 = vmul.f32 0.5, %v1591_v46 }
 0x152   :  { %v677_v4 = vmul.f32 %v1634_v57, %v661_v24  ;;  %v622_v1 = vadd.f32 -0.28449672, %v606_v5  ;;  %v543_v59 = vmul.f32 1.0614054, %v1685_v50  ;;  %v1253_v2 = vpop.eup %1252  ;;  %v813_v57 = vsel %vm781_vm8, %v797_v44, %v765_v45 }
 0x153   :  { %v598_v6 = vadd.f32 1.4214138, %v582_v36  ;;  %v845_v10 = vadd.f32 1.0, %v813_v57  ;;  %v741_v45 = vmul.f32 1.442695, %v711_v9  ;;  %v712_v46 = vmul.f32 %v696_v39, %v1681_v55 }
 0x154   :  { %v638_v51 = vmul.f32 %v1657_v53, %v622_v1  ;;  %v559_v3 = vadd.f32 -1.4531521, %v543_v59  ;;  %v757_v7 = vmul.f32 %v1253_v2, %v677_v4  ;;  %v1694_v41 = vpop.eup %1254  ;;  %v727_v49 = vmul.f32 1.442695, %v704_v62 }
 0x155   :  { %v614_v32 = vmul.f32 %v1676_v28, %v598_v6  ;;  %v551_v27 = vmul.f32 1.0614054, %v1694_v41  ;;  %v1257_v30 = vpop.eup %1256  ;;  %v861_v0 = vmul.f32 %v845_v10, %v829_v23  ;;  %1266 = vpow2.f32 %v741_v45 }
 0x156   :  { %v654_v33 = vadd.f32 0.2548296, %v638_v51  ;;  %v575_v22 = vmul.f32 %v1685_v50, %v559_v3  ;;  %v773_v34 = vsub.f32 1.0, %v757_v7  ;;  %1268 = vpow2.f32 %v727_v49 }
 0x157   :  { %v630_v16 = vadd.f32 -0.28449672, %v614_v32  ;;  %v1706_v58 = vpop.eup %1258  ;;  %vm790_vm11 = vcmp.lt.f32.partialorder %v1613_v52, 0.0  ;;  %v838_v62 = vmul.f32 0.5, %v1610_v18  ;;  %vm783_vm12 = vcmp.lt.f32.partialorder %v1632_v47, 0.0 }
 0x158   :  { %v670_v26 = vmul.f32 %v1657_v53, %v654_v33  ;;  %v591_v31 = vadd.f32 1.4214138, %v575_v22  ;;  %v567_v53 = vadd.f32 -1.4531521, %v551_v27  ;;  %v544_v38 = vmul.f32 1.0614054, %v1706_v58  ;;  %v1261_v21 = vpop.eup %1260 }
 0x159   :  { %v646_v42 = vmul.f32 %v1676_v28, %v630_v16  ;;  %v805_v63 = vsub.f32 0.0, %v773_v34  ;;  %v1263_v36 = vpop.eup %1262  ;;  %v743_v22 = vmul.f32 1.442695, %v712_v46  ;;  %vm784_vm13 = vcmp.lt.f32.partialorder %v1661_v11, 0.0 }
 0x15a   :  { %v750_v54 = vmul.f32 %v1257_v30, %v670_v26  ;;  %v607_v40 = vmul.f32 %v1685_v50, %v591_v31  ;;  %v583_v29 = vmul.f32 %v1694_v41, %v567_v53  ;;  %v560_v5 = vadd.f32 -1.4531521, %v544_v38  ;;  %v1265_v32 = vpop.eup %1264 }
 0x15b   :  { %v662_v43 = vadd.f32 0.2548296, %v646_v42  ;;  %v552_v6 = vmul.f32 1.0614054, %v1263_v36  ;;  %1270 = vpow2.f32 %v743_v22  ;;  %v831_v46 = vmul.f32 0.5, %v1626_v20 }
 0x15c   :  { %v766_v35 = vsub.f32 1.0, %v750_v54  ;;  %v623_v24 = vadd.f32 -0.28449672, %v607_v40  ;;  %v599_v1 = vadd.f32 1.4214138, %v583_v29  ;;  %v576_v60 = vmul.f32 %v1706_v58, %v560_v5 }
 0x15d   :  { %v678_v4 = vmul.f32 %v1676_v28, %v662_v43  ;;  %v821_v28 = vsel %vm789_vm10, %v805_v63, %v773_v34  ;;  %v568_v33 = vadd.f32 -1.4531521, %v552_v6  ;;  %vm791_vm14 = vcmp.lt.f32.partialorder %v1649_v15, 0.0 }
 0x15e   :  { %v798_v44 = vsub.f32 0.0, %v766_v35  ;;  %v639_v59 = vmul.f32 %v1685_v50, %v623_v24  ;;  %v615_v51 = vmul.f32 %v1694_v41, %v599_v1  ;;  %v592_v13 = vadd.f32 1.4214138, %v576_v60 }
 0x15f   :  { %v758_v2 = vmul.f32 %v1261_v21, %v678_v4  ;;  %v584_v16 = vmul.f32 %v1263_v36, %v568_v33  ;;  %v853_v27 = vadd.f32 1.0, %v821_v28  ;;  %v1267_v45 = vpop.eup %1266  ;;  %vm792_vm15 = vcmp.lt.f32.partialorder %v1674_v37, 0.0 }
 0x160   :  { %v814_v61 = vsel %vm782_vm9, %v798_v44, %v766_v35  ;;  %v655_v48 = vadd.f32 0.2548296, %v639_v59  ;;  %v631_v7 = vadd.f32 -0.28449672, %v615_v51  ;;  %v608_v14 = vmul.f32 %v1706_v58, %v592_v13  ;;  %v1269_v43 = vpop.eup %1268 }
 0x161   :  { %v846_v3 = vadd.f32 1.0, %v814_v61  ;;  %v774_v57 = vsub.f32 1.0, %v758_v2  ;;  %v600_v54 = vadd.f32 1.4214138, %v584_v16  ;;  %v869_v38 = vmul.f32 %v853_v27, %v1698_v12 }
 0x162   :  { %v671_v55 = vmul.f32 %v1685_v50, %v655_v48  ;;  %v647_v26 = vmul.f32 %v1694_v41, %v631_v7  ;;  %v624_v10 = vadd.f32 -0.28449672, %v608_v14  ;;  %v832_v51 = vmul.f32 0.5, %v1652_v25 }
 0x163   :  { %v862_v23 = vmul.f32 %v846_v3, %v830_v17  ;;  %v806_v9 = vsub.f32 0.0, %v774_v57  ;;  %v616_v40 = vmul.f32 %v1263_v36, %v600_v54  ;;  %v839_v11 = vmul.f32 0.5, %v1637_v8 }
 0x164   :  { %v751_v56 = vmul.f32 %v1265_v32, %v671_v55  ;;  %v663_v34 = vadd.f32 0.2548296, %v647_v26  ;;  %v640_v52 = vmul.f32 %v1706_v58, %v624_v10  ;;  %v840_v20 = vmul.f32 0.5, %v1669_v19 }
 0x165   :  { %v1054_v30 = vpack.c.bf16 %v862_v23, %v861_v0  ;;  %v822_v31 = vsel %vm790_vm11, %v806_v9, %v774_v57  ;;  %v632_v17 = vadd.f32 -0.28449672, %v616_v40  ;;  %v1271_v1 = vpop.eup %1270 }
 0x166   :  { %v854_v50 = vadd.f32 1.0, %v822_v31  ;;  %v767_v42 = vsub.f32 1.0, %v751_v56  ;;  %v679_v53 = vmul.f32 %v1694_v41, %v663_v34  ;;  %v656_v35 = vadd.f32 0.2548296, %v640_v52 }
 0x167   :  { %1082 = vst [vmem:[%s1755_s3 + $0x10] sm:$0xff] %v1054_v30   ;;  %v648_v49 = vmul.f32 %v1263_v36, %v632_v17 }
 0x168   :  { %v870_v39 = vmul.f32 %v854_v50, %v838_v62  ;;  %v759_v18 = vmul.f32 %v1267_v45, %v679_v53  ;;  %v799_v0 = vsub.f32 0.0, %v767_v42  ;;  %v672_v24 = vmul.f32 %v1706_v58, %v656_v35 }
 0x169   :  { %v664_v21 = vadd.f32 0.2548296, %v648_v49 }
 0x16a   :  { %v1074_v29 = vpack.c.bf16 %v870_v39, %v869_v38  ;;  %v775_v5 = vsub.f32 1.0, %v759_v18  ;;  %v752_v41 = vmul.f32 %v1269_v43, %v672_v24  ;;  %v815_v12 = vsel %vm783_vm12, %v799_v0, %v767_v42 }
 0x16b   :  { %v680_v4 = vmul.f32 %v1263_v36, %v664_v21  ;;  %v847_v60 = vadd.f32 1.0, %v815_v12 }
 0x16c   :  { %1086 = vst [vmem:[%s1755_s3 + $0x30] sm:$0xff] %v1074_v29   ;;  %v768_v63 = vsub.f32 1.0, %v752_v41  ;;  %v807_v44 = vsub.f32 0.0, %v775_v5 }
 0x16d   :  { %v760_v58 = vmul.f32 %v1271_v1, %v680_v4  ;;  %v863_v3 = vmul.f32 %v847_v60, %v831_v46 }
 0x16e   :  { %v800_v59 = vsub.f32 0.0, %v768_v63  ;;  %v823_v2 = vsel %vm791_vm14, %v807_v44, %v775_v5 }
 0x16f   :  { %v776_v6 = vsub.f32 1.0, %v760_v58  ;;  %v855_v36 = vadd.f32 1.0, %v823_v2 }
 0x170   :  { %v816_v61 = vsel %vm784_vm13, %v800_v59, %v768_v63 }
 0x171   :  { %v848_v47 = vadd.f32 1.0, %v816_v61  ;;  %v808_v13 = vsub.f32 0.0, %v776_v6  ;;  %v871_v15 = vmul.f32 %v855_v36, %v839_v11 }
 0x173   :  { %v864_v48 = vmul.f32 %v848_v47, %v832_v51  ;;  %v824_v57 = vsel %vm792_vm15, %v808_v13, %v776_v6 }
 0x174   :  { %v856_v7 = vadd.f32 1.0, %v824_v57 }
 0x175   :  { %v1059_v28 = vpack.c.bf16 %v864_v48, %v863_v3 }
 0x176   :  { %v872_v25 = vmul.f32 %v856_v7, %v840_v20 }
 0x177   :  { %1083 = vst [vmem:[%s1755_s3 + $0x18] sm:$0xff] %v1059_v28  }
 0x178   :  { %v1079_v33 = vpack.c.bf16 %v872_v25, %v871_v15 }
 0x17a   :  { %1087 = vst [vmem:[%s1755_s3 + $0x38] sm:$0xff] %v1079_v33  }

// kernel: forward.67
= control target key start
LH: loop header
LB: loop body
LE: loop exit
PB: predicated region body
PF: predicated region fallthrough
CT: control target
= control target key end

     0   :  { %s365_s1 = inlined_call_operand.vmem [shape: bf16[1,128,128], index: 1, kind: input, shape index: {}]   ;;  %s366_s0 = inlined_call_operand.vmem [shape: bf16[1,32,128], index: 0, kind: input, shape index: {}]   ;;  %s367_s2 = inlined_call_operand.vmem [shape: f32[1,1,128], index: 2, kind: input, shape index: {}]   ;;  %s368_s3 = inlined_call_operand.vmem [shape: bf16[32,128], index: 3, kind: output, shape index: {}]  }
   0x1   :  { %v296_v0 = vld [vmem:[%s365_s1] sm:$0xff]   ;;  %v297_v1 = vld [vmem:[%s365_s1 + $0x8] sm:$0xff]   ;;  %v298_v2 = vld [vmem:[%s365_s1 + $0x10] sm:$0xff]  }
   0x2   :  { %276 = vmatprep.subr.bf16.mxu0 %v296_v0  ;;  %v299_v3 = vld [vmem:[%s365_s1 + $0x18] sm:$0xff]   ;;  %v304_v4 = vld [vmem:[%s366_s0] sm:$0xff]   ;;  %v301_v6 = vld [vmem:[%s365_s1 + $0x28] sm:$0xff]  }
   0x3   :  { %277 = vmatpush3.bf16.msra.mxu0 %v296_v0  ;;  %292 = vmatprep.mubr.bf16.mxu0 %v304_v4  ;;  %v300_v5 = vld [vmem:[%s365_s1 + $0x20] sm:$0xff]   ;;  %v302_v7 = vld [vmem:[%s365_s1 + $0x30] sm:$0xff]   ;;  %v303_v8 = vld [vmem:[%s365_s1 + $0x38] sm:$0xff]  }
   0x4   :  { %278 = vmatprep.subr.bf16.mxu0 %v297_v1  ;;  %v305_v9 = vld [vmem:[%s366_s0 + $0x8] sm:$0xff]   ;;  %v246_v11 = vld [vmem:[%s367_s2] ss:$0 sm:$0xff] }
   0x7   :  { %279 = vmatpush3.bf16.msra.mxu0 %v297_v1 }
   0x8   :  { %280 = vmatprep.subr.bf16.mxu0 %v298_v2 }
   0xb   :  { %281 = vmatpush3.bf16.msra.mxu0 %v298_v2 }
   0xc   :  { %282 = vmatprep.subr.bf16.mxu0 %v299_v3 }
   0xf   :  { %283 = vmatpush3.bf16.msra.mxu0 %v299_v3 }
  0x10   :  { %284 = vmatprep.subr.bf16.mxu0 %v300_v5 }
  0x13   :  { %285 = vmatpush3.bf16.msra.mxu0 %v300_v5 }
  0x14   :  { %286 = vmatprep.subr.bf16.mxu0 %v301_v6 }
  0x17   :  { %287 = vmatpush3.bf16.msra.mxu0 %v301_v6 }
  0x18   :  { %288 = vmatprep.subr.bf16.mxu0 %v302_v7 }
  0x1b   :  { %289 = vmatpush3.bf16.msra.mxu0 %v302_v7 }
  0x1c   :  { %290 = vmatprep.subr.bf16.mxu0 %v303_v8 }
  0x1f   :  { %291 = vmatpush3.bf16.msra.mxu0 %v303_v8 }
  0x22   :  { %293 = vmatmul.mubr.bf16.vlgmr.msra.gmra.mrb[0].mxu0 %v305_v9 }
  0xf5   :  { %v294_v10 = vpop.f32.mrb[0].mxu0 }
  0xf6   :  { %v152_v12 = vpop.f32.mrb[1].mxu0  ;;  %v191_v14 = vadd.f32 %v294_v10, %v246_v11 }
  0xf7   :  { %v295_v13 = vpop.f32.mrb[2].mxu0  ;;  %v189_v17 = vadd.f32 %v246_v11, %v152_v12 }
  0xf8   :  { %v192_v15 = vadd.f32 %v295_v13, %v246_v11  ;;  %v155_v16 = vpop.f32.mrb[3].mxu0 }
  0xf9   :  { %v190_v18 = vadd.f32 %v246_v11, %v155_v16 }
  0xfa   :  { %v263_v19 = vpack.c.bf16 %v192_v15, %v191_v14 }
  0xfb   :  { %v258_v20 = vpack.c.bf16 %v190_v18, %v189_v17 }
  0xfc   :  { %265 = vst [vmem:[%s368_s3 + $0x8] sm:$0xff] %v263_v19  }
  0xfd   :  { %259 = vst [vmem:[%s368_s3] sm:$0xff] %v258_v20  }

// kernel: forward.70
= control target key start
LH: loop header
LB: loop body
LE: loop exit
PB: predicated region body
PF: predicated region fallthrough
CT: control target
= control target key end

     0   :  { %s727_s1 = inlined_call_operand.vmem [shape: bf16[1,128,128], index: 1, kind: input, shape index: {}]   ;;  %s728_s0 = inlined_call_operand.vmem [shape: bf16[1,32,128], index: 0, kind: input, shape index: {}]   ;;  %s729_s2 = inlined_call_operand.vmem [shape: f32[1,1,128], index: 2, kind: input, shape index: {}]   ;;  %s730_s3 = inlined_call_operand.vmem [shape: bf16[32,128], index: 3, kind: input, shape index: {}]   ;;  %s731_s4 = inlined_call_operand.vmem [shape: bf16[32,128], index: 4, kind: output, shape index: {}]  }
   0x1   :  { %v551_v0 = vld [vmem:[%s727_s1] sm:$0xff]   ;;  %v552_v1 = vld [vmem:[%s727_s1 + $0x8] sm:$0xff]   ;;  %v553_v2 = vld [vmem:[%s727_s1 + $0x10] sm:$0xff]  }
   0x2   :  { %531 = vmatprep.subr.bf16.mxu0 %v551_v0  ;;  %v554_v3 = vld [vmem:[%s727_s1 + $0x18] sm:$0xff]   ;;  %v559_v4 = vld [vmem:[%s728_s0] sm:$0xff]   ;;  %v556_v6 = vld [vmem:[%s727_s1 + $0x28] sm:$0xff]  }
   0x3   :  { %532 = vmatpush3.bf16.msra.mxu0 %v551_v0  ;;  %547 = vmatprep.mubr.bf16.mxu0 %v559_v4  ;;  %v555_v5 = vld [vmem:[%s727_s1 + $0x20] sm:$0xff]   ;;  %v557_v7 = vld [vmem:[%s727_s1 + $0x30] sm:$0xff]   ;;  %v558_v8 = vld [vmem:[%s727_s1 + $0x38] sm:$0xff]  }
   0x4   :  { %533 = vmatprep.subr.bf16.mxu0 %v552_v1  ;;  %v560_v9 = vld [vmem:[%s728_s0 + $0x8] sm:$0xff]   ;;  %v492_v10 = vld [vmem:[%s729_s2] ss:$0 sm:$0xff] }
   0x7   :  { %534 = vmatpush3.bf16.msra.mxu0 %v552_v1 }
   0x8   :  { %535 = vmatprep.subr.bf16.mxu0 %v553_v2 }
   0xb   :  { %536 = vmatpush3.bf16.msra.mxu0 %v553_v2 }
   0xc   :  { %537 = vmatprep.subr.bf16.mxu0 %v554_v3 }
   0xf   :  { %538 = vmatpush3.bf16.msra.mxu0 %v554_v3 }
  0x10   :  { %539 = vmatprep.subr.bf16.mxu0 %v555_v5 }
  0x13   :  { %540 = vmatpush3.bf16.msra.mxu0 %v555_v5 }
  0x14   :  { %541 = vmatprep.subr.bf16.mxu0 %v556_v6 }
  0x17   :  { %542 = vmatpush3.bf16.msra.mxu0 %v556_v6 }
  0x18   :  { %543 = vmatprep.subr.bf16.mxu0 %v557_v7 }
  0x1b   :  { %544 = vmatpush3.bf16.msra.mxu0 %v557_v7 }
  0x1c   :  { %545 = vmatprep.subr.bf16.mxu0 %v558_v8 }
  0x1f   :  { %546 = vmatpush3.bf16.msra.mxu0 %v558_v8 }
  0x22   :  { %548 = vmatmul.mubr.bf16.vlgmr.msra.gmra.mrb[0].mxu0 %v560_v9 }
  0xf5   :  { %v549_v11 = vpop.f32.mrb[0].mxu0 }
  0xf6   :  { %v651_v12 = vadd.f32 %v549_v11, %v492_v10  ;;  %v172_v13 = vpop.f32.mrb[1].mxu0 }
  0xf7   :  { %v653_v14 = vadd.f32 %v492_v10, %v172_v13  ;;  %v550_v15 = vpop.f32.mrb[2].mxu0 }
  0xf8   :  { %v656_v16 = vmul.f32 0.70710677, %v651_v12  ;;  %v658_v17 = vadd.f32 %v550_v15, %v492_v10  ;;  %v175_v18 = vpop.f32.mrb[3].mxu0 }
  0xf9   :  { %v661_v19 = vmul.f32 0.70710677, %v653_v14  ;;  %v663_v20 = vadd.f32 %v492_v10, %v175_v18 }
  0xfa   :  { %v219_v21 = vand.u32 2147483647, %v656_v16  ;;  %v667_v22 = vmul.f32 0.70710677, %v658_v17  ;;  %vm295_vm0 = vcmp.lt.f32.partialorder %v656_v16, 0.0 }
  0xfb   :  { %v217_v23 = vand.u32 2147483647, %v661_v19  ;;  %v671_v24 = vmul.f32 0.70710677, %v663_v20  ;;  %vm293_vm1 = vcmp.lt.f32.partialorder %v661_v19, 0.0 }
  0xfc   :  { %v223_v25 = vmul.f32 0.3275911, %v219_v21  ;;  %v220_v26 = vand.u32 2147483647, %v667_v22  ;;  %v271_v35 = vsub.f32 0.0, %v219_v21  ;;  %vm296_vm2 = vcmp.lt.f32.partialorder %v667_v22, 0.0 }
  0xfd   :  { %v221_v27 = vmul.f32 0.3275911, %v217_v23  ;;  %v218_v28 = vand.u32 2147483647, %v671_v24  ;;  %v269_v36 = vsub.f32 0.0, %v217_v23  ;;  %vm294_vm3 = vcmp.lt.f32.partialorder %v671_v24, 0.0 }
  0xfe   :  { %v227_v29 = vadd.f32 1.0, %v223_v25  ;;  %v224_v30 = vmul.f32 0.3275911, %v220_v26  ;;  %v275_v38 = vmul.f32 %v271_v35, %v219_v21  ;;  %v272_v39 = vsub.f32 0.0, %v220_v26 }
  0xff   :  { %v225_v31 = vadd.f32 1.0, %v221_v27  ;;  %v222_v32 = vmul.f32 0.3275911, %v218_v28  ;;  %v273_v42 = vmul.f32 %v269_v36, %v217_v23  ;;  %v270_v44 = vsub.f32 0.0, %v218_v28 }
 0x100   :  { %561 = vrcp.f32 %v227_v29  ;;  %v228_v33 = vadd.f32 1.0, %v224_v30  ;;  %v281_v47 = vmul.f32 1.442695, %v275_v38  ;;  %v276_v49 = vmul.f32 %v272_v39, %v220_v26 }
 0x101   :  { %563 = vrcp.f32 %v225_v31  ;;  %v226_v34 = vadd.f32 1.0, %v222_v32  ;;  %v277_v51 = vmul.f32 1.442695, %v273_v42  ;;  %v274_v55 = vmul.f32 %v270_v44, %v218_v28 }
 0x102   :  { %565 = vrcp.f32 %v228_v33  ;;  %v283_v60 = vmul.f32 1.442695, %v276_v49  ;;  %v519_v33 = vld [vmem:[%s730_s3 + $0x8] sm:$0xff]   ;;  %v306_v22 = vmul.f32 0.5, %v663_v20 }
 0x103   :  { %567 = vrcp.f32 %v226_v34  ;;  %v279_v1 = vmul.f32 1.442695, %v274_v55 }
 0x104   :  { %569 = vpow2.f32 %v281_v47 }
 0x105   :  { %571 = vpow2.f32 %v277_v51 }
 0x106   :  { %573 = vpow2.f32 %v283_v60  ;;  %v308_v60 = vmul.f32 0.5, %v658_v17 }
 0x107   :  { %575 = vpow2.f32 %v279_v1 }
 0x10a   :  { %v562_v37 = vpop.eup %561 }
 0x10b   :  { %v564_v40 = vpop.eup %563  ;;  %v235_v41 = vmul.f32 1.0614054, %v562_v37 }
 0x10c   :  { %v233_v43 = vmul.f32 1.0614054, %v564_v40  ;;  %v566_v46 = vpop.eup %565 }
 0x10d   :  { %v239_v45 = vadd.f32 -1.4531521, %v235_v41  ;;  %v236_v52 = vmul.f32 1.0614054, %v566_v46  ;;  %v568_v53 = vpop.eup %567 }
 0x10e   :  { %v237_v48 = vadd.f32 -1.4531521, %v233_v43  ;;  %v234_v58 = vmul.f32 1.0614054, %v568_v53  ;;  %v570_v25 = vpop.eup %569  ;;  %v507_v43 = vunpack.c.l.bf16 %v519_v33 }
 0x10f   :  { %v243_v50 = vmul.f32 %v562_v37, %v239_v45  ;;  %v240_v57 = vadd.f32 -1.4531521, %v236_v52  ;;  %v572_v27 = vpop.eup %571  ;;  %v305_v52 = vmul.f32 0.5, %v653_v14 }
 0x110   :  { %v241_v54 = vmul.f32 %v564_v40, %v237_v48  ;;  %v238_v63 = vadd.f32 -1.4531521, %v234_v58  ;;  %v574_v36 = vpop.eup %573  ;;  %v307_v48 = vmul.f32 0.5, %v651_v12  ;;  %v508_v58 = vunpack.c.h.bf16 %v519_v33 }
 0x111   :  { %v247_v56 = vadd.f32 1.4214138, %v243_v50  ;;  %v244_v62 = vmul.f32 %v566_v46, %v240_v57  ;;  %v576_v42 = vpop.eup %575 }
 0x112   :  { %v245_v59 = vadd.f32 1.4214138, %v241_v54  ;;  %v242_v4 = vmul.f32 %v568_v53, %v238_v63 }
 0x113   :  { %v251_v61 = vmul.f32 %v562_v37, %v247_v56  ;;  %v248_v3 = vadd.f32 1.4214138, %v244_v62 }
 0x114   :  { %v249_v0 = vmul.f32 %v564_v40, %v245_v59  ;;  %v246_v8 = vadd.f32 1.4214138, %v242_v4 }
 0x115   :  { %v255_v2 = vadd.f32 -0.28449672, %v251_v61  ;;  %v252_v7 = vmul.f32 %v566_v46, %v248_v3 }
 0x116   :  { %v253_v5 = vadd.f32 -0.28449672, %v249_v0  ;;  %v250_v13 = vmul.f32 %v568_v53, %v246_v8 }
 0x117   :  { %v259_v6 = vmul.f32 %v562_v37, %v255_v2  ;;  %v256_v11 = vadd.f32 -0.28449672, %v252_v7 }
 0x118   :  { %v257_v9 = vmul.f32 %v564_v40, %v253_v5  ;;  %v254_v23 = vadd.f32 -0.28449672, %v250_v13 }
 0x119   :  { %v263_v10 = vadd.f32 0.2548296, %v259_v6  ;;  %v260_v21 = vmul.f32 %v566_v46, %v256_v11 }
 0x11a   :  { %v261_v15 = vadd.f32 0.2548296, %v257_v9  ;;  %v258_v30 = vmul.f32 %v568_v53, %v254_v23 }
 0x11b   :  { %v267_v18 = vmul.f32 %v562_v37, %v263_v10  ;;  %v264_v29 = vadd.f32 0.2548296, %v260_v21  ;;  %v502_v37 = vld [vmem:[%s730_s3] sm:$0xff]  }
 0x11c   :  { %v265_v26 = vmul.f32 %v564_v40, %v261_v15  ;;  %v262_v35 = vadd.f32 0.2548296, %v258_v30  ;;  %v503_v51 = vunpack.c.l.bf16 %v502_v37  ;;  %v504_v2 = vunpack.c.h.bf16 %v502_v37 }
 0x11d   :  { %v287_v28 = vmul.f32 %v570_v25, %v267_v18  ;;  %v268_v34 = vmul.f32 %v566_v46, %v264_v29 }
 0x11e   :  { %v285_v31 = vmul.f32 %v572_v27, %v265_v26  ;;  %v266_v41 = vmul.f32 %v568_v53, %v262_v35 }
 0x11f   :  { %v291_v32 = vsub.f32 1.0, %v287_v28  ;;  %v288_v40 = vmul.f32 %v574_v36, %v268_v34 }
 0x120   :  { %v289_v38 = vsub.f32 1.0, %v285_v31  ;;  %v286_v46 = vmul.f32 %v576_v42, %v266_v41 }
 0x121   :  { %v299_v39 = vsub.f32 0.0, %v291_v32  ;;  %v292_v47 = vsub.f32 1.0, %v288_v40 }
 0x122   :  { %v297_v44 = vsub.f32 0.0, %v289_v38  ;;  %v290_v53 = vsub.f32 1.0, %v286_v46 }
 0x123   :  { %v303_v45 = vsel %vm295_vm0, %v299_v39, %v291_v32  ;;  %v300_v55 = vsub.f32 0.0, %v292_v47 }
 0x124   :  { %v311_v49 = vadd.f32 1.0, %v303_v45  ;;  %v301_v50 = vsel %vm293_vm1, %v297_v44, %v289_v38  ;;  %v298_v59 = vsub.f32 0.0, %v290_v53 }
 0x125   :  { %v309_v54 = vadd.f32 1.0, %v301_v50  ;;  %v304_v57 = vsel %vm296_vm2, %v300_v55, %v292_v47 }
 0x126   :  { %v315_v56 = vmul.f32 %v311_v49, %v307_v48  ;;  %v312_v12 = vadd.f32 1.0, %v304_v57  ;;  %v302_v14 = vsel %vm294_vm3, %v298_v59, %v290_v53 }
 0x127   :  { %v313_v16 = vmul.f32 %v309_v54, %v305_v52  ;;  %v310_v0 = vadd.f32 1.0, %v302_v14 }
 0x128   :  { %v686_v19 = vadd.f32 %v507_v43, %v315_v56  ;;  %v316_v63 = vmul.f32 %v312_v12, %v308_v60 }
 0x129   :  { %v690_v61 = vadd.f32 %v503_v51, %v313_v16  ;;  %v314_v4 = vmul.f32 %v310_v0, %v306_v22 }
 0x12a   :  { %v693_v62 = vmul.f32 0.70710677, %v686_v19  ;;  %v700_v17 = vadd.f32 %v508_v58, %v316_v63 }
 0x12b   :  { %v697_v1 = vmul.f32 0.70710677, %v690_v61  ;;  %v706_v8 = vadd.f32 %v504_v2, %v314_v4 }
 0x12c   :  { %v335_v3 = vand.u32 2147483647, %v693_v62  ;;  %v704_v6 = vmul.f32 0.70710677, %v700_v17  ;;  %vm411_vm4 = vcmp.lt.f32.partialorder %v693_v62, 0.0 }
 0x12d   :  { %v333_v24 = vand.u32 2147483647, %v697_v1  ;;  %v710_v11 = vmul.f32 0.70710677, %v706_v8  ;;  %vm409_vm5 = vcmp.lt.f32.partialorder %v697_v1, 0.0  ;;  %v421_v1 = vmul.f32 0.5, %v690_v61 }
 0x12e   :  { %v339_v5 = vmul.f32 0.3275911, %v335_v3  ;;  %v336_v9 = vand.u32 2147483647, %v704_v6  ;;  %v387_v25 = vsub.f32 0.0, %v335_v3  ;;  %vm412_vm6 = vcmp.lt.f32.partialorder %v704_v6, 0.0 }
 0x12f   :  { %v337_v7 = vmul.f32 0.3275911, %v333_v24  ;;  %v334_v15 = vand.u32 2147483647, %v710_v11  ;;  %v385_v26 = vsub.f32 0.0, %v333_v24  ;;  %vm410_vm7 = vcmp.lt.f32.partialorder %v710_v11, 0.0 }
 0x130   :  { %v343_v20 = vadd.f32 1.0, %v339_v5  ;;  %v340_v13 = vmul.f32 0.3275911, %v336_v9  ;;  %v391_v28 = vmul.f32 %v387_v25, %v335_v3  ;;  %v388_v29 = vsub.f32 0.0, %v336_v9 }
 0x131   :  { %v341_v10 = vadd.f32 1.0, %v337_v7  ;;  %v338_v21 = vmul.f32 0.3275911, %v334_v15  ;;  %v389_v32 = vmul.f32 %v385_v26, %v333_v24  ;;  %v386_v35 = vsub.f32 0.0, %v334_v15 }
 0x132   :  { %577 = vrcp.f32 %v343_v20  ;;  %v344_v18 = vadd.f32 1.0, %v340_v13  ;;  %v397_v38 = vmul.f32 1.442695, %v391_v28  ;;  %v392_v37 = vmul.f32 %v388_v29, %v336_v9 }
 0x133   :  { %579 = vrcp.f32 %v341_v10  ;;  %v342_v23 = vadd.f32 1.0, %v338_v21  ;;  %v393_v41 = vmul.f32 1.442695, %v389_v32  ;;  %v390_v46 = vmul.f32 %v386_v35, %v334_v15 }
 0x134   :  { %581 = vrcp.f32 %v344_v18  ;;  %v399_v49 = vmul.f32 1.442695, %v392_v37 }
 0x135   :  { %583 = vrcp.f32 %v342_v23  ;;  %v395_v16 = vmul.f32 1.442695, %v390_v46  ;;  %v422_v46 = vmul.f32 0.5, %v706_v8 }
 0x136   :  { %585 = vpow2.f32 %v397_v38 }
 0x137   :  { %587 = vpow2.f32 %v393_v41  ;;  %v424_v41 = vmul.f32 0.5, %v700_v17 }
 0x138   :  { %589 = vpow2.f32 %v399_v49 }
 0x139   :  { %591 = vpow2.f32 %v395_v16 }
 0x13c   :  { %v578_v27 = vpop.eup %577 }
 0x13d   :  { %v580_v30 = vpop.eup %579  ;;  %v351_v31 = vmul.f32 1.0614054, %v578_v27 }
 0x13e   :  { %v349_v33 = vmul.f32 1.0614054, %v580_v30  ;;  %v582_v36 = vpop.eup %581 }
 0x13f   :  { %v355_v34 = vadd.f32 -1.4531521, %v351_v31  ;;  %v352_v42 = vmul.f32 1.0614054, %v582_v36  ;;  %v584_v44 = vpop.eup %583 }
 0x140   :  { %v353_v39 = vadd.f32 -1.4531521, %v349_v33  ;;  %v350_v50 = vmul.f32 1.0614054, %v584_v44  ;;  %v586_v24 = vpop.eup %585 }
 0x141   :  { %v359_v40 = vmul.f32 %v578_v27, %v355_v34  ;;  %v356_v47 = vadd.f32 -1.4531521, %v352_v42  ;;  %v588_v20 = vpop.eup %587 }
 0x142   :  { %v357_v43 = vmul.f32 %v580_v30, %v353_v39  ;;  %v354_v55 = vadd.f32 -1.4531521, %v350_v50  ;;  %v590_v23 = vpop.eup %589 }
 0x143   :  { %v363_v45 = vadd.f32 1.4214138, %v359_v40  ;;  %v360_v52 = vmul.f32 %v582_v36, %v356_v47  ;;  %v592_v32 = vpop.eup %591  ;;  %v423_v40 = vmul.f32 0.5, %v686_v19 }
 0x144   :  { %v361_v48 = vadd.f32 1.4214138, %v357_v43  ;;  %v358_v58 = vmul.f32 %v584_v44, %v354_v55 }
 0x145   :  { %v367_v51 = vmul.f32 %v578_v27, %v363_v45  ;;  %v364_v56 = vadd.f32 1.4214138, %v360_v52 }
 0x146   :  { %v365_v54 = vmul.f32 %v580_v30, %v361_v48  ;;  %v362_v14 = vadd.f32 1.4214138, %v358_v58 }
 0x147   :  { %v371_v53 = vadd.f32 -0.28449672, %v367_v51  ;;  %v368_v60 = vmul.f32 %v582_v36, %v364_v56 }
 0x148   :  { %v369_v57 = vadd.f32 -0.28449672, %v365_v54  ;;  %v366_v2 = vmul.f32 %v584_v44, %v362_v14 }
 0x149   :  { %v375_v59 = vmul.f32 %v578_v27, %v371_v53  ;;  %v372_v22 = vadd.f32 -0.28449672, %v368_v60 }
 0x14a   :  { %v373_v12 = vmul.f32 %v580_v30, %v369_v57  ;;  %v370_v7 = vadd.f32 -0.28449672, %v366_v2 }
 0x14b   :  { %v379_v63 = vadd.f32 0.2548296, %v375_v59  ;;  %v376_v4 = vmul.f32 %v582_v36, %v372_v22 }
 0x14c   :  { %v377_v0 = vadd.f32 0.2548296, %v373_v12  ;;  %v374_v15 = vmul.f32 %v584_v44, %v370_v7 }
 0x14d   :  { %v383_v3 = vmul.f32 %v578_v27, %v379_v63  ;;  %v380_v10 = vadd.f32 0.2548296, %v376_v4 }
 0x14e   :  { %v381_v5 = vmul.f32 %v580_v30, %v377_v0  ;;  %v378_v26 = vadd.f32 0.2548296, %v374_v15 }
 0x14f   :  { %v403_v9 = vmul.f32 %v586_v24, %v383_v3  ;;  %v384_v21 = vmul.f32 %v582_v36, %v380_v10 }
 0x150   :  { %v401_v13 = vmul.f32 %v588_v20, %v381_v5  ;;  %v382_v27 = vmul.f32 %v584_v44, %v378_v26 }
 0x151   :  { %v407_v18 = vsub.f32 1.0, %v403_v9  ;;  %v404_v29 = vmul.f32 %v590_v23, %v384_v21 }
 0x152   :  { %v405_v25 = vsub.f32 1.0, %v401_v13  ;;  %v402_v34 = vmul.f32 %v592_v32, %v382_v27 }
 0x153   :  { %v415_v28 = vsub.f32 0.0, %v407_v18  ;;  %v408_v30 = vsub.f32 1.0, %v404_v29 }
 0x154   :  { %v413_v31 = vsub.f32 0.0, %v405_v25  ;;  %v406_v36 = vsub.f32 1.0, %v402_v34 }
 0x155   :  { %v419_v33 = vsel %vm411_vm4, %v415_v28, %v407_v18  ;;  %v416_v35 = vsub.f32 0.0, %v408_v30 }
 0x156   :  { %v427_v38 = vadd.f32 1.0, %v419_v33  ;;  %v417_v39 = vsel %vm409_vm5, %v413_v31, %v405_v25  ;;  %v414_v42 = vsub.f32 0.0, %v406_v36 }
 0x157   :  { %v420_v37 = vsel %vm412_vm6, %v416_v35, %v408_v30  ;;  %v425_v43 = vadd.f32 1.0, %v417_v39 }
 0x158   :  { %v428_v62 = vadd.f32 1.0, %v420_v37  ;;  %v431_v44 = vmul.f32 %v427_v38, %v423_v40  ;;  %v418_v47 = vsel %vm410_vm7, %v414_v42, %v406_v36 }
 0x159   :  { %v426_v48 = vadd.f32 1.0, %v418_v47  ;;  %v429_v49 = vmul.f32 %v425_v43, %v421_v1 }
 0x15a   :  { %v432_v45 = vmul.f32 %v428_v62, %v424_v41 }
 0x15b   :  { %v430_v50 = vmul.f32 %v426_v48, %v422_v46 }
 0x15c   :  { %v517_v6 = vpack.c.bf16 %v432_v45, %v431_v44 }
 0x15d   :  { %v512_v19 = vpack.c.bf16 %v430_v50, %v429_v49 }
 0x15e   :  { %520 = vst [vmem:[%s731_s4 + $0x8] sm:$0xff] %v517_v6  }
 0x15f   :  { %513 = vst [vmem:[%s731_s4] sm:$0xff] %v512_v19  }

// kernel: forward.69
= control target key start
LH: loop header
LB: loop body
LE: loop exit
PB: predicated region body
PF: predicated region fallthrough
CT: control target
= control target key end

     0   :  { %s1841_s1 = inlined_call_operand.vmem [shape: bf16[1,1152,128], index: 1, kind: input, shape index: {}]   ;;  %s1842_s0 = inlined_call_operand.vmem [shape: bf16[1,32,1152], index: 0, kind: input, shape index: {}]   ;;  %s1843_s2 = inlined_call_operand.vmem [shape: f32[1,1,128], index: 2, kind: input, shape index: {}]   ;;  %s1844_s3 = inlined_call_operand.vmem [shape: bf16[32,128], index: 3, kind: output, shape index: {}]  }
   0x1   :  { %v1396_v0 = vld [vmem:[%s1841_s1 + $0x40] sm:$0xff]   ;;  %v1400_v4 = vld [vmem:[%s1841_s1 + $0x48] sm:$0xff]   ;;  %v1404_v8 = vld [vmem:[%s1841_s1 + $0x50] sm:$0xff]  }
   0x2   :  { %v1397_v1 = vld [vmem:[%s1841_s1 + $0xc0] sm:$0xff]   ;;  %1254 = vmatprep.subr.bf16.mxu0 %v1396_v0  ;;  %v1401_v5 = vld [vmem:[%s1841_s1 + $0xc8] sm:$0xff]   ;;  %v1405_v9 = vld [vmem:[%s1841_s1 + $0xd0] sm:$0xff]  }
   0x3   :  { %v1398_v2 = vld [vmem:[%s1841_s1] sm:$0xff]   ;;  %1282 = vmatprep.subr.bf16.mxu1 %v1397_v1  ;;  %v1402_v6 = vld [vmem:[%s1841_s1 + $0x8] sm:$0xff]   ;;  %v1406_v10 = vld [vmem:[%s1841_s1 + $0x10] sm:$0xff]  }
   0x4   :  { %v1399_v3 = vld [vmem:[%s1841_s1 + $0x80] sm:$0xff]   ;;  %1255 = vmatpush3.bf16.msra.mxu0 %v1398_v2  ;;  %v1403_v7 = vld [vmem:[%s1841_s1 + $0x88] sm:$0xff]   ;;  %v1407_v11 = vld [vmem:[%s1841_s1 + $0x90] sm:$0xff]  }
   0x5   :  { %1283 = vmatpush3.bf16.msra.mxu1 %v1399_v3  ;;  %1256 = vmatprep.subr.bf16.mxu0 %v1400_v4  ;;  %v1408_v12 = vld [vmem:[%s1841_s1 + $0x58] sm:$0xff]   ;;  %v1412_v16 = vld [vmem:[%s1841_s1 + $0x60] sm:$0xff]   ;;  %v1416_v20 = vld [vmem:[%s1841_s1 + $0x68] sm:$0xff]  }
   0x6   :  { %1284 = vmatprep.subr.bf16.mxu1 %v1401_v5  ;;  %v1409_v13 = vld [vmem:[%s1841_s1 + $0xd8] sm:$0xff]   ;;  %v1413_v17 = vld [vmem:[%s1841_s1 + $0xe0] sm:$0xff]   ;;  %v1417_v21 = vld [vmem:[%s1841_s1 + $0xe8] sm:$0xff]  }
   0x7   :  { %v1410_v14 = vld [vmem:[%s1841_s1 + $0x18] sm:$0xff]   ;;  %v1414_v18 = vld [vmem:[%s1841_s1 + $0x20] sm:$0xff]   ;;  %v1418_v22 = vld [vmem:[%s1841_s1 + $0x28] sm:$0xff]  }
   0x8   :  { %1257 = vmatpush3.bf16.msra.mxu0 %v1402_v6  ;;  %v1411_v15 = vld [vmem:[%s1841_s1 + $0x98] sm:$0xff]   ;;  %v1415_v19 = vld [vmem:[%s1841_s1 + $0xa0] sm:$0xff]   ;;  %v1419_v23 = vld [vmem:[%s1841_s1 + $0xa8] sm:$0xff]  }
   0x9   :  { %1285 = vmatpush3.bf16.msra.mxu1 %v1403_v7  ;;  %1258 = vmatprep.subr.bf16.mxu0 %v1404_v8  ;;  %v1420_v24 = vld [vmem:[%s1841_s1 + $0x70] sm:$0xff]   ;;  %v1424_v28 = vld [vmem:[%s1841_s1 + $0x78] sm:$0xff]   ;;  %v1428_v32 = vld [vmem:[%s1842_s0] ss:$36 sps:$4 sm:$0xff]  }
   0xa   :  { %1286 = vmatprep.subr.bf16.mxu1 %v1405_v9  ;;  %v1421_v25 = vld [vmem:[%s1841_s1 + $0xf0] sm:$0xff]   ;;  %v1425_v29 = vld [vmem:[%s1841_s1 + $0xf8] sm:$0xff]   ;;  %v1430_v33 = vld [vmem:[%s1842_s0 + $0x4] ss:$36 sps:$4 sm:$0xff]  }
   0xb   :  { %v1422_v26 = vld [vmem:[%s1841_s1 + $0x30] sm:$0xff]   ;;  %v1426_v30 = vld [vmem:[%s1841_s1 + $0x38] sm:$0xff]   ;;  %v1431_v34 = vld [vmem:[%s1842_s0 + $0x8] ss:$36 sps:$4 sm:$0xff]   ;;  %758 = vmatprep.mubr.bf16.mxu0 %v1430_v33 }
   0xc   :  { %1259 = vmatpush3.bf16.msra.mxu0 %v1406_v10  ;;  %v1423_v27 = vld [vmem:[%s1841_s1 + $0xb0] sm:$0xff]   ;;  %v1427_v31 = vld [vmem:[%s1841_s1 + $0xb8] sm:$0xff]   ;;  %v1434_v36 = vld [vmem:[%s1841_s1 + $0x140] sm:$0xff]  }
   0xd   :  { %1287 = vmatpush3.bf16.msra.mxu1 %v1407_v11  ;;  %1260 = vmatprep.subr.bf16.mxu0 %v1408_v12  ;;  %v1433_v35 = vld [vmem:[%s1842_s0 + $0xc] ss:$36 sps:$4 sm:$0xff]   ;;  %v1435_v37 = vld [vmem:[%s1841_s1 + $0x100] sm:$0xff]   ;;  %v1446_v48 = vld [vmem:[%s1841_s1 + $0x158] sm:$0xff]  }
   0xe   :  { %1288 = vmatprep.subr.bf16.mxu1 %v1409_v13  ;;  %807 = vmatprep.mubr.bf16.mxu1 %v1433_v35  ;;  %v1436_v38 = vld [vmem:[%s1841_s1 + $0x1c0] sm:$0xff]   ;;  %v1438_v40 = vld [vmem:[%s1841_s1 + $0x148] sm:$0xff]   ;;  %v1442_v44 = vld [vmem:[%s1841_s1 + $0x150] sm:$0xff]  }
   0xf   :  { %v1437_v39 = vld [vmem:[%s1841_s1 + $0x180] sm:$0xff]   ;;  %v1439_v41 = vld [vmem:[%s1841_s1 + $0x108] sm:$0xff]   ;;  %v1443_v45 = vld [vmem:[%s1841_s1 + $0x110] sm:$0xff]  }
  0x10   :  { %1261 = vmatpush3.bf16.msra.mxu0 %v1410_v14  ;;  %v1440_v42 = vld [vmem:[%s1841_s1 + $0x1c8] sm:$0xff]   ;;  %v1444_v46 = vld [vmem:[%s1841_s1 + $0x1d0] sm:$0xff]   ;;  %v1447_v49 = vld [vmem:[%s1841_s1 + $0x118] sm:$0xff]  }
  0x11   :  { %1289 = vmatpush3.bf16.msra.mxu1 %v1411_v15  ;;  %1262 = vmatprep.subr.bf16.mxu0 %v1412_v16  ;;  %v1441_v43 = vld [vmem:[%s1841_s1 + $0x188] sm:$0xff]   ;;  %v1445_v47 = vld [vmem:[%s1841_s1 + $0x190] sm:$0xff]   ;;  %v1448_v50 = vld [vmem:[%s1841_s1 + $0x1d8] sm:$0xff]  }
  0x12   :  { %1290 = vmatprep.subr.bf16.mxu1 %v1413_v17  ;;  %v1449_v51 = vld [vmem:[%s1841_s1 + $0x198] sm:$0xff]   ;;  %v1450_v52 = vld [vmem:[%s1841_s1 + $0x160] sm:$0xff]   ;;  %v1454_v56 = vld [vmem:[%s1841_s1 + $0x168] sm:$0xff]  }
  0x13   :  { %v1451_v53 = vld [vmem:[%s1841_s1 + $0x120] sm:$0xff]   ;;  %v1455_v57 = vld [vmem:[%s1842_s0 + $0x4c] ss:$36 sps:$4 sm:$0xff]   ;;  %v1457_v58 = vld [vmem:[%s1842_s0 + $0x54] ss:$36 sps:$4 sm:$0xff]  }
  0x14   :  { %1263 = vmatpush3.bf16.msra.mxu0 %v1414_v18  ;;  %v1452_v54 = vld [vmem:[%s1841_s1 + $0x1e0] sm:$0xff]   ;;  %v1459_v59 = vld [vmem:[%s1841_s1 + $0x128] sm:$0xff]   ;;  %v1461_v61 = vld [vmem:[%s1842_s0 + $0x50] ss:$36 sps:$4 sm:$0xff]  }
  0x15   :  { %1291 = vmatpush3.bf16.msra.mxu1 %v1415_v19  ;;  %1264 = vmatprep.subr.bf16.mxu0 %v1416_v20  ;;  %v1453_v55 = vld [vmem:[%s1841_s1 + $0x1a0] sm:$0xff]   ;;  %v1460_v60 = vld [vmem:[%s1842_s0 + $0x48] ss:$36 sps:$4 sm:$0xff]   ;;  %v1464_v0 = vld [vmem:[%s1841_s1 + $0x170] sm:$0xff]  }
  0x16   :  { %1292 = vmatprep.subr.bf16.mxu1 %v1417_v21  ;;  %v1462_v62 = vld [vmem:[%s1841_s1 + $0x1e8] sm:$0xff]   ;;  %v1465_v1 = vld [vmem:[%s1841_s1 + $0x130] sm:$0xff]   ;;  %v1468_v4 = vld [vmem:[%s1841_s1 + $0x178] sm:$0xff]  }
  0x17   :  { %v1463_v63 = vld [vmem:[%s1841_s1 + $0x1a8] sm:$0xff]   ;;  %v1466_v2 = vld [vmem:[%s1841_s1 + $0x1f0] sm:$0xff]   ;;  %v1469_v5 = vld [vmem:[%s1841_s1 + $0x138] sm:$0xff]  }
  0x18   :  { %1265 = vmatpush3.bf16.msra.mxu0 %v1418_v22  ;;  %v1467_v3 = vld [vmem:[%s1841_s1 + $0x1b0] sm:$0xff]   ;;  %v1470_v6 = vld [vmem:[%s1841_s1 + $0x1f8] sm:$0xff]   ;;  %v1475_v10 = vld [vmem:[%s1841_s1 + $0x200] sm:$0xff]  }
  0x19   :  { %1293 = vmatpush3.bf16.msra.mxu1 %v1419_v23  ;;  %1266 = vmatprep.subr.bf16.mxu0 %v1420_v24  ;;  %v1471_v7 = vld [vmem:[%s1842_s0 + $0x10] ss:$36 sps:$4 sm:$0xff]   ;;  %v1474_v9 = vld [vmem:[%s1841_s1 + $0x1b8] sm:$0xff]   ;;  %v1479_v13 = vld [vmem:[%s1841_s1 + $0x208] sm:$0xff]  }
  0x1a   :  { %1294 = vmatprep.subr.bf16.mxu1 %v1421_v25  ;;  %v1473_v8 = vld [vmem:[%s1842_s0 + $0x14] ss:$36 sps:$4 sm:$0xff]   ;;  %v1478_v12 = vld [vmem:[%s1842_s0 + $0x1c] ss:$36 sps:$4 sm:$0xff]   ;;  %v1484_v17 = vld [vmem:[%s1842_s0 + $0x64] ss:$36 sps:$4 sm:$0xff]  }
  0x1b   :  { %v1476_v11 = vld [vmem:[%s1842_s0 + $0x18] ss:$36 sps:$4 sm:$0xff]   ;;  %v1483_v16 = vld [vmem:[%s1841_s1 + $0x210] sm:$0xff]   ;;  %v1486_v18 = vld [vmem:[%s1842_s0 + $0x60] ss:$36 sps:$4 sm:$0xff]  }
  0x1c   :  { %1267 = vmatpush3.bf16.msra.mxu0 %v1422_v26  ;;  %v1480_v14 = vld [vmem:[%s1842_s0 + $0x5c] ss:$36 sps:$4 sm:$0xff]   ;;  %v1489_v22 = vld [vmem:[%s1841_s1 + $0x228] sm:$0xff]   ;;  %v1490_v23 = vld [vmem:[%s1841_s1 + $0x230] sm:$0xff]  }
  0x1d   :  { %1295 = vmatpush3.bf16.msra.mxu1 %v1423_v27  ;;  %1268 = vmatprep.subr.bf16.mxu0 %v1424_v28  ;;  %v1482_v15 = vld [vmem:[%s1842_s0 + $0x58] ss:$36 sps:$4 sm:$0xff]   ;;  %v1488_v20 = vld [vmem:[%s1841_s1 + $0x220] sm:$0xff]   ;;  %v1493_v25 = vld [vmem:[%s1842_s0 + $0x68] ss:$36 sps:$4 sm:$0xff]  }
  0x1e   :  { %1296 = vmatprep.subr.bf16.mxu1 %v1425_v29  ;;  %v1487_v19 = vld [vmem:[%s1841_s1 + $0x218] sm:$0xff]   ;;  %v1492_v21 = vld [vmem:[%s1842_s0 + $0x20] ss:$36 sps:$4 sm:$0xff]  }
  0x1f   :  { %v1491_v24 = vld [vmem:[%s1841_s1 + $0x238] sm:$0xff]  }
  0x20   :  { %1269 = vmatpush3.bf16.msra.mxu0 %v1426_v30 }
  0x21   :  { %1297 = vmatpush3.bf16.msra.mxu1 %v1427_v31  ;;  %1310 = vmatprep.subr.bf16.mxu0 %v1434_v36 }
  0x22   :  { %1338 = vmatprep.subr.bf16.mxu1 %v1436_v38 }
  0x23   :  { %759 = vmatmul.mubr.bf16.vlgmr.msra.gmra.mrb[0].mxu0 %v1428_v32 }
  0x24   :  { %808 = vmatmul.mubr.bf16.vlgmr.msra.gmra.mrb[0].mxu1 %v1431_v34  ;;  %1311 = vmatpush3.bf16.msra.mxu0 %v1435_v37 }
  0x25   :  { %1339 = vmatpush3.bf16.msra.mxu1 %v1437_v39  ;;  %1312 = vmatprep.subr.bf16.mxu0 %v1438_v40 }
  0x26   :  { %1340 = vmatprep.subr.bf16.mxu1 %v1440_v42  ;;  %766 = vmatprep.mubr.bf16.mxu0 %v1455_v57 }
  0x27   :  { %815 = vmatprep.mubr.bf16.mxu1 %v1457_v58 }
  0x28   :  { %1313 = vmatpush3.bf16.msra.mxu0 %v1439_v41 }
  0x29   :  { %1341 = vmatpush3.bf16.msra.mxu1 %v1441_v43  ;;  %1314 = vmatprep.subr.bf16.mxu0 %v1442_v44 }
  0x2a   :  { %1342 = vmatprep.subr.bf16.mxu1 %v1444_v46 }
  0x2b   :  { %767 = vmatmul.mubr.bf16.gmra.mrb[4].mxu0 %v1460_v60 }
  0x2c   :  { %1315 = vmatpush3.bf16.msra.mxu0 %v1443_v45  ;;  %816 = vmatmul.mubr.bf16.gmra.mrb[4].mxu1 %v1461_v61 }
  0x2d   :  { %1343 = vmatpush3.bf16.msra.mxu1 %v1445_v47  ;;  %1316 = vmatprep.subr.bf16.mxu0 %v1446_v48 }
  0x2e   :  { %1344 = vmatprep.subr.bf16.mxu1 %v1448_v50  ;;  %856 = vmatprep.mubr.bf16.mxu0 %v1473_v8 }
  0x2f   :  { %905 = vmatprep.mubr.bf16.mxu1 %v1478_v12 }
  0x30   :  { %1317 = vmatpush3.bf16.msra.mxu0 %v1447_v49 }
  0x31   :  { %1345 = vmatpush3.bf16.msra.mxu1 %v1449_v51  ;;  %1318 = vmatprep.subr.bf16.mxu0 %v1450_v52 }
  0x32   :  { %1346 = vmatprep.subr.bf16.mxu1 %v1452_v54 }
  0x34   :  { %1319 = vmatpush3.bf16.msra.mxu0 %v1451_v53 }
  0x35   :  { %1347 = vmatpush3.bf16.msra.mxu1 %v1453_v55  ;;  %1320 = vmatprep.subr.bf16.mxu0 %v1454_v56 }
  0x36   :  { %1348 = vmatprep.subr.bf16.mxu1 %v1462_v62 }
  0x38   :  { %1321 = vmatpush3.bf16.msra.mxu0 %v1459_v59 }
  0x39   :  { %1349 = vmatpush3.bf16.msra.mxu1 %v1463_v63  ;;  %1322 = vmatprep.subr.bf16.mxu0 %v1464_v0 }
  0x3a   :  { %1350 = vmatprep.subr.bf16.mxu1 %v1466_v2 }
  0x3c   :  { %1323 = vmatpush3.bf16.msra.mxu0 %v1465_v1 }
  0x3d   :  { %1351 = vmatpush3.bf16.msra.mxu1 %v1467_v3  ;;  %1324 = vmatprep.subr.bf16.mxu0 %v1468_v4 }
  0x3e   :  { %1352 = vmatprep.subr.bf16.mxu1 %v1470_v6 }
  0x40   :  { %1325 = vmatpush3.bf16.msra.mxu0 %v1469_v5 }
  0x41   :  { %1353 = vmatpush3.bf16.msra.mxu1 %v1474_v9  ;;  %1376 = vmatprep.subr.bf16.mxu0 %v1475_v10 }
  0x43   :  { %857 = vmatmul.mubr.bf16.vlgmr.msra.gmra.mrb[8].mxu0 %v1471_v7 }
  0x44   :  { %1377 = vmatpush3.bf16.msra.mxu0 %v1475_v10  ;;  %906 = vmatmul.mubr.bf16.vlgmr.msra.gmra.mrb[8].mxu1 %v1476_v11 }
  0x45   :  { %1378 = vmatprep.subr.bf16.mxu0 %v1479_v13  ;;  %864 = vmatprep.mubr.bf16.mxu0 %v1480_v14 }
  0x46   :  { %913 = vmatprep.mubr.bf16.mxu1 %v1484_v17 }
  0x48   :  { %1379 = vmatpush3.bf16.msra.mxu0 %v1479_v13 }
  0x49   :  { %1380 = vmatprep.subr.bf16.mxu0 %v1483_v16 }
  0x4b   :  { %865 = vmatmul.mubr.bf16.gmra.mrb[12].mxu0 %v1482_v15 }
  0x4c   :  { %1381 = vmatpush3.bf16.msra.mxu0 %v1483_v16  ;;  %914 = vmatmul.mubr.bf16.gmra.mrb[12].mxu1 %v1486_v18 }
  0x4d   :  { %1382 = vmatprep.subr.bf16.mxu0 %v1487_v19  ;;  %1392 = vmatprep.mubr.bf16.mxu0 %v1492_v21 }
  0x50   :  { %1383 = vmatpush3.bf16.msra.mxu0 %v1487_v19 }
  0x51   :  { %1384 = vmatprep.subr.bf16.mxu0 %v1488_v20 }
  0x54   :  { %1385 = vmatpush3.bf16.msra.mxu0 %v1488_v20 }
  0x55   :  { %1386 = vmatprep.subr.bf16.mxu0 %v1489_v22 }
  0x58   :  { %1387 = vmatpush3.bf16.msra.mxu0 %v1489_v22 }
  0x59   :  { %1388 = vmatprep.subr.bf16.mxu0 %v1490_v23 }
  0x5c   :  { %1389 = vmatpush3.bf16.msra.mxu0 %v1490_v23  ;;  %v1234_v23 = vld [vmem:[%s1843_s2] ss:$0 sm:$0xff] }
  0x5d   :  { %1390 = vmatprep.subr.bf16.mxu0 %v1491_v24 }
  0x60   :  { %1391 = vmatpush3.bf16.msra.mxu0 %v1491_v24 }
  0x63   :  { %1393 = vmatmul.mubr.bf16.vlgmr.msra.gmra.mrb[16].mxu0 %v1493_v25 }
  0xf6   :  { %v1270_v26 = vpop.f32.mrb[0].mxu0 }
  0xf7   :  { %v1298_v27 = vpop.f32.mrb[0].mxu1  ;;  %v1271_v28 = vpop.f32.mrb[1].mxu0 }
  0xf8   :  { %v1272_v29 = vadd.f32 %v1271_v28, %v1270_v26  ;;  %v1299_v30 = vpop.f32.mrb[1].mxu1  ;;  %v1273_v31 = vpop.f32.mrb[2].mxu0 }
  0xf9   :  { %v1300_v32 = vadd.f32 %v1299_v30, %v1298_v27  ;;  %v1301_v33 = vpop.f32.mrb[2].mxu1  ;;  %v1274_v34 = vpop.f32.mrb[3].mxu0 }
  0xfa   :  { %v1275_v35 = vadd.f32 %v1274_v34, %v1273_v31  ;;  %v1302_v36 = vpop.f32.mrb[3].mxu1 }
  0xfb   :  { %v810_v37 = vadd.f32 %v1300_v32, %v1272_v29  ;;  %v1303_v38 = vadd.f32 %v1302_v36, %v1301_v33 }
  0xfd   :  { %v813_v39 = vadd.f32 %v1303_v38, %v1275_v35 }
  0xfe   :  { %v1276_v40 = vpop.f32.mrb[4].mxu0 }
  0xff   :  { %v1304_v41 = vpop.f32.mrb[4].mxu1  ;;  %v1277_v42 = vpop.f32.mrb[5].mxu0 }
 0x100   :  { %v1305_v43 = vpop.f32.mrb[5].mxu1  ;;  %v1278_v44 = vadd.f32 %v1277_v42, %v1276_v40  ;;  %v1279_v46 = vpop.f32.mrb[6].mxu0 }
 0x101   :  { %v1306_v45 = vadd.f32 %v1305_v43, %v1304_v41  ;;  %v1307_v47 = vpop.f32.mrb[6].mxu1  ;;  %v1280_v48 = vpop.f32.mrb[7].mxu0 }
 0x102   :  { %v1308_v49 = vpop.f32.mrb[7].mxu1  ;;  %v1281_v51 = vadd.f32 %v1280_v48, %v1279_v46 }
 0x103   :  { %v818_v50 = vadd.f32 %v1306_v45, %v1278_v44  ;;  %v1309_v52 = vadd.f32 %v1308_v49, %v1307_v47 }
 0x105   :  { %v821_v53 = vadd.f32 %v1309_v52, %v1281_v51 }
 0x116   :  { %v1326_v54 = vpop.f32.mrb[8].mxu0 }
 0x117   :  { %v1327_v55 = vpop.f32.mrb[9].mxu0  ;;  %v1354_v58 = vpop.f32.mrb[8].mxu1 }
 0x118   :  { %v1328_v56 = vadd.f32 %v1327_v55, %v1326_v54  ;;  %v1329_v57 = vpop.f32.mrb[10].mxu0  ;;  %v1355_v62 = vpop.f32.mrb[9].mxu1 }
 0x119   :  { %v1330_v59 = vpop.f32.mrb[11].mxu0  ;;  %v1356_v63 = vadd.f32 %v1355_v62, %v1354_v58  ;;  %v1357_v0 = vpop.f32.mrb[10].mxu1 }
 0x11a   :  { %v859_v60 = vadd.f32 %v1328_v56, %v810_v37  ;;  %v1331_v61 = vadd.f32 %v1330_v59, %v1329_v57  ;;  %v1358_v2 = vpop.f32.mrb[11].mxu1 }
 0x11b   :  { %v1359_v3 = vadd.f32 %v1358_v2, %v1357_v0 }
 0x11c   :  { %v862_v1 = vadd.f32 %v1331_v61, %v813_v39  ;;  %v908_v4 = vadd.f32 %v1356_v63, %v859_v60 }
 0x11e   :  { %v1332_v5 = vpop.f32.mrb[12].mxu0  ;;  %v911_v7 = vadd.f32 %v1359_v3, %v862_v1 }
 0x11f   :  { %v1333_v6 = vpop.f32.mrb[13].mxu0  ;;  %v1360_v10 = vpop.f32.mrb[12].mxu1 }
 0x120   :  { %v1334_v8 = vadd.f32 %v1333_v6, %v1332_v5  ;;  %v1335_v9 = vpop.f32.mrb[14].mxu0  ;;  %v1361_v14 = vpop.f32.mrb[13].mxu1 }
 0x121   :  { %v1336_v11 = vpop.f32.mrb[15].mxu0  ;;  %v1362_v15 = vadd.f32 %v1361_v14, %v1360_v10  ;;  %v1363_v16 = vpop.f32.mrb[14].mxu1 }
 0x122   :  { %v867_v12 = vadd.f32 %v1334_v8, %v818_v50  ;;  %v1337_v13 = vadd.f32 %v1336_v11, %v1335_v9  ;;  %v1364_v18 = vpop.f32.mrb[15].mxu1 }
 0x123   :  { %v1365_v19 = vadd.f32 %v1364_v18, %v1363_v16 }
 0x124   :  { %v870_v17 = vadd.f32 %v1337_v13, %v821_v53  ;;  %v916_v20 = vadd.f32 %v1362_v15, %v867_v12 }
 0x126   :  { %v919_v21 = vadd.f32 %v1365_v19, %v870_v17 }
 0x136   :  { %v1394_v22 = vpop.f32.mrb[16].mxu0 }
 0x137   :  { %v965_v24 = vadd.f32 %v1394_v22, %v916_v20  ;;  %v956_v25 = vpop.f32.mrb[17].mxu0 }
 0x138   :  { %v957_v26 = vadd.f32 %v956_v25, %v908_v4  ;;  %v1395_v27 = vpop.f32.mrb[18].mxu0 }
 0x139   :  { %v1803_v28 = vadd.f32 %v1234_v23, %v965_v24  ;;  %v968_v29 = vadd.f32 %v1395_v27, %v919_v21  ;;  %v959_v30 = vpop.f32.mrb[19].mxu0 }
 0x13a   :  { %v1805_v31 = vadd.f32 %v1234_v23, %v957_v26  ;;  %v960_v32 = vadd.f32 %v959_v30, %v911_v7 }
 0x13b   :  { %v1808_v33 = vmul.f32 0.70710677, %v1803_v28  ;;  %v1810_v34 = vadd.f32 %v1234_v23, %v968_v29 }
 0x13c   :  { %v1813_v35 = vmul.f32 0.70710677, %v1805_v31  ;;  %v1815_v36 = vadd.f32 %v1234_v23, %v960_v32 }
 0x13d   :  { %v1003_v37 = vand.u32 2147483647, %v1808_v33  ;;  %v1819_v38 = vmul.f32 0.70710677, %v1810_v34  ;;  %vm1079_vm0 = vcmp.lt.f32.partialorder %v1808_v33, 0.0 }
 0x13e   :  { %v1001_v39 = vand.u32 2147483647, %v1813_v35  ;;  %v1823_v40 = vmul.f32 0.70710677, %v1815_v36  ;;  %vm1077_vm1 = vcmp.lt.f32.partialorder %v1813_v35, 0.0 }
 0x13f   :  { %v1007_v41 = vmul.f32 0.3275911, %v1003_v37  ;;  %v1004_v42 = vand.u32 2147483647, %v1819_v38  ;;  %v1055_v51 = vsub.f32 0.0, %v1003_v37  ;;  %vm1080_vm2 = vcmp.lt.f32.partialorder %v1819_v38, 0.0 }
 0x140   :  { %v1005_v43 = vmul.f32 0.3275911, %v1001_v39  ;;  %v1002_v44 = vand.u32 2147483647, %v1823_v40  ;;  %v1053_v52 = vsub.f32 0.0, %v1001_v39  ;;  %vm1078_vm3 = vcmp.lt.f32.partialorder %v1823_v40, 0.0 }
 0x141   :  { %v1011_v45 = vadd.f32 1.0, %v1007_v41  ;;  %v1008_v46 = vmul.f32 0.3275911, %v1004_v42  ;;  %v1059_v54 = vmul.f32 %v1055_v51, %v1003_v37  ;;  %v1056_v55 = vsub.f32 0.0, %v1004_v42 }
 0x142   :  { %v1009_v47 = vadd.f32 1.0, %v1005_v43  ;;  %v1006_v48 = vmul.f32 0.3275911, %v1002_v44  ;;  %v1057_v58 = vmul.f32 %v1053_v52, %v1001_v39  ;;  %v1054_v60 = vsub.f32 0.0, %v1002_v44 }
 0x143   :  { %1494 = vrcp.f32 %v1011_v45  ;;  %v1012_v49 = vadd.f32 1.0, %v1008_v46  ;;  %v1065_v63 = vmul.f32 1.442695, %v1059_v54  ;;  %v1060_v1 = vmul.f32 %v1056_v55, %v1004_v42 }
 0x144   :  { %1496 = vrcp.f32 %v1009_v47  ;;  %v1010_v50 = vadd.f32 1.0, %v1006_v48  ;;  %v1061_v3 = vmul.f32 1.442695, %v1057_v58  ;;  %v1058_v7 = vmul.f32 %v1054_v60, %v1002_v44 }
 0x145   :  { %1498 = vrcp.f32 %v1012_v49  ;;  %v1067_v12 = vmul.f32 1.442695, %v1060_v1 }
 0x146   :  { %1500 = vrcp.f32 %v1010_v50  ;;  %v1063_v17 = vmul.f32 1.442695, %v1058_v7 }
 0x147   :  { %1502 = vpow2.f32 %v1065_v63 }
 0x148   :  { %1504 = vpow2.f32 %v1061_v3 }
 0x149   :  { %1506 = vpow2.f32 %v1067_v12 }
 0x14a   :  { %1508 = vpow2.f32 %v1063_v17 }
 0x14d   :  { %v1495_v53 = vpop.eup %1494 }
 0x14e   :  { %v1497_v56 = vpop.eup %1496  ;;  %v1019_v57 = vmul.f32 1.0614054, %v1495_v53 }
 0x14f   :  { %v1017_v59 = vmul.f32 1.0614054, %v1497_v56  ;;  %v1499_v62 = vpop.eup %1498 }
 0x150   :  { %v1023_v61 = vadd.f32 -1.4531521, %v1019_v57  ;;  %v1020_v4 = vmul.f32 1.0614054, %v1499_v62  ;;  %v1501_v5 = vpop.eup %1500 }
 0x151   :  { %v1021_v0 = vadd.f32 -1.4531521, %v1017_v59  ;;  %v1018_v10 = vmul.f32 1.0614054, %v1501_v5  ;;  %v1503_v41 = vpop.eup %1502 }
 0x152   :  { %v1027_v2 = vmul.f32 %v1495_v53, %v1023_v61  ;;  %v1024_v9 = vadd.f32 -1.4531521, %v1020_v4  ;;  %v1505_v43 = vpop.eup %1504 }
 0x153   :  { %v1025_v6 = vmul.f32 %v1497_v56, %v1021_v0  ;;  %v1022_v15 = vadd.f32 -1.4531521, %v1018_v10  ;;  %v1507_v51 = vpop.eup %1506 }
 0x154   :  { %v1031_v8 = vadd.f32 1.4214138, %v1027_v2  ;;  %v1028_v14 = vmul.f32 %v1499_v62, %v1024_v9  ;;  %v1509_v58 = vpop.eup %1508  ;;  %v1090_v9 = vmul.f32 0.5, %v1815_v36 }
 0x155   :  { %v1029_v11 = vadd.f32 1.4214138, %v1025_v6  ;;  %v1026_v20 = vmul.f32 %v1501_v5, %v1022_v15  ;;  %v1089_v6 = vmul.f32 0.5, %v1805_v31 }
 0x156   :  { %v1035_v13 = vmul.f32 %v1495_v53, %v1031_v8  ;;  %v1032_v19 = vadd.f32 1.4214138, %v1028_v14 }
 0x157   :  { %v1033_v16 = vmul.f32 %v1497_v56, %v1029_v11  ;;  %v1030_v24 = vadd.f32 1.4214138, %v1026_v20 }
 0x158   :  { %v1039_v18 = vadd.f32 -0.28449672, %v1035_v13  ;;  %v1036_v23 = vmul.f32 %v1499_v62, %v1032_v19 }
 0x159   :  { %v1037_v21 = vadd.f32 -0.28449672, %v1033_v16  ;;  %v1034_v29 = vmul.f32 %v1501_v5, %v1030_v24 }
 0x15a   :  { %v1043_v22 = vmul.f32 %v1495_v53, %v1039_v18  ;;  %v1040_v27 = vadd.f32 -0.28449672, %v1036_v23 }
 0x15b   :  { %v1041_v25 = vmul.f32 %v1497_v56, %v1037_v21  ;;  %v1038_v39 = vadd.f32 -0.28449672, %v1034_v29 }
 0x15c   :  { %v1047_v26 = vadd.f32 0.2548296, %v1043_v22  ;;  %v1044_v37 = vmul.f32 %v1499_v62, %v1040_v27 }
 0x15d   :  { %v1045_v30 = vadd.f32 0.2548296, %v1041_v25  ;;  %v1042_v46 = vmul.f32 %v1501_v5, %v1038_v39 }
 0x15e   :  { %v1051_v32 = vmul.f32 %v1495_v53, %v1047_v26  ;;  %v1048_v45 = vadd.f32 0.2548296, %v1044_v37 }
 0x15f   :  { %v1049_v42 = vmul.f32 %v1497_v56, %v1045_v30  ;;  %v1046_v50 = vadd.f32 0.2548296, %v1042_v46 }
 0x160   :  { %v1071_v44 = vmul.f32 %v1503_v41, %v1051_v32  ;;  %v1052_v49 = vmul.f32 %v1499_v62, %v1048_v45  ;;  %v1091_v62 = vmul.f32 0.5, %v1803_v28 }
 0x161   :  { %v1069_v47 = vmul.f32 %v1505_v43, %v1049_v42  ;;  %v1050_v57 = vmul.f32 %v1501_v5, %v1046_v50  ;;  %v1092_v5 = vmul.f32 0.5, %v1810_v34 }
 0x162   :  { %v1075_v48 = vsub.f32 1.0, %v1071_v44  ;;  %v1072_v55 = vmul.f32 %v1507_v51, %v1052_v49 }
 0x163   :  { %v1073_v52 = vsub.f32 1.0, %v1069_v47  ;;  %v1070_v56 = vmul.f32 %v1509_v58, %v1050_v57 }
 0x164   :  { %v1083_v54 = vsub.f32 0.0, %v1075_v48  ;;  %v1076_v60 = vsub.f32 1.0, %v1072_v55 }
 0x165   :  { %v1081_v53 = vsub.f32 0.0, %v1073_v52  ;;  %v1074_v0 = vsub.f32 1.0, %v1070_v56 }
 0x166   :  { %v1087_v59 = vsel %vm1079_vm0, %v1083_v54, %v1075_v48  ;;  %v1084_v63 = vsub.f32 0.0, %v1076_v60 }
 0x167   :  { %v1085_v61 = vsel %vm1077_vm1, %v1081_v53, %v1073_v52  ;;  %v1095_v1 = vadd.f32 1.0, %v1087_v59  ;;  %v1082_v3 = vsub.f32 0.0, %v1074_v0 }
 0x168   :  { %v1088_v2 = vsel %vm1080_vm2, %v1084_v63, %v1076_v60  ;;  %v1093_v4 = vadd.f32 1.0, %v1085_v61 }
 0x169   :  { %v1096_v33 = vadd.f32 1.0, %v1088_v2  ;;  %v1086_v7 = vsel %vm1078_vm3, %v1082_v3, %v1074_v0  ;;  %v1099_v35 = vmul.f32 %v1095_v1, %v1091_v62 }
 0x16a   :  { %v1094_v10 = vadd.f32 1.0, %v1086_v7  ;;  %v1097_v11 = vmul.f32 %v1093_v4, %v1089_v6 }
 0x16b   :  { %v1100_v8 = vmul.f32 %v1096_v33, %v1092_v5 }
 0x16c   :  { %v1098_v12 = vmul.f32 %v1094_v10, %v1090_v9 }
 0x16d   :  { %v1251_v38 = vpack.c.bf16 %v1100_v8, %v1099_v35 }
 0x16e   :  { %v1246_v28 = vpack.c.bf16 %v1098_v12, %v1097_v11 }
 0x16f   :  { %1253 = vst [vmem:[%s1844_s3 + $0x8] sm:$0xff] %v1251_v38  }
 0x170   :  { %1247 = vst [vmem:[%s1844_s3] sm:$0xff] %v1246_v28  }

// kernel: forward.77
= control target key start
LH: loop header
LB: loop body
LE: loop exit
PB: predicated region body
PF: predicated region fallthrough
CT: control target
= control target key end

     0   :  { %v306_v1 = vmov 0   ;;  %v205_v18 = vlaneseq  ;;  %s387_s1 = inlined_call_operand.vmem [shape: bf16[1,128,256], index: 1, kind: input, shape index: {}]   ;;  %s388_s0 = inlined_call_operand.vmem [shape: bf16[1,16,128], index: 0, kind: input, shape index: {}]   ;;  %s389_s2 = inlined_call_operand.vmem [shape: f32[1,1,256], index: 2, kind: input, shape index: {}]   ;;  %s390_s3 = inlined_call_operand.vmem [shape: bf16[16,256], index: 3, kind: output, shape index: {}]  }
   0x1   :  { %v281_v0 = vld [vmem:[%s387_s1 + $0x4] ss:$8 sps:$4 sm:$0xff]   ;;  %177 = vmatprep.mubr.bf16.mxu0 %v306_v1  ;;  %v283_v2 = vld [vmem:[%s387_s1] ss:$8 sps:$4 sm:$0xff]   ;;  %v284_v3 = vld [vmem:[%s387_s1 + $0x14] ss:$8 sps:$4 sm:$0xff]  }
   0x2   :  { %145 = vmatprep.subr.bf16.mxu0 %v281_v0  ;;  %v286_v4 = vld [vmem:[%s387_s1 + $0x10] ss:$8 sps:$4 sm:$0xff]   ;;  %v287_v5 = vld [vmem:[%s387_s1 + $0x24] ss:$8 sps:$4 sm:$0xff]   ;;  %v289_v6 = vld [vmem:[%s387_s1 + $0x20] ss:$8 sps:$4 sm:$0xff]  }
   0x3   :  { %146 = vmatpush1.bf16.msra.mxu0 %v283_v2  ;;  %v290_v7 = vld [vmem:[%s387_s1 + $0x34] ss:$8 sps:$4 sm:$0xff]   ;;  %v292_v8 = vld [vmem:[%s387_s1 + $0x30] ss:$8 sps:$4 sm:$0xff]   ;;  %v293_v9 = vld [vmem:[%s387_s1 + $0x44] ss:$8 sps:$4 sm:$0xff]  }
   0x4   :  { %147 = vmatprep.subr.bf16.mxu0 %v284_v3  ;;  %v295_v10 = vld [vmem:[%s387_s1 + $0x40] ss:$8 sps:$4 sm:$0xff]   ;;  %v296_v11 = vld [vmem:[%s387_s1 + $0x54] ss:$8 sps:$4 sm:$0xff]   ;;  %v298_v12 = vld [vmem:[%s387_s1 + $0x50] ss:$8 sps:$4 sm:$0xff]  }
   0x5   :  { %v299_v13 = vld [vmem:[%s387_s1 + $0x64] ss:$8 sps:$4 sm:$0xff]   ;;  %v301_v14 = vld [vmem:[%s387_s1 + $0x60] ss:$8 sps:$4 sm:$0xff]   ;;  %v302_v15 = vld [vmem:[%s387_s1 + $0x74] ss:$8 sps:$4 sm:$0xff]  }
   0x6   :  { %v304_v16 = vld [vmem:[%s387_s1 + $0x70] ss:$8 sps:$4 sm:$0xff]   ;;  %v305_v17 = vld [vmem:[%s388_s0] sm:$0xff]   ;;  %v206_v19 = vshrl.u32 %v205_v18, 7 }
   0x7   :  { %148 = vmatpush1.bf16.msra.mxu0 %v286_v4  ;;  %v203_v21 = vld [vmem:[%s389_s2] sm:$0x3] }
   0x8   :  { %149 = vmatprep.subr.bf16.mxu0 %v287_v5  ;;  %v207_v20 = vsub.s32 0, %v206_v19  ;;  %v211_v22 = vsub.s32 1, %v206_v19 }
   0xa   :  { %v208_v23 = vrot.slane %v203_v21, %v207_v20  ;;  %v212_v24 = vrot.slane %v203_v21, %v211_v22 }
   0xb   :  { %150 = vmatpush1.bf16.msra.mxu0 %v289_v6 }
   0xc   :  { %151 = vmatprep.subr.bf16.mxu0 %v290_v7 }
   0xf   :  { %152 = vmatpush1.bf16.msra.mxu0 %v292_v8 }
  0x10   :  { %153 = vmatprep.subr.bf16.mxu0 %v293_v9 }
  0x13   :  { %154 = vmatpush1.bf16.msra.mxu0 %v295_v10 }
  0x14   :  { %155 = vmatprep.subr.bf16.mxu0 %v296_v11 }
  0x17   :  { %156 = vmatpush1.bf16.msra.mxu0 %v298_v12 }
  0x18   :  { %157 = vmatprep.subr.bf16.mxu0 %v299_v13 }
  0x1b   :  { %158 = vmatpush1.bf16.msra.mxu0 %v301_v14 }
  0x1c   :  { %159 = vmatprep.subr.bf16.mxu0 %v302_v15 }
  0x1f   :  { %160 = vmatpush1.bf16.msra.mxu0 %v304_v16 }
  0x22   :  { %178 = vmatmul.mubr.bf16.vlgmr.msra.gmra.mrb[0].mxu0 %v305_v17 }
  0xf5   :  { %v179_v25 = vpop.f32.mrb[0].mxu0 }
  0xf6   :  { %v215_v26 = vadd.f32 %v208_v23, %v179_v25  ;;  %v181_v27 = vpop.f32.mrb[1].mxu0 }
  0xf7   :  { %v216_v28 = vadd.f32 %v212_v24, %v181_v27  ;;  %v183_v29 = vpop.f32.mrb[2].mxu0 }
  0xf8   :  { %v217_v30 = vadd.f32 %v208_v23, %v183_v29  ;;  %v185_v31 = vpop.f32.mrb[3].mxu0 }
  0xf9   :  { %v278_v32 = vpack.c.bf16 %v216_v28, %v215_v26  ;;  %v218_v33 = vadd.f32 %v212_v24, %v185_v31 }
  0xfb   :  { %231 = vst [vmem:[%s390_s3] sm:$0xff] %v278_v32  ;;  %v279_v34 = vpack.c.bf16 %v218_v33, %v217_v30 }
  0xfd   :  { %232 = vst [vmem:[%s390_s3 + $0x8] sm:$0xff] %v279_v34 }

// kernel: forward.78
= control target key start
LH: loop header
LB: loop body
LE: loop exit
PB: predicated region body
PF: predicated region fallthrough
CT: control target
= control target key end

     0   :  { %v426_v1 = vmov 0   ;;  %v205_v18 = vlaneseq  ;;  %s539_s1 = inlined_call_operand.vmem [shape: bf16[1,128,256], index: 1, kind: input, shape index: {}]   ;;  %s540_s0 = inlined_call_operand.vmem [shape: bf16[1,16,128], index: 0, kind: input, shape index: {}]   ;;  %s541_s2 = inlined_call_operand.vmem [shape: f32[1,1,256], index: 2, kind: input, shape index: {}]   ;;  %s542_s3 = inlined_call_operand.vmem [shape: bf16[16,256], index: 3, kind: output, shape index: {}]  }
   0x1   :  { %v385_v0 = vld [vmem:[%s539_s1 + $0x4] ss:$8 sps:$4 sm:$0xff]   ;;  %177 = vmatprep.mubr.bf16.mxu0 %v426_v1  ;;  %v387_v2 = vld [vmem:[%s539_s1] ss:$8 sps:$4 sm:$0xff]   ;;  %v388_v3 = vld [vmem:[%s539_s1 + $0x14] ss:$8 sps:$4 sm:$0xff]  }
   0x2   :  { %145 = vmatprep.subr.bf16.mxu0 %v385_v0  ;;  %v390_v4 = vld [vmem:[%s539_s1 + $0x10] ss:$8 sps:$4 sm:$0xff]   ;;  %v391_v5 = vld [vmem:[%s539_s1 + $0x24] ss:$8 sps:$4 sm:$0xff]   ;;  %v393_v6 = vld [vmem:[%s539_s1 + $0x20] ss:$8 sps:$4 sm:$0xff]  }
   0x3   :  { %146 = vmatpush1.bf16.msra.mxu0 %v387_v2  ;;  %v394_v7 = vld [vmem:[%s539_s1 + $0x34] ss:$8 sps:$4 sm:$0xff]   ;;  %v396_v8 = vld [vmem:[%s539_s1 + $0x30] ss:$8 sps:$4 sm:$0xff]   ;;  %v397_v9 = vld [vmem:[%s539_s1 + $0x44] ss:$8 sps:$4 sm:$0xff]  }
   0x4   :  { %147 = vmatprep.subr.bf16.mxu0 %v388_v3  ;;  %v399_v10 = vld [vmem:[%s539_s1 + $0x40] ss:$8 sps:$4 sm:$0xff]   ;;  %v400_v11 = vld [vmem:[%s539_s1 + $0x54] ss:$8 sps:$4 sm:$0xff]   ;;  %v402_v12 = vld [vmem:[%s539_s1 + $0x50] ss:$8 sps:$4 sm:$0xff]  }
   0x5   :  { %v403_v13 = vld [vmem:[%s539_s1 + $0x64] ss:$8 sps:$4 sm:$0xff]   ;;  %v405_v14 = vld [vmem:[%s539_s1 + $0x60] ss:$8 sps:$4 sm:$0xff]   ;;  %v406_v15 = vld [vmem:[%s539_s1 + $0x74] ss:$8 sps:$4 sm:$0xff]  }
   0x6   :  { %v408_v16 = vld [vmem:[%s539_s1 + $0x70] ss:$8 sps:$4 sm:$0xff]   ;;  %v409_v17 = vld [vmem:[%s540_s0] sm:$0xff]   ;;  %v206_v19 = vshrl.u32 %v205_v18, 7 }
   0x7   :  { %148 = vmatpush1.bf16.msra.mxu0 %v390_v4  ;;  %v203_v21 = vld [vmem:[%s541_s2] sm:$0x3] }
   0x8   :  { %149 = vmatprep.subr.bf16.mxu0 %v391_v5  ;;  %v207_v20 = vsub.s32 0, %v206_v19  ;;  %v211_v22 = vsub.s32 1, %v206_v19 }
   0xa   :  { %v208_v23 = vrot.slane %v203_v21, %v207_v20  ;;  %v212_v24 = vrot.slane %v203_v21, %v211_v22 }
   0xb   :  { %150 = vmatpush1.bf16.msra.mxu0 %v393_v6 }
   0xc   :  { %151 = vmatprep.subr.bf16.mxu0 %v394_v7 }
   0xf   :  { %152 = vmatpush1.bf16.msra.mxu0 %v396_v8 }
  0x10   :  { %153 = vmatprep.subr.bf16.mxu0 %v397_v9 }
  0x13   :  { %154 = vmatpush1.bf16.msra.mxu0 %v399_v10 }
  0x14   :  { %155 = vmatprep.subr.bf16.mxu0 %v400_v11 }
  0x17   :  { %156 = vmatpush1.bf16.msra.mxu0 %v402_v12 }
  0x18   :  { %157 = vmatprep.subr.bf16.mxu0 %v403_v13 }
  0x1b   :  { %158 = vmatpush1.bf16.msra.mxu0 %v405_v14 }
  0x1c   :  { %159 = vmatprep.subr.bf16.mxu0 %v406_v15 }
  0x1f   :  { %160 = vmatpush1.bf16.msra.mxu0 %v408_v16 }
  0x22   :  { %178 = vmatmul.mubr.bf16.vlgmr.msra.gmra.mrb[0].mxu0 %v409_v17 }
  0xf5   :  { %v179_v25 = vpop.f32.mrb[0].mxu0 }
  0xf6   :  { %v501_v26 = vadd.f32 %v208_v23, %v179_v25  ;;  %v181_v27 = vpop.f32.mrb[1].mxu0 }
  0xf7   :  { %v503_v28 = vadd.f32 %v212_v24, %v181_v27  ;;  %v183_v29 = vpop.f32.mrb[2].mxu0 }
  0xf8   :  { %v506_v30 = vmul.f32 0.70710677, %v501_v26  ;;  %v508_v31 = vadd.f32 %v208_v23, %v183_v29  ;;  %v185_v32 = vpop.f32.mrb[3].mxu0 }
  0xf9   :  { %v511_v33 = vmul.f32 0.70710677, %v503_v28  ;;  %v513_v34 = vadd.f32 %v212_v24, %v185_v32 }
  0xfa   :  { %v223_v35 = vand.u32 2147483647, %v506_v30  ;;  %v517_v36 = vmul.f32 0.70710677, %v508_v31  ;;  %vm299_vm0 = vcmp.lt.f32.partialorder %v506_v30, 0.0 }
  0xfb   :  { %v224_v37 = vand.u32 2147483647, %v511_v33  ;;  %v521_v38 = vmul.f32 0.70710677, %v513_v34  ;;  %vm300_vm1 = vcmp.lt.f32.partialorder %v511_v33, 0.0 }
  0xfc   :  { %v227_v39 = vmul.f32 0.3275911, %v223_v35  ;;  %v225_v40 = vand.u32 2147483647, %v517_v36  ;;  %v275_v49 = vsub.f32 0.0, %v223_v35  ;;  %vm301_vm2 = vcmp.lt.f32.partialorder %v517_v36, 0.0 }
  0xfd   :  { %v228_v41 = vmul.f32 0.3275911, %v224_v37  ;;  %v226_v42 = vand.u32 2147483647, %v521_v38  ;;  %v276_v50 = vsub.f32 0.0, %v224_v37  ;;  %vm302_vm3 = vcmp.lt.f32.partialorder %v521_v38, 0.0 }
  0xfe   :  { %v231_v43 = vadd.f32 1.0, %v227_v39  ;;  %v229_v44 = vmul.f32 0.3275911, %v225_v40  ;;  %v279_v52 = vmul.f32 %v275_v49, %v223_v35  ;;  %v277_v53 = vsub.f32 0.0, %v225_v40 }
  0xff   :  { %v232_v45 = vadd.f32 1.0, %v228_v41  ;;  %v230_v46 = vmul.f32 0.3275911, %v226_v42  ;;  %v280_v56 = vmul.f32 %v276_v50, %v224_v37  ;;  %v278_v58 = vsub.f32 0.0, %v226_v42 }
 0x100   :  { %410 = vrcp.f32 %v231_v43  ;;  %v233_v47 = vadd.f32 1.0, %v229_v44  ;;  %v283_v61 = vmul.f32 1.442695, %v279_v52  ;;  %v281_v63 = vmul.f32 %v277_v53, %v225_v40 }
 0x101   :  { %412 = vrcp.f32 %v232_v45  ;;  %v234_v48 = vadd.f32 1.0, %v230_v46  ;;  %v285_v1 = vmul.f32 1.442695, %v280_v56  ;;  %v282_v5 = vmul.f32 %v278_v58, %v226_v42 }
 0x102   :  { %414 = vrcp.f32 %v233_v47  ;;  %v287_v10 = vmul.f32 1.442695, %v281_v63 }
 0x103   :  { %416 = vrcp.f32 %v234_v48  ;;  %v289_v15 = vmul.f32 1.442695, %v282_v5  ;;  %v313_v5 = vmul.f32 0.5, %v508_v31 }
 0x104   :  { %418 = vpow2.f32 %v283_v61 }
 0x105   :  { %420 = vpow2.f32 %v285_v1 }
 0x106   :  { %422 = vpow2.f32 %v287_v10 }
 0x107   :  { %424 = vpow2.f32 %v289_v15 }
 0x10a   :  { %v411_v51 = vpop.eup %410 }
 0x10b   :  { %v413_v54 = vpop.eup %412  ;;  %v239_v55 = vmul.f32 1.0614054, %v411_v51 }
 0x10c   :  { %v240_v57 = vmul.f32 1.0614054, %v413_v54  ;;  %v415_v60 = vpop.eup %414 }
 0x10d   :  { %v243_v59 = vadd.f32 -1.4531521, %v239_v55  ;;  %v241_v2 = vmul.f32 1.0614054, %v415_v60  ;;  %v417_v3 = vpop.eup %416 }
 0x10e   :  { %v244_v62 = vadd.f32 -1.4531521, %v240_v57  ;;  %v242_v8 = vmul.f32 1.0614054, %v417_v3  ;;  %v419_v39 = vpop.eup %418 }
 0x10f   :  { %v247_v0 = vmul.f32 %v411_v51, %v243_v59  ;;  %v245_v7 = vadd.f32 -1.4531521, %v241_v2  ;;  %v421_v41 = vpop.eup %420  ;;  %v311_v59 = vmul.f32 0.5, %v501_v26 }
 0x110   :  { %v248_v4 = vmul.f32 %v413_v54, %v244_v62  ;;  %v246_v13 = vadd.f32 -1.4531521, %v242_v8  ;;  %v423_v49 = vpop.eup %422  ;;  %v314_v8 = vmul.f32 0.5, %v513_v34 }
 0x111   :  { %v251_v6 = vadd.f32 1.4214138, %v247_v0  ;;  %v249_v12 = vmul.f32 %v415_v60, %v245_v7  ;;  %v425_v56 = vpop.eup %424 }
 0x112   :  { %v252_v9 = vadd.f32 1.4214138, %v248_v4  ;;  %v250_v18 = vmul.f32 %v417_v3, %v246_v13 }
 0x113   :  { %v255_v11 = vmul.f32 %v411_v51, %v251_v6  ;;  %v253_v17 = vadd.f32 1.4214138, %v249_v12 }
 0x114   :  { %v256_v14 = vmul.f32 %v413_v54, %v252_v9  ;;  %v254_v22 = vadd.f32 1.4214138, %v250_v18 }
 0x115   :  { %v259_v16 = vadd.f32 -0.28449672, %v255_v11  ;;  %v257_v21 = vmul.f32 %v415_v60, %v253_v17 }
 0x116   :  { %v260_v19 = vadd.f32 -0.28449672, %v256_v14  ;;  %v258_v27 = vmul.f32 %v417_v3, %v254_v22 }
 0x117   :  { %v263_v20 = vmul.f32 %v411_v51, %v259_v16  ;;  %v261_v25 = vadd.f32 -0.28449672, %v257_v21 }
 0x118   :  { %v264_v23 = vmul.f32 %v413_v54, %v260_v19  ;;  %v262_v37 = vadd.f32 -0.28449672, %v258_v27 }
 0x119   :  { %v267_v24 = vadd.f32 0.2548296, %v263_v20  ;;  %v265_v35 = vmul.f32 %v415_v60, %v261_v25 }
 0x11a   :  { %v268_v29 = vadd.f32 0.2548296, %v264_v23  ;;  %v266_v44 = vmul.f32 %v417_v3, %v262_v37 }
 0x11b   :  { %v271_v32 = vmul.f32 %v411_v51, %v267_v24  ;;  %v269_v43 = vadd.f32 0.2548296, %v265_v35 }
 0x11c   :  { %v272_v40 = vmul.f32 %v413_v54, %v268_v29  ;;  %v270_v48 = vadd.f32 0.2548296, %v266_v44 }
 0x11d   :  { %v291_v42 = vmul.f32 %v419_v39, %v271_v32  ;;  %v273_v47 = vmul.f32 %v415_v60, %v269_v43  ;;  %v312_v60 = vmul.f32 0.5, %v503_v28 }
 0x11e   :  { %v292_v45 = vmul.f32 %v421_v41, %v272_v40  ;;  %v274_v55 = vmul.f32 %v417_v3, %v270_v48 }
 0x11f   :  { %v295_v46 = vsub.f32 1.0, %v291_v42  ;;  %v293_v53 = vmul.f32 %v423_v49, %v273_v47 }
 0x120   :  { %v296_v50 = vsub.f32 1.0, %v292_v45  ;;  %v294_v58 = vmul.f32 %v425_v56, %v274_v55 }
 0x121   :  { %v303_v52 = vsub.f32 0.0, %v295_v46  ;;  %v297_v54 = vsub.f32 1.0, %v293_v53 }
 0x122   :  { %v304_v51 = vsub.f32 0.0, %v296_v50  ;;  %v298_v1 = vsub.f32 1.0, %v294_v58 }
 0x123   :  { %v307_v57 = vsel %vm299_vm0, %v303_v52, %v295_v46  ;;  %v305_v0 = vsub.f32 0.0, %v297_v54 }
 0x124   :  { %v315_v61 = vadd.f32 1.0, %v307_v57  ;;  %v308_v62 = vsel %vm300_vm1, %v304_v51, %v296_v50  ;;  %v306_v4 = vsub.f32 0.0, %v298_v1 }
 0x125   :  { %v316_v63 = vadd.f32 1.0, %v308_v62  ;;  %v309_v30 = vsel %vm301_vm2, %v305_v0, %v297_v54 }
 0x126   :  { %v319_v2 = vmul.f32 %v315_v61, %v311_v59  ;;  %v317_v33 = vadd.f32 1.0, %v309_v30  ;;  %v310_v26 = vsel %vm302_vm3, %v306_v4, %v298_v1 }
 0x127   :  { %v320_v3 = vmul.f32 %v316_v63, %v312_v60  ;;  %v318_v28 = vadd.f32 1.0, %v310_v26 }
 0x128   :  { %v321_v7 = vmul.f32 %v317_v33, %v313_v5 }
 0x129   :  { %v382_v6 = vpack.c.bf16 %v320_v3, %v319_v2  ;;  %v322_v9 = vmul.f32 %v318_v28, %v314_v8 }
 0x12b   :  { %335 = vst [vmem:[%s542_s3] sm:$0xff] %v382_v6  ;;  %v383_v36 = vpack.c.bf16 %v322_v9, %v321_v7 }
 0x12d   :  { %336 = vst [vmem:[%s542_s3 + $0x8] sm:$0xff] %v383_v36 }

// kernel: forward.80
= control target key start
LH: loop header
LB: loop body
LE: loop exit
PB: predicated region body
PF: predicated region fallthrough
CT: control target
= control target key end

     0   :  { %v329_v34 = vlaneseq  ;;  %s934_s1 = inlined_call_operand.vmem [shape: bf16[1,256,256], index: 1, kind: input, shape index: {}]   ;;  %s935_s0 = inlined_call_operand.vmem [shape: bf16[1,16,256], index: 0, kind: input, shape index: {}]   ;;  %s936_s2 = inlined_call_operand.vmem [shape: f32[1,1,256], index: 2, kind: input, shape index: {}]   ;;  %s937_s3 = inlined_call_operand.vmem [shape: bf16[16,256], index: 3, kind: input, shape index: {}]   ;;  %s938_s4 = inlined_call_operand.vmem [shape: bf16[16,256], index: 4, kind: output, shape index: {}]  }
   0x1   :  { %v645_v0 = vld [vmem:[%s934_s1 + $0x4] ss:$8 sps:$4 sm:$0xff]   ;;  %v647_v1 = vld [vmem:[%s934_s1] ss:$8 sps:$4 sm:$0xff]   ;;  %v648_v2 = vld [vmem:[%s934_s1 + $0x14] ss:$8 sps:$4 sm:$0xff]  }
   0x2   :  { %269 = vmatprep.subr.bf16.mxu0 %v645_v0  ;;  %v650_v3 = vld [vmem:[%s934_s1 + $0x10] ss:$8 sps:$4 sm:$0xff]   ;;  %v651_v4 = vld [vmem:[%s934_s1 + $0x24] ss:$8 sps:$4 sm:$0xff]   ;;  %v653_v5 = vld [vmem:[%s934_s1 + $0x20] ss:$8 sps:$4 sm:$0xff]  }
   0x3   :  { %270 = vmatpush1.bf16.msra.mxu0 %v647_v1  ;;  %v654_v6 = vld [vmem:[%s934_s1 + $0x34] ss:$8 sps:$4 sm:$0xff]   ;;  %v656_v7 = vld [vmem:[%s934_s1 + $0x30] ss:$8 sps:$4 sm:$0xff]   ;;  %v657_v8 = vld [vmem:[%s934_s1 + $0x44] ss:$8 sps:$4 sm:$0xff]  }
   0x4   :  { %271 = vmatprep.subr.bf16.mxu0 %v648_v2  ;;  %v659_v9 = vld [vmem:[%s934_s1 + $0x40] ss:$8 sps:$4 sm:$0xff]   ;;  %v660_v10 = vld [vmem:[%s934_s1 + $0x54] ss:$8 sps:$4 sm:$0xff]   ;;  %v662_v11 = vld [vmem:[%s934_s1 + $0x50] ss:$8 sps:$4 sm:$0xff]  }
   0x5   :  { %v663_v12 = vld [vmem:[%s934_s1 + $0x64] ss:$8 sps:$4 sm:$0xff]   ;;  %v665_v14 = vld [vmem:[%s934_s1 + $0x60] ss:$8 sps:$4 sm:$0xff]   ;;  %v666_v15 = vld [vmem:[%s934_s1 + $0x74] ss:$8 sps:$4 sm:$0xff]  }
   0x6   :  { %v695_v13 = vld [vmem:[%s935_s0 + $0x4] ss:$8 sps:$4 sm:$0xff]   ;;  %v668_v16 = vld [vmem:[%s934_s1 + $0x70] ss:$8 sps:$4 sm:$0xff]   ;;  %v671_v18 = vld [vmem:[%s934_s1 + $0x80] ss:$8 sps:$4 sm:$0xff]  }
   0x7   :  { %272 = vmatpush1.bf16.msra.mxu0 %v650_v3  ;;  %301 = vmatprep.mubr.bf16.mxu0 %v695_v13  ;;  %v669_v17 = vld [vmem:[%s934_s1 + $0x84] ss:$8 sps:$4 sm:$0xff]   ;;  %v672_v19 = vld [vmem:[%s934_s1 + $0x94] ss:$8 sps:$4 sm:$0xff]   ;;  %v674_v20 = vld [vmem:[%s934_s1 + $0x90] ss:$8 sps:$4 sm:$0xff]  }
   0x8   :  { %273 = vmatprep.subr.bf16.mxu0 %v651_v4  ;;  %v675_v21 = vld [vmem:[%s934_s1 + $0xa4] ss:$8 sps:$4 sm:$0xff]   ;;  %v677_v22 = vld [vmem:[%s934_s1 + $0xa0] ss:$8 sps:$4 sm:$0xff]   ;;  %v678_v23 = vld [vmem:[%s934_s1 + $0xb4] ss:$8 sps:$4 sm:$0xff]  }
   0x9   :  { %v680_v24 = vld [vmem:[%s934_s1 + $0xb0] ss:$8 sps:$4 sm:$0xff]   ;;  %v681_v25 = vld [vmem:[%s934_s1 + $0xc4] ss:$8 sps:$4 sm:$0xff]   ;;  %v683_v26 = vld [vmem:[%s934_s1 + $0xc0] ss:$8 sps:$4 sm:$0xff]  }
   0xa   :  { %v684_v27 = vld [vmem:[%s934_s1 + $0xd4] ss:$8 sps:$4 sm:$0xff]   ;;  %v686_v28 = vld [vmem:[%s934_s1 + $0xd0] ss:$8 sps:$4 sm:$0xff]   ;;  %v687_v29 = vld [vmem:[%s934_s1 + $0xe4] ss:$8 sps:$4 sm:$0xff]  }
   0xb   :  { %274 = vmatpush1.bf16.msra.mxu0 %v653_v5  ;;  %v689_v30 = vld [vmem:[%s934_s1 + $0xe0] ss:$8 sps:$4 sm:$0xff]   ;;  %v690_v31 = vld [vmem:[%s934_s1 + $0xf4] ss:$8 sps:$4 sm:$0xff]   ;;  %v692_v32 = vld [vmem:[%s934_s1 + $0xf0] ss:$8 sps:$4 sm:$0xff]  }
   0xc   :  { %275 = vmatprep.subr.bf16.mxu0 %v654_v6  ;;  %v693_v33 = vld [vmem:[%s935_s0] ss:$8 sps:$4 sm:$0xff]   ;;  %v330_v35 = vshrl.u32 %v329_v34, 7 }
   0xd   :  { %v327_v37 = vld [vmem:[%s936_s2] sm:$0x3] }
   0xe   :  { %v331_v36 = vsub.s32 0, %v330_v35  ;;  %v335_v38 = vsub.s32 1, %v330_v35 }
   0xf   :  { %276 = vmatpush1.bf16.msra.mxu0 %v656_v7 }
  0x10   :  { %277 = vmatprep.subr.bf16.mxu0 %v657_v8  ;;  %v332_v39 = vrot.slane %v327_v37, %v331_v36  ;;  %v336_v40 = vrot.slane %v327_v37, %v335_v38 }
  0x13   :  { %278 = vmatpush1.bf16.msra.mxu0 %v659_v9 }
  0x14   :  { %279 = vmatprep.subr.bf16.mxu0 %v660_v10 }
  0x17   :  { %280 = vmatpush1.bf16.msra.mxu0 %v662_v11 }
  0x18   :  { %281 = vmatprep.subr.bf16.mxu0 %v663_v12 }
  0x1b   :  { %282 = vmatpush1.bf16.msra.mxu0 %v665_v14 }
  0x1c   :  { %283 = vmatprep.subr.bf16.mxu0 %v666_v15 }
  0x1f   :  { %284 = vmatpush1.bf16.msra.mxu0 %v668_v16 }
  0x20   :  { %285 = vmatprep.subr.bf16.mxu0 %v669_v17 }
  0x23   :  { %286 = vmatpush1.bf16.msra.mxu0 %v671_v18 }
  0x24   :  { %287 = vmatprep.subr.bf16.mxu0 %v672_v19 }
  0x27   :  { %288 = vmatpush1.bf16.msra.mxu0 %v674_v20 }
  0x28   :  { %289 = vmatprep.subr.bf16.mxu0 %v675_v21 }
  0x2b   :  { %290 = vmatpush1.bf16.msra.mxu0 %v677_v22 }
  0x2c   :  { %291 = vmatprep.subr.bf16.mxu0 %v678_v23 }
  0x2f   :  { %292 = vmatpush1.bf16.msra.mxu0 %v680_v24 }
  0x30   :  { %293 = vmatprep.subr.bf16.mxu0 %v681_v25 }
  0x33   :  { %294 = vmatpush1.bf16.msra.mxu0 %v683_v26 }
  0x34   :  { %295 = vmatprep.subr.bf16.mxu0 %v684_v27 }
  0x37   :  { %296 = vmatpush1.bf16.msra.mxu0 %v686_v28 }
  0x38   :  { %297 = vmatprep.subr.bf16.mxu0 %v687_v29 }
  0x3b   :  { %298 = vmatpush1.bf16.msra.mxu0 %v689_v30 }
  0x3c   :  { %299 = vmatprep.subr.bf16.mxu0 %v690_v31 }
  0x3f   :  { %300 = vmatpush1.bf16.msra.mxu0 %v692_v32 }
  0x42   :  { %302 = vmatmul.mubr.bf16.vlgmr.msra.gmra.mrb[0].mxu0 %v693_v33 }
 0x115   :  { %v303_v41 = vpop.f32.mrb[0].mxu0 }
 0x116   :  { %v858_v42 = vadd.f32 %v332_v39, %v303_v41  ;;  %v305_v43 = vpop.f32.mrb[1].mxu0 }
 0x117   :  { %v860_v44 = vadd.f32 %v336_v40, %v305_v43  ;;  %v307_v45 = vpop.f32.mrb[2].mxu0 }
 0x118   :  { %v863_v46 = vmul.f32 0.70710677, %v858_v42  ;;  %v865_v47 = vadd.f32 %v332_v39, %v307_v45  ;;  %v309_v48 = vpop.f32.mrb[3].mxu0 }
 0x119   :  { %v868_v49 = vmul.f32 0.70710677, %v860_v44  ;;  %v870_v50 = vadd.f32 %v336_v40, %v309_v48 }
 0x11a   :  { %v347_v51 = vand.u32 2147483647, %v863_v46  ;;  %v874_v52 = vmul.f32 0.70710677, %v865_v47  ;;  %vm423_vm0 = vcmp.lt.f32.partialorder %v863_v46, 0.0 }
 0x11b   :  { %v348_v53 = vand.u32 2147483647, %v868_v49  ;;  %v878_v54 = vmul.f32 0.70710677, %v870_v50  ;;  %vm424_vm1 = vcmp.lt.f32.partialorder %v868_v49, 0.0 }
 0x11c   :  { %v351_v55 = vmul.f32 0.3275911, %v347_v51  ;;  %v349_v56 = vand.u32 2147483647, %v874_v52  ;;  %v399_v1 = vsub.f32 0.0, %v347_v51  ;;  %vm425_vm2 = vcmp.lt.f32.partialorder %v874_v52, 0.0 }
 0x11d   :  { %v352_v57 = vmul.f32 0.3275911, %v348_v53  ;;  %v350_v58 = vand.u32 2147483647, %v878_v54  ;;  %v400_v2 = vsub.f32 0.0, %v348_v53  ;;  %vm426_vm3 = vcmp.lt.f32.partialorder %v878_v54, 0.0 }
 0x11e   :  { %v355_v59 = vadd.f32 1.0, %v351_v55  ;;  %v353_v60 = vmul.f32 0.3275911, %v349_v56  ;;  %v403_v4 = vmul.f32 %v399_v1, %v347_v51  ;;  %v401_v5 = vsub.f32 0.0, %v349_v56 }
 0x11f   :  { %v356_v61 = vadd.f32 1.0, %v352_v57  ;;  %v354_v62 = vmul.f32 0.3275911, %v350_v58  ;;  %v404_v8 = vmul.f32 %v400_v2, %v348_v53  ;;  %v402_v10 = vsub.f32 0.0, %v350_v58 }
 0x120   :  { %696 = vrcp.f32 %v355_v59  ;;  %v357_v63 = vadd.f32 1.0, %v353_v60  ;;  %v407_v13 = vmul.f32 1.442695, %v403_v4  ;;  %v405_v15 = vmul.f32 %v401_v5, %v349_v56 }
 0x121   :  { %698 = vrcp.f32 %v356_v61  ;;  %v358_v0 = vadd.f32 1.0, %v354_v62  ;;  %v409_v17 = vmul.f32 1.442695, %v404_v8  ;;  %v406_v21 = vmul.f32 %v402_v10, %v350_v58 }
 0x122   :  { %700 = vrcp.f32 %v357_v63  ;;  %v411_v26 = vmul.f32 1.442695, %v405_v15  ;;  %v447_v63 = vld [vmem:[%s937_s3] sm:$0xff]  ;;  %v438_v52 = vmul.f32 0.5, %v870_v50 }
 0x123   :  { %702 = vrcp.f32 %v358_v0  ;;  %v413_v31 = vmul.f32 1.442695, %v406_v21 }
 0x124   :  { %704 = vpow2.f32 %v407_v13 }
 0x125   :  { %706 = vpow2.f32 %v409_v17  ;;  %v448_v17 = vld [vmem:[%s937_s3 + $0x8] sm:$0xff] }
 0x126   :  { %708 = vpow2.f32 %v411_v26 }
 0x127   :  { %710 = vpow2.f32 %v413_v31 }
 0x12a   :  { %v697_v3 = vpop.eup %696 }
 0x12b   :  { %v699_v6 = vpop.eup %698  ;;  %v363_v7 = vmul.f32 1.0614054, %v697_v3 }
 0x12c   :  { %v364_v9 = vmul.f32 1.0614054, %v699_v6  ;;  %v701_v12 = vpop.eup %700 }
 0x12d   :  { %v367_v11 = vadd.f32 -1.4531521, %v363_v7  ;;  %v365_v18 = vmul.f32 1.0614054, %v701_v12  ;;  %v703_v19 = vpop.eup %702 }
 0x12e   :  { %v368_v14 = vadd.f32 -1.4531521, %v364_v9  ;;  %v366_v24 = vmul.f32 1.0614054, %v703_v19  ;;  %v705_v55 = vpop.eup %704 }
 0x12f   :  { %v371_v16 = vmul.f32 %v697_v3, %v367_v11  ;;  %v369_v23 = vadd.f32 -1.4531521, %v365_v18  ;;  %v707_v57 = vpop.eup %706  ;;  %v436_v18 = vmul.f32 0.5, %v860_v44 }
 0x130   :  { %v372_v20 = vmul.f32 %v699_v6, %v368_v14  ;;  %v370_v29 = vadd.f32 -1.4531521, %v366_v24  ;;  %v709_v2 = vpop.eup %708  ;;  %v435_v14 = vmul.f32 0.5, %v858_v42 }
 0x131   :  { %v375_v22 = vadd.f32 1.4214138, %v371_v16  ;;  %v373_v28 = vmul.f32 %v701_v12, %v369_v23  ;;  %v711_v8 = vpop.eup %710  ;;  %v450_v16 = vunpack.c.h.bf16 %v447_v63  ;;  %v451_v23 = vunpack.c.l.bf16 %v448_v17 }
 0x132   :  { %v376_v25 = vadd.f32 1.4214138, %v372_v20  ;;  %v374_v34 = vmul.f32 %v703_v19, %v370_v29 }
 0x133   :  { %v379_v27 = vmul.f32 %v697_v3, %v375_v22  ;;  %v377_v33 = vadd.f32 1.4214138, %v373_v28 }
 0x134   :  { %v380_v30 = vmul.f32 %v699_v6, %v376_v25  ;;  %v378_v38 = vadd.f32 1.4214138, %v374_v34  ;;  %v437_v25 = vmul.f32 0.5, %v865_v47 }
 0x135   :  { %v383_v32 = vadd.f32 -0.28449672, %v379_v27  ;;  %v381_v37 = vmul.f32 %v701_v12, %v377_v33 }
 0x136   :  { %v384_v35 = vadd.f32 -0.28449672, %v380_v30  ;;  %v382_v43 = vmul.f32 %v703_v19, %v378_v38 }
 0x137   :  { %v387_v36 = vmul.f32 %v697_v3, %v383_v32  ;;  %v385_v41 = vadd.f32 -0.28449672, %v381_v37  ;;  %v452_v32 = vunpack.c.h.bf16 %v448_v17 }
 0x138   :  { %v388_v39 = vmul.f32 %v699_v6, %v384_v35  ;;  %v386_v53 = vadd.f32 -0.28449672, %v382_v43 }
 0x139   :  { %v391_v40 = vadd.f32 0.2548296, %v387_v36  ;;  %v389_v51 = vmul.f32 %v701_v12, %v385_v41 }
 0x13a   :  { %v392_v45 = vadd.f32 0.2548296, %v388_v39  ;;  %v390_v60 = vmul.f32 %v703_v19, %v386_v53 }
 0x13b   :  { %v395_v48 = vmul.f32 %v697_v3, %v391_v40  ;;  %v393_v59 = vadd.f32 0.2548296, %v389_v51 }
 0x13c   :  { %v396_v56 = vmul.f32 %v699_v6, %v392_v45  ;;  %v394_v1 = vadd.f32 0.2548296, %v390_v60  ;;  %v449_v6 = vunpack.c.l.bf16 %v447_v63 }
 0x13d   :  { %v415_v58 = vmul.f32 %v705_v55, %v395_v48  ;;  %v397_v0 = vmul.f32 %v701_v12, %v393_v59 }
 0x13e   :  { %v416_v61 = vmul.f32 %v707_v57, %v396_v56  ;;  %v398_v7 = vmul.f32 %v703_v19, %v394_v1 }
 0x13f   :  { %v419_v62 = vsub.f32 1.0, %v415_v58  ;;  %v417_v3 = vmul.f32 %v709_v2, %v397_v0 }
 0x140   :  { %v420_v4 = vsub.f32 1.0, %v416_v61  ;;  %v418_v13 = vmul.f32 %v711_v8, %v398_v7 }
 0x141   :  { %v427_v5 = vsub.f32 0.0, %v419_v62  ;;  %v421_v11 = vsub.f32 1.0, %v417_v3 }
 0x142   :  { %v428_v9 = vsub.f32 0.0, %v420_v4  ;;  %v422_v20 = vsub.f32 1.0, %v418_v13 }
 0x143   :  { %v431_v10 = vsel %vm423_vm0, %v427_v5, %v419_v62  ;;  %v429_v46 = vsub.f32 0.0, %v421_v11 }
 0x144   :  { %v439_v15 = vadd.f32 1.0, %v431_v10  ;;  %v432_v12 = vsel %vm424_vm1, %v428_v9, %v420_v4  ;;  %v430_v24 = vsub.f32 0.0, %v422_v20 }
 0x145   :  { %v440_v19 = vadd.f32 1.0, %v432_v12  ;;  %v433_v22 = vsel %vm425_vm2, %v429_v46, %v421_v11 }
 0x146   :  { %v443_v21 = vmul.f32 %v439_v15, %v435_v14  ;;  %v441_v26 = vadd.f32 1.0, %v433_v22  ;;  %v434_v44 = vsel %vm426_vm3, %v430_v24, %v422_v20 }
 0x147   :  { %v444_v49 = vmul.f32 %v440_v19, %v436_v18  ;;  %v442_v30 = vadd.f32 1.0, %v434_v44 }
 0x148   :  { %v893_v42 = vadd.f32 %v449_v6, %v443_v21  ;;  %v445_v29 = vmul.f32 %v441_v26, %v437_v25 }
 0x149   :  { %v897_v27 = vadd.f32 %v450_v16, %v444_v49  ;;  %v446_v34 = vmul.f32 %v442_v30, %v438_v52 }
 0x14a   :  { %v900_v28 = vmul.f32 0.70710677, %v893_v42  ;;  %v907_v47 = vadd.f32 %v451_v23, %v445_v29 }
 0x14b   :  { %v904_v31 = vmul.f32 0.70710677, %v897_v27  ;;  %v913_v38 = vadd.f32 %v452_v32, %v446_v34 }
 0x14c   :  { %v461_v33 = vand.u32 2147483647, %v900_v28  ;;  %v911_v36 = vmul.f32 0.70710677, %v907_v47  ;;  %vm537_vm4 = vcmp.lt.f32.partialorder %v900_v28, 0.0 }
 0x14d   :  { %v462_v54 = vand.u32 2147483647, %v904_v31  ;;  %v917_v41 = vmul.f32 0.70710677, %v913_v38  ;;  %vm538_vm5 = vcmp.lt.f32.partialorder %v904_v31, 0.0  ;;  %v551_v31 = vmul.f32 0.5, %v907_v47 }
 0x14e   :  { %v465_v35 = vmul.f32 0.3275911, %v461_v33  ;;  %v463_v39 = vand.u32 2147483647, %v911_v36  ;;  %v513_v55 = vsub.f32 0.0, %v461_v33  ;;  %vm539_vm6 = vcmp.lt.f32.partialorder %v911_v36, 0.0 }
 0x14f   :  { %v466_v37 = vmul.f32 0.3275911, %v462_v54  ;;  %v464_v45 = vand.u32 2147483647, %v917_v41  ;;  %v514_v56 = vsub.f32 0.0, %v462_v54  ;;  %vm540_vm7 = vcmp.lt.f32.partialorder %v917_v41, 0.0 }
 0x150   :  { %v469_v50 = vadd.f32 1.0, %v465_v35  ;;  %v467_v43 = vmul.f32 0.3275911, %v463_v39  ;;  %v517_v58 = vmul.f32 %v513_v55, %v461_v33  ;;  %v515_v59 = vsub.f32 0.0, %v463_v39 }
 0x151   :  { %v470_v40 = vadd.f32 1.0, %v466_v37  ;;  %v468_v51 = vmul.f32 0.3275911, %v464_v45  ;;  %v518_v62 = vmul.f32 %v514_v56, %v462_v54  ;;  %v516_v1 = vsub.f32 0.0, %v464_v45 }
 0x152   :  { %712 = vrcp.f32 %v469_v50  ;;  %v471_v48 = vadd.f32 1.0, %v467_v43  ;;  %v521_v4 = vmul.f32 1.442695, %v517_v58  ;;  %v519_v3 = vmul.f32 %v515_v59, %v463_v39 }
 0x153   :  { %714 = vrcp.f32 %v470_v40  ;;  %v472_v53 = vadd.f32 1.0, %v468_v51  ;;  %v523_v8 = vmul.f32 1.442695, %v518_v62  ;;  %v520_v14 = vmul.f32 %v516_v1, %v464_v45 }
 0x154   :  { %716 = vrcp.f32 %v471_v48  ;;  %v525_v12 = vmul.f32 1.442695, %v519_v3 }
 0x155   :  { %718 = vrcp.f32 %v472_v53  ;;  %v527_v49 = vmul.f32 1.442695, %v520_v14  ;;  %v552_v14 = vmul.f32 0.5, %v913_v38 }
 0x156   :  { %720 = vpow2.f32 %v521_v4 }
 0x157   :  { %722 = vpow2.f32 %v523_v8 }
 0x158   :  { %724 = vpow2.f32 %v525_v12 }
 0x159   :  { %726 = vpow2.f32 %v527_v49 }
 0x15c   :  { %v713_v57 = vpop.eup %712 }
 0x15d   :  { %v715_v60 = vpop.eup %714  ;;  %v477_v61 = vmul.f32 1.0614054, %v713_v57 }
 0x15e   :  { %v478_v63 = vmul.f32 1.0614054, %v715_v60  ;;  %v717_v2 = vpop.eup %716 }
 0x15f   :  { %v481_v0 = vadd.f32 -1.4531521, %v477_v61  ;;  %v479_v6 = vmul.f32 1.0614054, %v717_v2  ;;  %v719_v10 = vpop.eup %718 }
 0x160   :  { %v482_v5 = vadd.f32 -1.4531521, %v478_v63  ;;  %v480_v16 = vmul.f32 1.0614054, %v719_v10  ;;  %v721_v54 = vpop.eup %720 }
 0x161   :  { %v485_v7 = vmul.f32 %v713_v57, %v481_v0  ;;  %v483_v13 = vadd.f32 -1.4531521, %v479_v6  ;;  %v723_v50 = vpop.eup %722  ;;  %v549_v0 = vmul.f32 0.5, %v893_v42 }
 0x162   :  { %v486_v9 = vmul.f32 %v715_v60, %v482_v5  ;;  %v484_v46 = vadd.f32 -1.4531521, %v480_v16  ;;  %v725_v53 = vpop.eup %724 }
 0x163   :  { %v489_v11 = vadd.f32 1.4214138, %v485_v7  ;;  %v487_v18 = vmul.f32 %v717_v2, %v483_v13  ;;  %v727_v62 = vpop.eup %726 }
 0x164   :  { %v490_v15 = vadd.f32 1.4214138, %v486_v9  ;;  %v488_v23 = vmul.f32 %v719_v10, %v484_v46 }
 0x165   :  { %v493_v17 = vmul.f32 %v713_v57, %v489_v11  ;;  %v491_v21 = vadd.f32 1.4214138, %v487_v18 }
 0x166   :  { %v494_v19 = vmul.f32 %v715_v60, %v490_v15  ;;  %v492_v44 = vadd.f32 1.4214138, %v488_v23 }
 0x167   :  { %v497_v20 = vadd.f32 -0.28449672, %v493_v17  ;;  %v495_v25 = vmul.f32 %v717_v2, %v491_v21 }
 0x168   :  { %v498_v22 = vadd.f32 -0.28449672, %v494_v19  ;;  %v496_v32 = vmul.f32 %v719_v10, %v492_v44 }
 0x169   :  { %v501_v24 = vmul.f32 %v713_v57, %v497_v20  ;;  %v499_v52 = vadd.f32 -0.28449672, %v495_v25 }
 0x16a   :  { %v502_v26 = vmul.f32 %v715_v60, %v498_v22  ;;  %v500_v37 = vadd.f32 -0.28449672, %v496_v32 }
 0x16b   :  { %v505_v29 = vadd.f32 0.2548296, %v501_v24  ;;  %v503_v34 = vmul.f32 %v717_v2, %v499_v52 }
 0x16c   :  { %v506_v30 = vadd.f32 0.2548296, %v502_v26  ;;  %v504_v45 = vmul.f32 %v719_v10, %v500_v37 }
 0x16d   :  { %v509_v33 = vmul.f32 %v713_v57, %v505_v29  ;;  %v507_v40 = vadd.f32 0.2548296, %v503_v34 }
 0x16e   :  { %v510_v35 = vmul.f32 %v715_v60, %v506_v30  ;;  %v508_v56 = vadd.f32 0.2548296, %v504_v45 }
 0x16f   :  { %v529_v39 = vmul.f32 %v721_v54, %v509_v33  ;;  %v511_v51 = vmul.f32 %v717_v2, %v507_v40  ;;  %v550_v2 = vmul.f32 0.5, %v897_v27 }
 0x170   :  { %v530_v43 = vmul.f32 %v723_v50, %v510_v35  ;;  %v512_v57 = vmul.f32 %v719_v10, %v508_v56 }
 0x171   :  { %v533_v48 = vsub.f32 1.0, %v529_v39  ;;  %v531_v59 = vmul.f32 %v725_v53, %v511_v51 }
 0x172   :  { %v534_v55 = vsub.f32 1.0, %v530_v43  ;;  %v532_v5 = vmul.f32 %v727_v62, %v512_v57 }
 0x173   :  { %v541_v58 = vsub.f32 0.0, %v533_v48  ;;  %v535_v60 = vsub.f32 1.0, %v531_v59 }
 0x174   :  { %v542_v61 = vsub.f32 0.0, %v534_v55  ;;  %v536_v28 = vsub.f32 1.0, %v532_v5 }
 0x175   :  { %v545_v63 = vsel %vm537_vm4, %v541_v58, %v533_v48  ;;  %v543_v7 = vsub.f32 0.0, %v535_v60 }
 0x176   :  { %v553_v1 = vadd.f32 1.0, %v545_v63  ;;  %v546_v4 = vsel %vm538_vm5, %v542_v61, %v534_v55  ;;  %v544_v11 = vsub.f32 0.0, %v536_v28 }
 0x177   :  { %v554_v3 = vadd.f32 1.0, %v546_v4  ;;  %v547_v9 = vsel %vm539_vm6, %v543_v7, %v535_v60 }
 0x178   :  { %v557_v8 = vmul.f32 %v553_v1, %v549_v0  ;;  %v555_v10 = vadd.f32 1.0, %v547_v9  ;;  %v548_v42 = vsel %vm540_vm7, %v544_v11, %v536_v28 }
 0x179   :  { %v558_v6 = vmul.f32 %v554_v3, %v550_v2  ;;  %v556_v15 = vadd.f32 1.0, %v548_v42 }
 0x17a   :  { %v559_v27 = vmul.f32 %v555_v10, %v551_v31 }
 0x17b   :  { %v643_v13 = vpack.c.bf16 %v558_v6, %v557_v8  ;;  %v560_v36 = vmul.f32 %v556_v15, %v552_v14 }
 0x17d   :  { %573 = vst [vmem:[%s938_s4] sm:$0xff] %v643_v13  ;;  %v644_v12 = vpack.c.bf16 %v560_v36, %v559_v27 }
 0x17f   :  { %574 = vst [vmem:[%s938_s4 + $0x8] sm:$0xff] %v644_v12 }

// kernel: forward.79
= control target key start
LH: loop header
LB: loop body
LE: loop exit
PB: predicated region body
PF: predicated region fallthrough
CT: control target
= control target key end

     0   :  { %s1818_s12 = smov 0   ;;  %s1820_s13 = smov 0   ;;  %s1984_s0 = inlined_call_operand.vmem [shape: bf16[2,16,1152], index: 0, kind: input, shape index: {}]   ;;  %s1985_s1 = inlined_call_operand.vmem [shape: bf16[2,1152,128], index: 1, kind: input, shape index: {}]   ;;  %s1986_s2 = inlined_call_operand.vmem [shape: f32[2,1,128], index: 2, kind: input, shape index: {}]   ;;  %s1987_s3 = inlined_call_operand.vmem [shape: bf16[16,256], index: 3, kind: output, shape index: {}]  }
   0x1   :  { %s1822_s14 = smov 0   ;;  %s1824_s15 = smov 0  }
   0x2   :  { %s1826_s16 = smov 0  }
   0x3 LB: > { %s1399_s17 = sadd.s32 4294967295, %s1794_s16   ;;  %s39_s18 = sadd.s32 1, %s1790_s15  ;;  %s1794_s16 = sphi %s1826_s16, %s13_s16   ;;  %s1790_s15 = sphi %s1824_s15, %s1992_s15   ;;  %s1786_s14 = sphi %s1822_s14, %s1991_s14   ;;  %s1782_s13 = sphi %s1820_s13, %s1990_s13   ;;  %s1778_s12 = sphi %s1818_s12, %s1989_s12  }
   0x4   : > { %p41_p0 = scmp.ge.s32.totalorder %s39_s18, 2  ;;  %s138_s19 = sadd.s32 1, %s1782_s13 }
   0x5   : > { %p148_p1 = scmp.ne.s32.totalorder %s1782_s13, %s1778_s12  ;;  %p149_p2 = scmp.eq.s32.totalorder %s1399_s17, 1 }
   0x6   : > { %s1994_s18 = smov (%p41_p0, %s39_s18), 0  ;;  %p1403_p4 = scmp.ge.s32.totalorder %s1794_s16, 1 }
   0x7   : > { %p1850_p3 = por %p149_p2, %p148_p1  ;;  %s134_s21 = ssub.s32 %s1790_s15, %s1994_s18 }
   0x8   : > { %p217_p5 = scmp.lt.s32.totalorder %s1794_s16, 3  ;;  %p136_p6 = scmp.eq.s32.totalorder %s134_s21, 0 }
   0xa   : > { %p218_p7 = pnand %p1403_p4, %p217_p5 }
   0xb   : > { %s1859_s22 = scalar_select %p136_p6, %s1782_s13, %s138_s19  }
   0xc   : > { %221 = sbr.rel (%p218_p7) target bundleno = 399 (0x18f), region = 32  ;;  %p269_p8 = scmp.lt.s32.totalorder (!%p218_p7), %s1786_s14, 1  ;;  %vm1797_vm0 = vmmov (!%p218_p7), 0  }
   0xd   : > { %s264_s8 = sand.u32 (!%p218_p7), 1, %s1778_s12  }
   0xe   : > { %s1404_s9 = sshll.u32 (!%p218_p7), %s264_s8, 3 }
   0xf   : > { %s266_s10 = scalar_lea.vmem (!%p218_p7), [#allocation3], %s1404_s9 }
  0x13   : > { %s1863_s23 = scalar_select %p269_p8, %s1786_s14, 1 }
  0x14   : > { %s1492_s11 = sshll.u32 (%p1850_p3), %s1786_s14, 2 }
  0x15   : > { %s1620_s24 = smul.u32 576, %s1863_s23  ;;  %s301_s7 = scalar_lea.vmem %s1986_s2, %s1863_s23 }
  0x16   : > { %s1619_s28 = smul.u32 72, %s1863_s23  ;;  %s1242_s19 = scalar_lea.vmem (%p1850_p3), %s1987_s3, %s1492_s11 }
  0x17   : > { %s1869_s27 = scalar_lea.vmem %s1985_s1, %s1620_s24 }
  0x18   : > { %v1663_v0 = vld [vmem:[%s1869_s27 + $0x40] sm:$0xff]   ;;  %v1667_v4 = vld [vmem:[%s1869_s27 + $0x48] sm:$0xff]   ;;  %v1671_v8 = vld [vmem:[%s1869_s27 + $0x50] sm:$0xff]   ;;  %s1905_s4 = scalar_lea.vmem %s1984_s0, %s1619_s28 }
  0x19   : > { %v1664_v1 = vld [vmem:[%s1869_s27 + $0xc0] sm:$0xff]   ;;  %1502 = vmatprep.subr.bf16.mxu0 %v1663_v0  ;;  %v1668_v5 = vld [vmem:[%s1869_s27 + $0xc8] sm:$0xff]   ;;  %v1672_v9 = vld [vmem:[%s1869_s27 + $0xd0] sm:$0xff]  }
  0x1a   : > { %v1665_v2 = vld [vmem:[%s1869_s27] sm:$0xff]   ;;  %1524 = vmatprep.subr.bf16.mxu1 %v1664_v1  ;;  %v1669_v6 = vld [vmem:[%s1869_s27 + $0x8] sm:$0xff]   ;;  %v1673_v10 = vld [vmem:[%s1869_s27 + $0x10] sm:$0xff]  }
  0x1b   : > { %v1666_v3 = vld [vmem:[%s1869_s27 + $0x80] sm:$0xff]   ;;  %1503 = vmatpush3.bf16.msra.mxu0 %v1665_v2  ;;  %v1670_v7 = vld [vmem:[%s1869_s27 + $0x88] sm:$0xff]   ;;  %v1674_v11 = vld [vmem:[%s1869_s27 + $0x90] sm:$0xff]  }
  0x1c   : > { %1525 = vmatpush3.bf16.msra.mxu1 %v1666_v3  ;;  %1504 = vmatprep.subr.bf16.mxu0 %v1667_v4  ;;  %v1675_v12 = vld [vmem:[%s1869_s27 + $0x58] sm:$0xff]   ;;  %v1679_v16 = vld [vmem:[%s1869_s27 + $0x60] sm:$0xff]   ;;  %v1683_v20 = vld [vmem:[%s1869_s27 + $0x68] sm:$0xff]  }
  0x1d   : > { %1526 = vmatprep.subr.bf16.mxu1 %v1668_v5  ;;  %v1676_v13 = vld [vmem:[%s1869_s27 + $0xd8] sm:$0xff]   ;;  %v1680_v17 = vld [vmem:[%s1869_s27 + $0xe0] sm:$0xff]   ;;  %v1684_v21 = vld [vmem:[%s1869_s27 + $0xe8] sm:$0xff]  }
  0x1e   : > { %v1677_v14 = vld [vmem:[%s1869_s27 + $0x18] sm:$0xff]   ;;  %v1681_v18 = vld [vmem:[%s1869_s27 + $0x20] sm:$0xff]   ;;  %v1685_v22 = vld [vmem:[%s1869_s27 + $0x28] sm:$0xff]  }
  0x1f   : > { %1505 = vmatpush3.bf16.msra.mxu0 %v1669_v6  ;;  %v1678_v15 = vld [vmem:[%s1869_s27 + $0x98] sm:$0xff]   ;;  %v1682_v19 = vld [vmem:[%s1869_s27 + $0xa0] sm:$0xff]   ;;  %v1686_v23 = vld [vmem:[%s1869_s27 + $0xa8] sm:$0xff]   ;;  %v1796_v6 = vmov 0.0  }
  0x20   : > { %1527 = vmatpush3.bf16.msra.mxu1 %v1670_v7  ;;  %1506 = vmatprep.subr.bf16.mxu0 %v1671_v8  ;;  %v1687_v24 = vld [vmem:[%s1869_s27 + $0x70] sm:$0xff]   ;;  %v1691_v28 = vld [vmem:[%s1869_s27 + $0x78] sm:$0xff]   ;;  %v1695_v32 = vld [vmem:[%s1905_s4] ss:$36 sps:$4 sm:$0xff]  }
  0x21   : > { %1528 = vmatprep.subr.bf16.mxu1 %v1672_v9  ;;  %v1688_v25 = vld [vmem:[%s1869_s27 + $0xf0] sm:$0xff]   ;;  %v1692_v29 = vld [vmem:[%s1869_s27 + $0xf8] sm:$0xff]   ;;  %v1697_v33 = vld [vmem:[%s1905_s4 + $0x4] ss:$36 sps:$4 sm:$0xff]  }
  0x22   : > { %v1689_v26 = vld [vmem:[%s1869_s27 + $0x30] sm:$0xff]   ;;  %v1693_v30 = vld [vmem:[%s1869_s27 + $0x38] sm:$0xff]   ;;  %v1698_v34 = vld [vmem:[%s1905_s4 + $0x8] ss:$36 sps:$4 sm:$0xff]   ;;  %977 = vmatprep.mubr.bf16.mxu0 %v1697_v33 }
  0x23   : > { %1507 = vmatpush3.bf16.msra.mxu0 %v1673_v10  ;;  %v1690_v27 = vld [vmem:[%s1869_s27 + $0xb0] sm:$0xff]   ;;  %v1694_v31 = vld [vmem:[%s1869_s27 + $0xb8] sm:$0xff]   ;;  %v1701_v36 = vld [vmem:[%s1869_s27 + $0x140] sm:$0xff]  }
  0x24   : > { %1529 = vmatpush3.bf16.msra.mxu1 %v1674_v11  ;;  %1508 = vmatprep.subr.bf16.mxu0 %v1675_v12  ;;  %v1700_v35 = vld [vmem:[%s1905_s4 + $0xc] ss:$36 sps:$4 sm:$0xff]   ;;  %v1702_v37 = vld [vmem:[%s1869_s27 + $0x100] sm:$0xff]   ;;  %v1713_v48 = vld [vmem:[%s1869_s27 + $0x158] sm:$0xff]  }
  0x25   : > { %1530 = vmatprep.subr.bf16.mxu1 %v1676_v13  ;;  %1018 = vmatprep.mubr.bf16.mxu1 %v1700_v35  ;;  %v1703_v38 = vld [vmem:[%s1869_s27 + $0x1c0] sm:$0xff]   ;;  %v1705_v40 = vld [vmem:[%s1869_s27 + $0x148] sm:$0xff]   ;;  %v1709_v44 = vld [vmem:[%s1869_s27 + $0x150] sm:$0xff]  }
  0x26   : > { %v1704_v39 = vld [vmem:[%s1869_s27 + $0x180] sm:$0xff]   ;;  %v1706_v41 = vld [vmem:[%s1869_s27 + $0x108] sm:$0xff]   ;;  %v1710_v45 = vld [vmem:[%s1869_s27 + $0x110] sm:$0xff]  }
  0x27   : > { %1509 = vmatpush3.bf16.msra.mxu0 %v1677_v14  ;;  %v1707_v42 = vld [vmem:[%s1869_s27 + $0x1c8] sm:$0xff]   ;;  %v1711_v46 = vld [vmem:[%s1869_s27 + $0x1d0] sm:$0xff]   ;;  %v1714_v49 = vld [vmem:[%s1869_s27 + $0x118] sm:$0xff]  }
  0x28   : > { %1531 = vmatpush3.bf16.msra.mxu1 %v1678_v15  ;;  %1510 = vmatprep.subr.bf16.mxu0 %v1679_v16  ;;  %v1708_v43 = vld [vmem:[%s1869_s27 + $0x188] sm:$0xff]   ;;  %v1712_v47 = vld [vmem:[%s1869_s27 + $0x190] sm:$0xff]   ;;  %v1715_v50 = vld [vmem:[%s1869_s27 + $0x1d8] sm:$0xff]  }
  0x29   : > { %1532 = vmatprep.subr.bf16.mxu1 %v1680_v17  ;;  %v1716_v51 = vld [vmem:[%s1869_s27 + $0x198] sm:$0xff]   ;;  %v1717_v52 = vld [vmem:[%s1869_s27 + $0x160] sm:$0xff]   ;;  %v1721_v56 = vld [vmem:[%s1869_s27 + $0x168] sm:$0xff]  }
  0x2a   : > { %v1718_v53 = vld [vmem:[%s1869_s27 + $0x120] sm:$0xff]   ;;  %v1722_v57 = vld [vmem:[%s1869_s27 + $0x128] sm:$0xff]   ;;  %v1725_v60 = vld [vmem:[%s1869_s27 + $0x170] sm:$0xff]  }
  0x2b   : > { %1511 = vmatpush3.bf16.msra.mxu0 %v1681_v18  ;;  %v1719_v54 = vld [vmem:[%s1869_s27 + $0x1e0] sm:$0xff]   ;;  %v1723_v58 = vld [vmem:[%s1869_s27 + $0x1e8] sm:$0xff]   ;;  %v1726_v61 = vld [vmem:[%s1869_s27 + $0x130] sm:$0xff]  }
  0x2c   : > { %1533 = vmatpush3.bf16.msra.mxu1 %v1682_v19  ;;  %1512 = vmatprep.subr.bf16.mxu0 %v1683_v20  ;;  %v1720_v55 = vld [vmem:[%s1869_s27 + $0x1a0] sm:$0xff]   ;;  %v1724_v59 = vld [vmem:[%s1869_s27 + $0x1a8] sm:$0xff]   ;;  %v1727_v62 = vld [vmem:[%s1869_s27 + $0x1f0] sm:$0xff]  }
  0x2d   : > { %1534 = vmatprep.subr.bf16.mxu1 %v1684_v21  ;;  %v1728_v63 = vld [vmem:[%s1869_s27 + $0x1b0] sm:$0xff]   ;;  %v1729_v0 = vld [vmem:[%s1869_s27 + $0x178] sm:$0xff]   ;;  %v1739_v9 = vld [vmem:[%s1869_s27 + $0x200] sm:$0xff]  }
  0x2e   : > { %v1730_v1 = vld [vmem:[%s1869_s27 + $0x138] sm:$0xff]   ;;  %v1732_v3 = vld [vmem:[%s1905_s4 + $0x10] ss:$36 sps:$4 sm:$0xff]   ;;  %v1740_v10 = vld [vmem:[%s1869_s27 + $0x208] sm:$0xff]  }
  0x2f   : > { %1513 = vmatpush3.bf16.msra.mxu0 %v1685_v22  ;;  %v1731_v2 = vld [vmem:[%s1869_s27 + $0x1f8] sm:$0xff]   ;;  %v1741_v11 = vld [vmem:[%s1869_s27 + $0x210] sm:$0xff]   ;;  %v1743_v13 = vld [vmem:[%s1869_s27 + $0x220] sm:$0xff]  }
  0x30   : > { %1535 = vmatpush3.bf16.msra.mxu1 %v1686_v23  ;;  %1514 = vmatprep.subr.bf16.mxu0 %v1687_v24  ;;  %v1734_v4 = vld [vmem:[%s1905_s4 + $0x14] ss:$36 sps:$4 sm:$0xff]   ;;  %v1738_v8 = vld [vmem:[%s1905_s4 + $0x1c] ss:$36 sps:$4 sm:$0xff]   ;;  %v1744_v14 = vld [vmem:[%s1869_s27 + $0x228] sm:$0xff]  }
  0x31   : > { %1536 = vmatprep.subr.bf16.mxu1 %v1688_v25  ;;  %v1735_v5 = vld [vmem:[%s1869_s27 + $0x1b8] sm:$0xff]   ;;  %v1745_v15 = vld [vmem:[%s1869_s27 + $0x230] sm:$0xff]   ;;  %v1747_v17 = vld [vmem:[%s1905_s4 + $0x20] ss:$36 sps:$4 sm:$0xff]  }
  0x32   : > { %v1736_v7 = vld [vmem:[%s1905_s4 + $0x18] ss:$36 sps:$4 sm:$0xff]  }
  0x33   : > { %1515 = vmatpush3.bf16.msra.mxu0 %v1689_v26  ;;  %v1742_v12 = vld [vmem:[%s1869_s27 + $0x218] sm:$0xff]  }
  0x34   : > { %1537 = vmatpush3.bf16.msra.mxu1 %v1690_v27  ;;  %1516 = vmatprep.subr.bf16.mxu0 %v1691_v28  ;;  %v1746_v16 = vld [vmem:[%s1869_s27 + $0x238] sm:$0xff]  }
  0x35   : > { %1538 = vmatprep.subr.bf16.mxu1 %v1692_v29 }
  0x37   : > { %1517 = vmatpush3.bf16.msra.mxu0 %v1693_v30 }
  0x38   : > { %1539 = vmatpush3.bf16.msra.mxu1 %v1694_v31  ;;  %1546 = vmatprep.subr.bf16.mxu0 %v1701_v36 }
  0x39   : > { %1568 = vmatprep.subr.bf16.mxu1 %v1703_v38 }
  0x3a   : > { %978 = vmatmul.mubr.bf16.vlgmr.msra.gmra.mrb[0].mxu0 %v1695_v32 }
  0x3b   : > { %1019 = vmatmul.mubr.bf16.vlgmr.msra.gmra.mrb[0].mxu1 %v1698_v34  ;;  %1547 = vmatpush3.bf16.msra.mxu0 %v1702_v37 }
  0x3c   : > { %1569 = vmatpush3.bf16.msra.mxu1 %v1704_v39  ;;  %1548 = vmatprep.subr.bf16.mxu0 %v1705_v40 }
  0x3d   : > { %1570 = vmatprep.subr.bf16.mxu1 %v1707_v42  ;;  %1059 = vmatprep.mubr.bf16.mxu0 %v1734_v4 }
  0x3e   : > { %1100 = vmatprep.mubr.bf16.mxu1 %v1738_v8 }
  0x3f   : > { %1549 = vmatpush3.bf16.msra.mxu0 %v1706_v41 }
  0x40   : > { %1571 = vmatpush3.bf16.msra.mxu1 %v1708_v43  ;;  %1550 = vmatprep.subr.bf16.mxu0 %v1709_v44 }
  0x41   : > { %1572 = vmatprep.subr.bf16.mxu1 %v1711_v46 }
  0x43   : > { %1551 = vmatpush3.bf16.msra.mxu0 %v1710_v45 }
  0x44   : > { %1573 = vmatpush3.bf16.msra.mxu1 %v1712_v47  ;;  %1552 = vmatprep.subr.bf16.mxu0 %v1713_v48 }
  0x45   : > { %1574 = vmatprep.subr.bf16.mxu1 %v1715_v50 }
  0x47   : > { %1553 = vmatpush3.bf16.msra.mxu0 %v1714_v49  ;;  %v1488_v49 = vld [vmem:[%s301_s7] ss:$0 sm:$0xff] }
  0x48   : > { %1575 = vmatpush3.bf16.msra.mxu1 %v1716_v51  ;;  %1554 = vmatprep.subr.bf16.mxu0 %v1717_v52 }
  0x49   : > { %1576 = vmatprep.subr.bf16.mxu1 %v1719_v54 }
  0x4b   : > { %1555 = vmatpush3.bf16.msra.mxu0 %v1718_v53 }
  0x4c   : > { %1577 = vmatpush3.bf16.msra.mxu1 %v1720_v55  ;;  %1556 = vmatprep.subr.bf16.mxu0 %v1721_v56 }
  0x4d   : > { %1578 = vmatprep.subr.bf16.mxu1 %v1723_v58 }
  0x4f   : > { %1557 = vmatpush3.bf16.msra.mxu0 %v1722_v57 }
  0x50   : > { %1579 = vmatpush3.bf16.msra.mxu1 %v1724_v59  ;;  %1558 = vmatprep.subr.bf16.mxu0 %v1725_v60 }
  0x51   : > { %1580 = vmatprep.subr.bf16.mxu1 %v1727_v62 }
  0x53   : > { %1559 = vmatpush3.bf16.msra.mxu0 %v1726_v61 }
  0x54   : > { %1581 = vmatpush3.bf16.msra.mxu1 %v1728_v63  ;;  %1560 = vmatprep.subr.bf16.mxu0 %v1729_v0 }
  0x55   : > { %1582 = vmatprep.subr.bf16.mxu1 %v1731_v2 }
  0x57   : > { %1561 = vmatpush3.bf16.msra.mxu0 %v1730_v1 }
  0x58   : > { %1599 = vmatprep.subr.bf16.mxu0 %v1796_v6  ;;  %1583 = vmatpush3.bf16.msra.mxu1 %v1735_v5 }
  0x5a   : > { %1060 = vmatmul.mubr.bf16.vlgmr.msra.gmra.mrb[4].mxu0 %v1732_v3 }
  0x5b   : > { %1615 = vmatprep.mubr.msk.bf16.mxu0 %vm1797_vm0, %v1796_v6  ;;  %1600 = vmatpush3.bf16.msra.mxu0 %v1739_v9 }
  0x5c   : > { %1101 = vmatmul.mubr.bf16.vlgmr.msra.gmra.mrb[4].mxu1 %v1736_v7  ;;  %1601 = vmatprep.subr.bf16.mxu0 %v1796_v6 }
  0x5f   : > { %1602 = vmatpush3.bf16.msra.mxu0 %v1740_v10 }
  0x60   : > { %1603 = vmatprep.subr.bf16.mxu0 %v1796_v6 }
  0x63   : > { %1604 = vmatpush3.bf16.msra.mxu0 %v1741_v11 }
  0x64   : > { %1605 = vmatprep.subr.bf16.mxu0 %v1796_v6 }
  0x67   : > { %1606 = vmatpush3.bf16.msra.mxu0 %v1742_v12 }
  0x68   : > { %1607 = vmatprep.subr.bf16.mxu0 %v1796_v6 }
  0x6b   : > { %1608 = vmatpush3.bf16.msra.mxu0 %v1743_v13 }
  0x6c   : > { %1609 = vmatprep.subr.bf16.mxu0 %v1796_v6 }
  0x6f   : > { %1610 = vmatpush3.bf16.msra.mxu0 %v1744_v14 }
  0x70   : > { %1611 = vmatprep.subr.bf16.mxu0 %v1796_v6 }
  0x73   : > { %1612 = vmatpush3.bf16.msra.mxu0 %v1745_v15 }
  0x74   : > { %1613 = vmatprep.subr.bf16.mxu0 %v1796_v6 }
  0x77   : > { %1614 = vmatpush3.bf16.msra.mxu0 %v1746_v16 }
  0x7a   : > { %1616 = vmatmul.mubr.bf16.vlgmr.msra.gmra.mrb[8].mxu0 %v1747_v17 }
 0x10d   : > { %v1518_v18 = vpop.f32.mrb[0].mxu0 }
 0x10e   : > { %v1540_v19 = vpop.f32.mrb[0].mxu1  ;;  %v1519_v20 = vpop.f32.mrb[1].mxu0 }
 0x10f   : > { %v1520_v21 = vadd.f32 %v1519_v20, %v1518_v18  ;;  %v1541_v22 = vpop.f32.mrb[1].mxu1  ;;  %v1521_v23 = vpop.f32.mrb[2].mxu0 }
 0x110   : > { %v1542_v24 = vadd.f32 %v1541_v22, %v1540_v19  ;;  %v1543_v25 = vpop.f32.mrb[2].mxu1  ;;  %v1522_v26 = vpop.f32.mrb[3].mxu0 }
 0x111   : > { %v1523_v27 = vadd.f32 %v1522_v26, %v1521_v23  ;;  %v1544_v28 = vpop.f32.mrb[3].mxu1 }
 0x112   : > { %v1021_v29 = vadd.f32 %v1542_v24, %v1520_v21  ;;  %v1545_v30 = vadd.f32 %v1544_v28, %v1543_v25 }
 0x114   : > { %v1024_v31 = vadd.f32 %v1545_v30, %v1523_v27 }
 0x12d   : > { %v1562_v32 = vpop.f32.mrb[4].mxu0 }
 0x12e   : > { %v1563_v33 = vpop.f32.mrb[5].mxu0 }
 0x12f   : > { %v1564_v34 = vadd.f32 %v1563_v33, %v1562_v32  ;;  %v1565_v35 = vpop.f32.mrb[6].mxu0  ;;  %v1584_v36 = vpop.f32.mrb[4].mxu1 }
 0x130   : > { %v1566_v37 = vpop.f32.mrb[7].mxu0  ;;  %v1585_v40 = vpop.f32.mrb[5].mxu1 }
 0x131   : > { %v1062_v38 = vadd.f32 %v1564_v34, %v1021_v29  ;;  %v1567_v39 = vadd.f32 %v1566_v37, %v1565_v35  ;;  %v1586_v41 = vadd.f32 %v1585_v40, %v1584_v36  ;;  %v1587_v42 = vpop.f32.mrb[6].mxu1 }
 0x132   : > { %v1588_v44 = vpop.f32.mrb[7].mxu1 }
 0x133   : > { %v1065_v43 = vadd.f32 %v1567_v39, %v1024_v31  ;;  %v1589_v45 = vadd.f32 %v1588_v44, %v1587_v42  ;;  %v1103_v46 = vadd.f32 %v1586_v41, %v1062_v38 }
 0x135   : > { %v1106_v47 = vadd.f32 %v1589_v45, %v1065_v43 }
 0x14d   : > { %v1143_v48 = vpop.f32.mrb[8].mxu0 }
 0x14e   : > { %v1144_v50 = vadd.f32 %v1143_v48, %v1103_v46  ;;  %v1617_v51 = vpop.f32.mrb[9].mxu0 }
 0x14f   : > { %v1146_v52 = vpop.f32.mrb[10].mxu0 }
 0x150   : > { %v1166_v53 = vadd.f32 %v1488_v49, %v1144_v50  ;;  %v1147_v54 = vadd.f32 %v1146_v52, %v1106_v47  ;;  %v1618_v55 = vpop.f32.mrb[11].mxu0 }
 0x152   : > { %v1168_v56 = vmul.f32 0.70710677, %v1166_v53  ;;  %v1167_v57 = vadd.f32 %v1488_v49, %v1147_v54  ;;  %v1214_v38 = vmul.f32 0.5, %v1166_v53 }
 0x154   : > { %v1170_v58 = vand.u32 2147483647, %v1168_v56  ;;  %v1169_v59 = vmul.f32 0.70710677, %v1167_v57  ;;  %vm1208_vm1 = vcmp.lt.f32.partialorder %v1168_v56, 0.0  ;;  %v1215_v39 = vmul.f32 0.5, %v1167_v57 }
 0x156   : > { %v1172_v60 = vmul.f32 0.3275911, %v1170_v58  ;;  %v1171_v61 = vand.u32 2147483647, %v1169_v59  ;;  %v1196_v1 = vsub.f32 0.0, %v1170_v58  ;;  %vm1209_vm2 = vcmp.lt.f32.partialorder %v1169_v59, 0.0 }
 0x158   : > { %v1174_v62 = vadd.f32 1.0, %v1172_v60  ;;  %v1173_v63 = vmul.f32 0.3275911, %v1171_v61  ;;  %v1197_v2 = vsub.f32 0.0, %v1171_v61  ;;  %v1198_v4 = vmul.f32 %v1196_v1, %v1170_v58 }
 0x15a   : > { %1748 = vrcp.f32 %v1174_v62  ;;  %v1175_v0 = vadd.f32 1.0, %v1173_v63  ;;  %v1199_v8 = vmul.f32 %v1197_v2, %v1171_v61  ;;  %v1200_v9 = vmul.f32 1.442695, %v1198_v4 }
 0x15c   : > { %1750 = vrcp.f32 %v1175_v0  ;;  %v1202_v14 = vmul.f32 1.442695, %v1199_v8 }
 0x15d   : > { %1752 = vpow2.f32 %v1200_v9 }
 0x15e   : > { %1754 = vpow2.f32 %v1202_v14 }
 0x164   : > { %v1749_v3 = vpop.eup %1748 }
 0x165   : > { %v1178_v5 = vmul.f32 1.0614054, %v1749_v3 }
 0x166   : > { %v1751_v6 = vpop.eup %1750 }
 0x167   : > { %v1180_v7 = vadd.f32 -1.4531521, %v1178_v5  ;;  %v1179_v10 = vmul.f32 1.0614054, %v1751_v6  ;;  %v1753_v25 = vpop.eup %1752 }
 0x168   : > { %v1755_v29 = vpop.eup %1754 }
 0x169   : > { %v1182_v11 = vmul.f32 %v1749_v3, %v1180_v7  ;;  %v1181_v12 = vadd.f32 -1.4531521, %v1179_v10 }
 0x16b   : > { %v1184_v13 = vadd.f32 1.4214138, %v1182_v11  ;;  %v1183_v15 = vmul.f32 %v1751_v6, %v1181_v12 }
 0x16d   : > { %v1186_v16 = vmul.f32 %v1749_v3, %v1184_v13  ;;  %v1185_v17 = vadd.f32 1.4214138, %v1183_v15 }
 0x16f   : > { %v1188_v18 = vadd.f32 -0.28449672, %v1186_v16  ;;  %v1187_v19 = vmul.f32 %v1751_v6, %v1185_v17 }
 0x171   : > { %v1190_v20 = vmul.f32 %v1749_v3, %v1188_v18  ;;  %v1189_v21 = vadd.f32 -0.28449672, %v1187_v19 }
 0x173   : > { %v1192_v22 = vadd.f32 0.2548296, %v1190_v20  ;;  %v1191_v23 = vmul.f32 %v1751_v6, %v1189_v21 }
 0x175   : > { %v1194_v24 = vmul.f32 %v1749_v3, %v1192_v22  ;;  %v1193_v26 = vadd.f32 0.2548296, %v1191_v23 }
 0x177   : > { %v1204_v27 = vmul.f32 %v1753_v25, %v1194_v24  ;;  %v1195_v28 = vmul.f32 %v1751_v6, %v1193_v26 }
 0x179   : > { %v1206_v30 = vsub.f32 1.0, %v1204_v27  ;;  %v1205_v31 = vmul.f32 %v1755_v29, %v1195_v28 }
 0x17b   : > { %v1210_v32 = vsub.f32 0.0, %v1206_v30  ;;  %v1207_v33 = vsub.f32 1.0, %v1205_v31 }
 0x17d   : > { %v1212_v34 = vsel %vm1208_vm1, %v1210_v32, %v1206_v30  ;;  %v1211_v35 = vsub.f32 0.0, %v1207_v33 }
 0x17e   : > { %v1216_v36 = vadd.f32 1.0, %v1212_v34 }
 0x17f   : > { %v1213_v37 = vsel %vm1209_vm2, %v1211_v35, %v1207_v33 }
 0x180   : > { %v1217_v40 = vadd.f32 1.0, %v1213_v37  ;;  %v1218_v41 = vmul.f32 %v1216_v36, %v1214_v38  ;;  %1236 = sbr.rel (!%p1850_p3) target bundleno = 399 (0x18f), region = 44 }
 0x182   : > { %v1219_v42 = vmul.f32 %v1217_v40, %v1215_v39 }
 0x184   : > { %v1500_v43 = vpack.c.bf16 %v1219_v42, %v1218_v41 }
 0x186   : > { %1501 = vst [vmem:[%s266_s10] sm:$0xff] %v1500_v43  }
 0x18d   : > { %v1258_v44 = vld [vmem:[%s266_s10] sm:$0xf]  ;;  %v1260_v45 = vld [vmem:[%s266_s10 + $0x4] sm:$0xf] }
 0x18e   : > { %1259 = vst [vmem:[%s1242_s19] sm:$0xf] %v1258_v44  ;;  %1261 = vst [vmem:[%s1242_s19 + $0x8] sm:$0xf] %v1260_v45 }
 0x18f PF: > { %s13_s16 = sadd.s32 1, %s1794_s16   ;;  %s1989_s12 = smov %s1782_s13 }
 0x190   : > { %p10_p9 = scmp.ge.s32.totalorder %s13_s16, 4   ;;  %s1990_s13 = smov %s1859_s22 }
 0x191   : > { %s1991_s14 = smov %s1790_s15  ;;  %s1992_s15 = smov %s1994_s18 }
 0x192   :  { %12 = sbr.rel (!%p10_p9) target bundleno = 3 (0x3), region = 117 }

// kernel: forward.81
= control target key start
LH: loop header
LB: loop body
LE: loop exit
PB: predicated region body
PF: predicated region fallthrough
CT: control target
= control target key end

     0   :  { %v304_v34 = vlaneseq  ;;  %s730_s1 = inlined_call_operand.vmem [shape: bf16[1,256,256], index: 1, kind: input, shape index: {}]   ;;  %s731_s0 = inlined_call_operand.vmem [shape: bf16[1,16,256], index: 0, kind: input, shape index: {}]   ;;  %s732_s2 = inlined_call_operand.vmem [shape: f32[1,1,256], index: 2, kind: input, shape index: {}]   ;;  %s733_s3 = inlined_call_operand.vmem [shape: bf16[16,256], index: 3, kind: output, shape index: {}]  }
   0x1   :  { %v500_v0 = vld [vmem:[%s730_s1 + $0x4] ss:$8 sps:$4 sm:$0xff]   ;;  %v502_v1 = vld [vmem:[%s730_s1] ss:$8 sps:$4 sm:$0xff]   ;;  %v503_v2 = vld [vmem:[%s730_s1 + $0x14] ss:$8 sps:$4 sm:$0xff]  }
   0x2   :  { %244 = vmatprep.subr.bf16.mxu0 %v500_v0  ;;  %v505_v3 = vld [vmem:[%s730_s1 + $0x10] ss:$8 sps:$4 sm:$0xff]   ;;  %v506_v4 = vld [vmem:[%s730_s1 + $0x24] ss:$8 sps:$4 sm:$0xff]   ;;  %v508_v5 = vld [vmem:[%s730_s1 + $0x20] ss:$8 sps:$4 sm:$0xff]  }
   0x3   :  { %245 = vmatpush1.bf16.msra.mxu0 %v502_v1  ;;  %v509_v6 = vld [vmem:[%s730_s1 + $0x34] ss:$8 sps:$4 sm:$0xff]   ;;  %v511_v7 = vld [vmem:[%s730_s1 + $0x30] ss:$8 sps:$4 sm:$0xff]   ;;  %v512_v8 = vld [vmem:[%s730_s1 + $0x44] ss:$8 sps:$4 sm:$0xff]  }
   0x4   :  { %246 = vmatprep.subr.bf16.mxu0 %v503_v2  ;;  %v514_v9 = vld [vmem:[%s730_s1 + $0x40] ss:$8 sps:$4 sm:$0xff]   ;;  %v515_v10 = vld [vmem:[%s730_s1 + $0x54] ss:$8 sps:$4 sm:$0xff]   ;;  %v517_v11 = vld [vmem:[%s730_s1 + $0x50] ss:$8 sps:$4 sm:$0xff]  }
   0x5   :  { %v518_v12 = vld [vmem:[%s730_s1 + $0x64] ss:$8 sps:$4 sm:$0xff]   ;;  %v520_v14 = vld [vmem:[%s730_s1 + $0x60] ss:$8 sps:$4 sm:$0xff]   ;;  %v521_v15 = vld [vmem:[%s730_s1 + $0x74] ss:$8 sps:$4 sm:$0xff]  }
   0x6   :  { %v550_v13 = vld [vmem:[%s731_s0 + $0x4] ss:$8 sps:$4 sm:$0xff]   ;;  %v523_v16 = vld [vmem:[%s730_s1 + $0x70] ss:$8 sps:$4 sm:$0xff]   ;;  %v526_v18 = vld [vmem:[%s730_s1 + $0x80] ss:$8 sps:$4 sm:$0xff]  }
   0x7   :  { %247 = vmatpush1.bf16.msra.mxu0 %v505_v3  ;;  %276 = vmatprep.mubr.bf16.mxu0 %v550_v13  ;;  %v524_v17 = vld [vmem:[%s730_s1 + $0x84] ss:$8 sps:$4 sm:$0xff]   ;;  %v527_v19 = vld [vmem:[%s730_s1 + $0x94] ss:$8 sps:$4 sm:$0xff]   ;;  %v529_v20 = vld [vmem:[%s730_s1 + $0x90] ss:$8 sps:$4 sm:$0xff]  }
   0x8   :  { %248 = vmatprep.subr.bf16.mxu0 %v506_v4  ;;  %v530_v21 = vld [vmem:[%s730_s1 + $0xa4] ss:$8 sps:$4 sm:$0xff]   ;;  %v532_v22 = vld [vmem:[%s730_s1 + $0xa0] ss:$8 sps:$4 sm:$0xff]   ;;  %v533_v23 = vld [vmem:[%s730_s1 + $0xb4] ss:$8 sps:$4 sm:$0xff]  }
   0x9   :  { %v535_v24 = vld [vmem:[%s730_s1 + $0xb0] ss:$8 sps:$4 sm:$0xff]   ;;  %v536_v25 = vld [vmem:[%s730_s1 + $0xc4] ss:$8 sps:$4 sm:$0xff]   ;;  %v538_v26 = vld [vmem:[%s730_s1 + $0xc0] ss:$8 sps:$4 sm:$0xff]  }
   0xa   :  { %v539_v27 = vld [vmem:[%s730_s1 + $0xd4] ss:$8 sps:$4 sm:$0xff]   ;;  %v541_v28 = vld [vmem:[%s730_s1 + $0xd0] ss:$8 sps:$4 sm:$0xff]   ;;  %v542_v29 = vld [vmem:[%s730_s1 + $0xe4] ss:$8 sps:$4 sm:$0xff]  }
   0xb   :  { %249 = vmatpush1.bf16.msra.mxu0 %v508_v5  ;;  %v544_v30 = vld [vmem:[%s730_s1 + $0xe0] ss:$8 sps:$4 sm:$0xff]   ;;  %v545_v31 = vld [vmem:[%s730_s1 + $0xf4] ss:$8 sps:$4 sm:$0xff]   ;;  %v547_v32 = vld [vmem:[%s730_s1 + $0xf0] ss:$8 sps:$4 sm:$0xff]  }
   0xc   :  { %250 = vmatprep.subr.bf16.mxu0 %v509_v6  ;;  %v548_v33 = vld [vmem:[%s731_s0] ss:$8 sps:$4 sm:$0xff]   ;;  %v305_v35 = vshrl.u32 %v304_v34, 7 }
   0xd   :  { %v302_v37 = vld [vmem:[%s732_s2] sm:$0x3] }
   0xe   :  { %v306_v36 = vsub.s32 0, %v305_v35  ;;  %v310_v38 = vsub.s32 1, %v305_v35 }
   0xf   :  { %251 = vmatpush1.bf16.msra.mxu0 %v511_v7 }
  0x10   :  { %252 = vmatprep.subr.bf16.mxu0 %v512_v8  ;;  %v307_v39 = vrot.slane %v302_v37, %v306_v36  ;;  %v311_v40 = vrot.slane %v302_v37, %v310_v38 }
  0x13   :  { %253 = vmatpush1.bf16.msra.mxu0 %v514_v9 }
  0x14   :  { %254 = vmatprep.subr.bf16.mxu0 %v515_v10 }
  0x17   :  { %255 = vmatpush1.bf16.msra.mxu0 %v517_v11 }
  0x18   :  { %256 = vmatprep.subr.bf16.mxu0 %v518_v12 }
  0x1b   :  { %257 = vmatpush1.bf16.msra.mxu0 %v520_v14 }
  0x1c   :  { %258 = vmatprep.subr.bf16.mxu0 %v521_v15 }
  0x1f   :  { %259 = vmatpush1.bf16.msra.mxu0 %v523_v16 }
  0x20   :  { %260 = vmatprep.subr.bf16.mxu0 %v524_v17 }
  0x23   :  { %261 = vmatpush1.bf16.msra.mxu0 %v526_v18 }
  0x24   :  { %262 = vmatprep.subr.bf16.mxu0 %v527_v19 }
  0x27   :  { %263 = vmatpush1.bf16.msra.mxu0 %v529_v20 }
  0x28   :  { %264 = vmatprep.subr.bf16.mxu0 %v530_v21 }
  0x2b   :  { %265 = vmatpush1.bf16.msra.mxu0 %v532_v22 }
  0x2c   :  { %266 = vmatprep.subr.bf16.mxu0 %v533_v23 }
  0x2f   :  { %267 = vmatpush1.bf16.msra.mxu0 %v535_v24 }
  0x30   :  { %268 = vmatprep.subr.bf16.mxu0 %v536_v25 }
  0x33   :  { %269 = vmatpush1.bf16.msra.mxu0 %v538_v26 }
  0x34   :  { %270 = vmatprep.subr.bf16.mxu0 %v539_v27 }
  0x37   :  { %271 = vmatpush1.bf16.msra.mxu0 %v541_v28 }
  0x38   :  { %272 = vmatprep.subr.bf16.mxu0 %v542_v29 }
  0x3b   :  { %273 = vmatpush1.bf16.msra.mxu0 %v544_v30 }
  0x3c   :  { %274 = vmatprep.subr.bf16.mxu0 %v545_v31 }
  0x3f   :  { %275 = vmatpush1.bf16.msra.mxu0 %v547_v32 }
  0x42   :  { %277 = vmatmul.mubr.bf16.vlgmr.msra.gmra.mrb[0].mxu0 %v548_v33 }
 0x115   :  { %v278_v41 = vpop.f32.mrb[0].mxu0 }
 0x116   :  { %v692_v42 = vadd.f32 %v307_v39, %v278_v41  ;;  %v280_v43 = vpop.f32.mrb[1].mxu0 }
 0x117   :  { %v694_v44 = vadd.f32 %v311_v40, %v280_v43  ;;  %v282_v45 = vpop.f32.mrb[2].mxu0 }
 0x118   :  { %v697_v46 = vmul.f32 0.70710677, %v692_v42  ;;  %v699_v47 = vadd.f32 %v307_v39, %v282_v45  ;;  %v284_v48 = vpop.f32.mrb[3].mxu0 }
 0x119   :  { %v702_v49 = vmul.f32 0.70710677, %v694_v44  ;;  %v704_v50 = vadd.f32 %v311_v40, %v284_v48 }
 0x11a   :  { %v322_v51 = vand.u32 2147483647, %v697_v46  ;;  %v708_v52 = vmul.f32 0.70710677, %v699_v47  ;;  %vm398_vm0 = vcmp.lt.f32.partialorder %v697_v46, 0.0 }
 0x11b   :  { %v323_v53 = vand.u32 2147483647, %v702_v49  ;;  %v712_v54 = vmul.f32 0.70710677, %v704_v50  ;;  %vm399_vm1 = vcmp.lt.f32.partialorder %v702_v49, 0.0 }
 0x11c   :  { %v326_v55 = vmul.f32 0.3275911, %v322_v51  ;;  %v324_v56 = vand.u32 2147483647, %v708_v52  ;;  %v374_v1 = vsub.f32 0.0, %v322_v51  ;;  %vm400_vm2 = vcmp.lt.f32.partialorder %v708_v52, 0.0 }
 0x11d   :  { %v327_v57 = vmul.f32 0.3275911, %v323_v53  ;;  %v325_v58 = vand.u32 2147483647, %v712_v54  ;;  %v375_v2 = vsub.f32 0.0, %v323_v53  ;;  %vm401_vm3 = vcmp.lt.f32.partialorder %v712_v54, 0.0 }
 0x11e   :  { %v330_v59 = vadd.f32 1.0, %v326_v55  ;;  %v328_v60 = vmul.f32 0.3275911, %v324_v56  ;;  %v378_v4 = vmul.f32 %v374_v1, %v322_v51  ;;  %v376_v5 = vsub.f32 0.0, %v324_v56 }
 0x11f   :  { %v331_v61 = vadd.f32 1.0, %v327_v57  ;;  %v329_v62 = vmul.f32 0.3275911, %v325_v58  ;;  %v379_v8 = vmul.f32 %v375_v2, %v323_v53  ;;  %v377_v10 = vsub.f32 0.0, %v325_v58 }
 0x120   :  { %551 = vrcp.f32 %v330_v59  ;;  %v332_v63 = vadd.f32 1.0, %v328_v60  ;;  %v382_v13 = vmul.f32 1.442695, %v378_v4  ;;  %v380_v15 = vmul.f32 %v376_v5, %v324_v56 }
 0x121   :  { %553 = vrcp.f32 %v331_v61  ;;  %v333_v0 = vadd.f32 1.0, %v329_v62  ;;  %v384_v17 = vmul.f32 1.442695, %v379_v8  ;;  %v381_v21 = vmul.f32 %v377_v10, %v325_v58 }
 0x122   :  { %555 = vrcp.f32 %v332_v63  ;;  %v386_v26 = vmul.f32 1.442695, %v380_v15 }
 0x123   :  { %557 = vrcp.f32 %v333_v0  ;;  %v388_v31 = vmul.f32 1.442695, %v381_v21  ;;  %v412_v21 = vmul.f32 0.5, %v699_v47 }
 0x124   :  { %559 = vpow2.f32 %v382_v13 }
 0x125   :  { %561 = vpow2.f32 %v384_v17 }
 0x126   :  { %563 = vpow2.f32 %v386_v26 }
 0x127   :  { %565 = vpow2.f32 %v388_v31 }
 0x12a   :  { %v552_v3 = vpop.eup %551 }
 0x12b   :  { %v554_v6 = vpop.eup %553  ;;  %v338_v7 = vmul.f32 1.0614054, %v552_v3 }
 0x12c   :  { %v339_v9 = vmul.f32 1.0614054, %v554_v6  ;;  %v556_v12 = vpop.eup %555 }
 0x12d   :  { %v342_v11 = vadd.f32 -1.4531521, %v338_v7  ;;  %v340_v18 = vmul.f32 1.0614054, %v556_v12  ;;  %v558_v19 = vpop.eup %557 }
 0x12e   :  { %v343_v14 = vadd.f32 -1.4531521, %v339_v9  ;;  %v341_v24 = vmul.f32 1.0614054, %v558_v19  ;;  %v560_v55 = vpop.eup %559 }
 0x12f   :  { %v346_v16 = vmul.f32 %v552_v3, %v342_v11  ;;  %v344_v23 = vadd.f32 -1.4531521, %v340_v18  ;;  %v562_v57 = vpop.eup %561  ;;  %v410_v11 = vmul.f32 0.5, %v692_v42 }
 0x130   :  { %v347_v20 = vmul.f32 %v554_v6, %v343_v14  ;;  %v345_v29 = vadd.f32 -1.4531521, %v341_v24  ;;  %v564_v1 = vpop.eup %563  ;;  %v413_v24 = vmul.f32 0.5, %v704_v50 }
 0x131   :  { %v350_v22 = vadd.f32 1.4214138, %v346_v16  ;;  %v348_v28 = vmul.f32 %v556_v12, %v344_v23  ;;  %v566_v8 = vpop.eup %565 }
 0x132   :  { %v351_v25 = vadd.f32 1.4214138, %v347_v20  ;;  %v349_v34 = vmul.f32 %v558_v19, %v345_v29 }
 0x133   :  { %v354_v27 = vmul.f32 %v552_v3, %v350_v22  ;;  %v352_v33 = vadd.f32 1.4214138, %v348_v28 }
 0x134   :  { %v355_v30 = vmul.f32 %v554_v6, %v351_v25  ;;  %v353_v38 = vadd.f32 1.4214138, %v349_v34 }
 0x135   :  { %v358_v32 = vadd.f32 -0.28449672, %v354_v27  ;;  %v356_v37 = vmul.f32 %v556_v12, %v352_v33 }
 0x136   :  { %v359_v35 = vadd.f32 -0.28449672, %v355_v30  ;;  %v357_v43 = vmul.f32 %v558_v19, %v353_v38 }
 0x137   :  { %v362_v36 = vmul.f32 %v552_v3, %v358_v32  ;;  %v360_v41 = vadd.f32 -0.28449672, %v356_v37 }
 0x138   :  { %v363_v39 = vmul.f32 %v554_v6, %v359_v35  ;;  %v361_v53 = vadd.f32 -0.28449672, %v357_v43 }
 0x139   :  { %v366_v40 = vadd.f32 0.2548296, %v362_v36  ;;  %v364_v51 = vmul.f32 %v556_v12, %v360_v41 }
 0x13a   :  { %v367_v45 = vadd.f32 0.2548296, %v363_v39  ;;  %v365_v60 = vmul.f32 %v558_v19, %v361_v53 }
 0x13b   :  { %v370_v48 = vmul.f32 %v552_v3, %v366_v40  ;;  %v368_v59 = vadd.f32 0.2548296, %v364_v51 }
 0x13c   :  { %v371_v56 = vmul.f32 %v554_v6, %v367_v45  ;;  %v369_v0 = vadd.f32 0.2548296, %v365_v60 }
 0x13d   :  { %v390_v58 = vmul.f32 %v560_v55, %v370_v48  ;;  %v372_v63 = vmul.f32 %v556_v12, %v368_v59  ;;  %v411_v12 = vmul.f32 0.5, %v694_v44 }
 0x13e   :  { %v391_v61 = vmul.f32 %v562_v57, %v371_v56  ;;  %v373_v7 = vmul.f32 %v558_v19, %v369_v0 }
 0x13f   :  { %v394_v62 = vsub.f32 1.0, %v390_v58  ;;  %v392_v5 = vmul.f32 %v564_v1, %v372_v63 }
 0x140   :  { %v395_v2 = vsub.f32 1.0, %v391_v61  ;;  %v393_v10 = vmul.f32 %v566_v8, %v373_v7 }
 0x141   :  { %v402_v4 = vsub.f32 0.0, %v394_v62  ;;  %v396_v6 = vsub.f32 1.0, %v392_v5 }
 0x142   :  { %v403_v3 = vsub.f32 0.0, %v395_v2  ;;  %v397_v17 = vsub.f32 1.0, %v393_v10 }
 0x143   :  { %v406_v9 = vsel %vm398_vm0, %v402_v4, %v394_v62  ;;  %v404_v16 = vsub.f32 0.0, %v396_v6 }
 0x144   :  { %v414_v13 = vadd.f32 1.0, %v406_v9  ;;  %v407_v14 = vsel %vm399_vm1, %v403_v3, %v395_v2  ;;  %v405_v20 = vsub.f32 0.0, %v397_v17 }
 0x145   :  { %v415_v15 = vadd.f32 1.0, %v407_v14  ;;  %v408_v46 = vsel %vm400_vm2, %v404_v16, %v396_v6 }
 0x146   :  { %v418_v18 = vmul.f32 %v414_v13, %v410_v11  ;;  %v416_v49 = vadd.f32 1.0, %v408_v46  ;;  %v409_v42 = vsel %vm401_vm3, %v405_v20, %v397_v17 }
 0x147   :  { %v419_v19 = vmul.f32 %v415_v15, %v411_v12  ;;  %v417_v44 = vadd.f32 1.0, %v409_v42 }
 0x148   :  { %v420_v23 = vmul.f32 %v416_v49, %v412_v21 }
 0x149   :  { %v498_v22 = vpack.c.bf16 %v419_v19, %v418_v18  ;;  %v421_v25 = vmul.f32 %v417_v44, %v413_v24 }
 0x14b   :  { %434 = vst [vmem:[%s733_s3] sm:$0xff] %v498_v22  ;;  %v499_v52 = vpack.c.bf16 %v421_v25, %v420_v23 }
 0x14d   :  { %435 = vst [vmem:[%s733_s3 + $0x8] sm:$0xff] %v499_v52 }

// kernel: forward.91
= control target key start
LH: loop header
LB: loop body
LE: loop exit
PB: predicated region body
PF: predicated region fallthrough
CT: control target
= control target key end

     0   :  { %s1265_s12 = smov 0   ;;  %s1267_s13 = smov 0   ;;  %s1485_s0 = inlined_call_operand.vmem [shape: bf16[1,16,256], index: 0, kind: input, shape index: {}]   ;;  %s1486_s1 = inlined_call_operand.vmem [shape: bf16[1,256,512], index: 1, kind: input, shape index: {}]   ;;  %s1487_s2 = inlined_call_operand.vmem [shape: f32[1,1,512], index: 2, kind: input, shape index: {}]   ;;  %s1488_s3 = inlined_call_operand.vmem [shape: bf16[16,512], index: 3, kind: output, shape index: {}]  }
   0x1   :  { %s1269_s14 = smov 0   ;;  %s1271_s15 = smov 0  }
   0x2   :  { %s1273_s16 = smov 0  }
   0x3 LB: > { %s31_s17 = sadd.s32 1, %s1239_s15  ;;  %s1041_s18 = sadd.s32 4294967295, %s1243_s16   ;;  %s1243_s16 = sphi %s1273_s16, %s13_s16   ;;  %s1239_s15 = sphi %s1271_s15, %s1493_s15   ;;  %s1235_s14 = sphi %s1269_s14, %s1492_s14   ;;  %s1231_s13 = sphi %s1267_s13, %s1491_s13   ;;  %s1227_s12 = sphi %s1265_s12, %s1490_s12  }
   0x4   : > { %p33_p0 = scmp.ge.s32.totalorder %s31_s17, 2  ;;  %p87_p1 = scmp.ne.s32.totalorder %s1231_s13, %s1227_s12 }
   0x5   : > { %p88_p2 = scmp.eq.s32.totalorder %s1243_s16, 0  ;;  %p151_p4 = scmp.eq.s32.totalorder %s1041_s18, 1 }
   0x6   : > { %s1495_s17 = smov (%p33_p0, %s31_s17), 0  ;;  %s80_s20 = sadd.s32 1, %s1231_s13 }
   0x7   : > { %p89_p3 = por %p88_p2, %p87_p1  ;;  %s76_s19 = ssub.s32 %s1239_s15, %s1495_s17 }
   0x8   : > { %p78_p5 = scmp.eq.s32.totalorder %s76_s19, 0  ;;  %p1300_p6 = por %p151_p4, %p87_p1 }
   0x9   : > { %p1045_p7 = scmp.ge.s32.totalorder %s1243_s16, 2 }
   0xa   : > { %s1305_s22 = scalar_select %p78_p5, %s1231_s13, %s80_s20  }
   0xb   : > { %192 = sbr.rel (%p1045_p7) target bundleno = 38 (0x26), region = 20 }
  0x12   : > { %195 = sbr.rel (!%p89_p3) target bundleno = 38 (0x26), region = 24  ;;  %s197_s23 = sand.u32 (%p89_p3), 1, %s1231_s13  }
  0x13   : > { %s1094_s24 = sshll.u32 (%p89_p3), %s1239_s15, 3  ;;  %s1046_s25 = sshll.u32 (%p89_p3), %s197_s23, 8 }
  0x14   : > { %s1313_s28 = scalar_lea.vmem (%p89_p3), %s1486_s1, %s1094_s24  ;;  %s1318_s29 = scalar_lea.vmem (%p89_p3), [#allocation3], %s1046_s25 }
  0x15   : > { %v297_v0 = vld [vmem:[%s1313_s28] sm:$0xff] (%p89_p3)  ;;  %v299_v1 = vld [vmem:[%s1313_s28 + $0x10] sm:$0xff] (%p89_p3) }
  0x16   : > { %v301_v2 = vld [vmem:[%s1313_s28 + $0x20] sm:$0xff] (%p89_p3)  ;;  %298 = vst [vmem:[%s1318_s29] sm:$0xff] (%p89_p3), %v297_v0  ;;  %300 = vst [vmem:[%s1318_s29 + $0x8] sm:$0xff] (%p89_p3), %v299_v1  ;;  %v303_v3 = vld [vmem:[%s1313_s28 + $0x30] sm:$0xff] (%p89_p3) }
  0x17   : > { %302 = vst [vmem:[%s1318_s29 + $0x10] sm:$0xff] (%p89_p3), %v301_v2  ;;  %v305_v4 = vld [vmem:[%s1313_s28 + $0x40] sm:$0xff] (%p89_p3)  ;;  %v307_v5 = vld [vmem:[%s1313_s28 + $0x50] sm:$0xff] (%p89_p3)  ;;  %304 = vst [vmem:[%s1318_s29 + $0x18] sm:$0xff] (%p89_p3), %v303_v3 }
  0x18   : > { %306 = vst [vmem:[%s1318_s29 + $0x20] sm:$0xff] (%p89_p3), %v305_v4  ;;  %308 = vst [vmem:[%s1318_s29 + $0x28] sm:$0xff] (%p89_p3), %v307_v5  ;;  %v309_v6 = vld [vmem:[%s1313_s28 + $0x60] sm:$0xff] (%p89_p3)  ;;  %v311_v7 = vld [vmem:[%s1313_s28 + $0x70] sm:$0xff] (%p89_p3) }
  0x19   : > { %v313_v8 = vld [vmem:[%s1313_s28 + $0x80] sm:$0xff]  ;;  %310 = vst [vmem:[%s1318_s29 + $0x30] sm:$0xff] %v309_v6  ;;  %312 = vst [vmem:[%s1318_s29 + $0x38] sm:$0xff] %v311_v7  ;;  %v315_v9 = vld [vmem:[%s1313_s28 + $0x90] sm:$0xff] }
  0x1a   : > { %314 = vst [vmem:[%s1318_s29 + $0x40] sm:$0xff] %v313_v8  ;;  %v317_v10 = vld [vmem:[%s1313_s28 + $0xa0] sm:$0xff]  ;;  %v319_v11 = vld [vmem:[%s1313_s28 + $0xb0] sm:$0xff]  ;;  %316 = vst [vmem:[%s1318_s29 + $0x48] sm:$0xff] %v315_v9 }
  0x1b   : > { %318 = vst [vmem:[%s1318_s29 + $0x50] sm:$0xff] %v317_v10  ;;  %320 = vst [vmem:[%s1318_s29 + $0x58] sm:$0xff] %v319_v11  ;;  %v321_v12 = vld [vmem:[%s1313_s28 + $0xc0] sm:$0xff]  ;;  %v323_v13 = vld [vmem:[%s1313_s28 + $0xd0] sm:$0xff] }
  0x1c   : > { %v325_v14 = vld [vmem:[%s1313_s28 + $0xe0] sm:$0xff]  ;;  %322 = vst [vmem:[%s1318_s29 + $0x60] sm:$0xff] %v321_v12  ;;  %324 = vst [vmem:[%s1318_s29 + $0x68] sm:$0xff] %v323_v13  ;;  %v327_v15 = vld [vmem:[%s1313_s28 + $0xf0] sm:$0xff] }
  0x1d   : > { %326 = vst [vmem:[%s1318_s29 + $0x70] sm:$0xff] %v325_v14  ;;  %v329_v16 = vld [vmem:[%s1313_s28 + $0x100] sm:$0xff]  ;;  %v331_v17 = vld [vmem:[%s1313_s28 + $0x110] sm:$0xff]  ;;  %328 = vst [vmem:[%s1318_s29 + $0x78] sm:$0xff] %v327_v15 }
  0x1e   : > { %330 = vst [vmem:[%s1318_s29 + $0x80] sm:$0xff] %v329_v16  ;;  %332 = vst [vmem:[%s1318_s29 + $0x88] sm:$0xff] %v331_v17  ;;  %v333_v18 = vld [vmem:[%s1313_s28 + $0x120] sm:$0xff]  ;;  %v335_v19 = vld [vmem:[%s1313_s28 + $0x130] sm:$0xff] }
  0x1f   : > { %v337_v20 = vld [vmem:[%s1313_s28 + $0x140] sm:$0xff]  ;;  %334 = vst [vmem:[%s1318_s29 + $0x90] sm:$0xff] %v333_v18  ;;  %336 = vst [vmem:[%s1318_s29 + $0x98] sm:$0xff] %v335_v19  ;;  %v339_v21 = vld [vmem:[%s1313_s28 + $0x150] sm:$0xff] }
  0x20   : > { %338 = vst [vmem:[%s1318_s29 + $0xa0] sm:$0xff] %v337_v20  ;;  %v341_v22 = vld [vmem:[%s1313_s28 + $0x160] sm:$0xff]  ;;  %v343_v23 = vld [vmem:[%s1313_s28 + $0x170] sm:$0xff]  ;;  %340 = vst [vmem:[%s1318_s29 + $0xa8] sm:$0xff] %v339_v21 }
  0x21   : > { %342 = vst [vmem:[%s1318_s29 + $0xb0] sm:$0xff] %v341_v22  ;;  %344 = vst [vmem:[%s1318_s29 + $0xb8] sm:$0xff] %v343_v23  ;;  %v345_v24 = vld [vmem:[%s1313_s28 + $0x180] sm:$0xff]  ;;  %v347_v25 = vld [vmem:[%s1313_s28 + $0x190] sm:$0xff] }
  0x22   : > { %v349_v26 = vld [vmem:[%s1313_s28 + $0x1a0] sm:$0xff]  ;;  %346 = vst [vmem:[%s1318_s29 + $0xc0] sm:$0xff] %v345_v24  ;;  %348 = vst [vmem:[%s1318_s29 + $0xc8] sm:$0xff] %v347_v25  ;;  %v351_v27 = vld [vmem:[%s1313_s28 + $0x1b0] sm:$0xff] }
  0x23   : > { %350 = vst [vmem:[%s1318_s29 + $0xd0] sm:$0xff] %v349_v26  ;;  %v353_v28 = vld [vmem:[%s1313_s28 + $0x1c0] sm:$0xff]  ;;  %v355_v29 = vld [vmem:[%s1313_s28 + $0x1d0] sm:$0xff]  ;;  %352 = vst [vmem:[%s1318_s29 + $0xd8] sm:$0xff] %v351_v27 }
  0x24   : > { %354 = vst [vmem:[%s1318_s29 + $0xe0] sm:$0xff] %v353_v28  ;;  %356 = vst [vmem:[%s1318_s29 + $0xe8] sm:$0xff] %v355_v29  ;;  %v357_v30 = vld [vmem:[%s1313_s28 + $0x1e0] sm:$0xff]  ;;  %v359_v31 = vld [vmem:[%s1313_s28 + $0x1f0] sm:$0xff] }
  0x25   : > { %358 = vst [vmem:[%s1318_s29 + $0xf0] sm:$0xff] %v357_v30  ;;  %360 = vst [vmem:[%s1318_s29 + $0xf8] sm:$0xff] %v359_v31 }
  0x26 PF: > { %p1049_p8 = scmp.ge.s32.totalorder %s1243_s16, 1  ;;  %p377_p9 = scmp.lt.s32.totalorder %s1243_s16, 3 }
  0x28   : > { %p378_p10 = pnand %p1049_p8, %p377_p9 }
  0x29   : > { %s384_s30 = sand.u32 (!%p378_p10), 1, %s1227_s12   ;;  %v1188_v32 = vld [vmem:[%s1485_s0 + $0x4] ss:$8 sps:$4 sm:$0xff] (!%p378_p10)   ;;  %v1186_v1 = vld [vmem:[%s1485_s0] ss:$8 sps:$4 sm:$0xff] (!%p378_p10)   ;;  %s1052_s10 = sshll.u32 (!%p378_p10), %s1235_s14, 1  ;;  %v735_v2 = vlaneseq (!%p378_p10) }
  0x2a   : > { %381 = sbr.rel (%p378_p10) target bundleno = 385 (0x181), region = 66  ;;  %s1050_s4 = sshll.u32 (!%p378_p10), %s384_s30, 8  ;;  %707 = vmatprep.mubr.bf16.mxu0 (!%p378_p10), %v1188_v32 }
  0x2b   : > { %s1389_s7 = scalar_lea.vmem (!%p378_p10), [#allocation3], %s1050_s4  ;;  %p449_p11 = scmp.lt.s32.totalorder (!%p378_p10), %s1052_s10, 3  ;;  %v736_v3 = vshrl.u32 (!%p378_p10), %v735_v2, 7 }
  0x2c   : > { %v1138_v33 = vld [vmem:[%s1389_s7 + $0x4] ss:$8 sps:$4 sm:$0xff] (!%p378_p10)   ;;  %v1140_v34 = vld [vmem:[%s1389_s7] ss:$8 sps:$4 sm:$0xff] (!%p378_p10)   ;;  %v1141_v35 = vld [vmem:[%s1389_s7 + $0x14] ss:$8 sps:$4 sm:$0xff] (!%p378_p10)  }
  0x2d   : > { %675 = vmatprep.subr.bf16.mxu0 (!%p378_p10), %v1138_v33  ;;  %v1143_v36 = vld [vmem:[%s1389_s7 + $0x10] ss:$8 sps:$4 sm:$0xff] (!%p378_p10)   ;;  %v1144_v37 = vld [vmem:[%s1389_s7 + $0x24] ss:$8 sps:$4 sm:$0xff] (!%p378_p10)   ;;  %v1146_v38 = vld [vmem:[%s1389_s7 + $0x20] ss:$8 sps:$4 sm:$0xff] (!%p378_p10)  }
  0x2e   : > { %676 = vmatpush1.bf16.msra.mxu0 (!%p378_p10), %v1140_v34  ;;  %v1147_v39 = vld [vmem:[%s1389_s7 + $0x34] ss:$8 sps:$4 sm:$0xff] (!%p378_p10)   ;;  %v1149_v40 = vld [vmem:[%s1389_s7 + $0x30] ss:$8 sps:$4 sm:$0xff] (!%p378_p10)   ;;  %v1150_v41 = vld [vmem:[%s1389_s7 + $0x44] ss:$8 sps:$4 sm:$0xff] (!%p378_p10)  }
  0x2f   : > { %677 = vmatprep.subr.bf16.mxu0 (!%p378_p10), %v1141_v35  ;;  %v1152_v42 = vld [vmem:[%s1389_s7 + $0x40] ss:$8 sps:$4 sm:$0xff] (!%p378_p10)   ;;  %v1153_v43 = vld [vmem:[%s1389_s7 + $0x54] ss:$8 sps:$4 sm:$0xff] (!%p378_p10)   ;;  %v1155_v44 = vld [vmem:[%s1389_s7 + $0x50] ss:$8 sps:$4 sm:$0xff] (!%p378_p10)  }
  0x30   : > { %v1156_v45 = vld [vmem:[%s1389_s7 + $0x64] ss:$8 sps:$4 sm:$0xff] (!%p378_p10)   ;;  %v1158_v46 = vld [vmem:[%s1389_s7 + $0x60] ss:$8 sps:$4 sm:$0xff] (!%p378_p10)   ;;  %v1159_v47 = vld [vmem:[%s1389_s7 + $0x74] ss:$8 sps:$4 sm:$0xff] (!%p378_p10)  }
  0x31   : > { %v1161_v48 = vld [vmem:[%s1389_s7 + $0x70] ss:$8 sps:$4 sm:$0xff]   ;;  %v1162_v49 = vld [vmem:[%s1389_s7 + $0x84] ss:$8 sps:$4 sm:$0xff]   ;;  %v1164_v50 = vld [vmem:[%s1389_s7 + $0x80] ss:$8 sps:$4 sm:$0xff]  }
  0x32   : > { %678 = vmatpush1.bf16.msra.mxu0 %v1143_v36  ;;  %v1165_v51 = vld [vmem:[%s1389_s7 + $0x94] ss:$8 sps:$4 sm:$0xff]   ;;  %v1167_v52 = vld [vmem:[%s1389_s7 + $0x90] ss:$8 sps:$4 sm:$0xff]   ;;  %v1168_v53 = vld [vmem:[%s1389_s7 + $0xa4] ss:$8 sps:$4 sm:$0xff]  }
  0x33   : > { %679 = vmatprep.subr.bf16.mxu0 %v1144_v37  ;;  %v1170_v54 = vld [vmem:[%s1389_s7 + $0xa0] ss:$8 sps:$4 sm:$0xff]   ;;  %v1171_v55 = vld [vmem:[%s1389_s7 + $0xb4] ss:$8 sps:$4 sm:$0xff]   ;;  %v1173_v56 = vld [vmem:[%s1389_s7 + $0xb0] ss:$8 sps:$4 sm:$0xff]  }
  0x34   : > { %v1174_v57 = vld [vmem:[%s1389_s7 + $0xc4] ss:$8 sps:$4 sm:$0xff]   ;;  %v1176_v58 = vld [vmem:[%s1389_s7 + $0xc0] ss:$8 sps:$4 sm:$0xff]   ;;  %v1177_v59 = vld [vmem:[%s1389_s7 + $0xd4] ss:$8 sps:$4 sm:$0xff]  }
  0x35   : > { %v1179_v60 = vld [vmem:[%s1389_s7 + $0xd0] ss:$8 sps:$4 sm:$0xff]   ;;  %v1180_v61 = vld [vmem:[%s1389_s7 + $0xe4] ss:$8 sps:$4 sm:$0xff]   ;;  %v1182_v62 = vld [vmem:[%s1389_s7 + $0xe0] ss:$8 sps:$4 sm:$0xff]  }
  0x36   : > { %680 = vmatpush1.bf16.msra.mxu0 %v1146_v38  ;;  %v1183_v63 = vld [vmem:[%s1389_s7 + $0xf4] ss:$8 sps:$4 sm:$0xff]   ;;  %v1185_v0 = vld [vmem:[%s1389_s7 + $0xf0] ss:$8 sps:$4 sm:$0xff]   ;;  %s1497_s10 = smov (!%p449_p11, %s1052_s10), 3  ;;  %v737_v4 = vsub.s32 0, %v736_v3 }
  0x37   : > { %681 = vmatprep.subr.bf16.mxu0 %v1147_v39  ;;  %s453_s19 = scalar_lea.vmem %s1487_s2, %s1497_s10  ;;  %v741_v6 = vsub.s32 1, %v736_v3  ;;  %s1051_s20 = sshll.u32 %s384_s30, 4 }
  0x38   : > { %v733_v5 = vld [vmem:[%s453_s19] sm:$0x3]  ;;  %s427_s12 = scalar_lea.vmem [#allocation4], %s1051_s20  ;;  %s1097_s23 = sshll.u32 (%p1300_p6), %s1235_s14, 3 }
  0x39   : > { %v738_v7 = vrot.slane %v733_v5, %v737_v4  ;;  %v742_v8 = vrot.slane %v733_v5, %v741_v6  ;;  %s881_s26 = scalar_lea.vmem (%p1300_p6), %s1488_s3, %s1097_s23 }
  0x3a   : > { %682 = vmatpush1.bf16.msra.mxu0 %v1149_v40 }
  0x3b   : > { %683 = vmatprep.subr.bf16.mxu0 %v1150_v41 }
  0x3e   : > { %684 = vmatpush1.bf16.msra.mxu0 %v1152_v42 }
  0x3f   : > { %685 = vmatprep.subr.bf16.mxu0 %v1153_v43 }
  0x42   : > { %686 = vmatpush1.bf16.msra.mxu0 %v1155_v44 }
  0x43   : > { %687 = vmatprep.subr.bf16.mxu0 %v1156_v45 }
  0x46   : > { %688 = vmatpush1.bf16.msra.mxu0 %v1158_v46 }
  0x47   : > { %689 = vmatprep.subr.bf16.mxu0 %v1159_v47 }
  0x4a   : > { %690 = vmatpush1.bf16.msra.mxu0 %v1161_v48 }
  0x4b   : > { %691 = vmatprep.subr.bf16.mxu0 %v1162_v49 }
  0x4e   : > { %692 = vmatpush1.bf16.msra.mxu0 %v1164_v50 }
  0x4f   : > { %693 = vmatprep.subr.bf16.mxu0 %v1165_v51 }
  0x52   : > { %694 = vmatpush1.bf16.msra.mxu0 %v1167_v52 }
  0x53   : > { %695 = vmatprep.subr.bf16.mxu0 %v1168_v53 }
  0x56   : > { %696 = vmatpush1.bf16.msra.mxu0 %v1170_v54 }
  0x57   : > { %697 = vmatprep.subr.bf16.mxu0 %v1171_v55 }
  0x5a   : > { %698 = vmatpush1.bf16.msra.mxu0 %v1173_v56 }
  0x5b   : > { %699 = vmatprep.subr.bf16.mxu0 %v1174_v57 }
  0x5e   : > { %700 = vmatpush1.bf16.msra.mxu0 %v1176_v58 }
  0x5f   : > { %701 = vmatprep.subr.bf16.mxu0 %v1177_v59 }
  0x62   : > { %702 = vmatpush1.bf16.msra.mxu0 %v1179_v60 }
  0x63   : > { %703 = vmatprep.subr.bf16.mxu0 %v1180_v61 }
  0x66   : > { %704 = vmatpush1.bf16.msra.mxu0 %v1182_v62 }
  0x67   : > { %705 = vmatprep.subr.bf16.mxu0 %v1183_v63 }
  0x6a   : > { %706 = vmatpush1.bf16.msra.mxu0 %v1185_v0 }
  0x6d   : > { %708 = vmatmul.mubr.bf16.vlgmr.msra.gmra.mrb[0].mxu0 %v1186_v1 }
 0x140   : > { %v709_v9 = vpop.f32.mrb[0].mxu0 }
 0x141   : > { %v1430_v10 = vadd.f32 %v738_v7, %v709_v9  ;;  %v711_v11 = vpop.f32.mrb[1].mxu0 }
 0x142   : > { %v1432_v12 = vadd.f32 %v742_v8, %v711_v11  ;;  %v713_v13 = vpop.f32.mrb[2].mxu0 }
 0x143   : > { %v1435_v14 = vmul.f32 0.70710677, %v1430_v10  ;;  %v1437_v15 = vadd.f32 %v738_v7, %v713_v13  ;;  %v715_v16 = vpop.f32.mrb[3].mxu0 }
 0x144   : > { %v1440_v17 = vmul.f32 0.70710677, %v1432_v12  ;;  %v1442_v18 = vadd.f32 %v742_v8, %v715_v16 }
 0x145   : > { %v753_v19 = vand.u32 2147483647, %v1435_v14  ;;  %v1446_v20 = vmul.f32 0.70710677, %v1437_v15  ;;  %vm829_vm0 = vcmp.lt.f32.partialorder %v1435_v14, 0.0 }
 0x146   : > { %v754_v21 = vand.u32 2147483647, %v1440_v17  ;;  %v1450_v22 = vmul.f32 0.70710677, %v1442_v18  ;;  %vm830_vm1 = vcmp.lt.f32.partialorder %v1440_v17, 0.0  ;;  %v843_v17 = vmul.f32 0.5, %v1437_v15 }
 0x147   : > { %v757_v23 = vmul.f32 0.3275911, %v753_v19  ;;  %v755_v24 = vand.u32 2147483647, %v1446_v20  ;;  %v805_v33 = vsub.f32 0.0, %v753_v19  ;;  %vm831_vm2 = vcmp.lt.f32.partialorder %v1446_v20, 0.0 }
 0x148   : > { %v758_v25 = vmul.f32 0.3275911, %v754_v21  ;;  %v756_v26 = vand.u32 2147483647, %v1450_v22  ;;  %v806_v34 = vsub.f32 0.0, %v754_v21  ;;  %vm832_vm3 = vcmp.lt.f32.partialorder %v1450_v22, 0.0 }
 0x149   : > { %v761_v27 = vadd.f32 1.0, %v757_v23  ;;  %v759_v28 = vmul.f32 0.3275911, %v755_v24  ;;  %v809_v36 = vmul.f32 %v805_v33, %v753_v19  ;;  %v807_v37 = vsub.f32 0.0, %v755_v24 }
 0x14a   : > { %v762_v29 = vadd.f32 1.0, %v758_v25  ;;  %v760_v30 = vmul.f32 0.3275911, %v756_v26  ;;  %v810_v40 = vmul.f32 %v806_v34, %v754_v21  ;;  %v808_v42 = vsub.f32 0.0, %v756_v26 }
 0x14b   : > { %1189 = vrcp.f32 %v761_v27  ;;  %v763_v31 = vadd.f32 1.0, %v759_v28  ;;  %v813_v45 = vmul.f32 1.442695, %v809_v36  ;;  %v811_v47 = vmul.f32 %v807_v37, %v755_v24 }
 0x14c   : > { %1191 = vrcp.f32 %v762_v29  ;;  %v764_v32 = vadd.f32 1.0, %v760_v30  ;;  %v815_v49 = vmul.f32 1.442695, %v810_v40  ;;  %v812_v53 = vmul.f32 %v808_v42, %v756_v26 }
 0x14d   : > { %1193 = vrcp.f32 %v763_v31  ;;  %v817_v58 = vmul.f32 1.442695, %v811_v47 }
 0x14e   : > { %1195 = vrcp.f32 %v764_v32  ;;  %v819_v63 = vmul.f32 1.442695, %v812_v53 }
 0x14f   : > { %1197 = vpow2.f32 %v813_v45 }
 0x150   : > { %1199 = vpow2.f32 %v815_v49 }
 0x151   : > { %1201 = vpow2.f32 %v817_v58 }
 0x152   : > { %1203 = vpow2.f32 %v819_v63 }
 0x155   : > { %v1190_v35 = vpop.eup %1189 }
 0x156   : > { %v1192_v38 = vpop.eup %1191  ;;  %v769_v39 = vmul.f32 1.0614054, %v1190_v35 }
 0x157   : > { %v770_v41 = vmul.f32 1.0614054, %v1192_v38  ;;  %v1194_v44 = vpop.eup %1193 }
 0x158   : > { %v773_v43 = vadd.f32 -1.4531521, %v769_v39  ;;  %v771_v50 = vmul.f32 1.0614054, %v1194_v44  ;;  %v1196_v51 = vpop.eup %1195 }
 0x159   : > { %v774_v46 = vadd.f32 -1.4531521, %v770_v41  ;;  %v772_v56 = vmul.f32 1.0614054, %v1196_v51  ;;  %v1198_v23 = vpop.eup %1197 }
 0x15a   : > { %v777_v48 = vmul.f32 %v1190_v35, %v773_v43  ;;  %v775_v55 = vadd.f32 -1.4531521, %v771_v50  ;;  %v1200_v25 = vpop.eup %1199  ;;  %v841_v43 = vmul.f32 0.5, %v1430_v10 }
 0x15b   : > { %v778_v52 = vmul.f32 %v1192_v38, %v774_v46  ;;  %v776_v61 = vadd.f32 -1.4531521, %v772_v56  ;;  %v1202_v33 = vpop.eup %1201  ;;  %v842_v46 = vmul.f32 0.5, %v1432_v12  ;;  %v844_v56 = vmul.f32 0.5, %v1442_v18 }
 0x15c   : > { %v781_v54 = vadd.f32 1.4214138, %v777_v48  ;;  %v779_v60 = vmul.f32 %v1194_v44, %v775_v55  ;;  %v1204_v40 = vpop.eup %1203 }
 0x15d   : > { %v782_v57 = vadd.f32 1.4214138, %v778_v52  ;;  %v780_v2 = vmul.f32 %v1196_v51, %v776_v61 }
 0x15e   : > { %v785_v59 = vmul.f32 %v1190_v35, %v781_v54  ;;  %v783_v1 = vadd.f32 1.4214138, %v779_v60 }
 0x15f   : > { %v786_v62 = vmul.f32 %v1192_v38, %v782_v57  ;;  %v784_v6 = vadd.f32 1.4214138, %v780_v2 }
 0x160   : > { %v789_v0 = vadd.f32 -0.28449672, %v785_v59  ;;  %v787_v5 = vmul.f32 %v1194_v44, %v783_v1 }
 0x161   : > { %v790_v3 = vadd.f32 -0.28449672, %v786_v62  ;;  %v788_v11 = vmul.f32 %v1196_v51, %v784_v6 }
 0x162   : > { %v793_v4 = vmul.f32 %v1190_v35, %v789_v0  ;;  %v791_v9 = vadd.f32 -0.28449672, %v787_v5 }
 0x163   : > { %v794_v7 = vmul.f32 %v1192_v38, %v790_v3  ;;  %v792_v21 = vadd.f32 -0.28449672, %v788_v11 }
 0x164   : > { %v797_v8 = vadd.f32 0.2548296, %v793_v4  ;;  %v795_v19 = vmul.f32 %v1194_v44, %v791_v9 }
 0x165   : > { %v798_v13 = vadd.f32 0.2548296, %v794_v7  ;;  %v796_v28 = vmul.f32 %v1196_v51, %v792_v21 }
 0x166   : > { %v801_v16 = vmul.f32 %v1190_v35, %v797_v8  ;;  %v799_v27 = vadd.f32 0.2548296, %v795_v19 }
 0x167   : > { %v802_v24 = vmul.f32 %v1192_v38, %v798_v13  ;;  %v800_v32 = vadd.f32 0.2548296, %v796_v28 }
 0x168   : > { %v821_v26 = vmul.f32 %v1198_v23, %v801_v16  ;;  %v803_v31 = vmul.f32 %v1194_v44, %v799_v27 }
 0x169   : > { %v822_v29 = vmul.f32 %v1200_v25, %v802_v24  ;;  %v804_v39 = vmul.f32 %v1196_v51, %v800_v32 }
 0x16a   : > { %v825_v30 = vsub.f32 1.0, %v821_v26  ;;  %v823_v37 = vmul.f32 %v1202_v33, %v803_v31 }
 0x16b   : > { %v826_v34 = vsub.f32 1.0, %v822_v29  ;;  %v824_v42 = vmul.f32 %v1204_v40, %v804_v39 }
 0x16c   : > { %v833_v36 = vsub.f32 0.0, %v825_v30  ;;  %v827_v38 = vsub.f32 1.0, %v823_v37 }
 0x16d   : > { %v834_v35 = vsub.f32 0.0, %v826_v34  ;;  %v828_v49 = vsub.f32 1.0, %v824_v42 }
 0x16e   : > { %v837_v41 = vsel %vm829_vm0, %v833_v36, %v825_v30  ;;  %v835_v48 = vsub.f32 0.0, %v827_v38 }
 0x16f   : > { %v845_v45 = vadd.f32 1.0, %v837_v41  ;;  %v838_v44 = vsel %vm830_vm1, %v834_v35, %v826_v34  ;;  %v836_v52 = vsub.f32 0.0, %v828_v49 }
 0x170   : > { %v846_v47 = vadd.f32 1.0, %v838_v44  ;;  %v839_v51 = vsel %vm831_vm2, %v835_v48, %v827_v38 }
 0x171   : > { %v849_v50 = vmul.f32 %v845_v45, %v841_v43  ;;  %v847_v53 = vadd.f32 1.0, %v839_v51  ;;  %v840_v54 = vsel %vm832_vm3, %v836_v52, %v828_v49 }
 0x172   : > { %v850_v14 = vmul.f32 %v846_v47, %v842_v46  ;;  %v848_v12 = vadd.f32 1.0, %v840_v54  ;;  %873 = sbr.rel (!%p1300_p6) target bundleno = 385 (0x181), region = 82 }
 0x173   : > { %v851_v55 = vmul.f32 %v847_v53, %v843_v17 }
 0x174   : > { %v1095_v10 = vpack.c.bf16 %v850_v14, %v849_v50  ;;  %v852_v57 = vmul.f32 %v848_v12, %v844_v56 }
 0x176   : > { %865 = vst [vmem:[%s427_s12] sm:$0xff] %v1095_v10  ;;  %v1096_v58 = vpack.c.bf16 %v852_v57, %v851_v55 }
 0x178   : > { %866 = vst [vmem:[%s427_s12 + $0x8] sm:$0xff] %v1096_v58 }
 0x17d   : > { %v911_v15 = vld [vmem:[%s427_s12] sm:$0xff] }
 0x17e   : > { %912 = vst [vmem:[%s881_s26] sm:$0xff] %v911_v15 }
 0x17f   : > { %v913_v20 = vld [vmem:[%s427_s12 + $0x8] sm:$0xff] }
 0x180   : > { %914 = vst [vmem:[%s881_s26 + $0x10] sm:$0xff] %v913_v20 }
 0x181 PF: > { %s13_s16 = sadd.s32 1, %s1243_s16   ;;  %s1490_s12 = smov %s1231_s13 }
 0x182   : > { %p10_p12 = scmp.ge.s32.totalorder %s13_s16, 4   ;;  %s1491_s13 = smov %s1305_s22 }
 0x183   : > { %s1492_s14 = smov %s1239_s15  ;;  %s1493_s15 = smov %s1495_s17 }
 0x184   :  { %12 = sbr.rel (!%p10_p12) target bundleno = 3 (0x3), region = 157 }

// kernel: forward.90
= control target key start
LH: loop header
LB: loop body
LE: loop exit
PB: predicated region body
PF: predicated region fallthrough
CT: control target
= control target key end

     0   :  { %s1145_s12 = smov 0   ;;  %s1147_s13 = smov 0   ;;  %s1333_s0 = inlined_call_operand.vmem [shape: bf16[1,16,256], index: 0, kind: input, shape index: {}]   ;;  %s1334_s1 = inlined_call_operand.vmem [shape: bf16[1,256,512], index: 1, kind: input, shape index: {}]   ;;  %s1335_s2 = inlined_call_operand.vmem [shape: f32[1,1,512], index: 2, kind: input, shape index: {}]   ;;  %s1336_s3 = inlined_call_operand.vmem [shape: bf16[16,512], index: 3, kind: output, shape index: {}]  }
   0x1   :  { %s1149_s14 = smov 0   ;;  %s1151_s15 = smov 0  }
   0x2   :  { %s1153_s16 = smov 0  }
   0x3 LB: > { %s31_s17 = sadd.s32 1, %s1119_s15  ;;  %s937_s18 = sadd.s32 4294967295, %s1123_s16   ;;  %s1123_s16 = sphi %s1153_s16, %s13_s16   ;;  %s1119_s15 = sphi %s1151_s15, %s1341_s15   ;;  %s1115_s14 = sphi %s1149_s14, %s1340_s14   ;;  %s1111_s13 = sphi %s1147_s13, %s1339_s13   ;;  %s1107_s12 = sphi %s1145_s12, %s1338_s12  }
   0x4   : > { %p33_p0 = scmp.ge.s32.totalorder %s31_s17, 2  ;;  %p87_p1 = scmp.ne.s32.totalorder %s1111_s13, %s1107_s12 }
   0x5   : > { %p88_p2 = scmp.eq.s32.totalorder %s1123_s16, 0  ;;  %p151_p4 = scmp.eq.s32.totalorder %s937_s18, 1 }
   0x6   : > { %s1343_s17 = smov (%p33_p0, %s31_s17), 0  ;;  %s80_s20 = sadd.s32 1, %s1111_s13 }
   0x7   : > { %p89_p3 = por %p88_p2, %p87_p1  ;;  %s76_s19 = ssub.s32 %s1119_s15, %s1343_s17 }
   0x8   : > { %p78_p5 = scmp.eq.s32.totalorder %s76_s19, 0  ;;  %p1180_p6 = por %p151_p4, %p87_p1 }
   0x9   : > { %p941_p7 = scmp.ge.s32.totalorder %s1123_s16, 2 }
   0xa   : > { %s1185_s22 = scalar_select %p78_p5, %s1111_s13, %s80_s20  }
   0xb   : > { %192 = sbr.rel (%p941_p7) target bundleno = 38 (0x26), region = 20 }
  0x12   : > { %195 = sbr.rel (!%p89_p3) target bundleno = 38 (0x26), region = 24  ;;  %s197_s23 = sand.u32 (%p89_p3), 1, %s1111_s13  }
  0x13   : > { %s990_s24 = sshll.u32 (%p89_p3), %s1119_s15, 3  ;;  %s942_s25 = sshll.u32 (%p89_p3), %s197_s23, 8 }
  0x14   : > { %s1193_s28 = scalar_lea.vmem (%p89_p3), %s1334_s1, %s990_s24  ;;  %s1198_s29 = scalar_lea.vmem (%p89_p3), [#allocation3], %s942_s25 }
  0x15   : > { %v297_v0 = vld [vmem:[%s1193_s28] sm:$0xff] (%p89_p3)  ;;  %v299_v1 = vld [vmem:[%s1193_s28 + $0x10] sm:$0xff] (%p89_p3) }
  0x16   : > { %v301_v2 = vld [vmem:[%s1193_s28 + $0x20] sm:$0xff] (%p89_p3)  ;;  %298 = vst [vmem:[%s1198_s29] sm:$0xff] (%p89_p3), %v297_v0  ;;  %300 = vst [vmem:[%s1198_s29 + $0x8] sm:$0xff] (%p89_p3), %v299_v1  ;;  %v303_v3 = vld [vmem:[%s1193_s28 + $0x30] sm:$0xff] (%p89_p3) }
  0x17   : > { %302 = vst [vmem:[%s1198_s29 + $0x10] sm:$0xff] (%p89_p3), %v301_v2  ;;  %v305_v4 = vld [vmem:[%s1193_s28 + $0x40] sm:$0xff] (%p89_p3)  ;;  %v307_v5 = vld [vmem:[%s1193_s28 + $0x50] sm:$0xff] (%p89_p3)  ;;  %304 = vst [vmem:[%s1198_s29 + $0x18] sm:$0xff] (%p89_p3), %v303_v3 }
  0x18   : > { %306 = vst [vmem:[%s1198_s29 + $0x20] sm:$0xff] (%p89_p3), %v305_v4  ;;  %308 = vst [vmem:[%s1198_s29 + $0x28] sm:$0xff] (%p89_p3), %v307_v5  ;;  %v309_v6 = vld [vmem:[%s1193_s28 + $0x60] sm:$0xff] (%p89_p3)  ;;  %v311_v7 = vld [vmem:[%s1193_s28 + $0x70] sm:$0xff] (%p89_p3) }
  0x19   : > { %v313_v8 = vld [vmem:[%s1193_s28 + $0x80] sm:$0xff]  ;;  %310 = vst [vmem:[%s1198_s29 + $0x30] sm:$0xff] %v309_v6  ;;  %312 = vst [vmem:[%s1198_s29 + $0x38] sm:$0xff] %v311_v7  ;;  %v315_v9 = vld [vmem:[%s1193_s28 + $0x90] sm:$0xff] }
  0x1a   : > { %314 = vst [vmem:[%s1198_s29 + $0x40] sm:$0xff] %v313_v8  ;;  %v317_v10 = vld [vmem:[%s1193_s28 + $0xa0] sm:$0xff]  ;;  %v319_v11 = vld [vmem:[%s1193_s28 + $0xb0] sm:$0xff]  ;;  %316 = vst [vmem:[%s1198_s29 + $0x48] sm:$0xff] %v315_v9 }
  0x1b   : > { %318 = vst [vmem:[%s1198_s29 + $0x50] sm:$0xff] %v317_v10  ;;  %320 = vst [vmem:[%s1198_s29 + $0x58] sm:$0xff] %v319_v11  ;;  %v321_v12 = vld [vmem:[%s1193_s28 + $0xc0] sm:$0xff]  ;;  %v323_v13 = vld [vmem:[%s1193_s28 + $0xd0] sm:$0xff] }
  0x1c   : > { %v325_v14 = vld [vmem:[%s1193_s28 + $0xe0] sm:$0xff]  ;;  %322 = vst [vmem:[%s1198_s29 + $0x60] sm:$0xff] %v321_v12  ;;  %324 = vst [vmem:[%s1198_s29 + $0x68] sm:$0xff] %v323_v13  ;;  %v327_v15 = vld [vmem:[%s1193_s28 + $0xf0] sm:$0xff] }
  0x1d   : > { %326 = vst [vmem:[%s1198_s29 + $0x70] sm:$0xff] %v325_v14  ;;  %v329_v16 = vld [vmem:[%s1193_s28 + $0x100] sm:$0xff]  ;;  %v331_v17 = vld [vmem:[%s1193_s28 + $0x110] sm:$0xff]  ;;  %328 = vst [vmem:[%s1198_s29 + $0x78] sm:$0xff] %v327_v15 }
  0x1e   : > { %330 = vst [vmem:[%s1198_s29 + $0x80] sm:$0xff] %v329_v16  ;;  %332 = vst [vmem:[%s1198_s29 + $0x88] sm:$0xff] %v331_v17  ;;  %v333_v18 = vld [vmem:[%s1193_s28 + $0x120] sm:$0xff]  ;;  %v335_v19 = vld [vmem:[%s1193_s28 + $0x130] sm:$0xff] }
  0x1f   : > { %v337_v20 = vld [vmem:[%s1193_s28 + $0x140] sm:$0xff]  ;;  %334 = vst [vmem:[%s1198_s29 + $0x90] sm:$0xff] %v333_v18  ;;  %336 = vst [vmem:[%s1198_s29 + $0x98] sm:$0xff] %v335_v19  ;;  %v339_v21 = vld [vmem:[%s1193_s28 + $0x150] sm:$0xff] }
  0x20   : > { %338 = vst [vmem:[%s1198_s29 + $0xa0] sm:$0xff] %v337_v20  ;;  %v341_v22 = vld [vmem:[%s1193_s28 + $0x160] sm:$0xff]  ;;  %v343_v23 = vld [vmem:[%s1193_s28 + $0x170] sm:$0xff]  ;;  %340 = vst [vmem:[%s1198_s29 + $0xa8] sm:$0xff] %v339_v21 }
  0x21   : > { %342 = vst [vmem:[%s1198_s29 + $0xb0] sm:$0xff] %v341_v22  ;;  %344 = vst [vmem:[%s1198_s29 + $0xb8] sm:$0xff] %v343_v23  ;;  %v345_v24 = vld [vmem:[%s1193_s28 + $0x180] sm:$0xff]  ;;  %v347_v25 = vld [vmem:[%s1193_s28 + $0x190] sm:$0xff] }
  0x22   : > { %v349_v26 = vld [vmem:[%s1193_s28 + $0x1a0] sm:$0xff]  ;;  %346 = vst [vmem:[%s1198_s29 + $0xc0] sm:$0xff] %v345_v24  ;;  %348 = vst [vmem:[%s1198_s29 + $0xc8] sm:$0xff] %v347_v25  ;;  %v351_v27 = vld [vmem:[%s1193_s28 + $0x1b0] sm:$0xff] }
  0x23   : > { %350 = vst [vmem:[%s1198_s29 + $0xd0] sm:$0xff] %v349_v26  ;;  %v353_v28 = vld [vmem:[%s1193_s28 + $0x1c0] sm:$0xff]  ;;  %v355_v29 = vld [vmem:[%s1193_s28 + $0x1d0] sm:$0xff]  ;;  %352 = vst [vmem:[%s1198_s29 + $0xd8] sm:$0xff] %v351_v27 }
  0x24   : > { %354 = vst [vmem:[%s1198_s29 + $0xe0] sm:$0xff] %v353_v28  ;;  %356 = vst [vmem:[%s1198_s29 + $0xe8] sm:$0xff] %v355_v29  ;;  %v357_v30 = vld [vmem:[%s1193_s28 + $0x1e0] sm:$0xff]  ;;  %v359_v31 = vld [vmem:[%s1193_s28 + $0x1f0] sm:$0xff] }
  0x25   : > { %358 = vst [vmem:[%s1198_s29 + $0xf0] sm:$0xff] %v357_v30  ;;  %360 = vst [vmem:[%s1198_s29 + $0xf8] sm:$0xff] %v359_v31 }
  0x26 PF: > { %p945_p8 = scmp.ge.s32.totalorder %s1123_s16, 1  ;;  %p377_p9 = scmp.lt.s32.totalorder %s1123_s16, 3 }
  0x28   : > { %p378_p10 = pnand %p945_p8, %p377_p9 }
  0x29   : > { %s384_s30 = sand.u32 (!%p378_p10), 1, %s1107_s12   ;;  %v1084_v32 = vld [vmem:[%s1333_s0 + $0x4] ss:$8 sps:$4 sm:$0xff] (!%p378_p10)   ;;  %v1082_v1 = vld [vmem:[%s1333_s0] ss:$8 sps:$4 sm:$0xff] (!%p378_p10)   ;;  %s948_s10 = sshll.u32 (!%p378_p10), %s1115_s14, 1  ;;  %v735_v2 = vlaneseq (!%p378_p10) }
  0x2a   : > { %381 = sbr.rel (%p378_p10) target bundleno = 337 (0x151), region = 66  ;;  %s946_s4 = sshll.u32 (!%p378_p10), %s384_s30, 8  ;;  %707 = vmatprep.mubr.bf16.mxu0 (!%p378_p10), %v1084_v32 }
  0x2b   : > { %s1269_s7 = scalar_lea.vmem (!%p378_p10), [#allocation3], %s946_s4  ;;  %p449_p11 = scmp.lt.s32.totalorder (!%p378_p10), %s948_s10, 3  ;;  %v736_v3 = vshrl.u32 (!%p378_p10), %v735_v2, 7 }
  0x2c   : > { %v1034_v33 = vld [vmem:[%s1269_s7 + $0x4] ss:$8 sps:$4 sm:$0xff] (!%p378_p10)   ;;  %v1036_v34 = vld [vmem:[%s1269_s7] ss:$8 sps:$4 sm:$0xff] (!%p378_p10)   ;;  %v1037_v35 = vld [vmem:[%s1269_s7 + $0x14] ss:$8 sps:$4 sm:$0xff] (!%p378_p10)  }
  0x2d   : > { %675 = vmatprep.subr.bf16.mxu0 (!%p378_p10), %v1034_v33  ;;  %v1039_v36 = vld [vmem:[%s1269_s7 + $0x10] ss:$8 sps:$4 sm:$0xff] (!%p378_p10)   ;;  %v1040_v37 = vld [vmem:[%s1269_s7 + $0x24] ss:$8 sps:$4 sm:$0xff] (!%p378_p10)   ;;  %v1042_v38 = vld [vmem:[%s1269_s7 + $0x20] ss:$8 sps:$4 sm:$0xff] (!%p378_p10)  }
  0x2e   : > { %676 = vmatpush1.bf16.msra.mxu0 (!%p378_p10), %v1036_v34  ;;  %v1043_v39 = vld [vmem:[%s1269_s7 + $0x34] ss:$8 sps:$4 sm:$0xff] (!%p378_p10)   ;;  %v1045_v40 = vld [vmem:[%s1269_s7 + $0x30] ss:$8 sps:$4 sm:$0xff] (!%p378_p10)   ;;  %v1046_v41 = vld [vmem:[%s1269_s7 + $0x44] ss:$8 sps:$4 sm:$0xff] (!%p378_p10)  }
  0x2f   : > { %677 = vmatprep.subr.bf16.mxu0 (!%p378_p10), %v1037_v35  ;;  %v1048_v42 = vld [vmem:[%s1269_s7 + $0x40] ss:$8 sps:$4 sm:$0xff] (!%p378_p10)   ;;  %v1049_v43 = vld [vmem:[%s1269_s7 + $0x54] ss:$8 sps:$4 sm:$0xff] (!%p378_p10)   ;;  %v1051_v44 = vld [vmem:[%s1269_s7 + $0x50] ss:$8 sps:$4 sm:$0xff] (!%p378_p10)  }
  0x30   : > { %v1052_v45 = vld [vmem:[%s1269_s7 + $0x64] ss:$8 sps:$4 sm:$0xff] (!%p378_p10)   ;;  %v1054_v46 = vld [vmem:[%s1269_s7 + $0x60] ss:$8 sps:$4 sm:$0xff] (!%p378_p10)   ;;  %v1055_v47 = vld [vmem:[%s1269_s7 + $0x74] ss:$8 sps:$4 sm:$0xff] (!%p378_p10)  }
  0x31   : > { %v1057_v48 = vld [vmem:[%s1269_s7 + $0x70] ss:$8 sps:$4 sm:$0xff]   ;;  %v1058_v49 = vld [vmem:[%s1269_s7 + $0x84] ss:$8 sps:$4 sm:$0xff]   ;;  %v1060_v50 = vld [vmem:[%s1269_s7 + $0x80] ss:$8 sps:$4 sm:$0xff]  }
  0x32   : > { %678 = vmatpush1.bf16.msra.mxu0 %v1039_v36  ;;  %v1061_v51 = vld [vmem:[%s1269_s7 + $0x94] ss:$8 sps:$4 sm:$0xff]   ;;  %v1063_v52 = vld [vmem:[%s1269_s7 + $0x90] ss:$8 sps:$4 sm:$0xff]   ;;  %v1064_v53 = vld [vmem:[%s1269_s7 + $0xa4] ss:$8 sps:$4 sm:$0xff]  }
  0x33   : > { %679 = vmatprep.subr.bf16.mxu0 %v1040_v37  ;;  %v1066_v54 = vld [vmem:[%s1269_s7 + $0xa0] ss:$8 sps:$4 sm:$0xff]   ;;  %v1067_v55 = vld [vmem:[%s1269_s7 + $0xb4] ss:$8 sps:$4 sm:$0xff]   ;;  %v1069_v56 = vld [vmem:[%s1269_s7 + $0xb0] ss:$8 sps:$4 sm:$0xff]  }
  0x34   : > { %v1070_v57 = vld [vmem:[%s1269_s7 + $0xc4] ss:$8 sps:$4 sm:$0xff]   ;;  %v1072_v58 = vld [vmem:[%s1269_s7 + $0xc0] ss:$8 sps:$4 sm:$0xff]   ;;  %v1073_v59 = vld [vmem:[%s1269_s7 + $0xd4] ss:$8 sps:$4 sm:$0xff]  }
  0x35   : > { %v1075_v60 = vld [vmem:[%s1269_s7 + $0xd0] ss:$8 sps:$4 sm:$0xff]   ;;  %v1076_v61 = vld [vmem:[%s1269_s7 + $0xe4] ss:$8 sps:$4 sm:$0xff]   ;;  %v1078_v62 = vld [vmem:[%s1269_s7 + $0xe0] ss:$8 sps:$4 sm:$0xff]  }
  0x36   : > { %680 = vmatpush1.bf16.msra.mxu0 %v1042_v38  ;;  %v1079_v63 = vld [vmem:[%s1269_s7 + $0xf4] ss:$8 sps:$4 sm:$0xff]   ;;  %v1081_v0 = vld [vmem:[%s1269_s7 + $0xf0] ss:$8 sps:$4 sm:$0xff]   ;;  %s1345_s10 = smov (!%p449_p11, %s948_s10), 3  ;;  %v737_v4 = vsub.s32 0, %v736_v3 }
  0x37   : > { %681 = vmatprep.subr.bf16.mxu0 %v1043_v39  ;;  %s453_s19 = scalar_lea.vmem %s1335_s2, %s1345_s10  ;;  %v741_v6 = vsub.s32 1, %v736_v3  ;;  %s947_s20 = sshll.u32 %s384_s30, 4 }
  0x38   : > { %v733_v5 = vld [vmem:[%s453_s19] sm:$0x3]  ;;  %s427_s23 = scalar_lea.vmem [#allocation4], %s947_s20  ;;  %s993_s24 = sshll.u32 (%p1180_p6), %s1115_s14, 3 }
  0x39   : > { %v738_v7 = vrot.slane %v733_v5, %v737_v4  ;;  %v742_v8 = vrot.slane %v733_v5, %v741_v6  ;;  %s777_s26 = scalar_lea.vmem (%p1180_p6), %s1336_s3, %s993_s24 }
  0x3a   : > { %682 = vmatpush1.bf16.msra.mxu0 %v1045_v40 }
  0x3b   : > { %683 = vmatprep.subr.bf16.mxu0 %v1046_v41 }
  0x3e   : > { %684 = vmatpush1.bf16.msra.mxu0 %v1048_v42 }
  0x3f   : > { %685 = vmatprep.subr.bf16.mxu0 %v1049_v43 }
  0x42   : > { %686 = vmatpush1.bf16.msra.mxu0 %v1051_v44 }
  0x43   : > { %687 = vmatprep.subr.bf16.mxu0 %v1052_v45 }
  0x46   : > { %688 = vmatpush1.bf16.msra.mxu0 %v1054_v46 }
  0x47   : > { %689 = vmatprep.subr.bf16.mxu0 %v1055_v47 }
  0x4a   : > { %690 = vmatpush1.bf16.msra.mxu0 %v1057_v48 }
  0x4b   : > { %691 = vmatprep.subr.bf16.mxu0 %v1058_v49 }
  0x4e   : > { %692 = vmatpush1.bf16.msra.mxu0 %v1060_v50 }
  0x4f   : > { %693 = vmatprep.subr.bf16.mxu0 %v1061_v51 }
  0x52   : > { %694 = vmatpush1.bf16.msra.mxu0 %v1063_v52 }
  0x53   : > { %695 = vmatprep.subr.bf16.mxu0 %v1064_v53 }
  0x56   : > { %696 = vmatpush1.bf16.msra.mxu0 %v1066_v54 }
  0x57   : > { %697 = vmatprep.subr.bf16.mxu0 %v1067_v55 }
  0x5a   : > { %698 = vmatpush1.bf16.msra.mxu0 %v1069_v56 }
  0x5b   : > { %699 = vmatprep.subr.bf16.mxu0 %v1070_v57 }
  0x5e   : > { %700 = vmatpush1.bf16.msra.mxu0 %v1072_v58 }
  0x5f   : > { %701 = vmatprep.subr.bf16.mxu0 %v1073_v59 }
  0x62   : > { %702 = vmatpush1.bf16.msra.mxu0 %v1075_v60 }
  0x63   : > { %703 = vmatprep.subr.bf16.mxu0 %v1076_v61 }
  0x66   : > { %704 = vmatpush1.bf16.msra.mxu0 %v1078_v62 }
  0x67   : > { %705 = vmatprep.subr.bf16.mxu0 %v1079_v63 }
  0x6a   : > { %706 = vmatpush1.bf16.msra.mxu0 %v1081_v0 }
  0x6d   : > { %708 = vmatmul.mubr.bf16.vlgmr.msra.gmra.mrb[0].mxu0 %v1082_v1 }
 0x140   : > { %v709_v9 = vpop.f32.mrb[0].mxu0 }
 0x141   : > { %v745_v10 = vadd.f32 %v738_v7, %v709_v9  ;;  %v711_v11 = vpop.f32.mrb[1].mxu0 }
 0x142   : > { %v746_v12 = vadd.f32 %v742_v8, %v711_v11  ;;  %v713_v13 = vpop.f32.mrb[2].mxu0  ;;  %769 = sbr.rel (!%p1180_p6) target bundleno = 337 (0x151), region = 82 }
 0x143   : > { %v747_v14 = vadd.f32 %v738_v7, %v713_v13  ;;  %v715_v15 = vpop.f32.mrb[3].mxu0 }
 0x144   : > { %v991_v16 = vpack.c.bf16 %v746_v12, %v745_v10  ;;  %v748_v17 = vadd.f32 %v742_v8, %v715_v15 }
 0x146   : > { %761 = vst [vmem:[%s427_s23] sm:$0xff] %v991_v16  ;;  %v992_v18 = vpack.c.bf16 %v748_v17, %v747_v14 }
 0x148   : > { %762 = vst [vmem:[%s427_s23 + $0x8] sm:$0xff] %v992_v18 }
 0x14d   : > { %v807_v19 = vld [vmem:[%s427_s23] sm:$0xff] }
 0x14e   : > { %808 = vst [vmem:[%s777_s26] sm:$0xff] %v807_v19 }
 0x14f   : > { %v809_v20 = vld [vmem:[%s427_s23 + $0x8] sm:$0xff] }
 0x150   : > { %810 = vst [vmem:[%s777_s26 + $0x10] sm:$0xff] %v809_v20 }
 0x151 PF: > { %s13_s16 = sadd.s32 1, %s1123_s16   ;;  %s1338_s12 = smov %s1111_s13 }
 0x152   : > { %p10_p12 = scmp.ge.s32.totalorder %s13_s16, 4   ;;  %s1339_s13 = smov %s1185_s22 }
 0x153   : > { %s1340_s14 = smov %s1119_s15  ;;  %s1341_s15 = smov %s1343_s17 }
 0x154   :  { %12 = sbr.rel (!%p10_p12) target bundleno = 3 (0x3), region = 157 }

// kernel: forward.92
= control target key start
LH: loop header
LB: loop body
LE: loop exit
PB: predicated region body
PF: predicated region fallthrough
CT: control target
= control target key end

     0   :  { %s1818_s12 = smov 0   ;;  %s1820_s13 = smov 0   ;;  %s1984_s0 = inlined_call_operand.vmem [shape: bf16[4,16,1152], index: 0, kind: input, shape index: {}]   ;;  %s1985_s1 = inlined_call_operand.vmem [shape: bf16[4,1152,128], index: 1, kind: input, shape index: {}]   ;;  %s1986_s2 = inlined_call_operand.vmem [shape: f32[4,1,128], index: 2, kind: input, shape index: {}]   ;;  %s1987_s3 = inlined_call_operand.vmem [shape: bf16[16,512], index: 3, kind: output, shape index: {}]  }
   0x1   :  { %s1822_s14 = smov 0   ;;  %s1824_s15 = smov 0  }
   0x2   :  { %s1826_s16 = smov 0  }
   0x3 LB: > { %s1399_s17 = sadd.s32 4294967295, %s1794_s16   ;;  %s39_s18 = sadd.s32 1, %s1790_s15  ;;  %s1794_s16 = sphi %s1826_s16, %s13_s16   ;;  %s1790_s15 = sphi %s1824_s15, %s1992_s15   ;;  %s1786_s14 = sphi %s1822_s14, %s1991_s14   ;;  %s1782_s13 = sphi %s1820_s13, %s1990_s13   ;;  %s1778_s12 = sphi %s1818_s12, %s1989_s12  }
   0x4   : > { %p41_p0 = scmp.ge.s32.totalorder %s39_s18, 4  ;;  %s138_s19 = sadd.s32 1, %s1782_s13 }
   0x5   : > { %p148_p1 = scmp.ne.s32.totalorder %s1782_s13, %s1778_s12  ;;  %p149_p2 = scmp.eq.s32.totalorder %s1399_s17, 3 }
   0x6   : > { %s1994_s18 = smov (%p41_p0, %s39_s18), 0  ;;  %p1403_p4 = scmp.ge.s32.totalorder %s1794_s16, 1 }
   0x7   : > { %p1850_p3 = por %p149_p2, %p148_p1  ;;  %s134_s21 = ssub.s32 %s1790_s15, %s1994_s18 }
   0x8   : > { %p217_p5 = scmp.lt.s32.totalorder %s1794_s16, 5  ;;  %p136_p6 = scmp.eq.s32.totalorder %s134_s21, 0 }
   0xa   : > { %p218_p7 = pnand %p1403_p4, %p217_p5 }
   0xb   : > { %s1859_s22 = scalar_select %p136_p6, %s1782_s13, %s138_s19  }
   0xc   : > { %221 = sbr.rel (%p218_p7) target bundleno = 399 (0x18f), region = 32  ;;  %p269_p8 = scmp.lt.s32.totalorder (!%p218_p7), %s1786_s14, 3  ;;  %vm1797_vm0 = vmmov (!%p218_p7), 0  }
   0xd   : > { %s264_s8 = sand.u32 (!%p218_p7), 1, %s1778_s12  }
   0xe   : > { %s1404_s9 = sshll.u32 (!%p218_p7), %s264_s8, 3 }
   0xf   : > { %s266_s10 = scalar_lea.vmem (!%p218_p7), [#allocation3], %s1404_s9 }
  0x13   : > { %s1863_s23 = scalar_select %p269_p8, %s1786_s14, 3 }
  0x14   : > { %s1492_s11 = sshll.u32 (%p1850_p3), %s1786_s14, 2 }
  0x15   : > { %s1620_s24 = smul.u32 576, %s1863_s23  ;;  %s301_s7 = scalar_lea.vmem %s1986_s2, %s1863_s23 }
  0x16   : > { %s1619_s28 = smul.u32 72, %s1863_s23  ;;  %s1242_s19 = scalar_lea.vmem (%p1850_p3), %s1987_s3, %s1492_s11 }
  0x17   : > { %s1869_s27 = scalar_lea.vmem %s1985_s1, %s1620_s24 }
  0x18   : > { %v1663_v0 = vld [vmem:[%s1869_s27 + $0x40] sm:$0xff]   ;;  %v1667_v4 = vld [vmem:[%s1869_s27 + $0x48] sm:$0xff]   ;;  %v1671_v8 = vld [vmem:[%s1869_s27 + $0x50] sm:$0xff]   ;;  %s1905_s4 = scalar_lea.vmem %s1984_s0, %s1619_s28 }
  0x19   : > { %v1664_v1 = vld [vmem:[%s1869_s27 + $0xc0] sm:$0xff]   ;;  %1502 = vmatprep.subr.bf16.mxu0 %v1663_v0  ;;  %v1668_v5 = vld [vmem:[%s1869_s27 + $0xc8] sm:$0xff]   ;;  %v1672_v9 = vld [vmem:[%s1869_s27 + $0xd0] sm:$0xff]  }
  0x1a   : > { %v1665_v2 = vld [vmem:[%s1869_s27] sm:$0xff]   ;;  %1524 = vmatprep.subr.bf16.mxu1 %v1664_v1  ;;  %v1669_v6 = vld [vmem:[%s1869_s27 + $0x8] sm:$0xff]   ;;  %v1673_v10 = vld [vmem:[%s1869_s27 + $0x10] sm:$0xff]  }
  0x1b   : > { %v1666_v3 = vld [vmem:[%s1869_s27 + $0x80] sm:$0xff]   ;;  %1503 = vmatpush3.bf16.msra.mxu0 %v1665_v2  ;;  %v1670_v7 = vld [vmem:[%s1869_s27 + $0x88] sm:$0xff]   ;;  %v1674_v11 = vld [vmem:[%s1869_s27 + $0x90] sm:$0xff]  }
  0x1c   : > { %1525 = vmatpush3.bf16.msra.mxu1 %v1666_v3  ;;  %1504 = vmatprep.subr.bf16.mxu0 %v1667_v4  ;;  %v1675_v12 = vld [vmem:[%s1869_s27 + $0x58] sm:$0xff]   ;;  %v1679_v16 = vld [vmem:[%s1869_s27 + $0x60] sm:$0xff]   ;;  %v1683_v20 = vld [vmem:[%s1869_s27 + $0x68] sm:$0xff]  }
  0x1d   : > { %1526 = vmatprep.subr.bf16.mxu1 %v1668_v5  ;;  %v1676_v13 = vld [vmem:[%s1869_s27 + $0xd8] sm:$0xff]   ;;  %v1680_v17 = vld [vmem:[%s1869_s27 + $0xe0] sm:$0xff]   ;;  %v1684_v21 = vld [vmem:[%s1869_s27 + $0xe8] sm:$0xff]  }
  0x1e   : > { %v1677_v14 = vld [vmem:[%s1869_s27 + $0x18] sm:$0xff]   ;;  %v1681_v18 = vld [vmem:[%s1869_s27 + $0x20] sm:$0xff]   ;;  %v1685_v22 = vld [vmem:[%s1869_s27 + $0x28] sm:$0xff]  }
  0x1f   : > { %1505 = vmatpush3.bf16.msra.mxu0 %v1669_v6  ;;  %v1678_v15 = vld [vmem:[%s1869_s27 + $0x98] sm:$0xff]   ;;  %v1682_v19 = vld [vmem:[%s1869_s27 + $0xa0] sm:$0xff]   ;;  %v1686_v23 = vld [vmem:[%s1869_s27 + $0xa8] sm:$0xff]   ;;  %v1796_v6 = vmov 0.0  }
  0x20   : > { %1527 = vmatpush3.bf16.msra.mxu1 %v1670_v7  ;;  %1506 = vmatprep.subr.bf16.mxu0 %v1671_v8  ;;  %v1687_v24 = vld [vmem:[%s1869_s27 + $0x70] sm:$0xff]   ;;  %v1691_v28 = vld [vmem:[%s1869_s27 + $0x78] sm:$0xff]   ;;  %v1695_v32 = vld [vmem:[%s1905_s4] ss:$36 sps:$4 sm:$0xff]  }
  0x21   : > { %1528 = vmatprep.subr.bf16.mxu1 %v1672_v9  ;;  %v1688_v25 = vld [vmem:[%s1869_s27 + $0xf0] sm:$0xff]   ;;  %v1692_v29 = vld [vmem:[%s1869_s27 + $0xf8] sm:$0xff]   ;;  %v1697_v33 = vld [vmem:[%s1905_s4 + $0x4] ss:$36 sps:$4 sm:$0xff]  }
  0x22   : > { %v1689_v26 = vld [vmem:[%s1869_s27 + $0x30] sm:$0xff]   ;;  %v1693_v30 = vld [vmem:[%s1869_s27 + $0x38] sm:$0xff]   ;;  %v1698_v34 = vld [vmem:[%s1905_s4 + $0x8] ss:$36 sps:$4 sm:$0xff]   ;;  %977 = vmatprep.mubr.bf16.mxu0 %v1697_v33 }
  0x23   : > { %1507 = vmatpush3.bf16.msra.mxu0 %v1673_v10  ;;  %v1690_v27 = vld [vmem:[%s1869_s27 + $0xb0] sm:$0xff]   ;;  %v1694_v31 = vld [vmem:[%s1869_s27 + $0xb8] sm:$0xff]   ;;  %v1701_v36 = vld [vmem:[%s1869_s27 + $0x140] sm:$0xff]  }
  0x24   : > { %1529 = vmatpush3.bf16.msra.mxu1 %v1674_v11  ;;  %1508 = vmatprep.subr.bf16.mxu0 %v1675_v12  ;;  %v1700_v35 = vld [vmem:[%s1905_s4 + $0xc] ss:$36 sps:$4 sm:$0xff]   ;;  %v1702_v37 = vld [vmem:[%s1869_s27 + $0x100] sm:$0xff]   ;;  %v1713_v48 = vld [vmem:[%s1869_s27 + $0x158] sm:$0xff]  }
  0x25   : > { %1530 = vmatprep.subr.bf16.mxu1 %v1676_v13  ;;  %1018 = vmatprep.mubr.bf16.mxu1 %v1700_v35  ;;  %v1703_v38 = vld [vmem:[%s1869_s27 + $0x1c0] sm:$0xff]   ;;  %v1705_v40 = vld [vmem:[%s1869_s27 + $0x148] sm:$0xff]   ;;  %v1709_v44 = vld [vmem:[%s1869_s27 + $0x150] sm:$0xff]  }
  0x26   : > { %v1704_v39 = vld [vmem:[%s1869_s27 + $0x180] sm:$0xff]   ;;  %v1706_v41 = vld [vmem:[%s1869_s27 + $0x108] sm:$0xff]   ;;  %v1710_v45 = vld [vmem:[%s1869_s27 + $0x110] sm:$0xff]  }
  0x27   : > { %1509 = vmatpush3.bf16.msra.mxu0 %v1677_v14  ;;  %v1707_v42 = vld [vmem:[%s1869_s27 + $0x1c8] sm:$0xff]   ;;  %v1711_v46 = vld [vmem:[%s1869_s27 + $0x1d0] sm:$0xff]   ;;  %v1714_v49 = vld [vmem:[%s1869_s27 + $0x118] sm:$0xff]  }
  0x28   : > { %1531 = vmatpush3.bf16.msra.mxu1 %v1678_v15  ;;  %1510 = vmatprep.subr.bf16.mxu0 %v1679_v16  ;;  %v1708_v43 = vld [vmem:[%s1869_s27 + $0x188] sm:$0xff]   ;;  %v1712_v47 = vld [vmem:[%s1869_s27 + $0x190] sm:$0xff]   ;;  %v1715_v50 = vld [vmem:[%s1869_s27 + $0x1d8] sm:$0xff]  }
  0x29   : > { %1532 = vmatprep.subr.bf16.mxu1 %v1680_v17  ;;  %v1716_v51 = vld [vmem:[%s1869_s27 + $0x198] sm:$0xff]   ;;  %v1717_v52 = vld [vmem:[%s1869_s27 + $0x160] sm:$0xff]   ;;  %v1721_v56 = vld [vmem:[%s1869_s27 + $0x168] sm:$0xff]  }
  0x2a   : > { %v1718_v53 = vld [vmem:[%s1869_s27 + $0x120] sm:$0xff]   ;;  %v1722_v57 = vld [vmem:[%s1869_s27 + $0x128] sm:$0xff]   ;;  %v1725_v60 = vld [vmem:[%s1869_s27 + $0x170] sm:$0xff]  }
  0x2b   : > { %1511 = vmatpush3.bf16.msra.mxu0 %v1681_v18  ;;  %v1719_v54 = vld [vmem:[%s1869_s27 + $0x1e0] sm:$0xff]   ;;  %v1723_v58 = vld [vmem:[%s1869_s27 + $0x1e8] sm:$0xff]   ;;  %v1726_v61 = vld [vmem:[%s1869_s27 + $0x130] sm:$0xff]  }
  0x2c   : > { %1533 = vmatpush3.bf16.msra.mxu1 %v1682_v19  ;;  %1512 = vmatprep.subr.bf16.mxu0 %v1683_v20  ;;  %v1720_v55 = vld [vmem:[%s1869_s27 + $0x1a0] sm:$0xff]   ;;  %v1724_v59 = vld [vmem:[%s1869_s27 + $0x1a8] sm:$0xff]   ;;  %v1727_v62 = vld [vmem:[%s1869_s27 + $0x1f0] sm:$0xff]  }
  0x2d   : > { %1534 = vmatprep.subr.bf16.mxu1 %v1684_v21  ;;  %v1728_v63 = vld [vmem:[%s1869_s27 + $0x1b0] sm:$0xff]   ;;  %v1729_v0 = vld [vmem:[%s1869_s27 + $0x178] sm:$0xff]   ;;  %v1739_v9 = vld [vmem:[%s1869_s27 + $0x200] sm:$0xff]  }
  0x2e   : > { %v1730_v1 = vld [vmem:[%s1869_s27 + $0x138] sm:$0xff]   ;;  %v1732_v3 = vld [vmem:[%s1905_s4 + $0x10] ss:$36 sps:$4 sm:$0xff]   ;;  %v1740_v10 = vld [vmem:[%s1869_s27 + $0x208] sm:$0xff]  }
  0x2f   : > { %1513 = vmatpush3.bf16.msra.mxu0 %v1685_v22  ;;  %v1731_v2 = vld [vmem:[%s1869_s27 + $0x1f8] sm:$0xff]   ;;  %v1741_v11 = vld [vmem:[%s1869_s27 + $0x210] sm:$0xff]   ;;  %v1743_v13 = vld [vmem:[%s1869_s27 + $0x220] sm:$0xff]  }
  0x30   : > { %1535 = vmatpush3.bf16.msra.mxu1 %v1686_v23  ;;  %1514 = vmatprep.subr.bf16.mxu0 %v1687_v24  ;;  %v1734_v4 = vld [vmem:[%s1905_s4 + $0x14] ss:$36 sps:$4 sm:$0xff]   ;;  %v1738_v8 = vld [vmem:[%s1905_s4 + $0x1c] ss:$36 sps:$4 sm:$0xff]   ;;  %v1744_v14 = vld [vmem:[%s1869_s27 + $0x228] sm:$0xff]  }
  0x31   : > { %1536 = vmatprep.subr.bf16.mxu1 %v1688_v25  ;;  %v1735_v5 = vld [vmem:[%s1869_s27 + $0x1b8] sm:$0xff]   ;;  %v1745_v15 = vld [vmem:[%s1869_s27 + $0x230] sm:$0xff]   ;;  %v1747_v17 = vld [vmem:[%s1905_s4 + $0x20] ss:$36 sps:$4 sm:$0xff]  }
  0x32   : > { %v1736_v7 = vld [vmem:[%s1905_s4 + $0x18] ss:$36 sps:$4 sm:$0xff]  }
  0x33   : > { %1515 = vmatpush3.bf16.msra.mxu0 %v1689_v26  ;;  %v1742_v12 = vld [vmem:[%s1869_s27 + $0x218] sm:$0xff]  }
  0x34   : > { %1537 = vmatpush3.bf16.msra.mxu1 %v1690_v27  ;;  %1516 = vmatprep.subr.bf16.mxu0 %v1691_v28  ;;  %v1746_v16 = vld [vmem:[%s1869_s27 + $0x238] sm:$0xff]  }
  0x35   : > { %1538 = vmatprep.subr.bf16.mxu1 %v1692_v29 }
  0x37   : > { %1517 = vmatpush3.bf16.msra.mxu0 %v1693_v30 }
  0x38   : > { %1539 = vmatpush3.bf16.msra.mxu1 %v1694_v31  ;;  %1546 = vmatprep.subr.bf16.mxu0 %v1701_v36 }
  0x39   : > { %1568 = vmatprep.subr.bf16.mxu1 %v1703_v38 }
  0x3a   : > { %978 = vmatmul.mubr.bf16.vlgmr.msra.gmra.mrb[0].mxu0 %v1695_v32 }
  0x3b   : > { %1019 = vmatmul.mubr.bf16.vlgmr.msra.gmra.mrb[0].mxu1 %v1698_v34  ;;  %1547 = vmatpush3.bf16.msra.mxu0 %v1702_v37 }
  0x3c   : > { %1569 = vmatpush3.bf16.msra.mxu1 %v1704_v39  ;;  %1548 = vmatprep.subr.bf16.mxu0 %v1705_v40 }
  0x3d   : > { %1570 = vmatprep.subr.bf16.mxu1 %v1707_v42  ;;  %1059 = vmatprep.mubr.bf16.mxu0 %v1734_v4 }
  0x3e   : > { %1100 = vmatprep.mubr.bf16.mxu1 %v1738_v8 }
  0x3f   : > { %1549 = vmatpush3.bf16.msra.mxu0 %v1706_v41 }
  0x40   : > { %1571 = vmatpush3.bf16.msra.mxu1 %v1708_v43  ;;  %1550 = vmatprep.subr.bf16.mxu0 %v1709_v44 }
  0x41   : > { %1572 = vmatprep.subr.bf16.mxu1 %v1711_v46 }
  0x43   : > { %1551 = vmatpush3.bf16.msra.mxu0 %v1710_v45 }
  0x44   : > { %1573 = vmatpush3.bf16.msra.mxu1 %v1712_v47  ;;  %1552 = vmatprep.subr.bf16.mxu0 %v1713_v48 }
  0x45   : > { %1574 = vmatprep.subr.bf16.mxu1 %v1715_v50 }
  0x47   : > { %1553 = vmatpush3.bf16.msra.mxu0 %v1714_v49  ;;  %v1488_v49 = vld [vmem:[%s301_s7] ss:$0 sm:$0xff] }
  0x48   : > { %1575 = vmatpush3.bf16.msra.mxu1 %v1716_v51  ;;  %1554 = vmatprep.subr.bf16.mxu0 %v1717_v52 }
  0x49   : > { %1576 = vmatprep.subr.bf16.mxu1 %v1719_v54 }
  0x4b   : > { %1555 = vmatpush3.bf16.msra.mxu0 %v1718_v53 }
  0x4c   : > { %1577 = vmatpush3.bf16.msra.mxu1 %v1720_v55  ;;  %1556 = vmatprep.subr.bf16.mxu0 %v1721_v56 }
  0x4d   : > { %1578 = vmatprep.subr.bf16.mxu1 %v1723_v58 }
  0x4f   : > { %1557 = vmatpush3.bf16.msra.mxu0 %v1722_v57 }
  0x50   : > { %1579 = vmatpush3.bf16.msra.mxu1 %v1724_v59  ;;  %1558 = vmatprep.subr.bf16.mxu0 %v1725_v60 }
  0x51   : > { %1580 = vmatprep.subr.bf16.mxu1 %v1727_v62 }
  0x53   : > { %1559 = vmatpush3.bf16.msra.mxu0 %v1726_v61 }
  0x54   : > { %1581 = vmatpush3.bf16.msra.mxu1 %v1728_v63  ;;  %1560 = vmatprep.subr.bf16.mxu0 %v1729_v0 }
  0x55   : > { %1582 = vmatprep.subr.bf16.mxu1 %v1731_v2 }
  0x57   : > { %1561 = vmatpush3.bf16.msra.mxu0 %v1730_v1 }
  0x58   : > { %1599 = vmatprep.subr.bf16.mxu0 %v1796_v6  ;;  %1583 = vmatpush3.bf16.msra.mxu1 %v1735_v5 }
  0x5a   : > { %1060 = vmatmul.mubr.bf16.vlgmr.msra.gmra.mrb[4].mxu0 %v1732_v3 }
  0x5b   : > { %1615 = vmatprep.mubr.msk.bf16.mxu0 %vm1797_vm0, %v1796_v6  ;;  %1600 = vmatpush3.bf16.msra.mxu0 %v1739_v9 }
  0x5c   : > { %1101 = vmatmul.mubr.bf16.vlgmr.msra.gmra.mrb[4].mxu1 %v1736_v7  ;;  %1601 = vmatprep.subr.bf16.mxu0 %v1796_v6 }
  0x5f   : > { %1602 = vmatpush3.bf16.msra.mxu0 %v1740_v10 }
  0x60   : > { %1603 = vmatprep.subr.bf16.mxu0 %v1796_v6 }
  0x63   : > { %1604 = vmatpush3.bf16.msra.mxu0 %v1741_v11 }
  0x64   : > { %1605 = vmatprep.subr.bf16.mxu0 %v1796_v6 }
  0x67   : > { %1606 = vmatpush3.bf16.msra.mxu0 %v1742_v12 }
  0x68   : > { %1607 = vmatprep.subr.bf16.mxu0 %v1796_v6 }
  0x6b   : > { %1608 = vmatpush3.bf16.msra.mxu0 %v1743_v13 }
  0x6c   : > { %1609 = vmatprep.subr.bf16.mxu0 %v1796_v6 }
  0x6f   : > { %1610 = vmatpush3.bf16.msra.mxu0 %v1744_v14 }
  0x70   : > { %1611 = vmatprep.subr.bf16.mxu0 %v1796_v6 }
  0x73   : > { %1612 = vmatpush3.bf16.msra.mxu0 %v1745_v15 }
  0x74   : > { %1613 = vmatprep.subr.bf16.mxu0 %v1796_v6 }
  0x77   : > { %1614 = vmatpush3.bf16.msra.mxu0 %v1746_v16 }
  0x7a   : > { %1616 = vmatmul.mubr.bf16.vlgmr.msra.gmra.mrb[8].mxu0 %v1747_v17 }
 0x10d   : > { %v1518_v18 = vpop.f32.mrb[0].mxu0 }
 0x10e   : > { %v1540_v19 = vpop.f32.mrb[0].mxu1  ;;  %v1519_v20 = vpop.f32.mrb[1].mxu0 }
 0x10f   : > { %v1520_v21 = vadd.f32 %v1519_v20, %v1518_v18  ;;  %v1541_v22 = vpop.f32.mrb[1].mxu1  ;;  %v1521_v23 = vpop.f32.mrb[2].mxu0 }
 0x110   : > { %v1542_v24 = vadd.f32 %v1541_v22, %v1540_v19  ;;  %v1543_v25 = vpop.f32.mrb[2].mxu1  ;;  %v1522_v26 = vpop.f32.mrb[3].mxu0 }
 0x111   : > { %v1523_v27 = vadd.f32 %v1522_v26, %v1521_v23  ;;  %v1544_v28 = vpop.f32.mrb[3].mxu1 }
 0x112   : > { %v1021_v29 = vadd.f32 %v1542_v24, %v1520_v21  ;;  %v1545_v30 = vadd.f32 %v1544_v28, %v1543_v25 }
 0x114   : > { %v1024_v31 = vadd.f32 %v1545_v30, %v1523_v27 }
 0x12d   : > { %v1562_v32 = vpop.f32.mrb[4].mxu0 }
 0x12e   : > { %v1563_v33 = vpop.f32.mrb[5].mxu0 }
 0x12f   : > { %v1564_v34 = vadd.f32 %v1563_v33, %v1562_v32  ;;  %v1565_v35 = vpop.f32.mrb[6].mxu0  ;;  %v1584_v36 = vpop.f32.mrb[4].mxu1 }
 0x130   : > { %v1566_v37 = vpop.f32.mrb[7].mxu0  ;;  %v1585_v40 = vpop.f32.mrb[5].mxu1 }
 0x131   : > { %v1062_v38 = vadd.f32 %v1564_v34, %v1021_v29  ;;  %v1567_v39 = vadd.f32 %v1566_v37, %v1565_v35  ;;  %v1586_v41 = vadd.f32 %v1585_v40, %v1584_v36  ;;  %v1587_v42 = vpop.f32.mrb[6].mxu1 }
 0x132   : > { %v1588_v44 = vpop.f32.mrb[7].mxu1 }
 0x133   : > { %v1065_v43 = vadd.f32 %v1567_v39, %v1024_v31  ;;  %v1589_v45 = vadd.f32 %v1588_v44, %v1587_v42  ;;  %v1103_v46 = vadd.f32 %v1586_v41, %v1062_v38 }
 0x135   : > { %v1106_v47 = vadd.f32 %v1589_v45, %v1065_v43 }
 0x14d   : > { %v1143_v48 = vpop.f32.mrb[8].mxu0 }
 0x14e   : > { %v1144_v50 = vadd.f32 %v1143_v48, %v1103_v46  ;;  %v1617_v51 = vpop.f32.mrb[9].mxu0 }
 0x14f   : > { %v1146_v52 = vpop.f32.mrb[10].mxu0 }
 0x150   : > { %v1166_v53 = vadd.f32 %v1488_v49, %v1144_v50  ;;  %v1147_v54 = vadd.f32 %v1146_v52, %v1106_v47  ;;  %v1618_v55 = vpop.f32.mrb[11].mxu0 }
 0x152   : > { %v1168_v56 = vmul.f32 0.70710677, %v1166_v53  ;;  %v1167_v57 = vadd.f32 %v1488_v49, %v1147_v54  ;;  %v1214_v38 = vmul.f32 0.5, %v1166_v53 }
 0x154   : > { %v1170_v58 = vand.u32 2147483647, %v1168_v56  ;;  %v1169_v59 = vmul.f32 0.70710677, %v1167_v57  ;;  %vm1208_vm1 = vcmp.lt.f32.partialorder %v1168_v56, 0.0  ;;  %v1215_v39 = vmul.f32 0.5, %v1167_v57 }
 0x156   : > { %v1172_v60 = vmul.f32 0.3275911, %v1170_v58  ;;  %v1171_v61 = vand.u32 2147483647, %v1169_v59  ;;  %v1196_v1 = vsub.f32 0.0, %v1170_v58  ;;  %vm1209_vm2 = vcmp.lt.f32.partialorder %v1169_v59, 0.0 }
 0x158   : > { %v1174_v62 = vadd.f32 1.0, %v1172_v60  ;;  %v1173_v63 = vmul.f32 0.3275911, %v1171_v61  ;;  %v1197_v2 = vsub.f32 0.0, %v1171_v61  ;;  %v1198_v4 = vmul.f32 %v1196_v1, %v1170_v58 }
 0x15a   : > { %1748 = vrcp.f32 %v1174_v62  ;;  %v1175_v0 = vadd.f32 1.0, %v1173_v63  ;;  %v1199_v8 = vmul.f32 %v1197_v2, %v1171_v61  ;;  %v1200_v9 = vmul.f32 1.442695, %v1198_v4 }
 0x15c   : > { %1750 = vrcp.f32 %v1175_v0  ;;  %v1202_v14 = vmul.f32 1.442695, %v1199_v8 }
 0x15d   : > { %1752 = vpow2.f32 %v1200_v9 }
 0x15e   : > { %1754 = vpow2.f32 %v1202_v14 }
 0x164   : > { %v1749_v3 = vpop.eup %1748 }
 0x165   : > { %v1178_v5 = vmul.f32 1.0614054, %v1749_v3 }
 0x166   : > { %v1751_v6 = vpop.eup %1750 }
 0x167   : > { %v1180_v7 = vadd.f32 -1.4531521, %v1178_v5  ;;  %v1179_v10 = vmul.f32 1.0614054, %v1751_v6  ;;  %v1753_v25 = vpop.eup %1752 }
 0x168   : > { %v1755_v29 = vpop.eup %1754 }
 0x169   : > { %v1182_v11 = vmul.f32 %v1749_v3, %v1180_v7  ;;  %v1181_v12 = vadd.f32 -1.4531521, %v1179_v10 }
 0x16b   : > { %v1184_v13 = vadd.f32 1.4214138, %v1182_v11  ;;  %v1183_v15 = vmul.f32 %v1751_v6, %v1181_v12 }
 0x16d   : > { %v1186_v16 = vmul.f32 %v1749_v3, %v1184_v13  ;;  %v1185_v17 = vadd.f32 1.4214138, %v1183_v15 }
 0x16f   : > { %v1188_v18 = vadd.f32 -0.28449672, %v1186_v16  ;;  %v1187_v19 = vmul.f32 %v1751_v6, %v1185_v17 }
 0x171   : > { %v1190_v20 = vmul.f32 %v1749_v3, %v1188_v18  ;;  %v1189_v21 = vadd.f32 -0.28449672, %v1187_v19 }
 0x173   : > { %v1192_v22 = vadd.f32 0.2548296, %v1190_v20  ;;  %v1191_v23 = vmul.f32 %v1751_v6, %v1189_v21 }
 0x175   : > { %v1194_v24 = vmul.f32 %v1749_v3, %v1192_v22  ;;  %v1193_v26 = vadd.f32 0.2548296, %v1191_v23 }
 0x177   : > { %v1204_v27 = vmul.f32 %v1753_v25, %v1194_v24  ;;  %v1195_v28 = vmul.f32 %v1751_v6, %v1193_v26 }
 0x179   : > { %v1206_v30 = vsub.f32 1.0, %v1204_v27  ;;  %v1205_v31 = vmul.f32 %v1755_v29, %v1195_v28 }
 0x17b   : > { %v1210_v32 = vsub.f32 0.0, %v1206_v30  ;;  %v1207_v33 = vsub.f32 1.0, %v1205_v31 }
 0x17d   : > { %v1212_v34 = vsel %vm1208_vm1, %v1210_v32, %v1206_v30  ;;  %v1211_v35 = vsub.f32 0.0, %v1207_v33 }
 0x17e   : > { %v1216_v36 = vadd.f32 1.0, %v1212_v34 }
 0x17f   : > { %v1213_v37 = vsel %vm1209_vm2, %v1211_v35, %v1207_v33 }
 0x180   : > { %v1217_v40 = vadd.f32 1.0, %v1213_v37  ;;  %v1218_v41 = vmul.f32 %v1216_v36, %v1214_v38  ;;  %1236 = sbr.rel (!%p1850_p3) target bundleno = 399 (0x18f), region = 44 }
 0x182   : > { %v1219_v42 = vmul.f32 %v1217_v40, %v1215_v39 }
 0x184   : > { %v1500_v43 = vpack.c.bf16 %v1219_v42, %v1218_v41 }
 0x186   : > { %1501 = vst [vmem:[%s266_s10] sm:$0xff] %v1500_v43  }
 0x18d   : > { %v1258_v44 = vld [vmem:[%s266_s10] sm:$0xf]  ;;  %v1260_v45 = vld [vmem:[%s266_s10 + $0x4] sm:$0xf] }
 0x18e   : > { %1259 = vst [vmem:[%s1242_s19] sm:$0xf] %v1258_v44  ;;  %1261 = vst [vmem:[%s1242_s19 + $0x10] sm:$0xf] %v1260_v45 }
 0x18f PF: > { %s13_s16 = sadd.s32 1, %s1794_s16   ;;  %s1989_s12 = smov %s1782_s13 }
 0x190   : > { %p10_p9 = scmp.ge.s32.totalorder %s13_s16, 6   ;;  %s1990_s13 = smov %s1859_s22 }
 0x191   : > { %s1991_s14 = smov %s1790_s15  ;;  %s1992_s15 = smov %s1994_s18 }
 0x192   :  { %12 = sbr.rel (!%p10_p9) target bundleno = 3 (0x3), region = 117 }

// kernel: forward.94
= control target key start
LH: loop header
LB: loop body
LE: loop exit
PB: predicated region body
PF: predicated region fallthrough
CT: control target
= control target key end

     0   :  { %s1729_s12 = smov 0   ;;  %s1731_s13 = smov 0   ;;  %s2051_s0 = inlined_call_operand.vmem [shape: bf16[1,16,512], index: 0, kind: input, shape index: {}]   ;;  %s2052_s1 = inlined_call_operand.vmem [shape: bf16[1,512,512], index: 1, kind: input, shape index: {}]   ;;  %s2053_s2 = inlined_call_operand.vmem [shape: f32[1,1,512], index: 2, kind: input, shape index: {}]   ;;  %s2054_s3 = inlined_call_operand.vmem [shape: bf16[16,512], index: 3, kind: output, shape index: {}]  }
   0x1   :  { %s1733_s14 = smov 0   ;;  %s1735_s15 = smov 0  }
   0x2   :  { %s1737_s16 = smov 0  }
   0x3 LB: > { %s31_s17 = sadd.s32 1, %s1703_s15  ;;  %s1416_s18 = sadd.s32 4294967295, %s1707_s16   ;;  %s1707_s16 = sphi %s1737_s16, %s13_s16   ;;  %s1703_s15 = sphi %s1735_s15, %s2059_s15   ;;  %s1699_s14 = sphi %s1733_s14, %s2058_s14   ;;  %s1695_s13 = sphi %s1731_s13, %s2057_s13   ;;  %s1691_s12 = sphi %s1729_s12, %s2056_s12  }
   0x4   : > { %p33_p0 = scmp.ge.s32.totalorder %s31_s17, 2  ;;  %p87_p1 = scmp.ne.s32.totalorder %s1695_s13, %s1691_s12 }
   0x5   : > { %p88_p2 = scmp.eq.s32.totalorder %s1707_s16, 0  ;;  %p151_p4 = scmp.eq.s32.totalorder %s1416_s18, 1 }
   0x6   : > { %s2061_s17 = smov (%p33_p0, %s31_s17), 0  ;;  %s80_s20 = sadd.s32 1, %s1695_s13 }
   0x7   : > { %p89_p3 = por %p88_p2, %p87_p1  ;;  %s76_s19 = ssub.s32 %s1703_s15, %s2061_s17 }
   0x8   : > { %p78_p5 = scmp.eq.s32.totalorder %s76_s19, 0  ;;  %p1764_p6 = por %p151_p4, %p87_p1 }
   0x9   : > { %p1420_p7 = scmp.ge.s32.totalorder %s1707_s16, 2 }
   0xa   : > { %s1769_s22 = scalar_select %p78_p5, %s1695_s13, %s80_s20  }
   0xb   : > { %192 = sbr.rel (%p1420_p7) target bundleno = 54 (0x36), region = 20 }
  0x12   : > { %195 = sbr.rel (!%p89_p3) target bundleno = 54 (0x36), region = 24  ;;  %s197_s23 = sand.u32 (%p89_p3), 1, %s1695_s13  }
  0x13   : > { %s1503_s24 = sshll.u32 (%p89_p3), %s1703_s15, 3  ;;  %s1421_s25 = sshll.u32 (%p89_p3), %s197_s23, 9 }
  0x14   : > { %s1777_s28 = scalar_lea.vmem (%p89_p3), %s2052_s1, %s1503_s24  ;;  %s1782_s29 = scalar_lea.vmem (%p89_p3), [#allocation3], %s1421_s25 }
  0x15   : > { %v361_v0 = vld [vmem:[%s1777_s28] sm:$0xff] (%p89_p3)  ;;  %v363_v1 = vld [vmem:[%s1777_s28 + $0x10] sm:$0xff] (%p89_p3) }
  0x16   : > { %v365_v2 = vld [vmem:[%s1777_s28 + $0x20] sm:$0xff] (%p89_p3)  ;;  %362 = vst [vmem:[%s1782_s29] sm:$0xff] (%p89_p3), %v361_v0  ;;  %364 = vst [vmem:[%s1782_s29 + $0x8] sm:$0xff] (%p89_p3), %v363_v1  ;;  %v367_v3 = vld [vmem:[%s1777_s28 + $0x30] sm:$0xff] (%p89_p3) }
  0x17   : > { %366 = vst [vmem:[%s1782_s29 + $0x10] sm:$0xff] (%p89_p3), %v365_v2  ;;  %v369_v4 = vld [vmem:[%s1777_s28 + $0x40] sm:$0xff] (%p89_p3)  ;;  %v371_v5 = vld [vmem:[%s1777_s28 + $0x50] sm:$0xff] (%p89_p3)  ;;  %368 = vst [vmem:[%s1782_s29 + $0x18] sm:$0xff] (%p89_p3), %v367_v3 }
  0x18   : > { %370 = vst [vmem:[%s1782_s29 + $0x20] sm:$0xff] (%p89_p3), %v369_v4  ;;  %372 = vst [vmem:[%s1782_s29 + $0x28] sm:$0xff] (%p89_p3), %v371_v5  ;;  %v373_v6 = vld [vmem:[%s1777_s28 + $0x60] sm:$0xff] (%p89_p3)  ;;  %v375_v7 = vld [vmem:[%s1777_s28 + $0x70] sm:$0xff] (%p89_p3) }
  0x19   : > { %v377_v8 = vld [vmem:[%s1777_s28 + $0x80] sm:$0xff]  ;;  %374 = vst [vmem:[%s1782_s29 + $0x30] sm:$0xff] %v373_v6  ;;  %376 = vst [vmem:[%s1782_s29 + $0x38] sm:$0xff] %v375_v7  ;;  %v379_v9 = vld [vmem:[%s1777_s28 + $0x90] sm:$0xff] }
  0x1a   : > { %378 = vst [vmem:[%s1782_s29 + $0x40] sm:$0xff] %v377_v8  ;;  %v381_v10 = vld [vmem:[%s1777_s28 + $0xa0] sm:$0xff]  ;;  %v383_v11 = vld [vmem:[%s1777_s28 + $0xb0] sm:$0xff]  ;;  %380 = vst [vmem:[%s1782_s29 + $0x48] sm:$0xff] %v379_v9 }
  0x1b   : > { %382 = vst [vmem:[%s1782_s29 + $0x50] sm:$0xff] %v381_v10  ;;  %384 = vst [vmem:[%s1782_s29 + $0x58] sm:$0xff] %v383_v11  ;;  %v385_v12 = vld [vmem:[%s1777_s28 + $0xc0] sm:$0xff]  ;;  %v387_v13 = vld [vmem:[%s1777_s28 + $0xd0] sm:$0xff] }
  0x1c   : > { %v389_v14 = vld [vmem:[%s1777_s28 + $0xe0] sm:$0xff]  ;;  %386 = vst [vmem:[%s1782_s29 + $0x60] sm:$0xff] %v385_v12  ;;  %388 = vst [vmem:[%s1782_s29 + $0x68] sm:$0xff] %v387_v13  ;;  %v391_v15 = vld [vmem:[%s1777_s28 + $0xf0] sm:$0xff] }
  0x1d   : > { %390 = vst [vmem:[%s1782_s29 + $0x70] sm:$0xff] %v389_v14  ;;  %v393_v16 = vld [vmem:[%s1777_s28 + $0x100] sm:$0xff]  ;;  %v395_v17 = vld [vmem:[%s1777_s28 + $0x110] sm:$0xff]  ;;  %392 = vst [vmem:[%s1782_s29 + $0x78] sm:$0xff] %v391_v15 }
  0x1e   : > { %394 = vst [vmem:[%s1782_s29 + $0x80] sm:$0xff] %v393_v16  ;;  %396 = vst [vmem:[%s1782_s29 + $0x88] sm:$0xff] %v395_v17  ;;  %v397_v18 = vld [vmem:[%s1777_s28 + $0x120] sm:$0xff]  ;;  %v399_v19 = vld [vmem:[%s1777_s28 + $0x130] sm:$0xff] }
  0x1f   : > { %v401_v20 = vld [vmem:[%s1777_s28 + $0x140] sm:$0xff]  ;;  %398 = vst [vmem:[%s1782_s29 + $0x90] sm:$0xff] %v397_v18  ;;  %400 = vst [vmem:[%s1782_s29 + $0x98] sm:$0xff] %v399_v19  ;;  %v403_v21 = vld [vmem:[%s1777_s28 + $0x150] sm:$0xff] }
  0x20   : > { %402 = vst [vmem:[%s1782_s29 + $0xa0] sm:$0xff] %v401_v20  ;;  %v405_v22 = vld [vmem:[%s1777_s28 + $0x160] sm:$0xff]  ;;  %v407_v23 = vld [vmem:[%s1777_s28 + $0x170] sm:$0xff]  ;;  %404 = vst [vmem:[%s1782_s29 + $0xa8] sm:$0xff] %v403_v21 }
  0x21   : > { %406 = vst [vmem:[%s1782_s29 + $0xb0] sm:$0xff] %v405_v22  ;;  %408 = vst [vmem:[%s1782_s29 + $0xb8] sm:$0xff] %v407_v23  ;;  %v409_v24 = vld [vmem:[%s1777_s28 + $0x180] sm:$0xff]  ;;  %v411_v25 = vld [vmem:[%s1777_s28 + $0x190] sm:$0xff] }
  0x22   : > { %v413_v26 = vld [vmem:[%s1777_s28 + $0x1a0] sm:$0xff]  ;;  %410 = vst [vmem:[%s1782_s29 + $0xc0] sm:$0xff] %v409_v24  ;;  %412 = vst [vmem:[%s1782_s29 + $0xc8] sm:$0xff] %v411_v25  ;;  %v415_v27 = vld [vmem:[%s1777_s28 + $0x1b0] sm:$0xff] }
  0x23   : > { %414 = vst [vmem:[%s1782_s29 + $0xd0] sm:$0xff] %v413_v26  ;;  %v417_v28 = vld [vmem:[%s1777_s28 + $0x1c0] sm:$0xff]  ;;  %v419_v29 = vld [vmem:[%s1777_s28 + $0x1d0] sm:$0xff]  ;;  %416 = vst [vmem:[%s1782_s29 + $0xd8] sm:$0xff] %v415_v27 }
  0x24   : > { %418 = vst [vmem:[%s1782_s29 + $0xe0] sm:$0xff] %v417_v28  ;;  %420 = vst [vmem:[%s1782_s29 + $0xe8] sm:$0xff] %v419_v29  ;;  %v421_v30 = vld [vmem:[%s1777_s28 + $0x1e0] sm:$0xff]  ;;  %v423_v31 = vld [vmem:[%s1777_s28 + $0x1f0] sm:$0xff] }
  0x25   : > { %v425_v32 = vld [vmem:[%s1777_s28 + $0x200] sm:$0xff]  ;;  %422 = vst [vmem:[%s1782_s29 + $0xf0] sm:$0xff] %v421_v30  ;;  %424 = vst [vmem:[%s1782_s29 + $0xf8] sm:$0xff] %v423_v31  ;;  %v427_v33 = vld [vmem:[%s1777_s28 + $0x210] sm:$0xff] }
  0x26   : > { %426 = vst [vmem:[%s1782_s29 + $0x100] sm:$0xff] %v425_v32  ;;  %v429_v34 = vld [vmem:[%s1777_s28 + $0x220] sm:$0xff]  ;;  %v431_v35 = vld [vmem:[%s1777_s28 + $0x230] sm:$0xff]  ;;  %428 = vst [vmem:[%s1782_s29 + $0x108] sm:$0xff] %v427_v33 }
  0x27   : > { %430 = vst [vmem:[%s1782_s29 + $0x110] sm:$0xff] %v429_v34  ;;  %432 = vst [vmem:[%s1782_s29 + $0x118] sm:$0xff] %v431_v35  ;;  %v433_v36 = vld [vmem:[%s1777_s28 + $0x240] sm:$0xff]  ;;  %v435_v37 = vld [vmem:[%s1777_s28 + $0x250] sm:$0xff] }
  0x28   : > { %v437_v38 = vld [vmem:[%s1777_s28 + $0x260] sm:$0xff]  ;;  %434 = vst [vmem:[%s1782_s29 + $0x120] sm:$0xff] %v433_v36  ;;  %436 = vst [vmem:[%s1782_s29 + $0x128] sm:$0xff] %v435_v37  ;;  %v439_v39 = vld [vmem:[%s1777_s28 + $0x270] sm:$0xff] }
  0x29   : > { %438 = vst [vmem:[%s1782_s29 + $0x130] sm:$0xff] %v437_v38  ;;  %v441_v40 = vld [vmem:[%s1777_s28 + $0x280] sm:$0xff]  ;;  %v443_v41 = vld [vmem:[%s1777_s28 + $0x290] sm:$0xff]  ;;  %440 = vst [vmem:[%s1782_s29 + $0x138] sm:$0xff] %v439_v39 }
  0x2a   : > { %442 = vst [vmem:[%s1782_s29 + $0x140] sm:$0xff] %v441_v40  ;;  %444 = vst [vmem:[%s1782_s29 + $0x148] sm:$0xff] %v443_v41  ;;  %v445_v42 = vld [vmem:[%s1777_s28 + $0x2a0] sm:$0xff]  ;;  %v447_v43 = vld [vmem:[%s1777_s28 + $0x2b0] sm:$0xff] }
  0x2b   : > { %v449_v44 = vld [vmem:[%s1777_s28 + $0x2c0] sm:$0xff]  ;;  %446 = vst [vmem:[%s1782_s29 + $0x150] sm:$0xff] %v445_v42  ;;  %448 = vst [vmem:[%s1782_s29 + $0x158] sm:$0xff] %v447_v43  ;;  %v451_v45 = vld [vmem:[%s1777_s28 + $0x2d0] sm:$0xff] }
  0x2c   : > { %450 = vst [vmem:[%s1782_s29 + $0x160] sm:$0xff] %v449_v44  ;;  %v453_v46 = vld [vmem:[%s1777_s28 + $0x2e0] sm:$0xff]  ;;  %v455_v47 = vld [vmem:[%s1777_s28 + $0x2f0] sm:$0xff]  ;;  %452 = vst [vmem:[%s1782_s29 + $0x168] sm:$0xff] %v451_v45 }
  0x2d   : > { %454 = vst [vmem:[%s1782_s29 + $0x170] sm:$0xff] %v453_v46  ;;  %456 = vst [vmem:[%s1782_s29 + $0x178] sm:$0xff] %v455_v47  ;;  %v457_v48 = vld [vmem:[%s1777_s28 + $0x300] sm:$0xff]  ;;  %v459_v49 = vld [vmem:[%s1777_s28 + $0x310] sm:$0xff] }
  0x2e   : > { %v461_v50 = vld [vmem:[%s1777_s28 + $0x320] sm:$0xff]  ;;  %458 = vst [vmem:[%s1782_s29 + $0x180] sm:$0xff] %v457_v48  ;;  %460 = vst [vmem:[%s1782_s29 + $0x188] sm:$0xff] %v459_v49  ;;  %v463_v51 = vld [vmem:[%s1777_s28 + $0x330] sm:$0xff] }
  0x2f   : > { %462 = vst [vmem:[%s1782_s29 + $0x190] sm:$0xff] %v461_v50  ;;  %v465_v52 = vld [vmem:[%s1777_s28 + $0x340] sm:$0xff]  ;;  %v467_v53 = vld [vmem:[%s1777_s28 + $0x350] sm:$0xff]  ;;  %464 = vst [vmem:[%s1782_s29 + $0x198] sm:$0xff] %v463_v51 }
  0x30   : > { %466 = vst [vmem:[%s1782_s29 + $0x1a0] sm:$0xff] %v465_v52  ;;  %468 = vst [vmem:[%s1782_s29 + $0x1a8] sm:$0xff] %v467_v53  ;;  %v469_v54 = vld [vmem:[%s1777_s28 + $0x360] sm:$0xff]  ;;  %v471_v55 = vld [vmem:[%s1777_s28 + $0x370] sm:$0xff] }
  0x31   : > { %v473_v56 = vld [vmem:[%s1777_s28 + $0x380] sm:$0xff]  ;;  %470 = vst [vmem:[%s1782_s29 + $0x1b0] sm:$0xff] %v469_v54  ;;  %472 = vst [vmem:[%s1782_s29 + $0x1b8] sm:$0xff] %v471_v55  ;;  %v475_v57 = vld [vmem:[%s1777_s28 + $0x390] sm:$0xff] }
  0x32   : > { %474 = vst [vmem:[%s1782_s29 + $0x1c0] sm:$0xff] %v473_v56  ;;  %v477_v58 = vld [vmem:[%s1777_s28 + $0x3a0] sm:$0xff]  ;;  %v479_v59 = vld [vmem:[%s1777_s28 + $0x3b0] sm:$0xff]  ;;  %476 = vst [vmem:[%s1782_s29 + $0x1c8] sm:$0xff] %v475_v57 }
  0x33   : > { %478 = vst [vmem:[%s1782_s29 + $0x1d0] sm:$0xff] %v477_v58  ;;  %480 = vst [vmem:[%s1782_s29 + $0x1d8] sm:$0xff] %v479_v59  ;;  %v481_v60 = vld [vmem:[%s1777_s28 + $0x3c0] sm:$0xff]  ;;  %v483_v61 = vld [vmem:[%s1777_s28 + $0x3d0] sm:$0xff] }
  0x34   : > { %v485_v62 = vld [vmem:[%s1777_s28 + $0x3e0] sm:$0xff]  ;;  %482 = vst [vmem:[%s1782_s29 + $0x1e0] sm:$0xff] %v481_v60  ;;  %484 = vst [vmem:[%s1782_s29 + $0x1e8] sm:$0xff] %v483_v61  ;;  %v487_v63 = vld [vmem:[%s1777_s28 + $0x3f0] sm:$0xff] }
  0x35   : > { %486 = vst [vmem:[%s1782_s29 + $0x1f0] sm:$0xff] %v485_v62  ;;  %488 = vst [vmem:[%s1782_s29 + $0x1f8] sm:$0xff] %v487_v63 }
  0x36 PF: > { %p1424_p8 = scmp.ge.s32.totalorder %s1707_s16, 1  ;;  %p505_p9 = scmp.lt.s32.totalorder %s1707_s16, 3 }
  0x38   : > { %p506_p10 = pnand %p1424_p8, %p505_p9 }
  0x39   : > { %s512_s30 = sand.u32 (!%p506_p10), 1, %s1691_s12   ;;  %v1649_v0 = vld [vmem:[%s2051_s0 + $0x4] ss:$16 sps:$4 sm:$0xff] (!%p506_p10)   ;;  %v1652_v1 = vld [vmem:[%s2051_s0 + $0xc] ss:$16 sps:$4 sm:$0xff] (!%p506_p10)   ;;  %s1427_s20 = sshll.u32 (!%p506_p10), %s1699_s14, 1 }
  0x3a   : > { %509 = sbr.rel (%p506_p10) target bundleno = 404 (0x194), region = 66  ;;  %s1425_s4 = sshll.u32 (!%p506_p10), %s512_s30, 9  ;;  %1039 = vmatprep.mubr.bf16.mxu1 (!%p506_p10), %v1649_v0  ;;  %1082 = vmatprep.mubr.bf16.mxu0 (!%p506_p10), %v1652_v1 }
  0x3b   : > { %s1920_s9 = scalar_lea.vmem (!%p506_p10), [#allocation3], %s1425_s4  ;;  %p577_p11 = scmp.lt.s32.totalorder (!%p506_p10), %s1427_s20, 3 }
  0x3c   : > { %v1551_v2 = vld [vmem:[%s1920_s9 + $0x4] ss:$8 sps:$4 sm:$0xff] (!%p506_p10)   ;;  %v1555_v4 = vld [vmem:[%s1920_s9] ss:$8 sps:$4 sm:$0xff] (!%p506_p10)   ;;  %v1557_v6 = vld [vmem:[%s1920_s9 + $0x14] ss:$8 sps:$4 sm:$0xff] (!%p506_p10)  }
  0x3d   : > { %v1553_v3 = vld [vmem:[%s1920_s9 + $0x104] ss:$8 sps:$4 sm:$0xff] (!%p506_p10)   ;;  %1007 = vmatprep.subr.bf16.mxu1 (!%p506_p10), %v1551_v2  ;;  %v1556_v5 = vld [vmem:[%s1920_s9 + $0x100] ss:$8 sps:$4 sm:$0xff] (!%p506_p10)   ;;  %v1559_v7 = vld [vmem:[%s1920_s9 + $0x114] ss:$8 sps:$4 sm:$0xff] (!%p506_p10)  }
  0x3e   : > { %1050 = vmatprep.subr.bf16.mxu0 (!%p506_p10), %v1553_v3  ;;  %1008 = vmatpush1.bf16.msra.mxu1 (!%p506_p10), %v1555_v4  ;;  %v1561_v8 = vld [vmem:[%s1920_s9 + $0x10] ss:$8 sps:$4 sm:$0xff] (!%p506_p10)   ;;  %v1563_v10 = vld [vmem:[%s1920_s9 + $0x24] ss:$8 sps:$4 sm:$0xff] (!%p506_p10)   ;;  %v1567_v12 = vld [vmem:[%s1920_s9 + $0x20] ss:$8 sps:$4 sm:$0xff] (!%p506_p10)   ;;  %v1110_v4 = vlaneseq (!%p506_p10) }
  0x3f   : > { %1051 = vmatpush1.bf16.msra.mxu0 (!%p506_p10), %v1556_v5  ;;  %1009 = vmatprep.subr.bf16.mxu1 (!%p506_p10), %v1557_v6  ;;  %v1562_v9 = vld [vmem:[%s1920_s9 + $0x110] ss:$8 sps:$4 sm:$0xff] (!%p506_p10)   ;;  %v1565_v11 = vld [vmem:[%s1920_s9 + $0x124] ss:$8 sps:$4 sm:$0xff] (!%p506_p10)   ;;  %v1568_v13 = vld [vmem:[%s1920_s9 + $0x120] ss:$8 sps:$4 sm:$0xff] (!%p506_p10)  }
  0x40   : > { %1052 = vmatprep.subr.bf16.mxu0 (!%p506_p10), %v1559_v7  ;;  %v1569_v14 = vld [vmem:[%s1920_s9 + $0x34] ss:$8 sps:$4 sm:$0xff] (!%p506_p10)   ;;  %v1573_v16 = vld [vmem:[%s1920_s9 + $0x30] ss:$8 sps:$4 sm:$0xff] (!%p506_p10)   ;;  %v1575_v18 = vld [vmem:[%s1920_s9 + $0x44] ss:$8 sps:$4 sm:$0xff] (!%p506_p10)  }
  0x41   : > { %v1571_v15 = vld [vmem:[%s1920_s9 + $0x134] ss:$8 sps:$4 sm:$0xff]   ;;  %v1574_v17 = vld [vmem:[%s1920_s9 + $0x130] ss:$8 sps:$4 sm:$0xff]   ;;  %v1577_v19 = vld [vmem:[%s1920_s9 + $0x144] ss:$8 sps:$4 sm:$0xff]  }
  0x42   : > { %1010 = vmatpush1.bf16.msra.mxu1 %v1561_v8  ;;  %v1579_v20 = vld [vmem:[%s1920_s9 + $0x40] ss:$8 sps:$4 sm:$0xff]   ;;  %v1581_v22 = vld [vmem:[%s1920_s9 + $0x54] ss:$8 sps:$4 sm:$0xff]   ;;  %v1585_v24 = vld [vmem:[%s1920_s9 + $0x50] ss:$8 sps:$4 sm:$0xff]  }
  0x43   : > { %1053 = vmatpush1.bf16.msra.mxu0 %v1562_v9  ;;  %1011 = vmatprep.subr.bf16.mxu1 %v1563_v10  ;;  %v1580_v21 = vld [vmem:[%s1920_s9 + $0x140] ss:$8 sps:$4 sm:$0xff]   ;;  %v1583_v23 = vld [vmem:[%s1920_s9 + $0x154] ss:$8 sps:$4 sm:$0xff]   ;;  %v1586_v25 = vld [vmem:[%s1920_s9 + $0x150] ss:$8 sps:$4 sm:$0xff]  }
  0x44   : > { %1054 = vmatprep.subr.bf16.mxu0 %v1565_v11  ;;  %v1587_v26 = vld [vmem:[%s1920_s9 + $0x64] ss:$8 sps:$4 sm:$0xff]   ;;  %v1591_v28 = vld [vmem:[%s1920_s9 + $0x60] ss:$8 sps:$4 sm:$0xff]   ;;  %v1593_v30 = vld [vmem:[%s1920_s9 + $0x74] ss:$8 sps:$4 sm:$0xff]  }
  0x45   : > { %v1589_v27 = vld [vmem:[%s1920_s9 + $0x164] ss:$8 sps:$4 sm:$0xff]   ;;  %v1592_v29 = vld [vmem:[%s1920_s9 + $0x160] ss:$8 sps:$4 sm:$0xff]   ;;  %v1595_v31 = vld [vmem:[%s1920_s9 + $0x174] ss:$8 sps:$4 sm:$0xff]  }
  0x46   : > { %1012 = vmatpush1.bf16.msra.mxu1 %v1567_v12  ;;  %v1597_v32 = vld [vmem:[%s1920_s9 + $0x70] ss:$8 sps:$4 sm:$0xff]   ;;  %v1599_v34 = vld [vmem:[%s1920_s9 + $0x84] ss:$8 sps:$4 sm:$0xff]   ;;  %v1603_v36 = vld [vmem:[%s1920_s9 + $0x80] ss:$8 sps:$4 sm:$0xff]  }
  0x47   : > { %1055 = vmatpush1.bf16.msra.mxu0 %v1568_v13  ;;  %1013 = vmatprep.subr.bf16.mxu1 %v1569_v14  ;;  %v1598_v33 = vld [vmem:[%s1920_s9 + $0x170] ss:$8 sps:$4 sm:$0xff]   ;;  %v1601_v35 = vld [vmem:[%s1920_s9 + $0x184] ss:$8 sps:$4 sm:$0xff]   ;;  %v1604_v37 = vld [vmem:[%s1920_s9 + $0x180] ss:$8 sps:$4 sm:$0xff]  }
  0x48   : > { %1056 = vmatprep.subr.bf16.mxu0 %v1571_v15  ;;  %v1605_v38 = vld [vmem:[%s1920_s9 + $0x94] ss:$8 sps:$4 sm:$0xff]   ;;  %v1609_v40 = vld [vmem:[%s1920_s9 + $0x90] ss:$8 sps:$4 sm:$0xff]   ;;  %v1611_v42 = vld [vmem:[%s1920_s9 + $0xa4] ss:$8 sps:$4 sm:$0xff]  }
  0x49   : > { %v1607_v39 = vld [vmem:[%s1920_s9 + $0x194] ss:$8 sps:$4 sm:$0xff]   ;;  %v1610_v41 = vld [vmem:[%s1920_s9 + $0x190] ss:$8 sps:$4 sm:$0xff]   ;;  %v1613_v43 = vld [vmem:[%s1920_s9 + $0x1a4] ss:$8 sps:$4 sm:$0xff]  }
  0x4a   : > { %1014 = vmatpush1.bf16.msra.mxu1 %v1573_v16  ;;  %v1615_v44 = vld [vmem:[%s1920_s9 + $0xa0] ss:$8 sps:$4 sm:$0xff]   ;;  %v1617_v46 = vld [vmem:[%s1920_s9 + $0xb4] ss:$8 sps:$4 sm:$0xff]   ;;  %v1621_v48 = vld [vmem:[%s1920_s9 + $0xb0] ss:$8 sps:$4 sm:$0xff]  }
  0x4b   : > { %1057 = vmatpush1.bf16.msra.mxu0 %v1574_v17  ;;  %1015 = vmatprep.subr.bf16.mxu1 %v1575_v18  ;;  %v1616_v45 = vld [vmem:[%s1920_s9 + $0x1a0] ss:$8 sps:$4 sm:$0xff]   ;;  %v1619_v47 = vld [vmem:[%s1920_s9 + $0x1b4] ss:$8 sps:$4 sm:$0xff]   ;;  %v1622_v49 = vld [vmem:[%s1920_s9 + $0x1b0] ss:$8 sps:$4 sm:$0xff]  }
  0x4c   : > { %1058 = vmatprep.subr.bf16.mxu0 %v1577_v19  ;;  %v1623_v50 = vld [vmem:[%s1920_s9 + $0xc4] ss:$8 sps:$4 sm:$0xff]   ;;  %v1627_v52 = vld [vmem:[%s1920_s9 + $0xc0] ss:$8 sps:$4 sm:$0xff]   ;;  %v1629_v54 = vld [vmem:[%s1920_s9 + $0xd4] ss:$8 sps:$4 sm:$0xff]  }
  0x4d   : > { %v1625_v51 = vld [vmem:[%s1920_s9 + $0x1c4] ss:$8 sps:$4 sm:$0xff]   ;;  %v1628_v53 = vld [vmem:[%s1920_s9 + $0x1c0] ss:$8 sps:$4 sm:$0xff]   ;;  %v1631_v55 = vld [vmem:[%s1920_s9 + $0x1d4] ss:$8 sps:$4 sm:$0xff]  }
  0x4e   : > { %1016 = vmatpush1.bf16.msra.mxu1 %v1579_v20  ;;  %v1633_v56 = vld [vmem:[%s1920_s9 + $0xd0] ss:$8 sps:$4 sm:$0xff]   ;;  %v1635_v58 = vld [vmem:[%s1920_s9 + $0xe4] ss:$8 sps:$4 sm:$0xff]   ;;  %v1639_v60 = vld [vmem:[%s1920_s9 + $0xe0] ss:$8 sps:$4 sm:$0xff]  }
  0x4f   : > { %1059 = vmatpush1.bf16.msra.mxu0 %v1580_v21  ;;  %1017 = vmatprep.subr.bf16.mxu1 %v1581_v22  ;;  %v1634_v57 = vld [vmem:[%s1920_s9 + $0x1d0] ss:$8 sps:$4 sm:$0xff]   ;;  %v1637_v59 = vld [vmem:[%s1920_s9 + $0x1e4] ss:$8 sps:$4 sm:$0xff]   ;;  %v1640_v61 = vld [vmem:[%s1920_s9 + $0x1e0] ss:$8 sps:$4 sm:$0xff]  }
  0x50   : > { %1060 = vmatprep.subr.bf16.mxu0 %v1583_v23  ;;  %v1641_v62 = vld [vmem:[%s1920_s9 + $0xf4] ss:$8 sps:$4 sm:$0xff]   ;;  %v1645_v0 = vld [vmem:[%s1920_s9 + $0xf0] ss:$8 sps:$4 sm:$0xff]   ;;  %s2063_s20 = smov (!%p577_p11, %s1427_s20), 3  ;;  %v1111_v5 = vshrl.u32 %v1110_v4, 7 }
  0x51   : > { %v1643_v63 = vld [vmem:[%s1920_s9 + $0x1f4] ss:$8 sps:$4 sm:$0xff]   ;;  %v1646_v1 = vld [vmem:[%s1920_s9 + $0x1f0] ss:$8 sps:$4 sm:$0xff]   ;;  %s581_s25 = scalar_lea.vmem %s2053_s2, %s2063_s20  ;;  %s1426_s26 = sshll.u32 %s512_s30, 4 }
  0x52   : > { %1018 = vmatpush1.bf16.msra.mxu1 %v1585_v24  ;;  %v1647_v2 = vld [vmem:[%s2051_s0] ss:$16 sps:$4 sm:$0xff]   ;;  %v1650_v3 = vld [vmem:[%s2051_s0 + $0x8] ss:$16 sps:$4 sm:$0xff]   ;;  %v1112_v6 = vsub.s32 0, %v1111_v5  ;;  %v1116_v8 = vsub.s32 1, %v1111_v5 }
  0x53   : > { %1061 = vmatpush1.bf16.msra.mxu0 %v1586_v25  ;;  %1019 = vmatprep.subr.bf16.mxu1 %v1587_v26  ;;  %v1108_v7 = vld [vmem:[%s581_s25] sm:$0x3]  ;;  %s555_s12 = scalar_lea.vmem [#allocation4], %s1426_s26  ;;  %s1506_s27 = sshll.u32 (%p1764_p6), %s1699_s14, 3 }
  0x54   : > { %1062 = vmatprep.subr.bf16.mxu0 %v1589_v27  ;;  %v1113_v9 = vrot.slane %v1108_v7, %v1112_v6  ;;  %v1117_v12 = vrot.slane %v1108_v7, %v1116_v8  ;;  %s1256_s30 = scalar_lea.vmem (%p1764_p6), %s2054_s3, %s1506_s27 }
  0x56   : > { %1020 = vmatpush1.bf16.msra.mxu1 %v1591_v28 }
  0x57   : > { %1063 = vmatpush1.bf16.msra.mxu0 %v1592_v29  ;;  %1021 = vmatprep.subr.bf16.mxu1 %v1593_v30 }
  0x58   : > { %1064 = vmatprep.subr.bf16.mxu0 %v1595_v31 }
  0x5a   : > { %1022 = vmatpush1.bf16.msra.mxu1 %v1597_v32 }
  0x5b   : > { %1065 = vmatpush1.bf16.msra.mxu0 %v1598_v33  ;;  %1023 = vmatprep.subr.bf16.mxu1 %v1599_v34 }
  0x5c   : > { %1066 = vmatprep.subr.bf16.mxu0 %v1601_v35 }
  0x5e   : > { %1024 = vmatpush1.bf16.msra.mxu1 %v1603_v36 }
  0x5f   : > { %1067 = vmatpush1.bf16.msra.mxu0 %v1604_v37  ;;  %1025 = vmatprep.subr.bf16.mxu1 %v1605_v38 }
  0x60   : > { %1068 = vmatprep.subr.bf16.mxu0 %v1607_v39 }
  0x62   : > { %1026 = vmatpush1.bf16.msra.mxu1 %v1609_v40 }
  0x63   : > { %1069 = vmatpush1.bf16.msra.mxu0 %v1610_v41  ;;  %1027 = vmatprep.subr.bf16.mxu1 %v1611_v42 }
  0x64   : > { %1070 = vmatprep.subr.bf16.mxu0 %v1613_v43 }
  0x66   : > { %1028 = vmatpush1.bf16.msra.mxu1 %v1615_v44 }
  0x67   : > { %1071 = vmatpush1.bf16.msra.mxu0 %v1616_v45  ;;  %1029 = vmatprep.subr.bf16.mxu1 %v1617_v46 }
  0x68   : > { %1072 = vmatprep.subr.bf16.mxu0 %v1619_v47 }
  0x6a   : > { %1030 = vmatpush1.bf16.msra.mxu1 %v1621_v48 }
  0x6b   : > { %1073 = vmatpush1.bf16.msra.mxu0 %v1622_v49  ;;  %1031 = vmatprep.subr.bf16.mxu1 %v1623_v50 }
  0x6c   : > { %1074 = vmatprep.subr.bf16.mxu0 %v1625_v51 }
  0x6e   : > { %1032 = vmatpush1.bf16.msra.mxu1 %v1627_v52 }
  0x6f   : > { %1075 = vmatpush1.bf16.msra.mxu0 %v1628_v53  ;;  %1033 = vmatprep.subr.bf16.mxu1 %v1629_v54 }
  0x70   : > { %1076 = vmatprep.subr.bf16.mxu0 %v1631_v55 }
  0x72   : > { %1034 = vmatpush1.bf16.msra.mxu1 %v1633_v56 }
  0x73   : > { %1077 = vmatpush1.bf16.msra.mxu0 %v1634_v57  ;;  %1035 = vmatprep.subr.bf16.mxu1 %v1635_v58 }
  0x74   : > { %1078 = vmatprep.subr.bf16.mxu0 %v1637_v59 }
  0x76   : > { %1036 = vmatpush1.bf16.msra.mxu1 %v1639_v60 }
  0x77   : > { %1079 = vmatpush1.bf16.msra.mxu0 %v1640_v61  ;;  %1037 = vmatprep.subr.bf16.mxu1 %v1641_v62 }
  0x78   : > { %1080 = vmatprep.subr.bf16.mxu0 %v1643_v63 }
  0x7a   : > { %1038 = vmatpush1.bf16.msra.mxu1 %v1645_v0 }
  0x7b   : > { %1081 = vmatpush1.bf16.msra.mxu0 %v1646_v1 }
  0x7d   : > { %1040 = vmatmul.mubr.bf16.vlgmr.msra.gmra.mrb[0].mxu1 %v1647_v2 }
  0x7e   : > { %1083 = vmatmul.mubr.bf16.vlgmr.msra.gmra.mrb[0].mxu0 %v1650_v3 }
 0x150   : > { %v1041_v10 = vpop.f32.mrb[0].mxu1 }
 0x151   : > { %v1084_v11 = vpop.f32.mrb[0].mxu0  ;;  %v1043_v14 = vpop.f32.mrb[1].mxu1 }
 0x152   : > { %v1085_v13 = vadd.f32 %v1084_v11, %v1041_v10  ;;  %v1086_v15 = vpop.f32.mrb[1].mxu0  ;;  %v1045_v17 = vpop.f32.mrb[2].mxu1 }
 0x153   : > { %v1087_v16 = vadd.f32 %v1086_v15, %v1043_v14  ;;  %v1088_v18 = vpop.f32.mrb[2].mxu0  ;;  %v1047_v21 = vpop.f32.mrb[3].mxu1 }
 0x154   : > { %v1996_v19 = vadd.f32 %v1113_v9, %v1085_v13  ;;  %v1089_v20 = vadd.f32 %v1088_v18, %v1045_v17  ;;  %v1090_v22 = vpop.f32.mrb[3].mxu0 }
 0x155   : > { %v1998_v23 = vadd.f32 %v1117_v12, %v1087_v16  ;;  %v1091_v24 = vadd.f32 %v1090_v22, %v1047_v21 }
 0x156   : > { %v2001_v25 = vmul.f32 0.70710677, %v1996_v19  ;;  %v2003_v26 = vadd.f32 %v1113_v9, %v1089_v20 }
 0x157   : > { %v2006_v27 = vmul.f32 0.70710677, %v1998_v23  ;;  %v2008_v28 = vadd.f32 %v1117_v12, %v1091_v24 }
 0x158   : > { %v1128_v29 = vand.u32 2147483647, %v2001_v25  ;;  %v2012_v30 = vmul.f32 0.70710677, %v2003_v26  ;;  %vm1204_vm0 = vcmp.lt.f32.partialorder %v2001_v25, 0.0 }
 0x159   : > { %v1129_v31 = vand.u32 2147483647, %v2006_v27  ;;  %v2016_v32 = vmul.f32 0.70710677, %v2008_v28  ;;  %vm1205_vm1 = vcmp.lt.f32.partialorder %v2006_v27, 0.0  ;;  %v1218_v27 = vmul.f32 0.5, %v2003_v26 }
 0x15a   : > { %v1132_v33 = vmul.f32 0.3275911, %v1128_v29  ;;  %v1130_v34 = vand.u32 2147483647, %v2012_v30  ;;  %v1180_v43 = vsub.f32 0.0, %v1128_v29  ;;  %vm1206_vm2 = vcmp.lt.f32.partialorder %v2012_v30, 0.0 }
 0x15b   : > { %v1133_v35 = vmul.f32 0.3275911, %v1129_v31  ;;  %v1131_v36 = vand.u32 2147483647, %v2016_v32  ;;  %v1181_v44 = vsub.f32 0.0, %v1129_v31  ;;  %vm1207_vm3 = vcmp.lt.f32.partialorder %v2016_v32, 0.0 }
 0x15c   : > { %v1136_v37 = vadd.f32 1.0, %v1132_v33  ;;  %v1134_v38 = vmul.f32 0.3275911, %v1130_v34  ;;  %v1184_v46 = vmul.f32 %v1180_v43, %v1128_v29  ;;  %v1182_v47 = vsub.f32 0.0, %v1130_v34 }
 0x15d   : > { %v1137_v39 = vadd.f32 1.0, %v1133_v35  ;;  %v1135_v40 = vmul.f32 0.3275911, %v1131_v36  ;;  %v1185_v50 = vmul.f32 %v1181_v44, %v1129_v31  ;;  %v1183_v52 = vsub.f32 0.0, %v1131_v36 }
 0x15e   : > { %1653 = vrcp.f32 %v1136_v37  ;;  %v1138_v41 = vadd.f32 1.0, %v1134_v38  ;;  %v1188_v55 = vmul.f32 1.442695, %v1184_v46  ;;  %v1186_v57 = vmul.f32 %v1182_v47, %v1130_v34 }
 0x15f   : > { %1655 = vrcp.f32 %v1137_v39  ;;  %v1139_v42 = vadd.f32 1.0, %v1135_v40  ;;  %v1190_v59 = vmul.f32 1.442695, %v1185_v50  ;;  %v1187_v63 = vmul.f32 %v1183_v52, %v1131_v36 }
 0x160   : > { %1657 = vrcp.f32 %v1138_v41  ;;  %v1192_v4 = vmul.f32 1.442695, %v1186_v57 }
 0x161   : > { %1659 = vrcp.f32 %v1139_v42  ;;  %v1194_v9 = vmul.f32 1.442695, %v1187_v63 }
 0x162   : > { %1661 = vpow2.f32 %v1188_v55 }
 0x163   : > { %1663 = vpow2.f32 %v1190_v59 }
 0x164   : > { %1665 = vpow2.f32 %v1192_v4 }
 0x165   : > { %1667 = vpow2.f32 %v1194_v9 }
 0x168   : > { %v1654_v45 = vpop.eup %1653 }
 0x169   : > { %v1656_v48 = vpop.eup %1655  ;;  %v1144_v49 = vmul.f32 1.0614054, %v1654_v45 }
 0x16a   : > { %v1145_v51 = vmul.f32 1.0614054, %v1656_v48  ;;  %v1658_v54 = vpop.eup %1657 }
 0x16b   : > { %v1148_v53 = vadd.f32 -1.4531521, %v1144_v49  ;;  %v1146_v60 = vmul.f32 1.0614054, %v1658_v54  ;;  %v1660_v61 = vpop.eup %1659 }
 0x16c   : > { %v1149_v56 = vadd.f32 -1.4531521, %v1145_v51  ;;  %v1147_v2 = vmul.f32 1.0614054, %v1660_v61  ;;  %v1662_v33 = vpop.eup %1661 }
 0x16d   : > { %v1152_v58 = vmul.f32 %v1654_v45, %v1148_v53  ;;  %v1150_v1 = vadd.f32 -1.4531521, %v1146_v60  ;;  %v1664_v35 = vpop.eup %1663  ;;  %v1216_v53 = vmul.f32 0.5, %v1996_v19 }
 0x16e   : > { %v1153_v62 = vmul.f32 %v1656_v48, %v1149_v56  ;;  %v1151_v7 = vadd.f32 -1.4531521, %v1147_v2  ;;  %v1666_v43 = vpop.eup %1665  ;;  %v1217_v56 = vmul.f32 0.5, %v1998_v23  ;;  %v1219_v2 = vmul.f32 0.5, %v2008_v28 }
 0x16f   : > { %v1156_v0 = vadd.f32 1.4214138, %v1152_v58  ;;  %v1154_v6 = vmul.f32 %v1658_v54, %v1150_v1  ;;  %v1668_v50 = vpop.eup %1667 }
 0x170   : > { %v1157_v3 = vadd.f32 1.4214138, %v1153_v62  ;;  %v1155_v12 = vmul.f32 %v1660_v61, %v1151_v7 }
 0x171   : > { %v1160_v5 = vmul.f32 %v1654_v45, %v1156_v0  ;;  %v1158_v11 = vadd.f32 1.4214138, %v1154_v6 }
 0x172   : > { %v1161_v8 = vmul.f32 %v1656_v48, %v1157_v3  ;;  %v1159_v16 = vadd.f32 1.4214138, %v1155_v12 }
 0x173   : > { %v1164_v10 = vadd.f32 -0.28449672, %v1160_v5  ;;  %v1162_v15 = vmul.f32 %v1658_v54, %v1158_v11 }
 0x174   : > { %v1165_v13 = vadd.f32 -0.28449672, %v1161_v8  ;;  %v1163_v21 = vmul.f32 %v1660_v61, %v1159_v16 }
 0x175   : > { %v1168_v14 = vmul.f32 %v1654_v45, %v1164_v10  ;;  %v1166_v20 = vadd.f32 -0.28449672, %v1162_v15 }
 0x176   : > { %v1169_v17 = vmul.f32 %v1656_v48, %v1165_v13  ;;  %v1167_v31 = vadd.f32 -0.28449672, %v1163_v21 }
 0x177   : > { %v1172_v18 = vadd.f32 0.2548296, %v1168_v14  ;;  %v1170_v29 = vmul.f32 %v1658_v54, %v1166_v20 }
 0x178   : > { %v1173_v22 = vadd.f32 0.2548296, %v1169_v17  ;;  %v1171_v38 = vmul.f32 %v1660_v61, %v1167_v31 }
 0x179   : > { %v1176_v24 = vmul.f32 %v1654_v45, %v1172_v18  ;;  %v1174_v37 = vadd.f32 0.2548296, %v1170_v29 }
 0x17a   : > { %v1177_v34 = vmul.f32 %v1656_v48, %v1173_v22  ;;  %v1175_v42 = vadd.f32 0.2548296, %v1171_v38 }
 0x17b   : > { %v1196_v36 = vmul.f32 %v1662_v33, %v1176_v24  ;;  %v1178_v41 = vmul.f32 %v1658_v54, %v1174_v37 }
 0x17c   : > { %v1197_v39 = vmul.f32 %v1664_v35, %v1177_v34  ;;  %v1179_v49 = vmul.f32 %v1660_v61, %v1175_v42 }
 0x17d   : > { %v1200_v40 = vsub.f32 1.0, %v1196_v36  ;;  %v1198_v47 = vmul.f32 %v1666_v43, %v1178_v41 }
 0x17e   : > { %v1201_v44 = vsub.f32 1.0, %v1197_v39  ;;  %v1199_v52 = vmul.f32 %v1668_v50, %v1179_v49 }
 0x17f   : > { %v1208_v46 = vsub.f32 0.0, %v1200_v40  ;;  %v1202_v48 = vsub.f32 1.0, %v1198_v47 }
 0x180   : > { %v1209_v45 = vsub.f32 0.0, %v1201_v44  ;;  %v1203_v59 = vsub.f32 1.0, %v1199_v52 }
 0x181   : > { %v1212_v51 = vsel %vm1204_vm0, %v1208_v46, %v1200_v40  ;;  %v1210_v58 = vsub.f32 0.0, %v1202_v48 }
 0x182   : > { %v1220_v55 = vadd.f32 1.0, %v1212_v51  ;;  %v1213_v54 = vsel %vm1205_vm1, %v1209_v45, %v1201_v44  ;;  %v1211_v62 = vsub.f32 0.0, %v1203_v59 }
 0x183   : > { %v1221_v57 = vadd.f32 1.0, %v1213_v54  ;;  %v1214_v61 = vsel %vm1206_vm2, %v1210_v58, %v1202_v48 }
 0x184   : > { %v1224_v60 = vmul.f32 %v1220_v55, %v1216_v53  ;;  %v1222_v63 = vadd.f32 1.0, %v1214_v61  ;;  %v1215_v0 = vsel %vm1207_vm3, %v1211_v62, %v1203_v59 }
 0x185   : > { %v1225_v25 = vmul.f32 %v1221_v57, %v1217_v56  ;;  %v1223_v23 = vadd.f32 1.0, %v1215_v0  ;;  %1248 = sbr.rel (!%p1764_p6) target bundleno = 404 (0x194), region = 82 }
 0x186   : > { %v1226_v1 = vmul.f32 %v1222_v63, %v1218_v27 }
 0x187   : > { %v1504_v19 = vpack.c.bf16 %v1225_v25, %v1224_v60  ;;  %v1227_v3 = vmul.f32 %v1223_v23, %v1219_v2 }
 0x189   : > { %1240 = vst [vmem:[%s555_s12] sm:$0xff] %v1504_v19  ;;  %v1505_v4 = vpack.c.bf16 %v1227_v3, %v1226_v1 }
 0x18b   : > { %1241 = vst [vmem:[%s555_s12 + $0x8] sm:$0xff] %v1505_v4 }
 0x190   : > { %v1286_v26 = vld [vmem:[%s555_s12] sm:$0xff] }
 0x191   : > { %1287 = vst [vmem:[%s1256_s30] sm:$0xff] %v1286_v26 }
 0x192   : > { %v1288_v30 = vld [vmem:[%s555_s12 + $0x8] sm:$0xff] }
 0x193   : > { %1289 = vst [vmem:[%s1256_s30 + $0x10] sm:$0xff] %v1288_v30 }
 0x194 PF: > { %s13_s16 = sadd.s32 1, %s1707_s16   ;;  %s2056_s12 = smov %s1695_s13 }
 0x195   : > { %p10_p12 = scmp.ge.s32.totalorder %s13_s16, 4   ;;  %s2057_s13 = smov %s1769_s22 }
 0x196   : > { %s2058_s14 = smov %s1703_s15  ;;  %s2059_s15 = smov %s2061_s17 }
 0x197   :  { %12 = sbr.rel (!%p10_p12) target bundleno = 3 (0x3), region = 157 }

// kernel: forward.93
= control target key start
LH: loop header
LB: loop body
LE: loop exit
PB: predicated region body
PF: predicated region fallthrough
CT: control target
= control target key end

     0   :  { %s1993_s15 = smov 0   ;;  %s1995_s16 = smov 0   ;;  %s2364_s0 = inlined_call_operand.vmem [shape: bf16[1,16,512], index: 0, kind: input, shape index: {}]   ;;  %s2365_s1 = inlined_call_operand.vmem [shape: bf16[1,512,512], index: 1, kind: input, shape index: {}]   ;;  %s2366_s2 = inlined_call_operand.vmem [shape: f32[1,1,512], index: 2, kind: input, shape index: {}]   ;;  %s2367_s3 = inlined_call_operand.vmem [shape: bf16[16,512], index: 3, kind: input, shape index: {}]   ;;  %s2368_s4 = inlined_call_operand.vmem [shape: bf16[16,512], index: 4, kind: output, shape index: {}]  }
   0x1   :  { %s1997_s17 = smov 0   ;;  %s1999_s18 = smov 0  }
   0x2   :  { %s2001_s19 = smov 0  }
   0x3 LB: > { %s32_s20 = sadd.s32 1, %s1962_s18  ;;  %s1654_s21 = sadd.s32 4294967295, %s1966_s19   ;;  %s1966_s19 = sphi %s2001_s19, %s14_s19   ;;  %s1962_s18 = sphi %s1999_s18, %s2374_s18   ;;  %s1958_s17 = sphi %s1997_s17, %s2373_s17   ;;  %s1954_s16 = sphi %s1995_s16, %s2372_s16   ;;  %s1950_s15 = sphi %s1993_s15, %s2371_s15  }
   0x4   : > { %p34_p0 = scmp.ge.s32.totalorder %s32_s20, 2  ;;  %p88_p1 = scmp.ne.s32.totalorder %s1954_s16, %s1950_s15 }
   0x5   : > { %p89_p2 = scmp.eq.s32.totalorder %s1966_s19, 0  ;;  %p184_p4 = scmp.eq.s32.totalorder %s1654_s21, 1 }
   0x6   : > { %s2376_s20 = smov (%p34_p0, %s32_s20), 0  ;;  %s81_s24 = sadd.s32 1, %s1954_s16 }
   0x7   : > { %p2025_p3 = por %p89_p2, %p88_p1  ;;  %s77_s23 = ssub.s32 %s1962_s18, %s2376_s20 }
   0x8   : > { %p79_p5 = scmp.eq.s32.totalorder %s77_s23, 0  ;;  %p2032_p6 = por %p184_p4, %p88_p1 }
   0x9   : > { %p1658_p7 = scmp.ge.s32.totalorder %s1966_s19, 2 }
   0xa   : > { %s2037_s26 = scalar_select %p79_p5, %s1954_s16, %s81_s24  }
   0xb   : > { %225 = sbr.rel (%p1658_p7) target bundleno = 61 (0x3d), region = 20 }
  0x12   : > { %228 = sbr.rel (!%p2025_p3) target bundleno = 54 (0x36), region = 24  ;;  %s230_s27 = sand.u32 (%p2025_p3), 1, %s1954_s16  }
  0x13   : > { %s1745_s28 = sshll.u32 (%p2025_p3), %s1962_s18, 3  ;;  %s1659_s29 = sshll.u32 (%p2025_p3), %s230_s27, 9 }
  0x14   : > { %s2047_s6 = scalar_lea.vmem (%p2025_p3), %s2365_s1, %s1745_s28  ;;  %s2052_s7 = scalar_lea.vmem (%p2025_p3), [#allocation3], %s1659_s29 }
  0x15   : > { %v394_v0 = vld [vmem:[%s2047_s6] sm:$0xff] (%p2025_p3)  ;;  %v396_v1 = vld [vmem:[%s2047_s6 + $0x10] sm:$0xff] (%p2025_p3) }
  0x16   : > { %v398_v2 = vld [vmem:[%s2047_s6 + $0x20] sm:$0xff] (%p2025_p3)  ;;  %395 = vst [vmem:[%s2052_s7] sm:$0xff] (%p2025_p3), %v394_v0  ;;  %397 = vst [vmem:[%s2052_s7 + $0x8] sm:$0xff] (%p2025_p3), %v396_v1  ;;  %v400_v3 = vld [vmem:[%s2047_s6 + $0x30] sm:$0xff] (%p2025_p3) }
  0x17   : > { %399 = vst [vmem:[%s2052_s7 + $0x10] sm:$0xff] (%p2025_p3), %v398_v2  ;;  %v402_v4 = vld [vmem:[%s2047_s6 + $0x40] sm:$0xff] (%p2025_p3)  ;;  %v404_v5 = vld [vmem:[%s2047_s6 + $0x50] sm:$0xff] (%p2025_p3)  ;;  %401 = vst [vmem:[%s2052_s7 + $0x18] sm:$0xff] (%p2025_p3), %v400_v3 }
  0x18   : > { %403 = vst [vmem:[%s2052_s7 + $0x20] sm:$0xff] (%p2025_p3), %v402_v4  ;;  %405 = vst [vmem:[%s2052_s7 + $0x28] sm:$0xff] (%p2025_p3), %v404_v5  ;;  %v406_v6 = vld [vmem:[%s2047_s6 + $0x60] sm:$0xff] (%p2025_p3)  ;;  %v408_v7 = vld [vmem:[%s2047_s6 + $0x70] sm:$0xff] (%p2025_p3) }
  0x19   : > { %v410_v8 = vld [vmem:[%s2047_s6 + $0x80] sm:$0xff]  ;;  %407 = vst [vmem:[%s2052_s7 + $0x30] sm:$0xff] %v406_v6  ;;  %409 = vst [vmem:[%s2052_s7 + $0x38] sm:$0xff] %v408_v7  ;;  %v412_v9 = vld [vmem:[%s2047_s6 + $0x90] sm:$0xff] }
  0x1a   : > { %411 = vst [vmem:[%s2052_s7 + $0x40] sm:$0xff] %v410_v8  ;;  %v414_v10 = vld [vmem:[%s2047_s6 + $0xa0] sm:$0xff]  ;;  %v416_v11 = vld [vmem:[%s2047_s6 + $0xb0] sm:$0xff]  ;;  %413 = vst [vmem:[%s2052_s7 + $0x48] sm:$0xff] %v412_v9 }
  0x1b   : > { %415 = vst [vmem:[%s2052_s7 + $0x50] sm:$0xff] %v414_v10  ;;  %417 = vst [vmem:[%s2052_s7 + $0x58] sm:$0xff] %v416_v11  ;;  %v418_v12 = vld [vmem:[%s2047_s6 + $0xc0] sm:$0xff]  ;;  %v420_v13 = vld [vmem:[%s2047_s6 + $0xd0] sm:$0xff] }
  0x1c   : > { %v422_v14 = vld [vmem:[%s2047_s6 + $0xe0] sm:$0xff]  ;;  %419 = vst [vmem:[%s2052_s7 + $0x60] sm:$0xff] %v418_v12  ;;  %421 = vst [vmem:[%s2052_s7 + $0x68] sm:$0xff] %v420_v13  ;;  %v424_v15 = vld [vmem:[%s2047_s6 + $0xf0] sm:$0xff] }
  0x1d   : > { %423 = vst [vmem:[%s2052_s7 + $0x70] sm:$0xff] %v422_v14  ;;  %v426_v16 = vld [vmem:[%s2047_s6 + $0x100] sm:$0xff]  ;;  %v428_v17 = vld [vmem:[%s2047_s6 + $0x110] sm:$0xff]  ;;  %425 = vst [vmem:[%s2052_s7 + $0x78] sm:$0xff] %v424_v15 }
  0x1e   : > { %427 = vst [vmem:[%s2052_s7 + $0x80] sm:$0xff] %v426_v16  ;;  %429 = vst [vmem:[%s2052_s7 + $0x88] sm:$0xff] %v428_v17  ;;  %v430_v18 = vld [vmem:[%s2047_s6 + $0x120] sm:$0xff]  ;;  %v432_v19 = vld [vmem:[%s2047_s6 + $0x130] sm:$0xff] }
  0x1f   : > { %v434_v20 = vld [vmem:[%s2047_s6 + $0x140] sm:$0xff]  ;;  %431 = vst [vmem:[%s2052_s7 + $0x90] sm:$0xff] %v430_v18  ;;  %433 = vst [vmem:[%s2052_s7 + $0x98] sm:$0xff] %v432_v19  ;;  %v436_v21 = vld [vmem:[%s2047_s6 + $0x150] sm:$0xff] }
  0x20   : > { %435 = vst [vmem:[%s2052_s7 + $0xa0] sm:$0xff] %v434_v20  ;;  %v438_v22 = vld [vmem:[%s2047_s6 + $0x160] sm:$0xff]  ;;  %v440_v23 = vld [vmem:[%s2047_s6 + $0x170] sm:$0xff]  ;;  %437 = vst [vmem:[%s2052_s7 + $0xa8] sm:$0xff] %v436_v21 }
  0x21   : > { %439 = vst [vmem:[%s2052_s7 + $0xb0] sm:$0xff] %v438_v22  ;;  %441 = vst [vmem:[%s2052_s7 + $0xb8] sm:$0xff] %v440_v23  ;;  %v442_v24 = vld [vmem:[%s2047_s6 + $0x180] sm:$0xff]  ;;  %v444_v25 = vld [vmem:[%s2047_s6 + $0x190] sm:$0xff] }
  0x22   : > { %v446_v26 = vld [vmem:[%s2047_s6 + $0x1a0] sm:$0xff]  ;;  %443 = vst [vmem:[%s2052_s7 + $0xc0] sm:$0xff] %v442_v24  ;;  %445 = vst [vmem:[%s2052_s7 + $0xc8] sm:$0xff] %v444_v25  ;;  %v448_v27 = vld [vmem:[%s2047_s6 + $0x1b0] sm:$0xff] }
  0x23   : > { %447 = vst [vmem:[%s2052_s7 + $0xd0] sm:$0xff] %v446_v26  ;;  %v450_v28 = vld [vmem:[%s2047_s6 + $0x1c0] sm:$0xff]  ;;  %v452_v29 = vld [vmem:[%s2047_s6 + $0x1d0] sm:$0xff]  ;;  %449 = vst [vmem:[%s2052_s7 + $0xd8] sm:$0xff] %v448_v27 }
  0x24   : > { %451 = vst [vmem:[%s2052_s7 + $0xe0] sm:$0xff] %v450_v28  ;;  %453 = vst [vmem:[%s2052_s7 + $0xe8] sm:$0xff] %v452_v29  ;;  %v454_v30 = vld [vmem:[%s2047_s6 + $0x1e0] sm:$0xff]  ;;  %v456_v31 = vld [vmem:[%s2047_s6 + $0x1f0] sm:$0xff] }
  0x25   : > { %v458_v32 = vld [vmem:[%s2047_s6 + $0x200] sm:$0xff]  ;;  %455 = vst [vmem:[%s2052_s7 + $0xf0] sm:$0xff] %v454_v30  ;;  %457 = vst [vmem:[%s2052_s7 + $0xf8] sm:$0xff] %v456_v31  ;;  %v460_v33 = vld [vmem:[%s2047_s6 + $0x210] sm:$0xff] }
  0x26   : > { %459 = vst [vmem:[%s2052_s7 + $0x100] sm:$0xff] %v458_v32  ;;  %v462_v34 = vld [vmem:[%s2047_s6 + $0x220] sm:$0xff]  ;;  %v464_v35 = vld [vmem:[%s2047_s6 + $0x230] sm:$0xff]  ;;  %461 = vst [vmem:[%s2052_s7 + $0x108] sm:$0xff] %v460_v33 }
  0x27   : > { %463 = vst [vmem:[%s2052_s7 + $0x110] sm:$0xff] %v462_v34  ;;  %465 = vst [vmem:[%s2052_s7 + $0x118] sm:$0xff] %v464_v35  ;;  %v466_v36 = vld [vmem:[%s2047_s6 + $0x240] sm:$0xff]  ;;  %v468_v37 = vld [vmem:[%s2047_s6 + $0x250] sm:$0xff] }
  0x28   : > { %v470_v38 = vld [vmem:[%s2047_s6 + $0x260] sm:$0xff]  ;;  %467 = vst [vmem:[%s2052_s7 + $0x120] sm:$0xff] %v466_v36  ;;  %469 = vst [vmem:[%s2052_s7 + $0x128] sm:$0xff] %v468_v37  ;;  %v472_v39 = vld [vmem:[%s2047_s6 + $0x270] sm:$0xff] }
  0x29   : > { %471 = vst [vmem:[%s2052_s7 + $0x130] sm:$0xff] %v470_v38  ;;  %v474_v40 = vld [vmem:[%s2047_s6 + $0x280] sm:$0xff]  ;;  %v476_v41 = vld [vmem:[%s2047_s6 + $0x290] sm:$0xff]  ;;  %473 = vst [vmem:[%s2052_s7 + $0x138] sm:$0xff] %v472_v39 }
  0x2a   : > { %475 = vst [vmem:[%s2052_s7 + $0x140] sm:$0xff] %v474_v40  ;;  %477 = vst [vmem:[%s2052_s7 + $0x148] sm:$0xff] %v476_v41  ;;  %v478_v42 = vld [vmem:[%s2047_s6 + $0x2a0] sm:$0xff]  ;;  %v480_v43 = vld [vmem:[%s2047_s6 + $0x2b0] sm:$0xff] }
  0x2b   : > { %v482_v44 = vld [vmem:[%s2047_s6 + $0x2c0] sm:$0xff]  ;;  %479 = vst [vmem:[%s2052_s7 + $0x150] sm:$0xff] %v478_v42  ;;  %481 = vst [vmem:[%s2052_s7 + $0x158] sm:$0xff] %v480_v43  ;;  %v484_v45 = vld [vmem:[%s2047_s6 + $0x2d0] sm:$0xff] }
  0x2c   : > { %483 = vst [vmem:[%s2052_s7 + $0x160] sm:$0xff] %v482_v44  ;;  %v486_v46 = vld [vmem:[%s2047_s6 + $0x2e0] sm:$0xff]  ;;  %v488_v47 = vld [vmem:[%s2047_s6 + $0x2f0] sm:$0xff]  ;;  %485 = vst [vmem:[%s2052_s7 + $0x168] sm:$0xff] %v484_v45 }
  0x2d   : > { %487 = vst [vmem:[%s2052_s7 + $0x170] sm:$0xff] %v486_v46  ;;  %489 = vst [vmem:[%s2052_s7 + $0x178] sm:$0xff] %v488_v47  ;;  %v490_v48 = vld [vmem:[%s2047_s6 + $0x300] sm:$0xff]  ;;  %v492_v49 = vld [vmem:[%s2047_s6 + $0x310] sm:$0xff] }
  0x2e   : > { %v494_v50 = vld [vmem:[%s2047_s6 + $0x320] sm:$0xff]  ;;  %491 = vst [vmem:[%s2052_s7 + $0x180] sm:$0xff] %v490_v48  ;;  %493 = vst [vmem:[%s2052_s7 + $0x188] sm:$0xff] %v492_v49  ;;  %v496_v51 = vld [vmem:[%s2047_s6 + $0x330] sm:$0xff] }
  0x2f   : > { %495 = vst [vmem:[%s2052_s7 + $0x190] sm:$0xff] %v494_v50  ;;  %v498_v52 = vld [vmem:[%s2047_s6 + $0x340] sm:$0xff]  ;;  %v500_v53 = vld [vmem:[%s2047_s6 + $0x350] sm:$0xff]  ;;  %497 = vst [vmem:[%s2052_s7 + $0x198] sm:$0xff] %v496_v51 }
  0x30   : > { %499 = vst [vmem:[%s2052_s7 + $0x1a0] sm:$0xff] %v498_v52  ;;  %501 = vst [vmem:[%s2052_s7 + $0x1a8] sm:$0xff] %v500_v53  ;;  %v502_v54 = vld [vmem:[%s2047_s6 + $0x360] sm:$0xff]  ;;  %v504_v55 = vld [vmem:[%s2047_s6 + $0x370] sm:$0xff] }
  0x31   : > { %v506_v56 = vld [vmem:[%s2047_s6 + $0x380] sm:$0xff]  ;;  %503 = vst [vmem:[%s2052_s7 + $0x1b0] sm:$0xff] %v502_v54  ;;  %505 = vst [vmem:[%s2052_s7 + $0x1b8] sm:$0xff] %v504_v55  ;;  %v508_v57 = vld [vmem:[%s2047_s6 + $0x390] sm:$0xff] }
  0x32   : > { %507 = vst [vmem:[%s2052_s7 + $0x1c0] sm:$0xff] %v506_v56  ;;  %v510_v58 = vld [vmem:[%s2047_s6 + $0x3a0] sm:$0xff]  ;;  %v512_v59 = vld [vmem:[%s2047_s6 + $0x3b0] sm:$0xff]  ;;  %509 = vst [vmem:[%s2052_s7 + $0x1c8] sm:$0xff] %v508_v57 }
  0x33   : > { %511 = vst [vmem:[%s2052_s7 + $0x1d0] sm:$0xff] %v510_v58  ;;  %513 = vst [vmem:[%s2052_s7 + $0x1d8] sm:$0xff] %v512_v59  ;;  %v514_v60 = vld [vmem:[%s2047_s6 + $0x3c0] sm:$0xff]  ;;  %v516_v61 = vld [vmem:[%s2047_s6 + $0x3d0] sm:$0xff] }
  0x34   : > { %v518_v62 = vld [vmem:[%s2047_s6 + $0x3e0] sm:$0xff]  ;;  %515 = vst [vmem:[%s2052_s7 + $0x1e0] sm:$0xff] %v514_v60  ;;  %517 = vst [vmem:[%s2052_s7 + $0x1e8] sm:$0xff] %v516_v61  ;;  %v520_v63 = vld [vmem:[%s2047_s6 + $0x3f0] sm:$0xff] }
  0x35   : > { %519 = vst [vmem:[%s2052_s7 + $0x1f0] sm:$0xff] %v518_v62  ;;  %521 = vst [vmem:[%s2052_s7 + $0x1f8] sm:$0xff] %v520_v63 }
  0x36 PF: > { %539 = sbr.rel (!%p2025_p3) target bundleno = 61 (0x3d), region = 66  ;;  %s541_s8 = sand.u32 (%p2025_p3), 1, %s1954_s16  }
  0x37   : > { %s1746_s9 = sshll.u32 (%p2025_p3), %s1962_s18, 3  ;;  %s1662_s10 = sshll.u32 (%p2025_p3), %s541_s8, 4 }
  0x38   : > { %s551_s13 = scalar_lea.vmem (%p2025_p3), %s2367_s3, %s1746_s9  ;;  %s543_s14 = scalar_lea.vmem (%p2025_p3), [#allocation4], %s1662_s10 }
  0x39   : > { %v581_v0 = vld [vmem:[%s551_s13] sm:$0xff] (%p2025_p3)  ;;  %v583_v1 = vld [vmem:[%s551_s13 + $0x10] sm:$0xff] (%p2025_p3) }
  0x3a   : > { %582 = vst [vmem:[%s543_s14] sm:$0xff] (%p2025_p3), %v581_v0  ;;  %584 = vst [vmem:[%s543_s14 + $0x8] sm:$0xff] (%p2025_p3), %v583_v1 }
  0x3d PF: > { %p1665_p8 = scmp.ge.s32.totalorder %s1966_s19, 1  ;;  %p589_p9 = scmp.lt.s32.totalorder %s1966_s19, 3 }
  0x3f   : > { %p590_p10 = pnand %p1665_p8, %p589_p9 }
  0x40   : > { %s596_s21 = sand.u32 (!%p590_p10), 1, %s1950_s15   ;;  %v1892_v2 = vld [vmem:[%s2364_s0 + $0x4] ss:$16 sps:$4 sm:$0xff] (!%p590_p10)   ;;  %v1895_v3 = vld [vmem:[%s2364_s0 + $0xc] ss:$16 sps:$4 sm:$0xff] (!%p590_p10)   ;;  %s1669_s8 = sshll.u32 (!%p590_p10), %s1958_s17, 1 }
  0x41   : > { %593 = sbr.rel (%p590_p10) target bundleno = 461 (0x1cd), region = 104  ;;  %s1666_s22 = sshll.u32 (!%p590_p10), %s596_s21, 9  ;;  %1140 = vmatprep.mubr.bf16.mxu1 (!%p590_p10), %v1892_v2  ;;  %1183 = vmatprep.mubr.bf16.mxu0 (!%p590_p10), %v1895_v3 }
  0x42   : > { %s2197_s29 = scalar_lea.vmem (!%p590_p10), [#allocation3], %s1666_s22  ;;  %p674_p11 = scmp.lt.s32.totalorder (!%p590_p10), %s1669_s8, 3 }
  0x43   : > { %v1794_v4 = vld [vmem:[%s2197_s29 + $0x4] ss:$8 sps:$4 sm:$0xff] (!%p590_p10)   ;;  %v1798_v6 = vld [vmem:[%s2197_s29] ss:$8 sps:$4 sm:$0xff] (!%p590_p10)   ;;  %v1800_v8 = vld [vmem:[%s2197_s29 + $0x14] ss:$8 sps:$4 sm:$0xff] (!%p590_p10)  }
  0x44   : > { %v1796_v5 = vld [vmem:[%s2197_s29 + $0x104] ss:$8 sps:$4 sm:$0xff] (!%p590_p10)   ;;  %1108 = vmatprep.subr.bf16.mxu1 (!%p590_p10), %v1794_v4  ;;  %v1799_v7 = vld [vmem:[%s2197_s29 + $0x100] ss:$8 sps:$4 sm:$0xff] (!%p590_p10)   ;;  %v1802_v9 = vld [vmem:[%s2197_s29 + $0x114] ss:$8 sps:$4 sm:$0xff] (!%p590_p10)  }
  0x45   : > { %1151 = vmatprep.subr.bf16.mxu0 (!%p590_p10), %v1796_v5  ;;  %1109 = vmatpush1.bf16.msra.mxu1 (!%p590_p10), %v1798_v6  ;;  %v1804_v10 = vld [vmem:[%s2197_s29 + $0x10] ss:$8 sps:$4 sm:$0xff] (!%p590_p10)   ;;  %v1806_v12 = vld [vmem:[%s2197_s29 + $0x24] ss:$8 sps:$4 sm:$0xff] (!%p590_p10)   ;;  %v1810_v14 = vld [vmem:[%s2197_s29 + $0x20] ss:$8 sps:$4 sm:$0xff] (!%p590_p10)   ;;  %v1211_v6 = vlaneseq (!%p590_p10) }
  0x46   : > { %1152 = vmatpush1.bf16.msra.mxu0 (!%p590_p10), %v1799_v7  ;;  %1110 = vmatprep.subr.bf16.mxu1 (!%p590_p10), %v1800_v8  ;;  %v1805_v11 = vld [vmem:[%s2197_s29 + $0x110] ss:$8 sps:$4 sm:$0xff] (!%p590_p10)   ;;  %v1808_v13 = vld [vmem:[%s2197_s29 + $0x124] ss:$8 sps:$4 sm:$0xff] (!%p590_p10)   ;;  %v1811_v15 = vld [vmem:[%s2197_s29 + $0x120] ss:$8 sps:$4 sm:$0xff] (!%p590_p10)  }
  0x47   : > { %1153 = vmatprep.subr.bf16.mxu0 (!%p590_p10), %v1802_v9  ;;  %v1812_v16 = vld [vmem:[%s2197_s29 + $0x34] ss:$8 sps:$4 sm:$0xff] (!%p590_p10)   ;;  %v1816_v18 = vld [vmem:[%s2197_s29 + $0x30] ss:$8 sps:$4 sm:$0xff] (!%p590_p10)   ;;  %v1818_v20 = vld [vmem:[%s2197_s29 + $0x44] ss:$8 sps:$4 sm:$0xff] (!%p590_p10)  }
  0x48   : > { %v1814_v17 = vld [vmem:[%s2197_s29 + $0x134] ss:$8 sps:$4 sm:$0xff]   ;;  %v1817_v19 = vld [vmem:[%s2197_s29 + $0x130] ss:$8 sps:$4 sm:$0xff]   ;;  %v1820_v21 = vld [vmem:[%s2197_s29 + $0x144] ss:$8 sps:$4 sm:$0xff]  }
  0x49   : > { %1111 = vmatpush1.bf16.msra.mxu1 %v1804_v10  ;;  %v1822_v22 = vld [vmem:[%s2197_s29 + $0x40] ss:$8 sps:$4 sm:$0xff]   ;;  %v1824_v24 = vld [vmem:[%s2197_s29 + $0x54] ss:$8 sps:$4 sm:$0xff]   ;;  %v1828_v26 = vld [vmem:[%s2197_s29 + $0x50] ss:$8 sps:$4 sm:$0xff]  }
  0x4a   : > { %1154 = vmatpush1.bf16.msra.mxu0 %v1805_v11  ;;  %1112 = vmatprep.subr.bf16.mxu1 %v1806_v12  ;;  %v1823_v23 = vld [vmem:[%s2197_s29 + $0x140] ss:$8 sps:$4 sm:$0xff]   ;;  %v1826_v25 = vld [vmem:[%s2197_s29 + $0x154] ss:$8 sps:$4 sm:$0xff]   ;;  %v1829_v27 = vld [vmem:[%s2197_s29 + $0x150] ss:$8 sps:$4 sm:$0xff]  }
  0x4b   : > { %1155 = vmatprep.subr.bf16.mxu0 %v1808_v13  ;;  %v1830_v28 = vld [vmem:[%s2197_s29 + $0x64] ss:$8 sps:$4 sm:$0xff]   ;;  %v1834_v30 = vld [vmem:[%s2197_s29 + $0x60] ss:$8 sps:$4 sm:$0xff]   ;;  %v1836_v32 = vld [vmem:[%s2197_s29 + $0x74] ss:$8 sps:$4 sm:$0xff]  }
  0x4c   : > { %v1832_v29 = vld [vmem:[%s2197_s29 + $0x164] ss:$8 sps:$4 sm:$0xff]   ;;  %v1835_v31 = vld [vmem:[%s2197_s29 + $0x160] ss:$8 sps:$4 sm:$0xff]   ;;  %v1838_v33 = vld [vmem:[%s2197_s29 + $0x174] ss:$8 sps:$4 sm:$0xff]  }
  0x4d   : > { %1113 = vmatpush1.bf16.msra.mxu1 %v1810_v14  ;;  %v1840_v34 = vld [vmem:[%s2197_s29 + $0x70] ss:$8 sps:$4 sm:$0xff]   ;;  %v1842_v36 = vld [vmem:[%s2197_s29 + $0x84] ss:$8 sps:$4 sm:$0xff]   ;;  %v1846_v38 = vld [vmem:[%s2197_s29 + $0x80] ss:$8 sps:$4 sm:$0xff]  }
  0x4e   : > { %1156 = vmatpush1.bf16.msra.mxu0 %v1811_v15  ;;  %1114 = vmatprep.subr.bf16.mxu1 %v1812_v16  ;;  %v1841_v35 = vld [vmem:[%s2197_s29 + $0x170] ss:$8 sps:$4 sm:$0xff]   ;;  %v1844_v37 = vld [vmem:[%s2197_s29 + $0x184] ss:$8 sps:$4 sm:$0xff]   ;;  %v1847_v39 = vld [vmem:[%s2197_s29 + $0x180] ss:$8 sps:$4 sm:$0xff]  }
  0x4f   : > { %1157 = vmatprep.subr.bf16.mxu0 %v1814_v17  ;;  %v1848_v40 = vld [vmem:[%s2197_s29 + $0x94] ss:$8 sps:$4 sm:$0xff]   ;;  %v1852_v42 = vld [vmem:[%s2197_s29 + $0x90] ss:$8 sps:$4 sm:$0xff]   ;;  %v1854_v44 = vld [vmem:[%s2197_s29 + $0xa4] ss:$8 sps:$4 sm:$0xff]  }
  0x50   : > { %v1850_v41 = vld [vmem:[%s2197_s29 + $0x194] ss:$8 sps:$4 sm:$0xff]   ;;  %v1853_v43 = vld [vmem:[%s2197_s29 + $0x190] ss:$8 sps:$4 sm:$0xff]   ;;  %v1856_v45 = vld [vmem:[%s2197_s29 + $0x1a4] ss:$8 sps:$4 sm:$0xff]  }
  0x51   : > { %1115 = vmatpush1.bf16.msra.mxu1 %v1816_v18  ;;  %v1858_v46 = vld [vmem:[%s2197_s29 + $0xa0] ss:$8 sps:$4 sm:$0xff]   ;;  %v1860_v48 = vld [vmem:[%s2197_s29 + $0xb4] ss:$8 sps:$4 sm:$0xff]   ;;  %v1864_v50 = vld [vmem:[%s2197_s29 + $0xb0] ss:$8 sps:$4 sm:$0xff]  }
  0x52   : > { %1158 = vmatpush1.bf16.msra.mxu0 %v1817_v19  ;;  %1116 = vmatprep.subr.bf16.mxu1 %v1818_v20  ;;  %v1859_v47 = vld [vmem:[%s2197_s29 + $0x1a0] ss:$8 sps:$4 sm:$0xff]   ;;  %v1862_v49 = vld [vmem:[%s2197_s29 + $0x1b4] ss:$8 sps:$4 sm:$0xff]   ;;  %v1865_v51 = vld [vmem:[%s2197_s29 + $0x1b0] ss:$8 sps:$4 sm:$0xff]  }
  0x53   : > { %1159 = vmatprep.subr.bf16.mxu0 %v1820_v21  ;;  %v1866_v52 = vld [vmem:[%s2197_s29 + $0xc4] ss:$8 sps:$4 sm:$0xff]   ;;  %v1870_v54 = vld [vmem:[%s2197_s29 + $0xc0] ss:$8 sps:$4 sm:$0xff]   ;;  %v1872_v56 = vld [vmem:[%s2197_s29 + $0xd4] ss:$8 sps:$4 sm:$0xff]  }
  0x54   : > { %v1868_v53 = vld [vmem:[%s2197_s29 + $0x1c4] ss:$8 sps:$4 sm:$0xff]   ;;  %v1871_v55 = vld [vmem:[%s2197_s29 + $0x1c0] ss:$8 sps:$4 sm:$0xff]   ;;  %v1874_v57 = vld [vmem:[%s2197_s29 + $0x1d4] ss:$8 sps:$4 sm:$0xff]  }
  0x55   : > { %1117 = vmatpush1.bf16.msra.mxu1 %v1822_v22  ;;  %v1876_v58 = vld [vmem:[%s2197_s29 + $0xd0] ss:$8 sps:$4 sm:$0xff]   ;;  %v1878_v60 = vld [vmem:[%s2197_s29 + $0xe4] ss:$8 sps:$4 sm:$0xff]   ;;  %v1882_v62 = vld [vmem:[%s2197_s29 + $0xe0] ss:$8 sps:$4 sm:$0xff]  }
  0x56   : > { %1160 = vmatpush1.bf16.msra.mxu0 %v1823_v23  ;;  %1118 = vmatprep.subr.bf16.mxu1 %v1824_v24  ;;  %v1877_v59 = vld [vmem:[%s2197_s29 + $0x1d0] ss:$8 sps:$4 sm:$0xff]   ;;  %v1880_v61 = vld [vmem:[%s2197_s29 + $0x1e4] ss:$8 sps:$4 sm:$0xff]   ;;  %v1883_v63 = vld [vmem:[%s2197_s29 + $0x1e0] ss:$8 sps:$4 sm:$0xff]  }
  0x57   : > { %1161 = vmatprep.subr.bf16.mxu0 %v1826_v25  ;;  %v1884_v0 = vld [vmem:[%s2197_s29 + $0xf4] ss:$8 sps:$4 sm:$0xff]   ;;  %v1888_v2 = vld [vmem:[%s2197_s29 + $0xf0] ss:$8 sps:$4 sm:$0xff]   ;;  %s2378_s8 = smov (!%p674_p11, %s1669_s8), 3  ;;  %v1212_v7 = vshrl.u32 %v1211_v6, 7 }
  0x58   : > { %v1886_v1 = vld [vmem:[%s2197_s29 + $0x1f4] ss:$8 sps:$4 sm:$0xff]   ;;  %v1889_v3 = vld [vmem:[%s2197_s29 + $0x1f0] ss:$8 sps:$4 sm:$0xff]   ;;  %s678_s11 = scalar_lea.vmem %s2366_s2, %s2378_s8  ;;  %s2299_s12 = sshll.u32 %s596_s21, 4 }
  0x59   : > { %1119 = vmatpush1.bf16.msra.mxu1 %v1828_v26  ;;  %v1890_v4 = vld [vmem:[%s2364_s0] ss:$16 sps:$4 sm:$0xff]   ;;  %v1893_v5 = vld [vmem:[%s2364_s0 + $0x8] ss:$16 sps:$4 sm:$0xff]   ;;  %v1213_v8 = vsub.s32 0, %v1212_v7  ;;  %v1217_v10 = vsub.s32 1, %v1212_v7 }
  0x5a   : > { %1162 = vmatpush1.bf16.msra.mxu0 %v1829_v27  ;;  %1120 = vmatprep.subr.bf16.mxu1 %v1830_v28  ;;  %v1209_v9 = vld [vmem:[%s678_s11] sm:$0x3]  ;;  %s605_s13 = scalar_lea.vmem [#allocation4], %s2299_s12  ;;  %s652_s15 = scalar_lea.vmem [#allocation5], %s2299_s12 }
  0x5b   : > { %1163 = vmatprep.subr.bf16.mxu0 %v1832_v29  ;;  %v1214_v11 = vrot.slane %v1209_v9, %v1213_v8  ;;  %v1218_v14 = vrot.slane %v1209_v9, %v1217_v10  ;;  %s1749_s14 = sshll.u32 (%p2032_p6), %s1958_s17, 3 }
  0x5c   : > { %s1471_s23 = scalar_lea.vmem (%p2032_p6), %s2368_s4, %s1749_s14 }
  0x5d   : > { %1121 = vmatpush1.bf16.msra.mxu1 %v1834_v30 }
  0x5e   : > { %1164 = vmatpush1.bf16.msra.mxu0 %v1835_v31  ;;  %1122 = vmatprep.subr.bf16.mxu1 %v1836_v32 }
  0x5f   : > { %1165 = vmatprep.subr.bf16.mxu0 %v1838_v33 }
  0x61   : > { %1123 = vmatpush1.bf16.msra.mxu1 %v1840_v34 }
  0x62   : > { %1166 = vmatpush1.bf16.msra.mxu0 %v1841_v35  ;;  %1124 = vmatprep.subr.bf16.mxu1 %v1842_v36 }
  0x63   : > { %1167 = vmatprep.subr.bf16.mxu0 %v1844_v37 }
  0x65   : > { %1125 = vmatpush1.bf16.msra.mxu1 %v1846_v38 }
  0x66   : > { %1168 = vmatpush1.bf16.msra.mxu0 %v1847_v39  ;;  %1126 = vmatprep.subr.bf16.mxu1 %v1848_v40 }
  0x67   : > { %1169 = vmatprep.subr.bf16.mxu0 %v1850_v41 }
  0x69   : > { %1127 = vmatpush1.bf16.msra.mxu1 %v1852_v42 }
  0x6a   : > { %1170 = vmatpush1.bf16.msra.mxu0 %v1853_v43  ;;  %1128 = vmatprep.subr.bf16.mxu1 %v1854_v44 }
  0x6b   : > { %1171 = vmatprep.subr.bf16.mxu0 %v1856_v45 }
  0x6d   : > { %1129 = vmatpush1.bf16.msra.mxu1 %v1858_v46 }
  0x6e   : > { %1172 = vmatpush1.bf16.msra.mxu0 %v1859_v47  ;;  %1130 = vmatprep.subr.bf16.mxu1 %v1860_v48 }
  0x6f   : > { %1173 = vmatprep.subr.bf16.mxu0 %v1862_v49 }
  0x71   : > { %1131 = vmatpush1.bf16.msra.mxu1 %v1864_v50 }
  0x72   : > { %1174 = vmatpush1.bf16.msra.mxu0 %v1865_v51  ;;  %1132 = vmatprep.subr.bf16.mxu1 %v1866_v52 }
  0x73   : > { %1175 = vmatprep.subr.bf16.mxu0 %v1868_v53 }
  0x75   : > { %1133 = vmatpush1.bf16.msra.mxu1 %v1870_v54 }
  0x76   : > { %1176 = vmatpush1.bf16.msra.mxu0 %v1871_v55  ;;  %1134 = vmatprep.subr.bf16.mxu1 %v1872_v56 }
  0x77   : > { %1177 = vmatprep.subr.bf16.mxu0 %v1874_v57 }
  0x79   : > { %1135 = vmatpush1.bf16.msra.mxu1 %v1876_v58 }
  0x7a   : > { %1178 = vmatpush1.bf16.msra.mxu0 %v1877_v59  ;;  %1136 = vmatprep.subr.bf16.mxu1 %v1878_v60 }
  0x7b   : > { %1179 = vmatprep.subr.bf16.mxu0 %v1880_v61 }
  0x7d   : > { %1137 = vmatpush1.bf16.msra.mxu1 %v1882_v62 }
  0x7e   : > { %1180 = vmatpush1.bf16.msra.mxu0 %v1883_v63  ;;  %1138 = vmatprep.subr.bf16.mxu1 %v1884_v0 }
  0x7f   : > { %1181 = vmatprep.subr.bf16.mxu0 %v1886_v1 }
  0x81   : > { %1139 = vmatpush1.bf16.msra.mxu1 %v1888_v2 }
  0x82   : > { %1182 = vmatpush1.bf16.msra.mxu0 %v1889_v3 }
  0x84   : > { %1141 = vmatmul.mubr.bf16.vlgmr.msra.gmra.mrb[0].mxu1 %v1890_v4 }
  0x85   : > { %1184 = vmatmul.mubr.bf16.vlgmr.msra.gmra.mrb[0].mxu0 %v1893_v5 }
 0x157   : > { %v1142_v12 = vpop.f32.mrb[0].mxu1 }
 0x158   : > { %v1185_v13 = vpop.f32.mrb[0].mxu0  ;;  %v1144_v16 = vpop.f32.mrb[1].mxu1 }
 0x159   : > { %v1186_v15 = vadd.f32 %v1185_v13, %v1142_v12  ;;  %v1187_v17 = vpop.f32.mrb[1].mxu0  ;;  %v1146_v19 = vpop.f32.mrb[2].mxu1 }
 0x15a   : > { %v1188_v18 = vadd.f32 %v1187_v17, %v1144_v16  ;;  %v1189_v20 = vpop.f32.mrb[2].mxu0  ;;  %v1148_v23 = vpop.f32.mrb[3].mxu1 }
 0x15b   : > { %v2273_v21 = vadd.f32 %v1214_v11, %v1186_v15  ;;  %v1190_v22 = vadd.f32 %v1189_v20, %v1146_v19  ;;  %v1191_v24 = vpop.f32.mrb[3].mxu0 }
 0x15c   : > { %v2275_v25 = vadd.f32 %v1218_v14, %v1188_v18  ;;  %v1192_v26 = vadd.f32 %v1191_v24, %v1148_v23 }
 0x15d   : > { %v2278_v27 = vmul.f32 0.70710677, %v2273_v21  ;;  %v2280_v28 = vadd.f32 %v1214_v11, %v1190_v22 }
 0x15e   : > { %v2283_v29 = vmul.f32 0.70710677, %v2275_v25  ;;  %v2285_v30 = vadd.f32 %v1218_v14, %v1192_v26 }
 0x15f   : > { %v1229_v31 = vand.u32 2147483647, %v2278_v27  ;;  %v2289_v32 = vmul.f32 0.70710677, %v2280_v28  ;;  %vm1305_vm0 = vcmp.lt.f32.partialorder %v2278_v27, 0.0 }
 0x160   : > { %v1230_v33 = vand.u32 2147483647, %v2283_v29  ;;  %v2293_v34 = vmul.f32 0.70710677, %v2285_v30  ;;  %vm1306_vm1 = vcmp.lt.f32.partialorder %v2283_v29, 0.0 }
 0x161   : > { %v1233_v35 = vmul.f32 0.3275911, %v1229_v31  ;;  %v1231_v36 = vand.u32 2147483647, %v2289_v32  ;;  %v1281_v45 = vsub.f32 0.0, %v1229_v31  ;;  %vm1307_vm2 = vcmp.lt.f32.partialorder %v2289_v32, 0.0 }
 0x162   : > { %v1234_v37 = vmul.f32 0.3275911, %v1230_v33  ;;  %v1232_v38 = vand.u32 2147483647, %v2293_v34  ;;  %v1282_v46 = vsub.f32 0.0, %v1230_v33  ;;  %vm1308_vm3 = vcmp.lt.f32.partialorder %v2293_v34, 0.0 }
 0x163   : > { %v1237_v39 = vadd.f32 1.0, %v1233_v35  ;;  %v1235_v40 = vmul.f32 0.3275911, %v1231_v36  ;;  %v1285_v48 = vmul.f32 %v1281_v45, %v1229_v31  ;;  %v1283_v49 = vsub.f32 0.0, %v1231_v36 }
 0x164   : > { %v1238_v41 = vadd.f32 1.0, %v1234_v37  ;;  %v1236_v42 = vmul.f32 0.3275911, %v1232_v38  ;;  %v1286_v52 = vmul.f32 %v1282_v46, %v1230_v33  ;;  %v1284_v54 = vsub.f32 0.0, %v1232_v38 }
 0x165   : > { %1896 = vrcp.f32 %v1237_v39  ;;  %v1239_v43 = vadd.f32 1.0, %v1235_v40  ;;  %v1289_v57 = vmul.f32 1.442695, %v1285_v48  ;;  %v1287_v59 = vmul.f32 %v1283_v49, %v1231_v36 }
 0x166   : > { %1898 = vrcp.f32 %v1238_v41  ;;  %v1240_v44 = vadd.f32 1.0, %v1236_v42  ;;  %v1291_v61 = vmul.f32 1.442695, %v1286_v52  ;;  %v1288_v1 = vmul.f32 %v1284_v54, %v1232_v38 }
 0x167   : > { %1900 = vrcp.f32 %v1239_v43  ;;  %v1293_v6 = vmul.f32 1.442695, %v1287_v59  ;;  %v1329_v43 = vld [vmem:[%s605_s13] sm:$0xff]  ;;  %v1320_v32 = vmul.f32 0.5, %v2285_v30 }
 0x168   : > { %1902 = vrcp.f32 %v1240_v44  ;;  %v1295_v11 = vmul.f32 1.442695, %v1288_v1 }
 0x169   : > { %1904 = vpow2.f32 %v1289_v57 }
 0x16a   : > { %1906 = vpow2.f32 %v1291_v61  ;;  %v1330_v61 = vld [vmem:[%s605_s13 + $0x8] sm:$0xff] }
 0x16b   : > { %1908 = vpow2.f32 %v1293_v6 }
 0x16c   : > { %1910 = vpow2.f32 %v1295_v11 }
 0x16f   : > { %v1897_v47 = vpop.eup %1896 }
 0x170   : > { %v1899_v50 = vpop.eup %1898  ;;  %v1245_v51 = vmul.f32 1.0614054, %v1897_v47 }
 0x171   : > { %v1246_v53 = vmul.f32 1.0614054, %v1899_v50  ;;  %v1901_v56 = vpop.eup %1900 }
 0x172   : > { %v1249_v55 = vadd.f32 -1.4531521, %v1245_v51  ;;  %v1247_v62 = vmul.f32 1.0614054, %v1901_v56  ;;  %v1903_v63 = vpop.eup %1902 }
 0x173   : > { %v1250_v58 = vadd.f32 -1.4531521, %v1246_v53  ;;  %v1248_v4 = vmul.f32 1.0614054, %v1903_v63  ;;  %v1905_v35 = vpop.eup %1904  ;;  %v1331_v53 = vunpack.c.l.bf16 %v1329_v43 }
 0x174   : > { %v1253_v60 = vmul.f32 %v1897_v47, %v1249_v55  ;;  %v1251_v3 = vadd.f32 -1.4531521, %v1247_v62  ;;  %v1907_v37 = vpop.eup %1906  ;;  %v1318_v62 = vmul.f32 0.5, %v2275_v25 }
 0x175   : > { %v1254_v0 = vmul.f32 %v1899_v50, %v1250_v58  ;;  %v1252_v9 = vadd.f32 -1.4531521, %v1248_v4  ;;  %v1909_v46 = vpop.eup %1908  ;;  %v1317_v58 = vmul.f32 0.5, %v2273_v21  ;;  %v1333_v4 = vunpack.c.l.bf16 %v1330_v61 }
 0x176   : > { %v1257_v2 = vadd.f32 1.4214138, %v1253_v60  ;;  %v1255_v8 = vmul.f32 %v1901_v56, %v1251_v3  ;;  %v1332_v60 = vunpack.c.h.bf16 %v1329_v43  ;;  %v1319_v21 = vmul.f32 0.5, %v2280_v28 }
 0x177   : > { %v1258_v5 = vadd.f32 1.4214138, %v1254_v0  ;;  %v1256_v14 = vmul.f32 %v1903_v63, %v1252_v9 }
 0x178   : > { %v1261_v7 = vmul.f32 %v1897_v47, %v1257_v2  ;;  %v1259_v13 = vadd.f32 1.4214138, %v1255_v8 }
 0x179   : > { %v1262_v10 = vmul.f32 %v1899_v50, %v1258_v5  ;;  %v1260_v18 = vadd.f32 1.4214138, %v1256_v14 }
 0x17a   : > { %v1265_v12 = vadd.f32 -0.28449672, %v1261_v7  ;;  %v1263_v17 = vmul.f32 %v1901_v56, %v1259_v13 }
 0x17b   : > { %v1266_v15 = vadd.f32 -0.28449672, %v1262_v10  ;;  %v1264_v23 = vmul.f32 %v1903_v63, %v1260_v18 }
 0x17c   : > { %v1269_v16 = vmul.f32 %v1897_v47, %v1265_v12  ;;  %v1267_v22 = vadd.f32 -0.28449672, %v1263_v17  ;;  %v1334_v12 = vunpack.c.h.bf16 %v1330_v61 }
 0x17d   : > { %v1270_v19 = vmul.f32 %v1899_v50, %v1266_v15  ;;  %v1268_v33 = vadd.f32 -0.28449672, %v1264_v23 }
 0x17e   : > { %v1273_v20 = vadd.f32 0.2548296, %v1269_v16  ;;  %v1271_v31 = vmul.f32 %v1901_v56, %v1267_v22 }
 0x17f   : > { %v1274_v24 = vadd.f32 0.2548296, %v1270_v19  ;;  %v1272_v40 = vmul.f32 %v1903_v63, %v1268_v33 }
 0x180   : > { %v1277_v26 = vmul.f32 %v1897_v47, %v1273_v20  ;;  %v1275_v39 = vadd.f32 0.2548296, %v1271_v31  ;;  %v1911_v47 = vpop.eup %1910 }
 0x181   : > { %v1278_v36 = vmul.f32 %v1899_v50, %v1274_v24  ;;  %v1276_v45 = vadd.f32 0.2548296, %v1272_v40 }
 0x182   : > { %v1297_v38 = vmul.f32 %v1905_v35, %v1277_v26  ;;  %v1279_v44 = vmul.f32 %v1901_v56, %v1275_v39 }
 0x183   : > { %v1298_v41 = vmul.f32 %v1907_v37, %v1278_v36  ;;  %v1280_v52 = vmul.f32 %v1903_v63, %v1276_v45 }
 0x184   : > { %v1301_v42 = vsub.f32 1.0, %v1297_v38  ;;  %v1299_v51 = vmul.f32 %v1909_v46, %v1279_v44 }
 0x185   : > { %v1302_v48 = vsub.f32 1.0, %v1298_v41  ;;  %v1300_v57 = vmul.f32 %v1911_v47, %v1280_v52 }
 0x186   : > { %v1309_v49 = vsub.f32 0.0, %v1301_v42  ;;  %v1303_v55 = vsub.f32 1.0, %v1299_v51 }
 0x187   : > { %v1310_v50 = vsub.f32 0.0, %v1302_v48  ;;  %v1304_v1 = vsub.f32 1.0, %v1300_v57 }
 0x188   : > { %v1313_v54 = vsel %vm1305_vm0, %v1309_v49, %v1301_v42  ;;  %v1311_v63 = vsub.f32 0.0, %v1303_v55 }
 0x189   : > { %v1321_v59 = vadd.f32 1.0, %v1313_v54  ;;  %v1314_v56 = vsel %vm1306_vm1, %v1310_v50, %v1302_v48  ;;  %v1312_v29 = vsub.f32 0.0, %v1304_v1 }
 0x18a   : > { %v1322_v0 = vadd.f32 1.0, %v1314_v56  ;;  %v1315_v3 = vsel %vm1307_vm2, %v1311_v63, %v1303_v55 }
 0x18b   : > { %v1325_v2 = vmul.f32 %v1321_v59, %v1317_v58  ;;  %v1323_v6 = vadd.f32 1.0, %v1315_v3  ;;  %v1316_v25 = vsel %vm1308_vm3, %v1312_v29, %v1304_v1 }
 0x18c   : > { %v1326_v27 = vmul.f32 %v1322_v0, %v1318_v62  ;;  %v1324_v10 = vadd.f32 1.0, %v1316_v25 }
 0x18d   : > { %v2307_v5 = vadd.f32 %v1331_v53, %v1325_v2  ;;  %v1327_v9 = vmul.f32 %v1323_v6, %v1319_v21 }
 0x18e   : > { %v2311_v7 = vadd.f32 %v1332_v60, %v1326_v27  ;;  %v1328_v14 = vmul.f32 %v1324_v10, %v1320_v32 }
 0x18f   : > { %v2314_v8 = vmul.f32 0.70710677, %v2307_v5  ;;  %v2321_v28 = vadd.f32 %v1333_v4, %v1327_v9 }
 0x190   : > { %v2318_v11 = vmul.f32 0.70710677, %v2311_v7  ;;  %v2327_v18 = vadd.f32 %v1334_v12, %v1328_v14 }
 0x191   : > { %v1343_v13 = vand.u32 2147483647, %v2314_v8  ;;  %v2325_v16 = vmul.f32 0.70710677, %v2321_v28  ;;  %vm1419_vm4 = vcmp.lt.f32.partialorder %v2314_v8, 0.0 }
 0x192   : > { %v1344_v34 = vand.u32 2147483647, %v2318_v11  ;;  %v2331_v22 = vmul.f32 0.70710677, %v2327_v18  ;;  %vm1420_vm5 = vcmp.lt.f32.partialorder %v2318_v11, 0.0 }
 0x193   : > { %v1347_v15 = vmul.f32 0.3275911, %v1343_v13  ;;  %v1345_v19 = vand.u32 2147483647, %v2325_v16  ;;  %v1395_v35 = vsub.f32 0.0, %v1343_v13  ;;  %vm1421_vm6 = vcmp.lt.f32.partialorder %v2325_v16, 0.0 }
 0x194   : > { %v1348_v17 = vmul.f32 0.3275911, %v1344_v34  ;;  %v1346_v24 = vand.u32 2147483647, %v2331_v22  ;;  %v1396_v36 = vsub.f32 0.0, %v1344_v34  ;;  %vm1422_vm7 = vcmp.lt.f32.partialorder %v2331_v22, 0.0 }
 0x195   : > { %v1351_v30 = vadd.f32 1.0, %v1347_v15  ;;  %v1349_v23 = vmul.f32 0.3275911, %v1345_v19  ;;  %v1399_v38 = vmul.f32 %v1395_v35, %v1343_v13  ;;  %v1397_v39 = vsub.f32 0.0, %v1345_v19 }
 0x196   : > { %v1352_v20 = vadd.f32 1.0, %v1348_v17  ;;  %v1350_v31 = vmul.f32 0.3275911, %v1346_v24  ;;  %v1400_v42 = vmul.f32 %v1396_v36, %v1344_v34  ;;  %v1398_v45 = vsub.f32 0.0, %v1346_v24 }
 0x197   : > { %1912 = vrcp.f32 %v1351_v30  ;;  %v1353_v26 = vadd.f32 1.0, %v1349_v23  ;;  %v1403_v48 = vmul.f32 1.442695, %v1399_v38  ;;  %v1401_v51 = vmul.f32 %v1397_v39, %v1345_v19 }
 0x198   : > { %1914 = vrcp.f32 %v1352_v20  ;;  %v1354_v33 = vadd.f32 1.0, %v1350_v31  ;;  %v1405_v47 = vmul.f32 1.442695, %v1400_v42  ;;  %v1402_v58 = vmul.f32 %v1398_v45, %v1346_v24 }
 0x199   : > { %1916 = vrcp.f32 %v1353_v26  ;;  %v1407_v56 = vmul.f32 1.442695, %v1401_v51 }
 0x19a   : > { %1918 = vrcp.f32 %v1354_v33  ;;  %v1409_v27 = vmul.f32 1.442695, %v1402_v58 }
 0x19b   : > { %1920 = vpow2.f32 %v1403_v48 }
 0x19c   : > { %1922 = vpow2.f32 %v1405_v47 }
 0x19d   : > { %1924 = vpow2.f32 %v1407_v56 }
 0x19e   : > { %1926 = vpow2.f32 %v1409_v27 }
 0x1a1   : > { %v1913_v37 = vpop.eup %1912 }
 0x1a2   : > { %v1915_v40 = vpop.eup %1914  ;;  %v1359_v41 = vmul.f32 1.0614054, %v1913_v37 }
 0x1a3   : > { %v1360_v43 = vmul.f32 1.0614054, %v1915_v40  ;;  %v1917_v46 = vpop.eup %1916 }
 0x1a4   : > { %v1363_v44 = vadd.f32 -1.4531521, %v1359_v41  ;;  %v1361_v53 = vmul.f32 1.0614054, %v1917_v46  ;;  %v1919_v54 = vpop.eup %1918 }
 0x1a5   : > { %v1364_v49 = vadd.f32 -1.4531521, %v1360_v43  ;;  %v1362_v60 = vmul.f32 1.0614054, %v1919_v54  ;;  %v1921_v34 = vpop.eup %1920 }
 0x1a6   : > { %v1367_v52 = vmul.f32 %v1913_v37, %v1363_v44  ;;  %v1365_v57 = vadd.f32 -1.4531521, %v1361_v53  ;;  %v1923_v30 = vpop.eup %1922  ;;  %v1431_v44 = vmul.f32 0.5, %v2307_v5 }
 0x1a7   : > { %v1368_v50 = vmul.f32 %v1915_v40, %v1364_v49  ;;  %v1366_v63 = vadd.f32 -1.4531521, %v1362_v60  ;;  %v1925_v33 = vpop.eup %1924  ;;  %v1432_v49 = vmul.f32 0.5, %v2311_v7  ;;  %v1434_v7 = vmul.f32 0.5, %v2327_v18 }
 0x1a8   : > { %v1371_v55 = vadd.f32 1.4214138, %v1367_v52  ;;  %v1369_v62 = vmul.f32 %v1917_v46, %v1365_v57  ;;  %v1927_v42 = vpop.eup %1926  ;;  %v1433_v57 = vmul.f32 0.5, %v2321_v28 }
 0x1a9   : > { %v1372_v59 = vadd.f32 1.4214138, %v1368_v50  ;;  %v1370_v4 = vmul.f32 %v1919_v54, %v1366_v63 }
 0x1aa   : > { %v1375_v61 = vmul.f32 %v1913_v37, %v1371_v55  ;;  %v1373_v2 = vadd.f32 1.4214138, %v1369_v62 }
 0x1ab   : > { %v1376_v0 = vmul.f32 %v1915_v40, %v1372_v59  ;;  %v1374_v25 = vadd.f32 1.4214138, %v1370_v4 }
 0x1ac   : > { %v1379_v1 = vadd.f32 -0.28449672, %v1375_v61  ;;  %v1377_v21 = vmul.f32 %v1917_v46, %v1373_v2 }
 0x1ad   : > { %v1380_v3 = vadd.f32 -0.28449672, %v1376_v0  ;;  %v1378_v12 = vmul.f32 %v1919_v54, %v1374_v25 }
 0x1ae   : > { %v1383_v29 = vmul.f32 %v1913_v37, %v1379_v1  ;;  %v1381_v32 = vadd.f32 -0.28449672, %v1377_v21 }
 0x1af   : > { %v1384_v6 = vmul.f32 %v1915_v40, %v1380_v3  ;;  %v1382_v17 = vadd.f32 -0.28449672, %v1378_v12 }
 0x1b0   : > { %v1387_v9 = vadd.f32 0.2548296, %v1383_v29  ;;  %v1385_v14 = vmul.f32 %v1917_v46, %v1381_v32 }
 0x1b1   : > { %v1388_v10 = vadd.f32 0.2548296, %v1384_v6  ;;  %v1386_v24 = vmul.f32 %v1919_v54, %v1382_v17 }
 0x1b2   : > { %v1391_v13 = vmul.f32 %v1913_v37, %v1387_v9  ;;  %v1389_v20 = vadd.f32 0.2548296, %v1385_v14 }
 0x1b3   : > { %v1392_v15 = vmul.f32 %v1915_v40, %v1388_v10  ;;  %v1390_v36 = vadd.f32 0.2548296, %v1386_v24 }
 0x1b4   : > { %v1411_v19 = vmul.f32 %v1921_v34, %v1391_v13  ;;  %v1393_v31 = vmul.f32 %v1917_v46, %v1389_v20 }
 0x1b5   : > { %v1412_v23 = vmul.f32 %v1923_v30, %v1392_v15  ;;  %v1394_v37 = vmul.f32 %v1919_v54, %v1390_v36 }
 0x1b6   : > { %v1415_v26 = vsub.f32 1.0, %v1411_v19  ;;  %v1413_v39 = vmul.f32 %v1925_v33, %v1393_v31 }
 0x1b7   : > { %v1416_v35 = vsub.f32 1.0, %v1412_v23  ;;  %v1414_v46 = vmul.f32 %v1927_v42, %v1394_v37 }
 0x1b8   : > { %v1423_v38 = vsub.f32 0.0, %v1415_v26  ;;  %v1417_v40 = vsub.f32 1.0, %v1413_v39 }
 0x1b9   : > { %v1424_v41 = vsub.f32 0.0, %v1416_v35  ;;  %v1418_v8 = vsub.f32 1.0, %v1414_v46 }
 0x1ba   : > { %v1427_v43 = vsel %vm1419_vm4, %v1423_v38, %v1415_v26  ;;  %v1425_v52 = vsub.f32 0.0, %v1417_v40 }
 0x1bb   : > { %v1435_v45 = vadd.f32 1.0, %v1427_v43  ;;  %v1428_v48 = vsel %vm1420_vm5, %v1424_v41, %v1416_v35  ;;  %v1426_v55 = vsub.f32 0.0, %v1418_v8 }
 0x1bc   : > { %v1436_v51 = vadd.f32 1.0, %v1428_v48  ;;  %v1429_v50 = vsel %vm1421_vm6, %v1425_v52, %v1417_v40 }
 0x1bd   : > { %v1439_v47 = vmul.f32 %v1435_v45, %v1431_v44  ;;  %v1437_v54 = vadd.f32 1.0, %v1429_v50  ;;  %v1430_v5 = vsel %vm1422_vm7, %v1426_v55, %v1418_v8 }
 0x1be   : > { %v1440_v53 = vmul.f32 %v1436_v51, %v1432_v49  ;;  %v1438_v59 = vadd.f32 1.0, %v1430_v5  ;;  %1463 = sbr.rel (!%p2032_p6) target bundleno = 461 (0x1cd), region = 124 }
 0x1bf   : > { %v1441_v58 = vmul.f32 %v1437_v54, %v1433_v57 }
 0x1c0   : > { %v1747_v11 = vpack.c.bf16 %v1440_v53, %v1439_v47  ;;  %v1442_v56 = vmul.f32 %v1438_v59, %v1434_v7 }
 0x1c2   : > { %1455 = vst [vmem:[%s652_s15] sm:$0xff] %v1747_v11  ;;  %v1748_v60 = vpack.c.bf16 %v1442_v56, %v1441_v58 }
 0x1c4   : > { %1456 = vst [vmem:[%s652_s15 + $0x8] sm:$0xff] %v1748_v60 }
 0x1c9   : > { %v1501_v16 = vld [vmem:[%s652_s15] sm:$0xff] }
 0x1ca   : > { %1502 = vst [vmem:[%s1471_s23] sm:$0xff] %v1501_v16 }
 0x1cb   : > { %v1503_v61 = vld [vmem:[%s652_s15 + $0x8] sm:$0xff] }
 0x1cc   : > { %1504 = vst [vmem:[%s1471_s23 + $0x10] sm:$0xff] %v1503_v61 }
 0x1cd PF: > { %s14_s19 = sadd.s32 1, %s1966_s19   ;;  %s2371_s15 = smov %s1954_s16 }
 0x1ce   : > { %p11_p12 = scmp.ge.s32.totalorder %s14_s19, 4   ;;  %s2372_s16 = smov %s2037_s26 }
 0x1cf   : > { %s2373_s17 = smov %s1962_s18  ;;  %s2374_s18 = smov %s2376_s20 }
 0x1d0   :  { %13 = sbr.rel (!%p11_p12) target bundleno = 3 (0x3), region = 207 }

</bundles_post_ra>
